<compile_context>
chip_gen: v5e
topology: v5e:2x2
jax: 0.10.0
libtpu: 0.0.40
codegen_flags: <defaults>
</compile_context>

<pallas_src>
import functools
import math

import jax
import jax.numpy as jnp
import numpy as np
from jax import lax
from jax.experimental import pallas as pl
from jax.experimental.pallas import tpu as pltpu


def _round_up(x, m):
    return (x + m - 1) // m * m


def _cdiv(a, b):
    return (a + b - 1) // b


# ---------------------------------------------------------------------------
# Pallas kernel #1: weight-resident matmul + bias + SiLU  (cv1 = 1x1 conv+BN+SiLU)
# ---------------------------------------------------------------------------
def _mm_bias_silu_kernel(a_ref, w_ref, b_ref, o_ref):
    # bf16 operands feed the MXU, accumulation in f32.
    acc = jnp.dot(a_ref[...], w_ref[...], preferred_element_type=jnp.float32)
    z = acc + b_ref[...]
    # SiLU(z) = z * sigmoid(z); tanh form is exact and runs on the EUP.
    out = z * (0.5 * (jnp.tanh(0.5 * z) + 1.0))
    o_ref[...] = out.astype(o_ref.dtype)


@functools.lru_cache(maxsize=None)
def _build_matmul(Mp, Kp, Np, tm, out_dtype_name):
    out_dtype = jnp.dtype(out_dtype_name)
    # VMEM budget from the actual buffers (no arbitrary inflation):
    #   A blocks (x2 double-buffer, bf16) + resident W (x2) + bias (x2, f32)
    #   + out blocks (x2) + f32 accumulator value + headroom.
    need = (2 * tm * Kp * 2 + 2 * Kp * Np * 2 + 2 * Np * 4
            + 2 * tm * Np * out_dtype.itemsize + tm * Np * 4)
    vmem_limit = int(min(max(need + (4 << 20), 8 << 20), 40 << 20))
    return pl.pallas_call(
        _mm_bias_silu_kernel,
        out_shape=jax.ShapeDtypeStruct((Mp, Np), out_dtype),
        grid_spec=pltpu.PrefetchScalarGridSpec(
            num_scalar_prefetch=0,
            grid=(Mp // tm,),
            in_specs=[
                pl.BlockSpec((tm, Kp), lambda i: (i, 0)),   # A: M-tiled
                pl.BlockSpec((Kp, Np), lambda i: (0, 0)),   # W: VMEM-resident
                pl.BlockSpec((1, Np), lambda i: (0, 0)),    # folded-BN bias
            ],
            out_specs=pl.BlockSpec((tm, Np), lambda i: (i, 0)),
        ),
        compiler_params=pltpu.CompilerParams(
            dimension_semantics=("parallel",),
            vmem_limit_bytes=vmem_limit),
    )


def _pick_tm(M):
    """>= 4 evenly sized M-blocks (>= 2 per v7x core), each <= 512 rows,
    rounded to the bf16 sublane pack (16) to minimize padded rows."""
    nblk = max(4, _cdiv(M, 512))
    return max(16, _round_up(_cdiv(M, nblk), 16))


def _mxu_matmul(a, w, b, out_dtype):
    """SiLU(a @ w + b).  a:(M,Kp) bf16, w:(Kp,Np) bf16, b:(1,Np) f32."""
    M, Kp = a.shape
    Kp2, Np = w.shape
    assert Kp == Kp2
    tm = _pick_tm(M)
    Mp = _round_up(M, tm)
    if Mp != M:
        a = jnp.pad(a, ((0, Mp - M), (0, 0)))
    out = _build_matmul(Mp, Kp, Np, tm, jnp.dtype(out_dtype).name)(a, w, b)
    return out[:M] if Mp != M else out


# ---------------------------------------------------------------------------
# Pallas kernel #2: fused [3x cascaded 5x5/s1 max-pool  +  concat  +  cv2]
#   in : (B, H, W, C) bf16   (cv1 output, C = padded hidden channels)
#   out: (B, H*W, N2p) f32   = SiLU(concat([x,y1,y2,y3]) @ W2 + b2)
# The concat never touches HBM: each pooled tensor is contracted immediately
# against its (C, N2p) slab of the VMEM-resident W2 and accumulated in f32.
# ---------------------------------------------------------------------------
def _sppf_pool_cv2_kernel(x_ref, w2_ref, b2_ref, o_ref, pad_ref, *, k):
    p = k // 2
    L = 16                                    # bf16 sublane-pack aligned margin
    _, H, W, C = x_ref.shape
    HW = H * W
    Wp = L + W + p                            # padded W extent of the scratch

    # -inf border strips only (interior is fully overwritten by each pool pass).
    # All strip stores start at aligned offsets (0, 32, row slices).
    pad_ref[0:p, :, :] = jnp.full((p, Wp, C), -jnp.inf, pad_ref.dtype)
    pad_ref[p + H:p + H + p, :, :] = jnp.full((p, Wp, C), -jnp.inf, pad_ref.dtype)
    pad_ref[:, 0:L, :] = jnp.full((H + 2 * p, L, C), -jnp.inf, pad_ref.dtype)
    pad_ref[:, L + W:L + W + p, :] = jnp.full((H + 2 * p, p, C), -jnp.inf,
                                              pad_ref.dtype)

    def pool_once(v):                         # v: (H, W, C) bf16
        pad_ref[p:p + H, L:L + W, :] = v      # aligned sublane offset (L = 16)
        # separable k x k max: W direction (scratch reads), then H (major axis)
        cm = pad_ref[:, L - p:L - p + W, :]
        for dw in range(1, k):
            cm = jnp.maximum(cm, pad_ref[:, L - p + dw:L - p + dw + W, :])
        out = cm[0:H]
        for dh in range(1, k):
            out = jnp.maximum(out, cm[dh:dh + H])
        return out

    def cv2_partial(v, g):                    # group-g slab of cv2, f32 acc
        return jnp.dot(v.reshape(HW, C), w2_ref[g * C:(g + 1) * C, :],
                       preferred_element_type=jnp.float32)

    x = x_ref[0]                              # (H, W, C) bf16
    acc = cv2_partial(x, 0)
    y1 = pool_once(x)
    acc = acc + cv2_partial(y1, 1)
    y2 = pool_once(y1)
    acc = acc + cv2_partial(y2, 2)
    y3 = pool_once(y2)
    acc = acc + cv2_partial(y3, 3)

    z = acc + b2_ref[...]                     # (HW, N2p) f32 + (1, N2p)
    o_ref[0] = (z * (0.5 * (jnp.tanh(0.5 * z) + 1.0))).astype(o_ref.dtype)


@functools.lru_cache(maxsize=None)
def _build_pool_cv2(B, H, W, C, N2p, k):
    p = k // 2
    L = 16
    HW = H * W
    # Explicit VMEM budget (v7x has only 64 MiB per TensorCore):
    need = (2 * HW * C * 2                        # double-buffered bf16 input
            + 2 * 4 * C * N2p * 2                 # double-buffered bf16 W2
            + 2 * N2p * 4                         # bias
            + 2 * HW * N2p * 4                    # double-buffered f32 output
            + (H + 2 * p) * (L + W + p) * C * 2   # bf16 pool scratch
            + HW * N2p * 4                        # f32 accumulator value
            + 2 * (H + 2 * p) * W * C * 2)        # pooling temporaries
    vmem_limit = int(min(max(need + (4 << 20), 8 << 20), 48 << 20))
    kernel = functools.partial(_sppf_pool_cv2_kernel, k=k)
    # TODO(synk): for B == 1 on v7x, split the reduction over the 4 groups (or
    # spatial row stripes with halos) across a second grid axis to feed both
    # TensorCores; with grid=(B,) a single image runs on one core.
    return pl.pallas_call(
        kernel,
        out_shape=jax.ShapeDtypeStruct((B, HW, N2p), jnp.float32),
        grid_spec=pltpu.PrefetchScalarGridSpec(
            num_scalar_prefetch=0,
            grid=(B,),
            in_specs=[
                pl.BlockSpec((1, H, W, C), lambda b: (b, 0, 0, 0)),   # cv1 out
                pl.BlockSpec((4 * C, N2p), lambda b: (0, 0)),         # W2 resident
                pl.BlockSpec((1, N2p), lambda b: (0, 0)),             # b2 resident
            ],
            out_specs=pl.BlockSpec((1, HW, N2p), lambda b: (b, 0, 0)),
            scratch_shapes=[
                pltpu.VMEM((H + 2 * p, L + W + p, C), jnp.bfloat16)],
        ),
        compiler_params=pltpu.CompilerParams(
            dimension_semantics=("parallel",),
            vmem_limit_bytes=vmem_limit),
    )


# ---------------------------------------------------------------------------
# SPPF module (parameters synthesized deterministically; BN folded at init)
# ---------------------------------------------------------------------------
def _fold_bn(w, gamma, beta, mean, var, eps=1e-5):
    """Fold eval-mode BatchNorm2d into a (Cin, Cout) 1x1-conv weight + bias."""
    scale = gamma / jnp.sqrt(var + eps)
    return w * scale[None, :], beta - mean * scale


class SPPF:
    """JAX/Pallas mirror of YOLOv5 SPPF (inference / eval-mode semantics)."""

    def __init__(self, c1, c2, k=5, key=jax.random.PRNGKey(0)):
        assert c1 % 2 == 0
        c_ = c1 // 2
        self.c1, self.c2, self.c_, self.k = c1, c2, c_, k
        ks = jax.random.split(key, 10)

        # cv1 = Conv2d(c1, c_, 1, bias=False) + BN(c_) + SiLU
        w1 = jax.random.normal(ks[0], (c1, c_), jnp.float32) / math.sqrt(c1)
        g1 = 1.0 + 0.1 * jax.random.normal(ks[1], (c_,), jnp.float32)
        be1 = 0.1 * jax.random.normal(ks[2], (c_,), jnp.float32)
        mu1 = 0.1 * jax.random.normal(ks[3], (c_,), jnp.float32)
        v1 = jax.random.uniform(ks[4], (c_,), jnp.float32, 0.5, 1.5)
        w1f, b1f = _fold_bn(w1, g1, be1, mu1, v1)

        # cv2 = Conv2d(4*c_, c2, 1, bias=False) + BN(c2) + SiLU
        w2 = jax.random.normal(ks[5], (4 * c_, c2), jnp.float32) / math.sqrt(4 * c_)
        g2 = 1.0 + 0.1 * jax.random.normal(ks[6], (c2,), jnp.float32)
        be2 = 0.1 * jax.random.normal(ks[7], (c2,), jnp.float32)
        mu2 = 0.1 * jax.random.normal(ks[8], (c2,), jnp.float32)
        v2 = jax.random.uniform(ks[9], (c2,), jnp.float32, 0.5, 1.5)
        w2f, b2f = _fold_bn(w2, g2, be2, mu2, v2)

        # keep unpadded f32 copies for the pure-JAX reference check
        self._refw = (w1f, b1f, w2f, b2f)

        # Pad to (·,128)-aligned shapes and cast to bf16 ONCE, at init.
        self.k1p = _round_up(c1, 128)     # cv1 contraction dim
        self.cp = _round_up(c_, 128)      # padded hidden channels (pool lanes)
        self.n2p = _round_up(c2, 128)     # cv2 output dim
        self.w1 = jnp.pad(w1f, ((0, self.k1p - c1),
                                (0, self.cp - c_))).astype(jnp.bfloat16)
        self.b1 = jnp.pad(b1f, (0, self.cp - c_)).reshape(1, self.cp)
        # cv2 rows ordered (x | y1 | y2 | y3), each group zero-padded to cp so
        # they line up with the fused kernel's padded channel lanes.
        w2g = jnp.pad(w2f.reshape(4, c_, c2),
                      ((0, 0), (0, self.cp - c_), (0, self.n2p - c2)))
        self.w2 = w2g.reshape(4 * self.cp, self.n2p).astype(jnp.bfloat16)
        self.b2 = jnp.pad(b2f, (0, self.n2p - c2)).reshape(1, self.n2p)

        self._fwd = jax.jit(self._forward_impl)

    def forward(self, x):
        return self._fwd(x)

    def _forward_impl(self, x):
        B, C1, H, W = x.shape
        M = B * H * W
        # NCHW -> channels-last rows: a 1x1 conv is then a plain matmul.
        a = x.transpose(0, 2, 3, 1).reshape(M, C1)
        if self.k1p != C1:
            a = jnp.pad(a, ((0, 0), (0, self.k1p - C1)))
        a = a.astype(jnp.bfloat16)

        h = _mxu_matmul(a, self.w1, self.b1, jnp.bfloat16)        # (M, cp)
        h = h.reshape(B, H, W, self.cp)

        # fused 3x max-pool + concat + cv2 (bias + SiLU), concat never hits HBM
        out = _build_pool_cv2(B, H, W, self.cp, self.n2p,
                              self.k)(h, self.w2, self.b2)        # (B,HW,n2p)
        out = out[:, :, :self.c2].reshape(B, H, W, self.c2)
        return out.transpose(0, 3, 1, 2)                          # NCHW, f32

    # pure-JAX f32 reference (same eval-mode semantics) for sanity checking
    def reference(self, x):
        w1f, b1f, w2f, b2f = self._refw
        B, C1, H, W = x.shape
        silu = lambda z: z * jax.nn.sigmoid(z)
        p = self.k // 2

        def pool(v):
            return lax.reduce_window(v, -jnp.inf, lax.max,
                                     (1, self.k, self.k, 1), (1, 1, 1, 1),
                                     [(0, 0), (p, p), (p, p), (0, 0)])

        a = x.transpose(0, 2, 3, 1).reshape(-1, C1)
        h = silu(a @ w1f + b1f).reshape(B, H, W, self.c_)
        y1 = pool(h); y2 = pool(y1); y3 = pool(y2)
        cat = jnp.concatenate([h, y1, y2, y3], axis=-1).reshape(-1, 4 * self.c_)
        out = silu(cat @ w2f + b2f).reshape(B, H, W, self.c2)
        return out.transpose(0, 3, 1, 2)


if __name__ == "__main__":
    key = jax.random.PRNGKey(0)
    k_model, k_x = jax.random.split(key)

    # Small SPPF: c1=64 -> hidden 32, c2=128, 16x16 spatial, batch 2 (NCHW).
    B, C1, H, W, C2 = 2, 64, 16, 16, 128
    model = SPPF(c1=C1, c2=C2, k=5, key=k_model)
    x = jax.random.normal(k_x, (B, C1, H, W), jnp.float32)

    out = jax.block_until_ready(model.forward(x))
    assert out.shape == (B, C2, H, W), out.shape
    assert out.dtype == jnp.float32

    # Sanity check vs. a pure-JAX f32 reference (bf16 MXU operands -> loose tol).
    ref = jax.block_until_ready(jax.jit(model.reference)(x))
    np.testing.assert_allclose(np.asarray(out), np.asarray(ref),
                               rtol=5e-2, atol=2e-1)
    print("KERNEL_OK")
</pallas_src>

<mosaic_0001>
module attributes {stable_mosaic.version = 11 : i64} {
  func.func @_sppf_pool_cv2_kernel(%arg0: i32, %arg1: memref<1x16x16x128xbf16, #tpu.memory_space<vmem>>, %arg2: memref<512x128xbf16, #tpu.memory_space<vmem>>, %arg3: memref<1x128xf32, #tpu.memory_space<vmem>>, %arg4: memref<1x256x128xf32, #tpu.memory_space<vmem>>, %arg5: memref<20x34x128xbf16, #tpu.memory_space<vmem>>) attributes {dimension_semantics = [#tpu.dimension_semantics<parallel>], iteration_bounds = array<i64: 2>, scalar_prefetch = 0 : i64, scratch_operands = 1 : i64, tpu.core_type = #tpu.core_type<tc>, window_params = [{transform_indices = @transform_0, window_bounds = array<i64: 1, 16, 16, 128>}, {pipeline_mode = #tpu.pipeline_mode<synchronous>, transform_indices = @transform_1, window_bounds = array<i64: 512, 128>}, {pipeline_mode = #tpu.pipeline_mode<synchronous>, transform_indices = @transform_2, window_bounds = array<i64: 1, 128>}, {transform_indices = @transform_3, window_bounds = array<i64: 1, 256, 128>}]} {
    %cst = arith.constant 0xFF80 : bf16
    %0 = vector.broadcast %cst : bf16 to vector<2x34x128xbf16>
    %c0 = arith.constant 0 : index
    %c0_0 = arith.constant 0 : index
    %c0_1 = arith.constant 0 : index
    %1 = vector.load %arg5[%c0, %c0_0, %c0_1] : memref<20x34x128xbf16, #tpu.memory_space<vmem>>, vector<2x34x128xbf16>
    tpu.vector_store %arg5[%c0, %c0_0, %c0_1], %0 {strides = array<i32>} : memref<20x34x128xbf16, #tpu.memory_space<vmem>>, vector<2x34x128xbf16>,
    %cst_2 = arith.constant 0xFF80 : bf16
    %2 = vector.broadcast %cst_2 : bf16 to vector<2x34x128xbf16>
    %c18 = arith.constant 18 : index
    %c0_3 = arith.constant 0 : index
    %c0_4 = arith.constant 0 : index
    %3 = vector.load %arg5[%c18, %c0_3, %c0_4] : memref<20x34x128xbf16, #tpu.memory_space<vmem>>, vector<2x34x128xbf16>
    tpu.vector_store %arg5[%c18, %c0_3, %c0_4], %2 {strides = array<i32>} : memref<20x34x128xbf16, #tpu.memory_space<vmem>>, vector<2x34x128xbf16>,
    %cst_5 = arith.constant 0xFF80 : bf16
    %4 = vector.broadcast %cst_5 : bf16 to vector<20x16x128xbf16>
    %c0_6 = arith.constant 0 : index
    %c0_7 = arith.constant 0 : index
    %c0_8 = arith.constant 0 : index
    %5 = vector.load %arg5[%c0_6, %c0_7, %c0_8] : memref<20x34x128xbf16, #tpu.memory_space<vmem>>, vector<20x16x128xbf16>
    tpu.vector_store %arg5[%c0_6, %c0_7, %c0_8], %4 {strides = array<i32>} : memref<20x34x128xbf16, #tpu.memory_space<vmem>>, vector<20x16x128xbf16>,
    %cst_9 = arith.constant 0xFF80 : bf16
    %6 = vector.broadcast %cst_9 : bf16 to vector<20x2x128xbf16>
    %c0_10 = arith.constant 0 : index
    %c32 = arith.constant 32 : index
    %c0_11 = arith.constant 0 : index
    %7 = vector.load %arg5[%c0_10, %c32, %c0_11] : memref<20x34x128xbf16, #tpu.memory_space<vmem>>, vector<20x2x128xbf16>
    tpu.vector_store %arg5[%c0_10, %c32, %c0_11], %6 {strides = array<i32>} : memref<20x34x128xbf16, #tpu.memory_space<vmem>>, vector<20x2x128xbf16>,
    %c0_12 = arith.constant 0 : index
    %c0_13 = arith.constant 0 : index
    %c0_14 = arith.constant 0 : index
    %c0_15 = arith.constant 0 : index
    %8 = vector.load %arg1[%c0_12, %c0_13, %c0_14, %c0_15] : memref<1x16x16x128xbf16, #tpu.memory_space<vmem>>, vector<1x16x16x128xbf16>
    %9 = vector.shape_cast %8 : vector<1x16x16x128xbf16> to vector<16x16x128xbf16>
    %10 = vector.shape_cast %9 : vector<16x16x128xbf16> to vector<256x128xbf16>
    %c0_16 = arith.constant 0 : index
    %c0_17 = arith.constant 0 : index
    %11 = vector.load %arg2[%c0_16, %c0_17] : memref<512x128xbf16, #tpu.memory_space<vmem>>, vector<128x128xbf16>
    %cst_18 = arith.constant dense<0.000000e+00> : vector<256x128xf32>
    %12 = tpu.matmul %10, %11, %cst_18 {dimension_numbers = #tpu.dot_dimension_numbers<[1], [0], [0], [1], [0, 0, 1, 1], [], []>} : vector<256x128xbf16>, vector<128x128xbf16>, vector<256x128xf32> -> vector<256x128xf32>
    %c2 = arith.constant 2 : index
    %c16 = arith.constant 16 : index
    %c0_19 = arith.constant 0 : index
    %13 = vector.load %arg5[%c2, %c16, %c0_19] : memref<20x34x128xbf16, #tpu.memory_space<vmem>>, vector<16x16x128xbf16>
    tpu.vector_store %arg5[%c2, %c16, %c0_19], %9 {strides = array<i32>} : memref<20x34x128xbf16, #tpu.memory_space<vmem>>, vector<16x16x128xbf16>,
    %c0_20 = arith.constant 0 : index
    %c14 = arith.constant 14 : index
    %c0_21 = arith.constant 0 : index
    %14 = vector.load %arg5[%c0_20, %c14, %c0_21] : memref<20x34x128xbf16, #tpu.memory_space<vmem>>, vector<20x16x128xbf16>
    %c0_22 = arith.constant 0 : index
    %c15 = arith.constant 15 : index
    %c0_23 = arith.constant 0 : index
    %15 = vector.load %arg5[%c0_22, %c15, %c0_23] : memref<20x34x128xbf16, #tpu.memory_space<vmem>>, vector<20x16x128xbf16>
    %16 = arith.maximumf %14, %15 : vector<20x16x128xbf16>
    %c0_24 = arith.constant 0 : index
    %c16_25 = arith.constant 16 : index
    %c0_26 = arith.constant 0 : index
    %17 = vector.load %arg5[%c0_24, %c16_25, %c0_26] : memref<20x34x128xbf16, #tpu.memory_space<vmem>>, vector<20x16x128xbf16>
    %18 = arith.maximumf %16, %17 : vector<20x16x128xbf16>
    %c0_27 = arith.constant 0 : index
    %c17 = arith.constant 17 : index
    %c0_28 = arith.constant 0 : index
    %19 = vector.load %arg5[%c0_27, %c17, %c0_28] : memref<20x34x128xbf16, #tpu.memory_space<vmem>>, vector<20x16x128xbf16>
    %20 = arith.maximumf %18, %19 : vector<20x16x128xbf16>
    %c0_29 = arith.constant 0 : index
    %c18_30 = arith.constant 18 : index
    %c0_31 = arith.constant 0 : index
    %21 = vector.load %arg5[%c0_29, %c18_30, %c0_31] : memref<20x34x128xbf16, #tpu.memory_space<vmem>>, vector<20x16x128xbf16>
    %22 = arith.maximumf %20, %21 : vector<20x16x128xbf16>
    %23 = vector.extract_strided_slice %22 {offsets = [0, 0, 0], sizes = [16, 16, 128], strides = [1, 1, 1]} : vector<20x16x128xbf16> to vector<16x16x128xbf16>
    %24 = vector.extract_strided_slice %22 {offsets = [1, 0, 0], sizes = [16, 16, 128], strides = [1, 1, 1]} : vector<20x16x128xbf16> to vector<16x16x128xbf16>
    %25 = arith.maximumf %23, %24 : vector<16x16x128xbf16>
    %26 = vector.extract_strided_slice %22 {offsets = [2, 0, 0], sizes = [16, 16, 128], strides = [1, 1, 1]} : vector<20x16x128xbf16> to vector<16x16x128xbf16>
    %27 = arith.maximumf %25, %26 : vector<16x16x128xbf16>
    %28 = vector.extract_strided_slice %22 {offsets = [3, 0, 0], sizes = [16, 16, 128], strides = [1, 1, 1]} : vector<20x16x128xbf16> to vector<16x16x128xbf16>
    %29 = arith.maximumf %27, %28 : vector<16x16x128xbf16>
    %30 = vector.extract_strided_slice %22 {offsets = [4, 0, 0], sizes = [16, 16, 128], strides = [1, 1, 1]} : vector<20x16x128xbf16> to vector<16x16x128xbf16>
    %31 = arith.maximumf %29, %30 : vector<16x16x128xbf16>
    %32 = vector.shape_cast %31 : vector<16x16x128xbf16> to vector<256x128xbf16>
    %c128 = arith.constant 128 : index
    %c0_32 = arith.constant 0 : index
    %33 = vector.load %arg2[%c128, %c0_32] : memref<512x128xbf16, #tpu.memory_space<vmem>>, vector<128x128xbf16>
    %cst_33 = arith.constant dense<0.000000e+00> : vector<256x128xf32>
    %34 = tpu.matmul %32, %33, %cst_33 {dimension_numbers = #tpu.dot_dimension_numbers<[1], [0], [0], [1], [0, 0, 1, 1], [], []>} : vector<256x128xbf16>, vector<128x128xbf16>, vector<256x128xf32> -> vector<256x128xf32>
    %35 = arith.addf %12, %34 : vector<256x128xf32>
    %c2_34 = arith.constant 2 : index
    %c16_35 = arith.constant 16 : index
    %c0_36 = arith.constant 0 : index
    %36 = vector.load %arg5[%c2_34, %c16_35, %c0_36] : memref<20x34x128xbf16, #tpu.memory_space<vmem>>, vector<16x16x128xbf16>
    tpu.vector_store %arg5[%c2_34, %c16_35, %c0_36], %31 {strides = array<i32>} : memref<20x34x128xbf16, #tpu.memory_space<vmem>>, vector<16x16x128xbf16>,
    %c0_37 = arith.constant 0 : index
    %c14_38 = arith.constant 14 : index
    %c0_39 = arith.constant 0 : index
    %37 = vector.load %arg5[%c0_37, %c14_38, %c0_39] : memref<20x34x128xbf16, #tpu.memory_space<vmem>>, vector<20x16x128xbf16>
    %c0_40 = arith.constant 0 : index
    %c15_41 = arith.constant 15 : index
    %c0_42 = arith.constant 0 : index
    %38 = vector.load %arg5[%c0_40, %c15_41, %c0_42] : memref<20x34x128xbf16, #tpu.memory_space<vmem>>, vector<20x16x128xbf16>
    %39 = arith.maximumf %37, %38 : vector<20x16x128xbf16>
    %c0_43 = arith.constant 0 : index
    %c16_44 = arith.constant 16 : index
    %c0_45 = arith.constant 0 : index
    %40 = vector.load %arg5[%c0_43, %c16_44, %c0_45] : memref<20x34x128xbf16, #tpu.memory_space<vmem>>, vector<20x16x128xbf16>
    %41 = arith.maximumf %39, %40 : vector<20x16x128xbf16>
    %c0_46 = arith.constant 0 : index
    %c17_47 = arith.constant 17 : index
    %c0_48 = arith.constant 0 : index
    %42 = vector.load %arg5[%c0_46, %c17_47, %c0_48] : memref<20x34x128xbf16, #tpu.memory_space<vmem>>, vector<20x16x128xbf16>
    %43 = arith.maximumf %41, %42 : vector<20x16x128xbf16>
    %c0_49 = arith.constant 0 : index
    %c18_50 = arith.constant 18 : index
    %c0_51 = arith.constant 0 : index
    %44 = vector.load %arg5[%c0_49, %c18_50, %c0_51] : memref<20x34x128xbf16, #tpu.memory_space<vmem>>, vector<20x16x128xbf16>
    %45 = arith.maximumf %43, %44 : vector<20x16x128xbf16>
    %46 = vector.extract_strided_slice %45 {offsets = [0, 0, 0], sizes = [16, 16, 128], strides = [1, 1, 1]} : vector<20x16x128xbf16> to vector<16x16x128xbf16>
    %47 = vector.extract_strided_slice %45 {offsets = [1, 0, 0], sizes = [16, 16, 128], strides = [1, 1, 1]} : vector<20x16x128xbf16> to vector<16x16x128xbf16>
    %48 = arith.maximumf %46, %47 : vector<16x16x128xbf16>
    %49 = vector.extract_strided_slice %45 {offsets = [2, 0, 0], sizes = [16, 16, 128], strides = [1, 1, 1]} : vector<20x16x128xbf16> to vector<16x16x128xbf16>
    %50 = arith.maximumf %48, %49 : vector<16x16x128xbf16>
    %51 = vector.extract_strided_slice %45 {offsets = [3, 0, 0], sizes = [16, 16, 128], strides = [1, 1, 1]} : vector<20x16x128xbf16> to vector<16x16x128xbf16>
    %52 = arith.maximumf %50, %51 : vector<16x16x128xbf16>
    %53 = vector.extract_strided_slice %45 {offsets = [4, 0, 0], sizes = [16, 16, 128], strides = [1, 1, 1]} : vector<20x16x128xbf16> to vector<16x16x128xbf16>
    %54 = arith.maximumf %52, %53 : vector<16x16x128xbf16>
    %55 = vector.shape_cast %54 : vector<16x16x128xbf16> to vector<256x128xbf16>
    %c256 = arith.constant 256 : index
    %c0_52 = arith.constant 0 : index
    %56 = vector.load %arg2[%c256, %c0_52] : memref<512x128xbf16, #tpu.memory_space<vmem>>, vector<128x128xbf16>
    %cst_53 = arith.constant dense<0.000000e+00> : vector<256x128xf32>
    %57 = tpu.matmul %55, %56, %cst_53 {dimension_numbers = #tpu.dot_dimension_numbers<[1], [0], [0], [1], [0, 0, 1, 1], [], []>} : vector<256x128xbf16>, vector<128x128xbf16>, vector<256x128xf32> -> vector<256x128xf32>
    %58 = arith.addf %35, %57 : vector<256x128xf32>
    %c2_54 = arith.constant 2 : index
    %c16_55 = arith.constant 16 : index
    %c0_56 = arith.constant 0 : index
    %59 = vector.load %arg5[%c2_54, %c16_55, %c0_56] : memref<20x34x128xbf16, #tpu.memory_space<vmem>>, vector<16x16x128xbf16>
    tpu.vector_store %arg5[%c2_54, %c16_55, %c0_56], %54 {strides = array<i32>} : memref<20x34x128xbf16, #tpu.memory_space<vmem>>, vector<16x16x128xbf16>,
    %c0_57 = arith.constant 0 : index
    %c14_58 = arith.constant 14 : index
    %c0_59 = arith.constant 0 : index
    %60 = vector.load %arg5[%c0_57, %c14_58, %c0_59] : memref<20x34x128xbf16, #tpu.memory_space<vmem>>, vector<20x16x128xbf16>
    %c0_60 = arith.constant 0 : index
    %c15_61 = arith.constant 15 : index
    %c0_62 = arith.constant 0 : index
    %61 = vector.load %arg5[%c0_60, %c15_61, %c0_62] : memref<20x34x128xbf16, #tpu.memory_space<vmem>>, vector<20x16x128xbf16>
    %62 = arith.maximumf %60, %61 : vector<20x16x128xbf16>
    %c0_63 = arith.constant 0 : index
    %c16_64 = arith.constant 16 : index
    %c0_65 = arith.constant 0 : index
    %63 = vector.load %arg5[%c0_63, %c16_64, %c0_65] : memref<20x34x128xbf16, #tpu.memory_space<vmem>>, vector<20x16x128xbf16>
    %64 = arith.maximumf %62, %63 : vector<20x16x128xbf16>
    %c0_66 = arith.constant 0 : index
    %c17_67 = arith.constant 17 : index
    %c0_68 = arith.constant 0 : index
    %65 = vector.load %arg5[%c0_66, %c17_67, %c0_68] : memref<20x34x128xbf16, #tpu.memory_space<vmem>>, vector<20x16x128xbf16>
    %66 = arith.maximumf %64, %65 : vector<20x16x128xbf16>
    %c0_69 = arith.constant 0 : index
    %c18_70 = arith.constant 18 : index
    %c0_71 = arith.constant 0 : index
    %67 = vector.load %arg5[%c0_69, %c18_70, %c0_71] : memref<20x34x128xbf16, #tpu.memory_space<vmem>>, vector<20x16x128xbf16>
    %68 = arith.maximumf %66, %67 : vector<20x16x128xbf16>
    %69 = vector.extract_strided_slice %68 {offsets = [0, 0, 0], sizes = [16, 16, 128], strides = [1, 1, 1]} : vector<20x16x128xbf16> to vector<16x16x128xbf16>
    %70 = vector.extract_strided_slice %68 {offsets = [1, 0, 0], sizes = [16, 16, 128], strides = [1, 1, 1]} : vector<20x16x128xbf16> to vector<16x16x128xbf16>
    %71 = arith.maximumf %69, %70 : vector<16x16x128xbf16>
    %72 = vector.extract_strided_slice %68 {offsets = [2, 0, 0], sizes = [16, 16, 128], strides = [1, 1, 1]} : vector<20x16x128xbf16> to vector<16x16x128xbf16>
    %73 = arith.maximumf %71, %72 : vector<16x16x128xbf16>
    %74 = vector.extract_strided_slice %68 {offsets = [3, 0, 0], sizes = [16, 16, 128], strides = [1, 1, 1]} : vector<20x16x128xbf16> to vector<16x16x128xbf16>
    %75 = arith.maximumf %73, %74 : vector<16x16x128xbf16>
    %76 = vector.extract_strided_slice %68 {offsets = [4, 0, 0], sizes = [16, 16, 128], strides = [1, 1, 1]} : vector<20x16x128xbf16> to vector<16x16x128xbf16>
    %77 = arith.maximumf %75, %76 : vector<16x16x128xbf16>
    %78 = vector.shape_cast %77 : vector<16x16x128xbf16> to vector<256x128xbf16>
    %c384 = arith.constant 384 : index
    %c0_72 = arith.constant 0 : index
    %79 = vector.load %arg2[%c384, %c0_72] : memref<512x128xbf16, #tpu.memory_space<vmem>>, vector<128x128xbf16>
    %cst_73 = arith.constant dense<0.000000e+00> : vector<256x128xf32>
    %80 = tpu.matmul %78, %79, %cst_73 {dimension_numbers = #tpu.dot_dimension_numbers<[1], [0], [0], [1], [0, 0, 1, 1], [], []>} : vector<256x128xbf16>, vector<128x128xbf16>, vector<256x128xf32> -> vector<256x128xf32>
    %81 = arith.addf %58, %80 : vector<256x128xf32>
    %c0_74 = arith.constant 0 : index
    %c0_75 = arith.constant 0 : index
    %82 = vector.load %arg3[%c0_74, %c0_75] : memref<1x128xf32, #tpu.memory_space<vmem>>, vector<1x128xf32>
    %83 = vector.broadcast %82 : vector<1x128xf32> to vector<256x128xf32>
    %84 = arith.addf %81, %83 : vector<256x128xf32>
    %cst_76 = arith.constant 5.000000e-01 : f32
    %85 = vector.broadcast %cst_76 : f32 to vector<256x128xf32>
    %86 = arith.mulf %85, %84 : vector<256x128xf32>
    %87 = math.tanh %86 : vector<256x128xf32>
    %cst_77 = arith.constant 1.000000e+00 : f32
    %88 = vector.broadcast %cst_77 : f32 to vector<256x128xf32>
    %89 = arith.addf %87, %88 : vector<256x128xf32>
    %cst_78 = arith.constant 5.000000e-01 : f32
    %90 = vector.broadcast %cst_78 : f32 to vector<256x128xf32>
    %91 = arith.mulf %90, %89 : vector<256x128xf32>
    %92 = arith.mulf %84, %91 : vector<256x128xf32>
    %c0_79 = arith.constant 0 : index
    %c0_80 = arith.constant 0 : index
    %c0_81 = arith.constant 0 : index
    %93 = vector.load %arg4[%c0_79, %c0_80, %c0_81] : memref<1x256x128xf32, #tpu.memory_space<vmem>>, vector<1x256x128xf32>
    %94 = vector.shape_cast %93 : vector<1x256x128xf32> to vector<256x128xf32>
    %95 = vector.shape_cast %92 : vector<256x128xf32> to vector<1x256x128xf32>
    tpu.vector_store %arg4[%c0_79, %c0_80, %c0_81], %95 {strides = array<i32>} : memref<1x256x128xf32, #tpu.memory_space<vmem>>, vector<1x256x128xf32>,
    return
  }
  func.func @transform_0(%arg0: i32) -> (i32, i32, i32, i32) {
    %c0_i32 = arith.constant 0 : i32
    %c0_i32_0 = arith.constant 0 : i32
    %c0_i32_1 = arith.constant 0 : i32
    %c0_i32_2 = arith.constant 0 : i32
    return %arg0, %c0_i32, %c0_i32_0, %c0_i32_1 : i32, i32, i32, i32
  }
  func.func @transform_1(%arg0: i32) -> (i32, i32) {
    %c0_i32 = arith.constant 0 : i32
    %c0_i32_0 = arith.constant 0 : i32
    %c0_i32_1 = arith.constant 0 : i32
    return %c0_i32, %c0_i32_0 : i32, i32
  }
  func.func @transform_2(%arg0: i32) -> (i32, i32) {
    %c0_i32 = arith.constant 0 : i32
    %c0_i32_0 = arith.constant 0 : i32
    %c0_i32_1 = arith.constant 0 : i32
    return %c0_i32, %c0_i32_0 : i32, i32
  }
  func.func @transform_3(%arg0: i32) -> (i32, i32, i32) {
    %c0_i32 = arith.constant 0 : i32
    %c0_i32_0 = arith.constant 0 : i32
    %c0_i32_1 = arith.constant 0 : i32
    return %arg0, %c0_i32, %c0_i32_0 : i32, i32, i32
  }
}

module attributes {stable_mosaic.version = 11 : i64} {
  func.func @_mm_bias_silu_kernel(%arg0: i32, %arg1: memref<128x128xbf16, #tpu.memory_space<vmem>>, %arg2: memref<128x128xbf16, #tpu.memory_space<vmem>>, %arg3: memref<1x128xf32, #tpu.memory_space<vmem>>, %arg4: memref<128x128xbf16, #tpu.memory_space<vmem>>) attributes {dimension_semantics = [#tpu.dimension_semantics<parallel>], iteration_bounds = array<i64: 4>, scalar_prefetch = 0 : i64, scratch_operands = 0 : i64, tpu.core_type = #tpu.core_type<tc>, window_params = [{transform_indices = @transform_0, window_bounds = array<i64: 128, 128>}, {pipeline_mode = #tpu.pipeline_mode<synchronous>, transform_indices = @transform_1, window_bounds = array<i64: 128, 128>}, {pipeline_mode = #tpu.pipeline_mode<synchronous>, transform_indices = @transform_2, window_bounds = array<i64: 1, 128>}, {transform_indices = @transform_3, window_bounds = array<i64: 128, 128>}]} {
    %c0 = arith.constant 0 : index
    %c0_0 = arith.constant 0 : index
    %0 = vector.load %arg1[%c0, %c0_0] : memref<128x128xbf16, #tpu.memory_space<vmem>>, vector<128x128xbf16>
    %c0_1 = arith.constant 0 : index
    %c0_2 = arith.constant 0 : index
    %1 = vector.load %arg2[%c0_1, %c0_2] : memref<128x128xbf16, #tpu.memory_space<vmem>>, vector<128x128xbf16>
    %cst = arith.constant dense<0.000000e+00> : vector<128x128xf32>
    %2 = tpu.matmul %0, %1, %cst {dimension_numbers = #tpu.dot_dimension_numbers<[1], [0], [0], [1], [0, 0, 1, 1], [], []>} : vector<128x128xbf16>, vector<128x128xbf16>, vector<128x128xf32> -> vector<128x128xf32>
    %c0_3 = arith.constant 0 : index
    %c0_4 = arith.constant 0 : index
    %3 = vector.load %arg3[%c0_3, %c0_4] : memref<1x128xf32, #tpu.memory_space<vmem>>, vector<1x128xf32>
    %4 = vector.broadcast %3 : vector<1x128xf32> to vector<128x128xf32>
    %5 = arith.addf %2, %4 : vector<128x128xf32>
    %cst_5 = arith.constant 5.000000e-01 : f32
    %6 = vector.broadcast %cst_5 : f32 to vector<128x128xf32>
    %7 = arith.mulf %6, %5 : vector<128x128xf32>
    %8 = math.tanh %7 : vector<128x128xf32>
    %cst_6 = arith.constant 1.000000e+00 : f32
    %9 = vector.broadcast %cst_6 : f32 to vector<128x128xf32>
    %10 = arith.addf %8, %9 : vector<128x128xf32>
    %cst_7 = arith.constant 5.000000e-01 : f32
    %11 = vector.broadcast %cst_7 : f32 to vector<128x128xf32>
    %12 = arith.mulf %11, %10 : vector<128x128xf32>
    %13 = arith.mulf %5, %12 : vector<128x128xf32>
    %14 = arith.truncf %13 : vector<128x128xf32> to vector<128x128xbf16>
    %c0_8 = arith.constant 0 : index
    %c0_9 = arith.constant 0 : index
    %15 = vector.load %arg4[%c0_8, %c0_9] : memref<128x128xbf16, #tpu.memory_space<vmem>>, vector<128x128xbf16>
    tpu.vector_store %arg4[%c0_8, %c0_9], %14 {strides = array<i32>} : memref<128x128xbf16, #tpu.memory_space<vmem>>, vector<128x128xbf16>,
    return
  }
  func.func @transform_0(%arg0: i32) -> (i32, i32) {
    %c0_i32 = arith.constant 0 : i32
    %c0_i32_0 = arith.constant 0 : i32
    return %arg0, %c0_i32 : i32, i32
  }
  func.func @transform_1(%arg0: i32) -> (i32, i32) {
    %c0_i32 = arith.constant 0 : i32
    %c0_i32_0 = arith.constant 0 : i32
    %c0_i32_1 = arith.constant 0 : i32
    return %c0_i32, %c0_i32_0 : i32, i32
  }
  func.func @transform_2(%arg0: i32) -> (i32, i32) {
    %c0_i32 = arith.constant 0 : i32
    %c0_i32_0 = arith.constant 0 : i32
    %c0_i32_1 = arith.constant 0 : i32
    return %c0_i32, %c0_i32_0 : i32, i32
  }
  func.func @transform_3(%arg0: i32) -> (i32, i32) {
    %c0_i32 = arith.constant 0 : i32
    %c0_i32_0 = arith.constant 0 : i32
    return %arg0, %c0_i32 : i32, i32
  }
}

</mosaic_0001>

<bundles_post_ra>
// kernel: _forward_impl.2
= control target key start
LH: loop header
LB: loop body
LE: loop exit
PB: predicated region body
PF: predicated region fallthrough
CT: control target
= control target key end

     0   :  { %s754_s12 = smov 0   ;;  %s861_s0 = inlined_call_operand.vmem [shape: bf16[512,128], index: 0, kind: input, shape index: {}]   ;;  %s862_s1 = inlined_call_operand.vmem [shape: bf16[128,128], index: 1, kind: input, shape index: {}]   ;;  %s863_s2 = inlined_call_operand.vmem [shape: f32[1,128], index: 2, kind: input, shape index: {}]   ;;  %s864_s3 = inlined_call_operand.vmem [shape: bf16[512,128], index: 3, kind: output, shape index: {}]  }
   0x1 LB: > { %s523_s13 = sadd.s32 4294967295, %s732_s12   ;;  %p527_p0 = scmp.ge.s32.totalorder %s732_s12, 1  ;;  %s732_s12 = sphi %s754_s12, %s13_s12  }
   0x2   : > { %p138_p1 = scmp.lt.s32.totalorder %s732_s12, 5 }
   0x4   : > { %p139_p2 = pnand %p527_p0, %p138_p1 }
   0x5   : > { %s528_s22 = sshll.u32 (!%p139_p2), %s523_s13, 4 }
   0x6   : > { %142 = sbr.rel (%p139_p2) target bundleno = 221 (0xdd), region = 32  ;;  %p163_p3 = scmp.lt.s32.totalorder (!%p139_p2), %s528_s22, 63 }
   0xb   : > { %v613_v0 = vld [vmem:[%s862_s1 + $0x38] sm:$0xff]  ;;  %v612_v1 = vld [vmem:[%s862_s1 + $0x30] sm:$0xff]  ;;  %v611_v2 = vld [vmem:[%s862_s1 + $0x28] sm:$0xff]  ;;  %s866_s22 = smov (!%p163_p3, %s528_s22), 63 }
   0xc   : > { %306 = vmatpush.bf16.msra.mxu0 %v613_v0  ;;  %661 = vmatpush.bf16.msra.mxu1 %v613_v0  ;;  %v610_v3 = vld [vmem:[%s862_s1 + $0x20] sm:$0xff]  ;;  %v609_v4 = vld [vmem:[%s862_s1 + $0x18] sm:$0xff]  ;;  %v608_v5 = vld [vmem:[%s862_s1 + $0x10] sm:$0xff]  ;;  %s529_s29 = sshll.u32 %s866_s22, 2 }
   0xd   : > { %662 = vmatpush.bf16.msra.mxu2 %v613_v0  ;;  %663 = vmatpush.bf16.msra.mxu3 %v613_v0  ;;  %v607_v6 = vld [vmem:[%s862_s1 + $0x8] sm:$0xff]  ;;  %v606_v7 = vld [vmem:[%s862_s1] sm:$0xff]  ;;  %s166_s7 = scalar_lea.vmem %s861_s0, %s529_s29  ;;  %s837_s13 = scalar_lea.vmem %s864_s3, %s529_s29 }
   0xe   : > { %v598_v8 = vld [vmem:[%s166_s7] sm:$0xff]  ;;  %v600_v9 = vld [vmem:[%s166_s7 + $0x10] sm:$0xff]  ;;  %v599_v12 = vld [vmem:[%s166_s7 + $0x8] sm:$0xff] }
   0xf   : > { %v602_v10 = vld [vmem:[%s166_s7 + $0x20] sm:$0xff]  ;;  %v604_v11 = vld [vmem:[%s166_s7 + $0x30] sm:$0xff]  ;;  %v601_v13 = vld [vmem:[%s166_s7 + $0x18] sm:$0xff] }
  0x10   : > { %307 = vmatpush.bf16.msra.mxu0 %v612_v1  ;;  %664 = vmatpush.bf16.msra.mxu1 %v612_v1  ;;  %v603_v14 = vld [vmem:[%s166_s7 + $0x28] sm:$0xff]  ;;  %v605_v15 = vld [vmem:[%s166_s7 + $0x38] sm:$0xff]  ;;  %v797_v16 = vld [vmem:[%s863_s2] ss:$0 sm:$0xff] }
  0x11   : > { %665 = vmatpush.bf16.msra.mxu2 %v612_v1  ;;  %666 = vmatpush.bf16.msra.mxu3 %v612_v1 }
  0x14   : > { %308 = vmatpush.bf16.msra.mxu0 %v611_v2  ;;  %667 = vmatpush.bf16.msra.mxu1 %v611_v2 }
  0x15   : > { %668 = vmatpush.bf16.msra.mxu2 %v611_v2  ;;  %669 = vmatpush.bf16.msra.mxu3 %v611_v2 }
  0x18   : > { %309 = vmatpush.bf16.msra.mxu0 %v610_v3  ;;  %670 = vmatpush.bf16.msra.mxu1 %v610_v3 }
  0x19   : > { %671 = vmatpush.bf16.msra.mxu2 %v610_v3  ;;  %672 = vmatpush.bf16.msra.mxu3 %v610_v3 }
  0x1c   : > { %310 = vmatpush.bf16.msra.mxu0 %v609_v4  ;;  %673 = vmatpush.bf16.msra.mxu1 %v609_v4 }
  0x1d   : > { %674 = vmatpush.bf16.msra.mxu2 %v609_v4  ;;  %675 = vmatpush.bf16.msra.mxu3 %v609_v4 }
  0x20   : > { %311 = vmatpush.bf16.msra.mxu0 %v608_v5  ;;  %676 = vmatpush.bf16.msra.mxu1 %v608_v5 }
  0x21   : > { %677 = vmatpush.bf16.msra.mxu2 %v608_v5  ;;  %678 = vmatpush.bf16.msra.mxu3 %v608_v5 }
  0x24   : > { %312 = vmatpush.bf16.msra.mxu0 %v607_v6  ;;  %679 = vmatpush.bf16.msra.mxu1 %v607_v6 }
  0x25   : > { %680 = vmatpush.bf16.msra.mxu2 %v607_v6  ;;  %681 = vmatpush.bf16.msra.mxu3 %v607_v6 }
  0x28   : > { %313 = vmatpush.bf16.msra.mxu0 %v606_v7  ;;  %682 = vmatpush.bf16.msra.mxu1 %v606_v7 }
  0x29   : > { %683 = vmatpush.bf16.msra.mxu2 %v606_v7  ;;  %684 = vmatpush.bf16.msra.mxu3 %v606_v7 }
  0x2b   : > { %314 = vmatmul.bf16.vlgmr.msra.gmra.mxu0 %v598_v8  ;;  %324 = vmatmul.bf16.vlgmr.msra.gmra.mxu1 %v600_v9 }
  0x2c   : > { %334 = vmatmul.bf16.vlgmr.msra.gmra.mxu2 %v602_v10  ;;  %344 = vmatmul.bf16.vlgmr.msra.gmra.mxu3 %v604_v11 }
  0x3b   : > { %319 = vmatmul.bf16.gmra.mxu0 %v599_v12  ;;  %329 = vmatmul.bf16.gmra.mxu1 %v601_v13 }
  0x3c   : > { %339 = vmatmul.bf16.gmra.mxu2 %v603_v14  ;;  %349 = vmatmul.bf16.gmra.mxu3 %v605_v15 }
  0xa8   : > { %v315_v17 = vpop.f32.mrf.mxu0  ;;  %v325_v18 = vpop.f32.mrf.mxu1 }
  0xa9   : > { %v316_v19 = vadd.f32 %v797_v16, %v315_v17  ;;  %v326_v20 = vadd.f32 %v797_v16, %v325_v18 }
  0xab   : > { %v355_v21 = vmul.f32 0.5, %v316_v19  ;;  %v359_v22 = vmul.f32 0.5, %v326_v20 }
  0xad   : > { %694 = vtanh.f32 %v355_v21 }
  0xae   : > { %696 = vtanh.f32 %v359_v22 }
  0xaf   : > { %v335_v23 = vpop.f32.mrf.mxu2  ;;  %v345_v24 = vpop.f32.mrf.mxu3 }
  0xb0   : > { %v802_v25 = vadd.f32 %v797_v16, %v335_v23  ;;  %v805_v26 = vadd.f32 %v797_v16, %v345_v24  ;;  %v317_v27 = vpop.f32.mrf.mxu0  ;;  %v327_v28 = vpop.f32.mrf.mxu1 }
  0xb1   : > { %v318_v29 = vadd.f32 %v797_v16, %v317_v27  ;;  %v328_v30 = vadd.f32 %v797_v16, %v327_v28 }
  0xb2   : > { %v363_v31 = vmul.f32 0.5, %v802_v25  ;;  %v367_v32 = vmul.f32 0.5, %v805_v26 }
  0xb3   : > { %v695_v33 = vpop.eup %694  ;;  %v356_v34 = vmul.f32 0.5, %v318_v29  ;;  %v360_v35 = vmul.f32 0.5, %v328_v30 }
  0xb4   : > { %v697_v36 = vpop.eup %696  ;;  %698 = vtanh.f32 %v363_v31  ;;  %v387_v37 = vadd.f32 1.0, %v695_v33 }
  0xb5   : > { %700 = vtanh.f32 %v367_v32  ;;  %v391_v38 = vadd.f32 1.0, %v697_v36 }
  0xb6   : > { %702 = vtanh.f32 %v356_v34  ;;  %v403_v51 = vmul.f32 0.5, %v387_v37 }
  0xb7   : > { %704 = vtanh.f32 %v360_v35  ;;  %v337_v39 = vpop.f32.mrf.mxu2  ;;  %v347_v40 = vpop.f32.mrf.mxu3  ;;  %v407_v52 = vmul.f32 0.5, %v391_v38 }
  0xb8   : > { %v338_v41 = vadd.f32 %v797_v16, %v337_v39  ;;  %v813_v42 = vadd.f32 %v797_v16, %v347_v40  ;;  %v320_v43 = vpop.f32.mrf.mxu0  ;;  %v330_v44 = vpop.f32.mrf.mxu1  ;;  %v419_v60 = vmul.f32 %v403_v51, %v316_v19 }
  0xb9   : > { %v816_v45 = vadd.f32 %v797_v16, %v320_v43  ;;  %v819_v46 = vadd.f32 %v797_v16, %v330_v44  ;;  %v423_v61 = vmul.f32 %v407_v52, %v326_v20 }
  0xba   : > { %v699_v47 = vpop.eup %698  ;;  %v364_v48 = vmul.f32 0.5, %v338_v41  ;;  %v368_v49 = vmul.f32 0.5, %v813_v42 }
  0xbb   : > { %v701_v50 = vpop.eup %700  ;;  %v357_v54 = vmul.f32 0.5, %v816_v45  ;;  %v361_v57 = vmul.f32 0.5, %v819_v46  ;;  %v395_v58 = vadd.f32 1.0, %v699_v47 }
  0xbc   : > { %v703_v53 = vpop.eup %702  ;;  %706 = vtanh.f32 %v364_v48  ;;  %v399_v62 = vadd.f32 1.0, %v701_v50 }
  0xbd   : > { %v705_v55 = vpop.eup %704  ;;  %v388_v56 = vadd.f32 1.0, %v703_v53  ;;  %708 = vtanh.f32 %v368_v49  ;;  %v411_v11 = vmul.f32 0.5, %v395_v58 }
  0xbe   : > { %v392_v59 = vadd.f32 1.0, %v705_v55  ;;  %710 = vtanh.f32 %v357_v54  ;;  %v415_v21 = vmul.f32 0.5, %v399_v62 }
  0xbf   : > { %v404_v63 = vmul.f32 0.5, %v388_v56  ;;  %v340_v0 = vpop.f32.mrf.mxu2  ;;  %v350_v1 = vpop.f32.mrf.mxu3  ;;  %712 = vtanh.f32 %v361_v57 }
  0xc0   : > { %v408_v2 = vmul.f32 0.5, %v392_v59  ;;  %v825_v3 = vadd.f32 %v797_v16, %v340_v0  ;;  %v828_v4 = vadd.f32 %v797_v16, %v350_v1  ;;  %v322_v5 = vpop.f32.mrf.mxu0  ;;  %v332_v6 = vpop.f32.mrf.mxu1  ;;  %v431_v34 = vmul.f32 %v415_v21, %v805_v26 }
  0xc1   : > { %v420_v7 = vmul.f32 %v404_v63, %v318_v29  ;;  %v323_v8 = vadd.f32 %v797_v16, %v322_v5  ;;  %v333_v9 = vadd.f32 %v797_v16, %v332_v6 }
  0xc2   : > { %v707_v10 = vpop.eup %706  ;;  %v424_v12 = vmul.f32 %v408_v2, %v328_v30  ;;  %v365_v13 = vmul.f32 0.5, %v825_v3  ;;  %v369_v14 = vmul.f32 0.5, %v828_v4  ;;  %v427_v30 = vmul.f32 %v411_v11, %v802_v25 }
  0xc3   : > { %v709_v15 = vpop.eup %708  ;;  %v617_v17 = vpack.c.bf16 %v420_v7, %v419_v60  ;;  %v396_v18 = vadd.f32 1.0, %v707_v10  ;;  %v358_v19 = vmul.f32 0.5, %v323_v8  ;;  %v362_v20 = vmul.f32 0.5, %v333_v9 }
  0xc4   : > { %v627_v22 = vpack.c.bf16 %v424_v12, %v423_v61  ;;  %v400_v23 = vadd.f32 1.0, %v709_v15  ;;  %714 = vtanh.f32 %v365_v13  ;;  %v711_v27 = vpop.eup %710 }
  0xc5   : > { %618 = vst [vmem:[%s837_s13] sm:$0xff] %v617_v17   ;;  %v412_v24 = vmul.f32 0.5, %v396_v18  ;;  %716 = vtanh.f32 %v369_v14  ;;  %v713_v29 = vpop.eup %712  ;;  %v389_v39 = vadd.f32 1.0, %v711_v27 }
  0xc6   : > { %655 = vst [vmem:[%s837_s13 + $0x10] sm:$0xff] %v627_v22   ;;  %v416_v28 = vmul.f32 0.5, %v400_v23  ;;  %718 = vtanh.f32 %v358_v19  ;;  %v393_v44 = vadd.f32 1.0, %v713_v29 }
  0xc7   : > { %v428_v31 = vmul.f32 %v412_v24, %v338_v41  ;;  %720 = vtanh.f32 %v362_v20  ;;  %v342_v32 = vpop.f32.mrf.mxu2  ;;  %v352_v33 = vpop.f32.mrf.mxu3  ;;  %v405_v26 = vmul.f32 0.5, %v389_v39 }
  0xc8   : > { %v432_v35 = vmul.f32 %v416_v28, %v813_v42  ;;  %v343_v36 = vadd.f32 %v797_v16, %v342_v32  ;;  %v353_v37 = vadd.f32 %v797_v16, %v352_v33  ;;  %v409_v42 = vmul.f32 0.5, %v393_v44 }
  0xc9   : > { %v637_v38 = vpack.c.bf16 %v428_v31, %v427_v30  ;;  %v421_v55 = vmul.f32 %v405_v26, %v816_v45 }
  0xca   : > { %v715_v40 = vpop.eup %714  ;;  %v647_v43 = vpack.c.bf16 %v432_v35, %v431_v34  ;;  %v366_v25 = vmul.f32 0.5, %v343_v36  ;;  %v370_v41 = vmul.f32 0.5, %v353_v37  ;;  %v425_v58 = vmul.f32 %v409_v42, %v819_v46 }
  0xcb   : > { %v717_v47 = vpop.eup %716  ;;  %657 = vst [vmem:[%s837_s13 + $0x20] sm:$0xff] %v637_v38   ;;  %v397_v52 = vadd.f32 1.0, %v715_v40 }
  0xcc   : > { %v719_v48 = vpop.eup %718  ;;  %659 = vst [vmem:[%s837_s13 + $0x30] sm:$0xff] %v647_v43   ;;  %722 = vtanh.f32 %v366_v25  ;;  %v401_v53 = vadd.f32 1.0, %v717_v47 }
  0xcd   : > { %v721_v49 = vpop.eup %720  ;;  %v390_v50 = vadd.f32 1.0, %v719_v48  ;;  %724 = vtanh.f32 %v370_v41  ;;  %v413_v61 = vmul.f32 0.5, %v397_v52 }
  0xce   : > { %v394_v51 = vadd.f32 1.0, %v721_v49  ;;  %v417_v0 = vmul.f32 0.5, %v401_v53 }
  0xcf   : > { %v406_v16 = vmul.f32 0.5, %v390_v50  ;;  %v429_v45 = vmul.f32 %v413_v61, %v825_v3 }
  0xd0   : > { %v410_v54 = vmul.f32 0.5, %v394_v51 }
  0xd1   : > { %v422_v56 = vmul.f32 %v406_v16, %v323_v8  ;;  %v433_v8 = vmul.f32 %v417_v0, %v828_v4 }
  0xd2   : > { %v723_v57 = vpop.eup %722  ;;  %v426_v59 = vmul.f32 %v410_v54, %v333_v9 }
  0xd3   : > { %v725_v60 = vpop.eup %724  ;;  %v622_v62 = vpack.c.bf16 %v422_v56, %v421_v55  ;;  %v398_v63 = vadd.f32 1.0, %v723_v57 }
  0xd4   : > { %v632_v1 = vpack.c.bf16 %v426_v59, %v425_v58  ;;  %v402_v2 = vadd.f32 1.0, %v725_v60 }
  0xd5   : > { %654 = vst [vmem:[%s837_s13 + $0x8] sm:$0xff] %v622_v62   ;;  %v414_v5 = vmul.f32 0.5, %v398_v63 }
  0xd6   : > { %656 = vst [vmem:[%s837_s13 + $0x18] sm:$0xff] %v632_v1   ;;  %v418_v6 = vmul.f32 0.5, %v402_v2 }
  0xd7   : > { %v430_v7 = vmul.f32 %v414_v5, %v343_v36 }
  0xd8   : > { %v434_v46 = vmul.f32 %v418_v6, %v353_v37 }
  0xd9   : > { %v642_v9 = vpack.c.bf16 %v430_v7, %v429_v45 }
  0xda   : > { %v652_v10 = vpack.c.bf16 %v434_v46, %v433_v8 }
  0xdb   : > { %658 = vst [vmem:[%s837_s13 + $0x28] sm:$0xff] %v642_v9  }
  0xdc   : > { %660 = vst [vmem:[%s837_s13 + $0x38] sm:$0xff] %v652_v10  }
  0xdd PF: > { %s13_s12 = sadd.s32 1, %s732_s12  }
  0xde   : > { %p10_p4 = scmp.ge.s32.totalorder %s13_s12, 6  }
  0xe0   :  { %12 = sbr.rel (!%p10_p4) target bundleno = 1 (0x1), region = 62 }

// kernel: _forward_impl.3
= control target key start
LH: loop header
LB: loop body
LE: loop exit
PB: predicated region body
PF: predicated region fallthrough
CT: control target
= control target key end

     0   :  { %8 = vsyncpa [#allocation4], 0  ;;  %s15384_s0 = inlined_call_operand.vmem [shape: bf16[2,16,16,128], index: 0, kind: input, shape index: {}]   ;;  %s15385_s1 = inlined_call_operand.vmem [shape: bf16[512,128], index: 1, kind: input, shape index: {}]   ;;  %s15386_s2 = inlined_call_operand.vmem [shape: f32[1,128], index: 2, kind: input, shape index: {}]   ;;  %s15387_s3 = inlined_call_operand.hbm [shape: f32[2,256,128], index: 3, kind: output, shape index: {}]  }
   0x1   :  { %10 = vsyncpa [#allocation4 + $0x1], 0  ;;  %s9263_s12 = smov 0   ;;  %s9265_s13 = smov 0  }
   0x2   :  { %s9267_s14 = smov 0   ;;  %s9269_s15 = smov 0  }
   0x3 LB: > { %s9284_s16 = sadd.s32 4294967295, %s9238_s15   ;;  %s8765_s17 = sadd.s32 4294967294, %s9238_s15   ;;  %s9238_s15 = sphi %s9269_s15, %s17527_s15   ;;  %s9234_s14 = sphi %s9267_s14, %s17526_s14   ;;  %s9230_s13 = sphi %s9265_s13, %s17525_s13   ;;  %s9226_s12 = sphi %s9263_s12, %s17524_s12  }
   0x4   : > { %s9288_s18 = sadd.s32 1, %s9238_s15   ;;  %s91_s19 = sadd.s32 1, %s9234_s14 }
   0x5   : > { %s88_s20 = ssub.s32 %s9238_s15, %s9288_s18  ;;  %p101_p0 = scmp.ne.s32.totalorder %s9234_s14, %s9230_s13 }
   0x6   : > { %p89_p1 = scmp.eq.s32.totalorder %s88_s20, 0  ;;  %p102_p2 = scmp.eq.s32.totalorder %s9284_s16, 1 }
   0x7   : > { %p107_p3 = scmp.ne.s32.totalorder %s9230_s13, %s9226_s12  ;;  %p108_p4 = scmp.eq.s32.totalorder %s8765_s17, 1 }
   0x8   : > { %s9299_s21 = scalar_select %p89_p1, %s9234_s14, %s91_s19  }
   0x9   : > { %p9301_p5 = por %p102_p2, %p101_p0  ;;  %p9305_p6 = por %p108_p4, %p107_p3 }
   0xa   : > { %p8768_p7 = scmp.ge.s32.totalorder %s9238_s15, 1  ;;  %p140_p8 = scmp.lt.s32.totalorder %s9238_s15, 3 }
   0xc   : > { %p141_p9 = pnand %p8768_p7, %p140_p8 }
   0xe   : > { %144 = sbr.rel (%p141_p9) target bundleno = 1370 (0x55a), region = 32 }
  0x13   : > { %v9057_v0 = vld [vmem:[%s15385_s1 + $0xb8] sm:$0xff]  ;;  %v15405_v3 = vmov 4286644096   ;;  %v9056_v4 = vld [vmem:[%s15385_s1 + $0xb0] sm:$0xff]  ;;  %v9055_v9 = vld [vmem:[%s15385_s1 + $0xa8] sm:$0xff]  ;;  %p164_p10 = scmp.lt.s32.totalorder %s9284_s16, 1 }
  0x14   : > { %v9049_v1 = vld [vmem:[%s15385_s1 + $0x78] sm:$0xff]  ;;  %171 = vst [vmem:[#allocation2 + $0x4] sm:$0xf] %v15405_v3  ;;  %5677 = vmatpush.bf16.msra.mxu2 %v9057_v0  ;;  %v9048_v5 = vld [vmem:[%s15385_s1 + $0x70] sm:$0xff]  ;;  %v9047_v10 = vld [vmem:[%s15385_s1 + $0x68] sm:$0xff]  ;;  %vm552_vm0 = vcmask 1046528  }
  0x15   : > { %v9041_v2 = vld [vmem:[%s15385_s1 + $0x38] sm:$0xff]  ;;  %2815 = vmatpush.bf16.msra.mxu0 %v9049_v1  ;;  %172 = vst [vmem:[#allocation2 + $0x8] sm:$0xf] %v15405_v3  ;;  %v9040_v7 = vld [vmem:[%s15385_s1 + $0x30] sm:$0xff]  ;;  %v9039_v11 = vld [vmem:[%s15385_s1 + $0x28] sm:$0xff]  ;;  %s165_s26 = scalar_select %p164_p10, %s9284_s16, 1 }
  0x16   : > { %v9065_v6 = vld [vmem:[%s15385_s1 + $0xf8] sm:$0xff]  ;;  %3048 = vmatpush.bf16.msra.mxu1 %v9041_v2  ;;  %173 = vst [vmem:[#allocation2 + $0xc] sm:$0xf] %v15405_v3  ;;  %v9064_v8 = vld [vmem:[%s15385_s1 + $0xf0] sm:$0xff]  ;;  %v9063_v12 = vld [vmem:[%s15385_s1 + $0xe8] sm:$0xff]  ;;  %vm893_vm1 = vcmask 1045504  }
  0x17   : > { %8338 = vmatpush.bf16.msra.mxu3 %v9065_v6  ;;  %174 = vst [vmem:[#allocation2 + $0x10] sm:$0x1] %v15405_v3  ;;  %v9054_v13 = vld [vmem:[%s15385_s1 + $0xa0] sm:$0xff]  ;;  %v9053_v17 = vld [vmem:[%s15385_s1 + $0x98] sm:$0xff]  ;;  %v9052_v21 = vld [vmem:[%s15385_s1 + $0x90] sm:$0xff]  ;;  %s9017_s27 = sshll.u32 %s165_s26, 7 }
  0x18   : > { %176 = vst [vmem:[#allocation2 + $0x18] sm:$0xf] %v15405_v3  ;;  %5678 = vmatpush.bf16.msra.mxu2 %v9056_v4  ;;  %v9046_v14 = vld [vmem:[%s15385_s1 + $0x60] sm:$0xff]  ;;  %v9045_v18 = vld [vmem:[%s15385_s1 + $0x58] sm:$0xff]  ;;  %v9044_v22 = vld [vmem:[%s15385_s1 + $0x50] sm:$0xff]  ;;  %s9454_s30 = scalar_lea.vmem %s15384_s0, %s9017_s27  ;;  %vm1254_vm2 = vcmask 1044480  }
  0x19   : > { %2816 = vmatpush.bf16.msra.mxu0 %v9048_v5  ;;  %177 = vst [vmem:[#allocation2 + $0x1c] sm:$0xf] %v15405_v3  ;;  %v9038_v15 = vld [vmem:[%s15385_s1 + $0x20] sm:$0xff]  ;;  %v9037_v19 = vld [vmem:[%s15385_s1 + $0x18] sm:$0xff]  ;;  %v9036_v23 = vld [vmem:[%s15385_s1 + $0x10] sm:$0xff]  ;;  %vm1655_vm3 = vcmask 1043456  }
  0x1a   : > { %3049 = vmatpush.bf16.msra.mxu1 %v9040_v7  ;;  %178 = vst [vmem:[#allocation2 + $0x20] sm:$0xf] %v15405_v3  ;;  %v9062_v16 = vld [vmem:[%s15385_s1 + $0xe0] sm:$0xff]  ;;  %v9061_v20 = vld [vmem:[%s15385_s1 + $0xd8] sm:$0xff]  ;;  %v9060_v24 = vld [vmem:[%s15385_s1 + $0xd0] sm:$0xff]  ;;  %vm2572_vm4 = vcmask 1040384  }
  0x1b   : > { %8339 = vmatpush.bf16.msra.mxu3 %v9064_v8  ;;  %179 = vst [vmem:[#allocation2 + $0x24] sm:$0x1] %v15405_v3  ;;  %v9051_v25 = vld [vmem:[%s15385_s1 + $0x88] sm:$0xff]  ;;  %v9050_v28 = vld [vmem:[%s15385_s1 + $0x80] sm:$0xff]  ;;  %v255_v59 = vld [vmem:[%s9454_s30 + $0x10] sm:$0xff]   ;;  %vm2573_vm5 = vcmask 1044484  }
  0x1c   : > { %192 = vst [vmem:[#allocation2 + $0x4] sm:$0xf] %v15405_v3  ;;  %5679 = vmatpush.bf16.msra.mxu2 %v9055_v9  ;;  %v9043_v26 = vld [vmem:[%s15385_s1 + $0x48] sm:$0xff]  ;;  %v251_v52 = vld [vmem:[%s9454_s30] sm:$0xff]   ;;  %vm11740_vm6 = vmor %vm2572_vm4, %vm2573_vm5  ;;  %s161_s20 = sand.u32 1, %s9230_s13   ;;  %s9196_s19 = scalar_lea.hbm %s15387_s3, 512 }
  0x1d   : > { %2817 = vmatpush.bf16.msra.mxu0 %v9047_v10  ;;  %194 = vst [vmem:[#allocation2 + $0x18] sm:$0xf] %v15405_v3  ;;  %v9035_v27 = vld [vmem:[%s15385_s1 + $0x8] sm:$0xff]  ;;  %s8769_s24 = sshll.u32 %s161_s20, 8  ;;  %s8688_s9 = scalar_lea.sflag [#allocation4], %s161_s20 }
  0x1e   : > { %3050 = vmatpush.bf16.msra.mxu1 %v9039_v11  ;;  %196 = vst [vmem:[#allocation2 + $0x2c] sm:$0xf] %v15405_v3  ;;  %v333_v29 = vld [vmem:[#allocation2 + $0x8] sm:$0xff]   ;;  %s14269_s25 = scalar_lea.vmem [#allocation3], %s8769_s24 }
  0x1f   : > { %8340 = vmatpush.bf16.msra.mxu3 %v9063_v12  ;;  %198 = vst [vmem:[#allocation2 + $0x40] sm:$0xf] %v15405_v3  ;;  %v9434_v34 = vunpack.c.l.bf16 %v333_v29  ;;  %v9436_v35 = vunpack.c.h.bf16 %v333_v29  ;;  %v334_v43 = vld [vmem:[#allocation2 + $0xc] sm:$0x7]  ;;  %v257_v12 = vld [vmem:[%s9454_s30 + $0x18] sm:$0xff]   ;;  %v263_v29 = vld [vmem:[%s9454_s30 + $0x30] sm:$0xff]  }
  0x20   : > { %200 = vst [vmem:[#allocation2 + $0x54] sm:$0xf] %v15405_v3  ;;  %5680 = vmatpush.bf16.msra.mxu2 %v9054_v13  ;;  %v253_v55 = vld [vmem:[%s9454_s30 + $0x8] sm:$0xff]   ;;  %v414_v62 = vunpack.c.l.bf16 %v334_v43  ;;  %s8700_s7 = sshll.u32 %s14269_s25, 4  ;;  %s8701_s7 = int_to_ptr.vmem [resolvable:$true] %s8700_s7 }
  0x21   : > { %2818 = vmatpush.bf16.msra.mxu0 %v9046_v14  ;;  %202 = vst [vmem:[#allocation2 + $0x68] sm:$0xf] %v15405_v3  ;;  %v336_v30 = vld [vmem:[#allocation2 + $0x1c] sm:$0xff]   ;;  %v554_v41 = vrot.slane %v9434_v34, 1  ;;  %v556_v42 = vrot.slane %v9436_v35, 1 }
  0x22   : > { %3051 = vmatpush.bf16.msra.mxu1 %v9038_v15  ;;  %204 = vst [vmem:[#allocation2 + $0x7c] sm:$0xf] %v15405_v3  ;;  %v9439_v36 = vunpack.c.l.bf16 %v336_v30  ;;  %v9443_v38 = vunpack.c.h.bf16 %v336_v30  ;;  %v9463_v48 = vld [vmem:[#allocation2 + $0x20] sm:$0x7]  ;;  %v265_v30 = vld [vmem:[%s9454_s30 + $0x38] sm:$0xff]  }
  0x23   : > { %8341 = vmatpush.bf16.msra.mxu3 %v9062_v16  ;;  %206 = vst [vmem:[#allocation2 + $0x90] sm:$0xf] %v15405_v3  ;;  %v9427_v31 = vld [vmem:[#allocation2 + $0x4] sm:$0x8]  ;;  %v9486_v58 = vsel %vm552_vm0, %v554_v41, %v556_v42  ;;  %v417_v8 = vunpack.c.l.bf16 %v9463_v48 }
  0x24   : > { %208 = vst [vmem:[#allocation2 + $0xa4] sm:$0xf] %v15405_v3  ;;  %5681 = vmatpush.bf16.msra.mxu2 %v9053_v17  ;;  %v9430_v32 = vld [vmem:[#allocation2 + $0x18] sm:$0x8]  ;;  %v412_v37 = vunpack.c.l.bf16 %v9427_v31  ;;  %v559_v44 = vrot.slane %v9439_v36, 1  ;;  %v561_v47 = vrot.slane %v9443_v38, 1 }
  0x25   : > { %2819 = vmatpush.bf16.msra.mxu0 %v9045_v18  ;;  %210 = vst [vmem:[#allocation2 + $0xb8] sm:$0xf] %v15405_v3  ;;  %v9432_v33 = vld [vmem:[#allocation2 + $0x2c] sm:$0x8]  ;;  %v415_v39 = vunpack.c.l.bf16 %v9430_v32  ;;  %v267_v31 = vld [vmem:[%s9454_s30 + $0x40] sm:$0xff]  }
  0x26   : > { %3052 = vmatpush.bf16.msra.mxu1 %v9037_v19  ;;  %212 = vst [vmem:[#allocation2 + $0xcc] sm:$0xf] %v15405_v3  ;;  %v15404_v40 = vunpack.c.l.bf16 %v9432_v33  ;;  %v9459_v45 = vld [vmem:[#allocation2 + $0x40] sm:$0x8]  ;;  %v553_v46 = vrot.slane %v412_v37, 1  ;;  %v9499_v1 = vsel %vm552_vm0, %v559_v44, %v561_v47 }
  0x27   : > { %8342 = vmatpush.bf16.msra.mxu3 %v9061_v20  ;;  %214 = vst [vmem:[#allocation2 + $0xe0] sm:$0xf] %v15405_v3  ;;  %v9465_v49 = vld [vmem:[#allocation2 + $0x54] sm:$0x8]  ;;  %v558_v50 = vrot.slane %v415_v39, 1  ;;  %v15401_v63 = vunpack.c.l.bf16 %v9459_v45  ;;  %v259_v19 = vld [vmem:[%s9454_s30 + $0x20] sm:$0xff]  }
  0x28   : > { %216 = vst [vmem:[#allocation2 + $0xf4] sm:$0xf] %v15405_v3  ;;  %5682 = vmatpush.bf16.msra.mxu2 %v9052_v21  ;;  %v9471_v51 = vrot.slane %v15404_v40, 1  ;;  %v9475_v53 = vld [vmem:[#allocation2 + $0x68] sm:$0x8]  ;;  %v15400_v0 = vunpack.c.l.bf16 %v9465_v49  ;;  %v555_v5 = vsel %vm552_vm0, %v553_v46, %v554_v41 }
  0x29   : > { %2820 = vmatpush.bf16.msra.mxu0 %v9044_v22  ;;  %218 = vst [vmem:[#allocation2 + $0x108] sm:$0xf] %v15405_v3  ;;  %v9477_v54 = vld [vmem:[#allocation2 + $0x7c] sm:$0x8]  ;;  %v15394_v9 = vunpack.c.l.bf16 %v9475_v53  ;;  %v560_v11 = vsel %vm552_vm0, %v558_v50, %v559_v44  ;;  %v9530_v20 = vrot.slane %v15401_v63, 1  ;;  %v9536_v22 = vmax.f32 %v412_v37, %v555_v5  ;;  %v269_v44 = vld [vmem:[%s9454_s30 + $0x48] sm:$0xff]  }
  0x2a   : > { %3053 = vmatpush.bf16.msra.mxu1 %v9036_v23  ;;  %220 = vst [vmem:[#allocation2 + $0x11c] sm:$0xf] %v15405_v3  ;;  %v9481_v56 = vld [vmem:[#allocation2 + $0x90] sm:$0x8]  ;;  %v15393_v10 = vunpack.c.l.bf16 %v9477_v54  ;;  %v9534_v21 = vrot.slane %v15400_v0, 1  ;;  %v9538_v23 = vmax.f32 %v414_v62, %v556_v42  ;;  %v15402_v62 = vrot.slane %v9436_v35, 2 }
  0x2b   : > { %8343 = vmatpush.bf16.msra.mxu3 %v9060_v24  ;;  %222 = vst [vmem:[#allocation2 + $0x130] sm:$0xf] %v15405_v3  ;;  %v9483_v57 = vld [vmem:[#allocation2 + $0xa4] sm:$0x8]  ;;  %v15389_v15 = vunpack.c.l.bf16 %v9481_v56  ;;  %v261_v24 = vld [vmem:[%s9454_s30 + $0x28] sm:$0xff]   ;;  %v9555_v46 = vrot.slane %v15394_v9, 1 }
  0x2c   : > { %224 = vst [vmem:[#allocation2 + $0x144] sm:$0xf] %v15405_v3  ;;  %5683 = vmatpush.bf16.msra.mxu2 %v9051_v25  ;;  %v9490_v60 = vld [vmem:[#allocation2 + $0xb8] sm:$0x8]  ;;  %v15388_v16 = vunpack.c.l.bf16 %v9483_v57  ;;  %v9559_v48 = vrot.slane %v15393_v10, 1  ;;  %v15408_v5 = vrot.slane %v9439_v36, 2 }
  0x2d   : > { %2821 = vmatpush.bf16.msra.mxu0 %v9043_v26  ;;  %231 = vst [vmem:[#allocation2 + $0x10] sm:$0x1] %v15405_v3  ;;  %v9492_v61 = vld [vmem:[#allocation2 + $0xcc] sm:$0x8]  ;;  %v15390_v25 = vunpack.c.l.bf16 %v9490_v60  ;;  %v9563_v50 = vrot.slane %v15389_v15, 1 }
  0x2e   : > { %3054 = vmatpush.bf16.msra.mxu1 %v9035_v27  ;;  %232 = vst [vmem:[#allocation2 + $0x24] sm:$0x1] %v15405_v3  ;;  %v9502_v2 = vld [vmem:[#allocation2 + $0xe0] sm:$0x8]  ;;  %v15391_v26 = vunpack.c.l.bf16 %v9492_v61 }
  0x2f   : > { %233 = vst [vmem:[#allocation2 + $0x38] sm:$0x1] %v15405_v3  ;;  %v9504_v4 = vld [vmem:[#allocation2 + $0xf4] sm:$0x8]  ;;  %v15392_v27 = vunpack.c.l.bf16 %v9502_v2  ;;  %v9577_v18 = vrot.slane %v15390_v25, 1 }
  0x30   : > { %234 = vst [vmem:[#allocation2 + $0x4c] sm:$0x1] %v15405_v3  ;;  %5684 = vmatpush.bf16.msra.mxu2 %v9050_v28  ;;  %v9508_v6 = vld [vmem:[#allocation2 + $0x108] sm:$0x8]  ;;  %v15395_v28 = vunpack.c.l.bf16 %v9504_v4  ;;  %v9581_v17 = vrot.slane %v15391_v26, 1  ;;  %v9599_v26 = vmax.f32 %v415_v39, %v560_v11  ;;  %v275_v39 = vld [vmem:[%s9454_s30 + $0x60] sm:$0xff]  }
  0x31   : > { %235 = vst [vmem:[#allocation2 + $0x60] sm:$0x1] %v15405_v3  ;;  %v9510_v7 = vld [vmem:[#allocation2 + $0x11c] sm:$0x8]  ;;  %v15396_v37 = vunpack.c.l.bf16 %v9508_v6 }
  0x32   : > { %236 = vst [vmem:[#allocation2 + $0x74] sm:$0x1] %v15405_v3  ;;  %v9517_v13 = vld [vmem:[#allocation2 + $0x130] sm:$0x8]  ;;  %v15398_v41 = vunpack.c.l.bf16 %v9510_v7 }
  0x33   : > { %15952 = vst [vmem:[#allocation6_spill] sm:$0xff] %v9434_v34  ;;  %v9519_v14 = vld [vmem:[#allocation2 + $0x144] sm:$0x8]  ;;  %v15397_v42 = vunpack.c.l.bf16 %v9517_v13  ;;  %v9595_v25 = vrot.slane %v15396_v37, 1 }
  0x34   : > { %15953 = vst [vmem:[#allocation7_spill] sm:$0xff] %v9436_v35  ;;  %v15399_v43 = vunpack.c.l.bf16 %v9519_v14  ;;  %v9613_v37 = vrot.slane %v15398_v41, 1 }
  0x35   : > { %237 = vst [vmem:[#allocation2 + $0x88] sm:$0x1] %v15405_v3  ;;  %v9617_v32 = vrot.slane %v15397_v42, 1  ;;  %v277_v42 = vld [vmem:[%s9454_s30 + $0x68] sm:$0xff]  }
  0x36   : > { %15954 = vst [vmem:[#allocation8_spill] sm:$0xff] %v9439_v36 }
  0x37   : > { %238 = vst [vmem:[#allocation2 + $0x9c] sm:$0x1] %v15405_v3 }
  0x38   : > { %15955 = vst [vmem:[#allocation9_spill] sm:$0xff] %v9443_v38 }
  0x39   : > { %239 = vst [vmem:[#allocation2 + $0xb0] sm:$0x1] %v15405_v3 }
  0x3a   : > { %240 = vst [vmem:[#allocation2 + $0xc4] sm:$0x1] %v15405_v3 }
  0x3b   : > { %241 = vst [vmem:[#allocation2 + $0xd8] sm:$0x1] %v15405_v3 }
  0x3c   : > { %242 = vst [vmem:[#allocation2 + $0xec] sm:$0x1] %v15405_v3 }
  0x3d   : > { %243 = vst [vmem:[#allocation2 + $0x100] sm:$0x1] %v15405_v3 }
  0x3e   : > { %15956 = vst [vmem:[#allocation10_spill] sm:$0xff] %v9465_v49 }
  0x3f   : > { %244 = vst [vmem:[#allocation2 + $0x114] sm:$0x1] %v15405_v3 }
  0x40   : > { %15957 = vst [vmem:[#allocation11_spill] sm:$0xff] %v9475_v53 }
  0x41   : > { %15958 = vst [vmem:[#allocation12_spill] sm:$0xff] %v9477_v54 }
  0x42   : > { %245 = vst [vmem:[#allocation2 + $0x128] sm:$0x1] %v15405_v3 }
  0x43   : > { %15959 = vst [vmem:[#allocation13_spill] sm:$0xff] %v9481_v56 }
  0x44   : > { %15960 = vst [vmem:[#allocation14_spill] sm:$0xff] %v9483_v57 }
  0x45   : > { %15961 = vst [vmem:[#allocation15_spill] sm:$0xff] %v9486_v58 }
  0x46   : > { %246 = vst [vmem:[#allocation2 + $0x13c] sm:$0x1] %v15405_v3 }
  0x47   : > { %15962 = vst [vmem:[#allocation16_spill] sm:$0xff] %v9490_v60 }
  0x48   : > { %15963 = vst [vmem:[#allocation17_spill] sm:$0xff] %v9492_v61 }
  0x49   : > { %15964 = vst [vmem:[#allocation18_spill] sm:$0xff] %v9499_v1 }
  0x4a   : > { %247 = vst [vmem:[#allocation2 + $0x150] sm:$0x1] %v15405_v3 }
  0x4b   : > { %15965 = vst [vmem:[#allocation19_spill] sm:$0xff] %v9502_v2 }
  0x4c   : > { %15966 = vst [vmem:[#allocation20_spill] sm:$0xff] %v9504_v4 }
  0x4d   : > { %248 = vst [vmem:[#allocation2 + $0x164] sm:$0x1] %v15405_v3 }
  0x4e   : > { %15967 = vst [vmem:[#allocation21_spill] sm:$0xff] %v9508_v6 }
  0x4f   : > { %15968 = vst [vmem:[#allocation22_spill] sm:$0xff] %v9510_v7 }
  0x50   : > { %300 = vst [vmem:[#allocation2 + $0x30] sm:$0xff] %v251_v52   ;;  %v9567_v52 = vrot.slane %v15388_v16, 1 }
  0x51   : > { %15969 = vst [vmem:[#allocation23_spill] sm:$0xff] %v9517_v13 }
  0x52   : > { %15970 = vst [vmem:[#allocation24_spill] sm:$0xff] %v9519_v14 }
  0x53   : > { %302 = vst [vmem:[#allocation2 + $0x44] sm:$0xff] %v253_v55   ;;  %v271_v55 = vld [vmem:[%s9454_s30 + $0x50] sm:$0xff]  }
  0x54   : > { %15971 = vst [vmem:[#allocation25_spill] sm:$0xff] %v9536_v22 }
  0x55   : > { %15972 = vst [vmem:[#allocation26_spill] sm:$0xff] %v9538_v23 }
  0x56   : > { %304 = vst [vmem:[#allocation2 + $0x58] sm:$0xff] %v255_v59   ;;  %v15403_v59 = vrot.slane %v9434_v34, 2 }
  0x57   : > { %306 = vst [vmem:[#allocation2 + $0x6c] sm:$0xff] %v257_v12   ;;  %v15407_v12 = vrot.slane %v9443_v38, 2  ;;  %v339_v16 = vld [vmem:[#allocation2 + $0x30] sm:$0xff]   ;;  %v282_v38 = vld [vmem:[%s9454_s30 + $0x7c] sm:$0xf] }
  0x58   : > { %308 = vst [vmem:[#allocation2 + $0x80] sm:$0xff] %v259_v19   ;;  %v273_v19 = vld [vmem:[%s9454_s30 + $0x58] sm:$0xff]   ;;  %v9587_v15 = vld [vmem:[#allocation2 + $0x34] sm:$0x7]  ;;  %v9607_v9 = vunpack.c.l.bf16 %v339_v16 }
  0x59   : > { %310 = vst [vmem:[#allocation2 + $0x94] sm:$0xff] %v261_v24   ;;  %v9585_v24 = vrot.slane %v15392_v27, 1  ;;  %v9603_v27 = vmax.f32 %v417_v8, %v561_v47 }
  0x5a   : > { %312 = vst [vmem:[#allocation2 + $0xa8] sm:$0xff] %v263_v29   ;;  %v9591_v29 = vrot.slane %v15395_v28, 1  ;;  %v9605_v10 = vld [vmem:[#allocation2 + $0x48] sm:$0x7]  ;;  %v9609_v28 = vunpack.c.h.bf16 %v339_v16  ;;  %v9625_v16 = vrot.slane %v15399_v43, 1 }
  0x5b   : > { %314 = vst [vmem:[#allocation2 + $0xbc] sm:$0xff] %v265_v30   ;;  %v342_v30 = vld [vmem:[#allocation2 + $0x44] sm:$0xff]  }
  0x5c   : > { %15973 = vst [vmem:[#allocation27_spill] sm:$0xff] %v9599_v26  ;;  %v9644_v0 = vunpack.c.l.bf16 %v342_v30  ;;  %v9647_v11 = vunpack.c.h.bf16 %v342_v30  ;;  %v15993_v58 = vrot.slane %v9609_v28, 1 }
  0x5d   : > { %15974 = vst [vmem:[#allocation28_spill] sm:$0xff] %v9603_v27  ;;  %v345_v47 = vld [vmem:[#allocation2 + $0x58] sm:$0xff]  }
  0x5e   : > { %316 = vst [vmem:[#allocation2 + $0xd0] sm:$0xff] %v267_v31   ;;  %v9620_v8 = vld [vmem:[#allocation2 + $0x5c] sm:$0x7]  ;;  %v9632_v31 = vsel %vm893_vm1, %v15403_v59, %v15402_v62  ;;  %v348_v41 = vld [vmem:[#allocation2 + $0x6c] sm:$0xff]   ;;  %v564_v62 = vrot.slane %v9607_v9, 1 }
  0x5f   : > { %15975 = vst [vmem:[#allocation29_spill] sm:$0xff] %v9609_v28  ;;  %v9642_v43 = vld [vmem:[#allocation2 + $0x70] sm:$0x7]  ;;  %v351_v40 = vld [vmem:[#allocation2 + $0x80] sm:$0xff]   ;;  %v9662_v1 = vunpack.c.l.bf16 %v348_v41  ;;  %v9667_v26 = vunpack.c.h.bf16 %v348_v41 }
  0x60   : > { %318 = vst [vmem:[#allocation2 + $0xe4] sm:$0xff] %v269_v44   ;;  %v9639_v44 = vsel %vm893_vm1, %v15408_v5, %v15407_v12  ;;  %v279_v59 = vld [vmem:[%s9454_s30 + $0x70] sm:$0xff]   ;;  %v9651_v3 = vld [vmem:[#allocation2 + $0x84] sm:$0x7]  ;;  %v9653_v12 = vunpack.c.l.bf16 %v345_v47  ;;  %v9656_v5 = vunpack.c.h.bf16 %v345_v47  ;;  %v9660_v30 = vld [vmem:[#allocation2 + $0x98] sm:$0x7]  ;;  %v9678_v23 = vsel %vm552_vm0, %v9471_v51, %v564_v62 }
  0x61   : > { %15976 = vst [vmem:[#allocation30_spill] sm:$0xff] %v9620_v8  ;;  %v354_v63 = vld [vmem:[#allocation2 + $0x94] sm:$0xff]   ;;  %v357_v36 = vld [vmem:[#allocation2 + $0xa8] sm:$0xff]   ;;  %v9688_v47 = vsel %vm552_vm0, %v564_v62, %v15993_v58 }
  0x62   : > { %15977 = vst [vmem:[#allocation31_spill] sm:$0xff] %v9632_v31  ;;  %v9672_v27 = vunpack.c.l.bf16 %v354_v63  ;;  %v9680_v35 = vld [vmem:[#allocation2 + $0xc0] sm:$0x7]  ;;  %v9693_v51 = vunpack.c.l.bf16 %v357_v36  ;;  %v9696_v34 = vunpack.c.h.bf16 %v357_v36  ;;  %v16022_v8 = vrot.slane %v9656_v5, 1 }
  0x63   : > { %15978 = vst [vmem:[#allocation32_spill] sm:$0xff] %v9639_v44  ;;  %v9665_v44 = vunpack.c.l.bf16 %v351_v40 }
  0x64   : > { %320 = vst [vmem:[#allocation2 + $0xf8] sm:$0xff] %v271_v55   ;;  %v9669_v55 = vld [vmem:[#allocation2 + $0xac] sm:$0x7] }
  0x65   : > { %15979 = vst [vmem:[#allocation33_spill] sm:$0xff] %v9642_v43  ;;  %v363_v31 = vld [vmem:[#allocation2 + $0xd0] sm:$0xff]   ;;  %v584_v49 = vrot.slane %v9665_v44, 1 }
  0x66   : > { %15980 = vst [vmem:[#allocation34_spill] sm:$0xff] %v9647_v11  ;;  %v9691_v22 = vld [vmem:[#allocation2 + $0xd4] sm:$0x7]  ;;  %v9704_v62 = vunpack.c.l.bf16 %v363_v31  ;;  %v9713_v4 = vunpack.c.h.bf16 %v363_v31 }
  0x67   : > { %322 = vst [vmem:[#allocation2 + $0x10c] sm:$0xff] %v273_v19   ;;  %v360_v19 = vld [vmem:[#allocation2 + $0xbc] sm:$0xff]   ;;  %v366_v41 = vld [vmem:[#allocation2 + $0xe4] sm:$0xff]  }
  0x68   : > { %15981 = vst [vmem:[#allocation35_spill] sm:$0xff] %v9651_v3  ;;  %v9699_v14 = vld [vmem:[#allocation2 + $0xe8] sm:$0x7]  ;;  %v9701_v13 = vunpack.c.l.bf16 %v360_v19  ;;  %v9711_v36 = vunpack.c.l.bf16 %v366_v41 }
  0x69   : > { %15982 = vst [vmem:[#allocation36_spill] sm:$0xff] %v9653_v12 }
  0x6a   : > { %15983 = vst [vmem:[#allocation37_spill] sm:$0xff] %v9656_v5 }
  0x6b   : > { %324 = vst [vmem:[#allocation2 + $0x120] sm:$0xff] %v275_v39   ;;  %v9674_v39 = vunpack.c.h.bf16 %v351_v40  ;;  %v569_v40 = vrot.slane %v9644_v0, 1  ;;  %v369_v7 = vld [vmem:[#allocation2 + $0xf8] sm:$0xff]  }
  0x6c   : > { %15984 = vst [vmem:[#allocation38_spill] sm:$0xff] %v9660_v30  ;;  %v9708_v6 = vld [vmem:[#allocation2 + $0xfc] sm:$0x7]  ;;  %v9735_v57 = vunpack.c.h.bf16 %v369_v7 }
  0x6d   : > { %15985 = vst [vmem:[#allocation39_spill] sm:$0xff] %v9662_v1 }
  0x6e   : > { %15986 = vst [vmem:[#allocation40_spill] sm:$0xff] %v9665_v44  ;;  %v372_v2 = vld [vmem:[#allocation2 + $0x10c] sm:$0xff]  }
  0x6f   : > { %15987 = vst [vmem:[#allocation41_spill] sm:$0xff] %v9667_v26  ;;  %v9719_v61 = vld [vmem:[#allocation2 + $0x110] sm:$0x7]  ;;  %v9746_v3 = vunpack.c.h.bf16 %v372_v2 }
  0x70   : > { %326 = vst [vmem:[#allocation2 + $0x134] sm:$0xff] %v277_v42   ;;  %v9683_v42 = vunpack.c.h.bf16 %v354_v63  ;;  %v9717_v63 = vsel %vm552_vm0, %v9530_v20, %v569_v40 }
  0x71   : > { %15988 = vst [vmem:[#allocation42_spill] sm:$0xff] %v9669_v55  ;;  %v9732_v55 = vunpack.c.l.bf16 %v369_v7 }
  0x72   : > { %15989 = vst [vmem:[#allocation43_spill] sm:$0xff] %v9672_v27  ;;  %v375_v31 = vld [vmem:[#allocation2 + $0x120] sm:$0xff]  }
  0x73   : > { %15990 = vst [vmem:[#allocation44_spill] sm:$0xff] %v9674_v39  ;;  %v9744_v56 = vunpack.c.l.bf16 %v375_v31  ;;  %v9754_v54 = vunpack.c.h.bf16 %v375_v31  ;;  %v579_v31 = vrot.slane %v9662_v1, 1 }
  0x74   : > { %328 = vst [vmem:[#allocation2 + $0x148] sm:$0xff] %v279_v59   ;;  %v574_v59 = vrot.slane %v9653_v12, 1 }
  0x75   : > { %15991 = vst [vmem:[#allocation45_spill] sm:$0xff] %v9680_v35  ;;  %v16007_v35 = vrot.slane %v9647_v11, 1 }
  0x76   : > { %15992 = vst [vmem:[#allocation46_spill] sm:$0xff] %v9683_v42  ;;  %v9758_v43 = vsel %vm552_vm0, %v9534_v21, %v574_v59  ;;  %v9769_v58 = vsel %vm552_vm0, %v574_v59, %v16022_v8  ;;  %v594_v21 = vrot.slane %v9693_v51, 1  ;;  %v599_v8 = vrot.slane %v9701_v13, 1 }
  0x77   : > { %15994 = vst [vmem:[#allocation47_spill] sm:$0xff] %v9688_v47  ;;  %v9727_v60 = vsel %vm552_vm0, %v569_v40, %v16007_v35  ;;  %v9739_v30 = vld [vmem:[#allocation2 + $0x138] sm:$0x7]  ;;  %v9741_v35 = vunpack.c.l.bf16 %v372_v2 }
  0x78   : > { %331 = vst [vmem:[#allocation2 + $0x160] sm:$0xf] %v282_v38  ;;  %v9706_v38 = vunpack.c.h.bf16 %v360_v19  ;;  %v9722_v19 = vunpack.c.h.bf16 %v366_v41  ;;  %v16012_v41 = vmov 4286644096  }
  0x79   : > { %15995 = vst [vmem:[#allocation48_spill] sm:$0xff] %v9691_v22  ;;  %v9730_v22 = vld [vmem:[#allocation2 + $0x124] sm:$0x7] }
  0x7a   : > { %15996 = vst [vmem:[#allocation49_spill] sm:$0xff] %v9693_v51  ;;  %v601_v12 = vrot.slane %v9706_v38, 1 }
  0x7b   : > { %15997 = vst [vmem:[#allocation50_spill] sm:$0xff] %v9696_v34  ;;  %v381_v20 = vld [vmem:[#allocation2 + $0x148] sm:$0xff]  }
  0x7c   : > { %15998 = vst [vmem:[#allocation51_spill] sm:$0xff] %v9699_v14  ;;  %v378_v14 = vld [vmem:[#allocation2 + $0x134] sm:$0xff]   ;;  %v9749_v7 = vld [vmem:[#allocation2 + $0x14c] sm:$0x7] }
  0x7d   : > { %15999 = vst [vmem:[#allocation52_spill] sm:$0xff] %v9701_v13  ;;  %v9764_v53 = vunpack.c.h.bf16 %v378_v14  ;;  %v609_v13 = vrot.slane %v9711_v36, 1 }
  0x7e   : > { %16000 = vst [vmem:[#allocation53_spill] sm:$0xff] %v9704_v62 }
  0x7f   : > { %16001 = vst [vmem:[#allocation54_spill] sm:$0xff] %v9706_v38  ;;  %v9761_v40 = vld [vmem:[#allocation2 + $0x160] sm:$0x7] }
  0x80   : > { %16002 = vst [vmem:[#allocation55_spill] sm:$0xff] %v9708_v6  ;;  %v9752_v6 = vunpack.c.l.bf16 %v378_v14  ;;  %v409_v2 = vld [vmem:[#allocation2 + $0x160] sm:$0xf]  ;;  %v585_v14 = vsel %vm552_vm0, %v9559_v48, %v584_v49  ;;  %v16031_v48 = vrot.slane %v9683_v42, 1 }
  0x81   : > { %16003 = vst [vmem:[#allocation56_spill] sm:$0xff] %v9711_v36  ;;  %v9784_v1 = vunpack.c.l.bf16 %v409_v2  ;;  %v16029_v2 = vrot.slane %v9674_v39, 1 }
  0x82   : > { %16004 = vst [vmem:[#allocation57_spill] sm:$0xff] %v9713_v4 }
  0x83   : > { %16005 = vst [vmem:[#allocation58_spill] sm:$0xff] %v9719_v61  ;;  %v9778_v61 = vunpack.c.h.bf16 %v381_v20  ;;  %v9802_v59 = vsel %vm552_vm0, %v584_v49, %v16029_v2  ;;  %v611_v49 = vrot.slane %v9722_v19, 1  ;;  %v16033_v2 = vrot.slane %v9696_v34, 1 }
  0x84   : > { %16006 = vst [vmem:[#allocation59_spill] sm:$0xff] %v9722_v19  ;;  %v9831_v19 = vsel %vm552_vm0, %v599_v8, %v601_v12 }
  0x85   : > { %16008 = vst [vmem:[#allocation60_spill] sm:$0xff] %v9727_v60  ;;  %v9823_v38 = vsel %vm552_vm0, %v594_v21, %v16033_v2  ;;  %v610_v2 = vsel %vm552_vm0, %v9585_v24, %v609_v13 }
  0x86   : > { %16009 = vst [vmem:[#allocation61_spill] sm:$0xff] %v9730_v22  ;;  %v9772_v22 = vunpack.c.l.bf16 %v381_v20  ;;  %v16027_v20 = vrot.slane %v9667_v26, 1 }
  0x87   : > { %16010 = vst [vmem:[#allocation62_spill] sm:$0xff] %v9732_v55 }
  0x88   : > { %16011 = vst [vmem:[#allocation63_spill] sm:$0xff] %v9735_v57  ;;  %v9793_v44 = vsel %vm552_vm0, %v579_v31, %v16027_v20  ;;  %v634_v24 = vrot.slane %v9772_v22, 1 }
  0x89   : > { %182 = vst [vmem:[#allocation2 + $0x16c] sm:$0xf] %v16012_v41 }
  0x8a   : > { %16013 = vst [vmem:[#allocation64_spill] sm:$0xff] %v9739_v30  ;;  %v589_v30 = vrot.slane %v9672_v27, 1 }
  0x8b   : > { %16014 = vst [vmem:[#allocation65_spill] sm:$0xff] %v9741_v35 }
  0x8c   : > { %16015 = vst [vmem:[#allocation66_spill] sm:$0xff] %v9744_v56  ;;  %v9812_v20 = vsel %vm552_vm0, %v589_v30, %v16031_v48  ;;  %v600_v48 = vsel %vm552_vm0, %v9577_v18, %v599_v8  ;;  %v9844_v18 = vsel %vm552_vm0, %v609_v13, %v611_v49  ;;  %v626_v8 = vrot.slane %v9754_v54, 1 }
  0x8d   : > { %16016 = vst [vmem:[#allocation67_spill] sm:$0xff] %v9746_v3 }
  0x8e   : > { %183 = vst [vmem:[#allocation2 + $0x170] sm:$0xf] %v16012_v41 }
  0x8f   : > { %16017 = vst [vmem:[#allocation68_spill] sm:$0xff] %v9749_v7  ;;  %v580_v7 = vsel %vm552_vm0, %v9555_v46, %v579_v31  ;;  %v590_v46 = vsel %vm552_vm0, %v9563_v50, %v589_v30  ;;  %v604_v31 = vrot.slane %v9704_v62, 1  ;;  %v595_v50 = vsel %vm552_vm0, %v9567_v52, %v594_v21 }
  0x90   : > { %16018 = vst [vmem:[#allocation69_spill] sm:$0xff] %v9752_v6  ;;  %v614_v62 = vrot.slane %v9732_v55, 1  ;;  %v616_v30 = vrot.slane %v9735_v57, 1  ;;  %v621_v57 = vrot.slane %v9746_v3, 1  ;;  %v629_v55 = vrot.slane %v9752_v6, 1 }
  0x91   : > { %16019 = vst [vmem:[#allocation70_spill] sm:$0xff] %v9754_v54  ;;  %v605_v52 = vsel %vm552_vm0, %v9581_v17, %v604_v31  ;;  %v631_v17 = vrot.slane %v9764_v53, 1  ;;  %v636_v3 = vrot.slane %v9778_v61, 1 }
  0x92   : > { %184 = vst [vmem:[#allocation2 + $0x174] sm:$0xf] %v16012_v41 }
  0x93   : > { %16020 = vst [vmem:[#allocation71_spill] sm:$0xff] %v9761_v40  ;;  %v606_v40 = vrot.slane %v9713_v4, 1  ;;  %v619_v4 = vrot.slane %v9741_v35, 1  ;;  %v9852_v35 = vsel %vm552_vm0, %v614_v62, %v616_v30 }
  0x94   : > { %16021 = vst [vmem:[#allocation72_spill] sm:$0xff] %v9764_v53 }
  0x95   : > { %16023 = vst [vmem:[#allocation73_spill] sm:$0xff] %v9769_v58  ;;  %v9837_v21 = vsel %vm552_vm0, %v604_v31, %v606_v40  ;;  %v615_v31 = vsel %vm552_vm0, %v9591_v29, %v614_v62  ;;  %v620_v13 = vsel %vm552_vm0, %v9595_v25, %v619_v4  ;;  %v630_v29 = vsel %vm552_vm0, %v9617_v32, %v629_v55 }
  0x96   : > { %16024 = vst [vmem:[#allocation74_spill] sm:$0xff] %v9772_v22  ;;  %v9869_v62 = vsel %vm552_vm0, %v629_v55, %v631_v17  ;;  %v16044_v32 = vrot.slane %v9609_v28, 1  ;;  %v16045_v55 = vunpack.c.l.bf16 %v9587_v15 }
  0x97   : > { %185 = vst [vmem:[#allocation2 + $0x178] sm:$0x1] %v16012_v41 }
  0x98   : > { %16025 = vst [vmem:[#allocation75_spill] sm:$0xff] %v9778_v61  ;;  %v635_v61 = vsel %vm552_vm0, %v9625_v16, %v634_v24  ;;  %v9888_v6 = vmax.f32 %v16045_v55, %v16044_v32  ;;  %v16047_v16 = vunpack.c.l.bf16 %v9459_v45  ;;  %v16054_v32 = vld [vmem:[#allocation36_spill] sm:$0xff]  ;;  %v16055_v45 = vrot.slane %v9656_v5, 1 }
  0x99   : > { %16026 = vst [vmem:[#allocation76_spill] sm:$0xff] %v9784_v1  ;;  %v16065_v55 = vld [vmem:[#allocation12_spill] sm:$0xff] }
  0x9a   : > { %16028 = vst [vmem:[#allocation77_spill] sm:$0xff] %v9793_v44  ;;  %v9893_v25 = vmax.f32 %v16047_v16, %v9717_v63  ;;  %v16056_v63 = vld [vmem:[#allocation30_spill] sm:$0xff]  ;;  %v16066_v58 = vunpack.c.l.bf16 %v16065_v55  ;;  %v16075_v55 = vrot.slane %v9683_v42, 1 }
  0x9b   : > { %187 = vst [vmem:[#allocation2 + $0x180] sm:$0xf] %v16012_v41  ;;  %v16057_v16 = vunpack.c.l.bf16 %v16056_v63 }
  0x9c   : > { %16030 = vst [vmem:[#allocation78_spill] sm:$0xff] %v9802_v59 }
  0x9d   : > { %188 = vst [vmem:[#allocation2 + $0x184] sm:$0xf] %v16012_v41 }
  0x9e   : > { %16032 = vst [vmem:[#allocation79_spill] sm:$0xff] %v9812_v20 }
  0x9f   : > { %189 = vst [vmem:[#allocation2 + $0x188] sm:$0xf] %v16012_v41 }
  0xa0   : > { %16034 = vst [vmem:[#allocation80_spill] sm:$0xff] %v9823_v38  ;;  %v16096_v38 = vld [vmem:[#allocation53_spill] sm:$0xff] }
  0xa1   : > { %190 = vst [vmem:[#allocation2 + $0x18c] sm:$0x1] %v16012_v41  ;;  %v624_v41 = vrot.slane %v9744_v56, 1  ;;  %v9859_v56 = vsel %vm552_vm0, %v619_v4, %v621_v57  ;;  %v9875_v4 = vsel %vm552_vm0, %v634_v24, %v636_v3  ;;  %v16058_v24 = vld [vmem:[#allocation11_spill] sm:$0xff] }
  0xa2   : > { %16035 = vst [vmem:[#allocation81_spill] sm:$0xff] %v9831_v19  ;;  %v16059_v60 = vunpack.c.l.bf16 %v16058_v24  ;;  %v16068_v24 = vrot.slane %v9674_v39, 1 }
  0xa3   : > { %16036 = vst [vmem:[#allocation82_spill] sm:$0xff] %v9837_v21  ;;  %v625_v54 = vsel %vm552_vm0, %v9613_v37, %v624_v41  ;;  %v9864_v53 = vsel %vm552_vm0, %v624_v41, %v626_v8  ;;  %v16043_v37 = vunpack.c.l.bf16 %v9432_v33  ;;  %v16049_v33 = vrot.slane %v9647_v11, 1  ;;  %v16051_v41 = vld [vmem:[#allocation10_spill] sm:$0xff] }
  0xa4   : > { %16037 = vst [vmem:[#allocation83_spill] sm:$0xff] %v9844_v18  ;;  %v16052_v47 = vunpack.c.l.bf16 %v16051_v41  ;;  %v16062_v41 = vrot.slane %v9667_v26, 1  ;;  %v16153_v18 = vld [vmem:[#allocation67_spill] sm:$0xff] }
  0xa5   : > { %16038 = vst [vmem:[#allocation84_spill] sm:$0xff] %v9852_v35  ;;  %v9880_v22 = vmax.f32 %v16043_v37, %v9678_v23  ;;  %v16050_v23 = vunpack.c.l.bf16 %v9605_v10  ;;  %v16061_v10 = vld [vmem:[#allocation39_spill] sm:$0xff]  ;;  %v16157_v19 = vrot.slane %v16153_v18, 2 }
  0xa6   : > { %16039 = vst [vmem:[#allocation85_spill] sm:$0xff] %v9859_v56  ;;  %v9906_v15 = vmax.f32 %v16052_v47, %v9758_v43  ;;  %v16063_v43 = vld [vmem:[#allocation33_spill] sm:$0xff] }
  0xa7   : > { %16040 = vst [vmem:[#allocation86_spill] sm:$0xff] %v9864_v53  ;;  %v9901_v37 = vmax.f32 %v16050_v23, %v16049_v33  ;;  %v16064_v47 = vunpack.c.l.bf16 %v16063_v43  ;;  %v16072_v33 = vld [vmem:[#allocation13_spill] sm:$0xff] }
  0xa8   : > { %16041 = vst [vmem:[#allocation87_spill] sm:$0xff] %v9869_v62  ;;  %v16073_v44 = vunpack.c.l.bf16 %v16072_v33  ;;  %v16082_v33 = vrot.slane %v9696_v34, 1 }
  0xa9   : > { %16042 = vst [vmem:[#allocation88_spill] sm:$0xff] %v9875_v4  ;;  %v9926_v23 = vmax.f32 %v16064_v47, %v16062_v41  ;;  %v16079_v47 = vld [vmem:[#allocation14_spill] sm:$0xff] }
  0xaa   : > { %16046 = vst [vmem:[#allocation89_spill] sm:$0xff] %v9888_v6  ;;  %v9918_v6 = vmax.f32 %v16059_v60, %v580_v7  ;;  %v16069_v60 = vld [vmem:[#allocation35_spill] sm:$0xff]  ;;  %v16080_v63 = vunpack.c.l.bf16 %v16079_v47 }
  0xab   : > { %16048 = vst [vmem:[#allocation90_spill] sm:$0xff] %v9893_v25  ;;  %v9914_v25 = vmax.f32 %v16057_v16, %v16055_v45  ;;  %v16067_v45 = vld [vmem:[#allocation40_spill] sm:$0xff]  ;;  %v16070_v7 = vunpack.c.l.bf16 %v16069_v60 }
  0xac   : > { %16053 = vst [vmem:[#allocation10_spill] sm:$0xff] %v9906_v15  ;;  %v9930_v15 = vmax.f32 %v16066_v58, %v585_v14  ;;  %v16076_v58 = vld [vmem:[#allocation38_spill] sm:$0xff]  ;;  %v9954_v59 = vmax.f32 %v16080_v63, %v595_v50  ;;  %v16093_v63 = vld [vmem:[#allocation17_spill] sm:$0xff] }
  0xad   : > { %16060 = vst [vmem:[#allocation36_spill] sm:$0xff] %v9918_v6  ;;  %v9938_v16 = vmax.f32 %v16070_v7, %v16068_v24  ;;  %v9942_v6 = vmax.f32 %v16073_v44, %v590_v46  ;;  %v16077_v14 = vunpack.c.l.bf16 %v16076_v58  ;;  %v16083_v44 = vld [vmem:[#allocation42_spill] sm:$0xff]  ;;  %v16086_v7 = vld [vmem:[#allocation16_spill] sm:$0xff] }
  0xae   : > { %16081 = vst [vmem:[#allocation33_spill] sm:$0xff] %v9954_v59  ;;  %v16084_v46 = vunpack.c.l.bf16 %v16083_v44  ;;  %v16087_v41 = vunpack.c.l.bf16 %v16086_v7  ;;  %v16094_v59 = vunpack.c.l.bf16 %v16093_v63  ;;  %v16109_v44 = vld [vmem:[#allocation62_spill] sm:$0xff] }
  0xaf   : > { %16071 = vst [vmem:[#allocation30_spill] sm:$0xff] %v9938_v16  ;;  %v9950_v43 = vmax.f32 %v16077_v14, %v16075_v55  ;;  %v16089_v55 = vld [vmem:[#allocation52_spill] sm:$0xff]  ;;  %v16090_v14 = vld [vmem:[#allocation45_spill] sm:$0xff] }
  0xb0   : > { %16074 = vst [vmem:[#allocation11_spill] sm:$0xff] %v9942_v6  ;;  %v9962_v60 = vmax.f32 %v16084_v46, %v16082_v33  ;;  %v9966_v20 = vmax.f32 %v16087_v41, %v600_v48  ;;  %v16091_v47 = vunpack.c.l.bf16 %v16090_v14  ;;  %v9976_v24 = vmax.f32 %v16094_v59, %v605_v52  ;;  %v16097_v33 = vld [vmem:[#allocation48_spill] sm:$0xff]  ;;  %v16100_v48 = vld [vmem:[#allocation19_spill] sm:$0xff]  ;;  %v16116_v14 = vld [vmem:[#allocation65_spill] sm:$0xff] }
  0xb1   : > { %16078 = vst [vmem:[#allocation39_spill] sm:$0xff] %v9950_v43  ;;  %v16098_v46 = vunpack.c.l.bf16 %v16097_v33  ;;  %v16101_v41 = vunpack.c.l.bf16 %v16100_v48  ;;  %v16106_v59 = vld [vmem:[#allocation20_spill] sm:$0xff]  ;;  %v16123_v33 = vld [vmem:[#allocation66_spill] sm:$0xff]  ;;  %v921_v4 = vrot.slane %v16089_v55, 2  ;;  %v16158_v21 = vrot.slane %v16116_v14, 2  ;;  %v16179_v6 = vld [vmem:[#allocation27_spill] sm:$0xff] }
  0xb2   : > { %16085 = vst [vmem:[#allocation12_spill] sm:$0xff] %v9962_v60  ;;  %v9972_v50 = vmax.f32 %v16091_v47, %v601_v12  ;;  %v16103_v12 = vld [vmem:[#allocation51_spill] sm:$0xff]  ;;  %v16107_v52 = vunpack.c.l.bf16 %v16106_v59  ;;  %v16160_v55 = vrot.slane %v16123_v33, 2  ;;  %v16185_v16 = vld [vmem:[#allocation9_spill] sm:$0xff] }
  0xb3   : > { %16088 = vst [vmem:[#allocation40_spill] sm:$0xff] %v9966_v20  ;;  %v9982_v60 = vmax.f32 %v16098_v46, %v606_v40  ;;  %v9986_v7 = vmax.f32 %v16101_v41, %v610_v2  ;;  %v16104_v47 = vunpack.c.l.bf16 %v16103_v12  ;;  %v16110_v40 = vld [vmem:[#allocation55_spill] sm:$0xff]  ;;  %v16113_v2 = vld [vmem:[#allocation21_spill] sm:$0xff] }
  0xb4   : > { %16092 = vst [vmem:[#allocation35_spill] sm:$0xff] %v9972_v50  ;;  %v9996_v63 = vmax.f32 %v16107_v52, %v615_v31  ;;  %v16111_v46 = vunpack.c.l.bf16 %v16110_v40  ;;  %v16114_v48 = vunpack.c.l.bf16 %v16113_v2  ;;  %v16120_v31 = vld [vmem:[#allocation22_spill] sm:$0xff]  ;;  %v16130_v12 = vld [vmem:[#allocation69_spill] sm:$0xff]  ;;  %v900_v40 = vrot.slane %v9607_v9, 2  ;;  %v16156_v50 = vld [vmem:[#allocation75_spill] sm:$0xff] }
  0xb5   : > { %16095 = vst [vmem:[#allocation13_spill] sm:$0xff] %v9976_v24  ;;  %v9992_v58 = vmax.f32 %v16104_v47, %v611_v49  ;;  %v16117_v49 = vld [vmem:[#allocation58_spill] sm:$0xff]  ;;  %v16121_v59 = vunpack.c.l.bf16 %v16120_v31  ;;  %v16162_v43 = vrot.slane %v16130_v12, 2  ;;  %v16163_v18 = vrot.slane %v16156_v50, 2  ;;  %v16177_v50 = vld [vmem:[#allocation8_spill] sm:$0xff] }
  0xb6   : > { %16099 = vst [vmem:[#allocation38_spill] sm:$0xff] %v9982_v60  ;;  %v10002_v60 = vmax.f32 %v16111_v46, %v616_v30  ;;  %v10006_v41 = vmax.f32 %v16114_v48, %v620_v13  ;;  %v16118_v47 = vunpack.c.l.bf16 %v16117_v49  ;;  %v16124_v30 = vld [vmem:[#allocation61_spill] sm:$0xff]  ;;  %v16127_v13 = vld [vmem:[#allocation23_spill] sm:$0xff]  ;;  %v16141_v49 = vrot.slane %v9784_v1, 1 }
  0xb7   : > { %16102 = vst [vmem:[#allocation14_spill] sm:$0xff] %v9986_v7  ;;  %v10016_v52 = vmax.f32 %v16121_v59, %v625_v54  ;;  %v16125_v46 = vunpack.c.l.bf16 %v16124_v30  ;;  %v16128_v2 = vunpack.c.l.bf16 %v16127_v13  ;;  %v16134_v54 = vld [vmem:[#allocation24_spill] sm:$0xff]  ;;  %v903_v30 = vrot.slane %v9644_v0, 2  ;;  %v16154_v7 = vld [vmem:[#allocation70_spill] sm:$0xff] }
  0xb8   : > { %16105 = vst [vmem:[#allocation42_spill] sm:$0xff] %v9992_v58  ;;  %v10012_v58 = vmax.f32 %v16118_v47, %v621_v57  ;;  %v16131_v57 = vld [vmem:[#allocation64_spill] sm:$0xff]  ;;  %v16135_v31 = vunpack.c.l.bf16 %v16134_v54  ;;  %v16145_v13 = vmov 4286644096  }
  0xb9   : > { %16108 = vst [vmem:[#allocation16_spill] sm:$0xff] %v9996_v63  ;;  %v10026_v48 = vmax.f32 %v16128_v2, %v630_v29  ;;  %v16132_v47 = vunpack.c.l.bf16 %v16131_v57  ;;  %v904_v29 = vrot.slane %v9647_v11, 2  ;;  %v16137_v57 = vld [vmem:[#allocation74_spill] sm:$0xff]  ;;  %v912_v2 = vrot.slane %v16067_v45, 2  ;;  %v16152_v63 = vld [vmem:[#allocation63_spill] sm:$0xff] }
  0xba   : > { %16112 = vst [vmem:[#allocation45_spill] sm:$0xff] %v10002_v60  ;;  %v10022_v60 = vmax.f32 %v16125_v46, %v626_v8  ;;  %v10036_v59 = vmax.f32 %v16135_v31, %v635_v61  ;;  %v901_v8 = vrot.slane %v9609_v28, 2  ;;  %v906_v46 = vrot.slane %v16054_v32, 2  ;;  %v16142_v28 = vld [vmem:[#allocation71_spill] sm:$0xff] }
  0xbb   : > { %16115 = vst [vmem:[#allocation17_spill] sm:$0xff] %v10006_v41  ;;  %v915_v61 = vrot.slane %v9672_v27, 2  ;;  %v16164_v14 = vrot.slane %v16137_v57, 2  ;;  %v16167_v27 = vld [vmem:[#allocation25_spill] sm:$0xff]  ;;  %v16178_v57 = vrot.slane %v16177_v50, 2 }
  0xbc   : > { %16119 = vst [vmem:[#allocation48_spill] sm:$0xff] %v10012_v58  ;;  %v10032_v58 = vmax.f32 %v16132_v47, %v631_v17  ;;  %v16138_v47 = vld [vmem:[#allocation68_spill] sm:$0xff]  ;;  %v902_v62 = vsel %vm893_vm1, %v900_v40, %v901_v8  ;;  %v913_v17 = vrot.slane %v9674_v39, 2 }
  0xbd   : > { %16122 = vst [vmem:[#allocation19_spill] sm:$0xff] %v10016_v52  ;;  %v16139_v54 = vunpack.c.l.bf16 %v16138_v47  ;;  %v916_v47 = vrot.slane %v9683_v42, 2  ;;  %v16151_v52 = vld [vmem:[#allocation59_spill] sm:$0xff] }
  0xbe   : > { %16126 = vst [vmem:[#allocation51_spill] sm:$0xff] %v10022_v60  ;;  %v16150_v60 = vld [vmem:[#allocation57_spill] sm:$0xff]  ;;  %v928_v56 = vrot.slane %v16151_v52, 2  ;;  %v914_v41 = vsel %vm893_vm1, %v912_v2, %v913_v17 }
  0xbf   : > { %16129 = vst [vmem:[#allocation20_spill] sm:$0xff] %v10026_v48  ;;  %v10050_v31 = vmax.f32 %v16139_v54, %v636_v3  ;;  %v905_v3 = vsel %vm893_vm1, %v903_v30, %v904_v29  ;;  %v16146_v54 = vrot.slane %v9656_v5, 2  ;;  %v924_v48 = vrot.slane %v16096_v38, 2  ;;  %v16155_v38 = vld [vmem:[#allocation72_spill] sm:$0xff] }
  0xc0   : > { %16133 = vst [vmem:[#allocation55_spill] sm:$0xff] %v10032_v58  ;;  %v16143_v58 = vunpack.c.l.bf16 %v16142_v28  ;;  %v925_v53 = vrot.slane %v16150_v60, 2  ;;  %v917_v35 = vsel %vm893_vm1, %v915_v61, %v916_v47 }
  0xc1   : > { %16136 = vst [vmem:[#allocation21_spill] sm:$0xff] %v10036_v59  ;;  %v908_v28 = vsel %vm893_vm1, %v906_v46, %v16146_v54  ;;  %v16149_v59 = vld [vmem:[#allocation54_spill] sm:$0xff]  ;;  %v927_v54 = vrot.slane %v9711_v36, 2 }
  0xc2   : > { %16140 = vst [vmem:[#allocation58_spill] sm:$0xff] %v10050_v31  ;;  %v10056_v11 = vmax.f32 %v16143_v58, %v16141_v49  ;;  %v918_v58 = vrot.slane %v9693_v51, 2  ;;  %v919_v49 = vrot.slane %v9696_v34, 2  ;;  %v16148_v31 = vrot.slane %v16061_v10, 2 }
  0xc3   : > { %226 = vst [vmem:[#allocation2 + $0x158] sm:$0xf] %v16145_v13  ;;  %v922_v42 = vrot.slane %v16149_v59, 2  ;;  %v930_v34 = vrot.slane %v16109_v44, 2  ;;  %v926_v24 = vsel %vm893_vm1, %v924_v48, %v925_v53  ;;  %v929_v60 = vsel %vm893_vm1, %v927_v54, %v928_v56 }
  0xc4   : > { %16144 = vst [vmem:[#allocation22_spill] sm:$0xff] %v10056_v11  ;;  %v16147_v11 = vrot.slane %v9667_v26, 2  ;;  %v920_v59 = vsel %vm893_vm1, %v918_v58, %v919_v49  ;;  %v16161_v51 = vrot.slane %v16155_v38, 2 }
  0xc5   : > { %228 = vst [vmem:[#allocation2 + $0x16c] sm:$0xf] %v16145_v13  ;;  %v923_v44 = vsel %vm893_vm1, %v921_v4, %v922_v42 }
  0xc6   : > { %v911_v39 = vsel %vm893_vm1, %v16148_v31, %v16147_v11  ;;  %v931_v11 = vrot.slane %v16152_v63, 2  ;;  %230 = vst [vmem:[#allocation2 + $0x180] sm:$0xf] %v16145_v13  ;;  %v935_v63 = vsel %vm893_vm1, %v16158_v21, %v16157_v19  ;;  %v16159_v31 = vrot.slane %v16154_v7, 2  ;;  %v16165_v21 = vld [vmem:[#allocation6_spill] sm:$0xff] }
  0xc7   : > { %249 = vst [vmem:[#allocation2 + $0x178] sm:$0x1] %v16145_v13  ;;  %v941_v52 = vsel %vm893_vm1, %v16162_v43, %v16161_v51  ;;  %v944_v19 = vsel %vm893_vm1, %v16164_v14, %v16163_v18  ;;  %v16166_v7 = vrot.slane %v16165_v21, 2  ;;  %v16173_v51 = vld [vmem:[#allocation7_spill] sm:$0xff]  ;;  %v10142_v18 = vmax.f32 %v16179_v6, %v16178_v57  ;;  %v16181_v14 = vld [vmem:[#allocation32_spill] sm:$0xff]  ;;  %v16191_v6 = vld [vmem:[#allocation89_spill] sm:$0xff] }
  0xc8   : > { %v932_v36 = vsel %vm893_vm1, %v930_v34, %v931_v11  ;;  %250 = vst [vmem:[#allocation2 + $0x18c] sm:$0x1] %v16145_v13  ;;  %v938_v20 = vsel %vm893_vm1, %v16160_v55, %v16159_v31  ;;  %v16169_v55 = vld [vmem:[#allocation31_spill] sm:$0xff]  ;;  %v16174_v43 = vrot.slane %v16173_v51, 2  ;;  %v16175_v13 = vld [vmem:[#allocation26_spill] sm:$0xff]  ;;  %v10164_v57 = vmax.f32 %v16191_v6, %v901_v8 }
  0xc9   : > { %v10126_v33 = vmax.f32 %v16167_v27, %v16166_v7  ;;  %v16170_v31 = vld [vmem:[#allocation15_spill] sm:$0xff]  ;;  %16180 = vst [vmem:[#allocation24_spill] sm:$0xff] %v10142_v18  ;;  %v16182_v27 = vld [vmem:[#allocation18_spill] sm:$0xff]  ;;  %v16202_v8 = vrot.slane %v9656_v5, 2  ;;  %v16210_v6 = vrot.slane %v9667_v26, 2 }
  0xca   : > { %v16171_v38 = vmax.f32 %v16165_v21, %v16170_v31  ;;  %v10137_v1 = vmax.f32 %v16175_v13, %v16174_v43  ;;  %v16183_v7 = vmax.f32 %v16177_v50, %v16182_v27  ;;  %v16186_v31 = vrot.slane %v16185_v16, 2  ;;  %v16188_v13 = vld [vmem:[#allocation47_spill] sm:$0xff]  ;;  %v16192_v18 = vld [vmem:[#allocation90_spill] sm:$0xff] }
  0xcb   : > { %16168 = vst [vmem:[#allocation61_spill] sm:$0xff] %v10126_v33  ;;  %v16189_v43 = vmax.f32 %v9607_v9, %v16188_v13  ;;  %v10167_v27 = vmax.f32 %v16192_v18, %v903_v30  ;;  %v10188_v30 = vmax.f32 %v9914_v25, %v16202_v8  ;;  %v16204_v18 = vrot.slane %v16061_v10, 2  ;;  %v16213_v25 = vld [vmem:[#allocation78_spill] sm:$0xff]  ;;  %v16218_v8 = vld [vmem:[#allocation11_spill] sm:$0xff] }
  0xcc   : > { %v10132_v12 = vmax.f32 %v16171_v38, %v16169_v55  ;;  %16176 = vst [vmem:[#allocation64_spill] sm:$0xff] %v10137_v1  ;;  %v10148_v33 = vmax.f32 %v16183_v7, %v16181_v14  ;;  %v16187_v38 = vld [vmem:[#allocation28_spill] sm:$0xff] }
  0xcd   : > { %v10153_v55 = vmax.f32 %v16187_v38, %v16186_v31  ;;  %v10161_v1 = vmax.f32 %v16189_v43, %v902_v62  ;;  %v16193_v14 = vld [vmem:[#allocation60_spill] sm:$0xff]  ;;  %v10175_v31 = vmax.f32 %v9901_v37, %v904_v29  ;;  %v16199_v62 = vld [vmem:[#allocation73_spill] sm:$0xff]  ;;  %16203 = vst [vmem:[#allocation26_spill] sm:$0xff] %v10188_v30  ;;  %v16338_v30 = vrot.slane %v16177_v50, 3 }
  0xce   : > { %16172 = vst [vmem:[#allocation23_spill] sm:$0xff] %v10132_v12  ;;  %v10156_v12 = vmax.f32 %v9880_v22, %v900_v40  ;;  %v16194_v7 = vmax.f32 %v9644_v0, %v16193_v14  ;;  %v16197_v22 = vld [vmem:[#allocation10_spill] sm:$0xff]  ;;  %v16200_v38 = vmax.f32 %v16054_v32, %v16199_v62  ;;  %v16207_v37 = vld [vmem:[#allocation77_spill] sm:$0xff]  ;;  %v10206_v14 = vmax.f32 %v9930_v15, %v912_v2 }
  0xcf   : > { %16184 = vst [vmem:[#allocation68_spill] sm:$0xff] %v10148_v33  ;;  %v10178_v40 = vmax.f32 %v16197_v22, %v906_v46  ;;  %v16208_v29 = vmax.f32 %v16061_v10, %v16207_v37  ;;  %v16216_v62 = vld [vmem:[#allocation30_spill] sm:$0xff]  ;;  %v16226_v15 = vld [vmem:[#allocation33_spill] sm:$0xff] }
  0xd0   : > { %16190 = vst [vmem:[#allocation71_spill] sm:$0xff] %v10161_v1  ;;  %v10172_v33 = vmax.f32 %v16194_v7, %v905_v3  ;;  %v10183_v13 = vmax.f32 %v16200_v38, %v908_v28  ;;  %v16205_v3 = vld [vmem:[#allocation36_spill] sm:$0xff]  ;;  %v10203_v28 = vmax.f32 %v9926_v23, %v16210_v6  ;;  %v16214_v7 = vmax.f32 %v16067_v45, %v16213_v25  ;;  %v16224_v23 = vld [vmem:[#allocation39_spill] sm:$0xff]  ;;  %v16228_v25 = vld [vmem:[#allocation49_spill] sm:$0xff] }
  0xd1   : > { %16196 = vst [vmem:[#allocation25_spill] sm:$0xff] %v10175_v31  ;;  %v10193_v43 = vmax.f32 %v16205_v3, %v16204_v18  ;;  %v10198_v46 = vmax.f32 %v16208_v29, %v911_v39  ;;  %v10214_v38 = vmax.f32 %v16216_v62, %v913_v17  ;;  %v10217_v18 = vmax.f32 %v16218_v8, %v915_v61  ;;  %v16220_v39 = vld [vmem:[#allocation43_spill] sm:$0xff]  ;;  %v16232_v17 = vld [vmem:[#allocation12_spill] sm:$0xff] }
  0xd2   : > { %16195 = vst [vmem:[#allocation6_spill] sm:$0xff] %v10172_v33  ;;  %v10211_v22 = vmax.f32 %v16214_v7, %v914_v41  ;;  %v16221_v3 = vld [vmem:[#allocation79_spill] sm:$0xff]  ;;  %v10225_v6 = vmax.f32 %v16224_v23, %v916_v47  ;;  %v10228_v2 = vmax.f32 %v16226_v15, %v918_v58  ;;  %v16229_v41 = vld [vmem:[#allocation80_spill] sm:$0xff]  ;;  %v10236_v62 = vmax.f32 %v16232_v17, %v919_v49  ;;  %v16242_v58 = vld [vmem:[#allocation13_spill] sm:$0xff] }
  0xd3   : > { %16198 = vst [vmem:[#allocation31_spill] sm:$0xff] %v10178_v40  ;;  %v16222_v37 = vmax.f32 %v16220_v39, %v16221_v3  ;;  %v16230_v7 = vmax.f32 %v16228_v25, %v16229_v41  ;;  %v16234_v61 = vld [vmem:[#allocation40_spill] sm:$0xff]  ;;  %v16240_v47 = vld [vmem:[#allocation35_spill] sm:$0xff]  ;;  %v10250_v15 = vmax.f32 %v16242_v58, %v924_v48  ;;  %v16244_v41 = vld [vmem:[#allocation53_spill] sm:$0xff] }
  0xd4   : > { %16201 = vst [vmem:[#allocation15_spill] sm:$0xff] %v10183_v13  ;;  %v10239_v8 = vmax.f32 %v16234_v61, %v921_v4  ;;  %v16236_v3 = vld [vmem:[#allocation52_spill] sm:$0xff]  ;;  %v10247_v23 = vmax.f32 %v16240_v47, %v922_v42  ;;  %v16248_v49 = vld [vmem:[#allocation38_spill] sm:$0xff]  ;;  %v16334_v13 = vld [vmem:[#allocation29_spill] sm:$0xff] }
  0xd5   : > { %16206 = vst [vmem:[#allocation8_spill] sm:$0xff] %v10193_v43  ;;  %v10222_v29 = vmax.f32 %v16222_v37, %v917_v35  ;;  %v16237_v35 = vld [vmem:[#allocation81_spill] sm:$0xff]  ;;  %v10258_v17 = vmax.f32 %v16248_v49, %v925_v53  ;;  %v16250_v4 = vld [vmem:[#allocation14_spill] sm:$0xff]  ;;  %v16258_v48 = vld [vmem:[#allocation16_spill] sm:$0xff] }
  0xd6   : > { %16209 = vst [vmem:[#allocation27_spill] sm:$0xff] %v10198_v46  ;;  %v16238_v37 = vmax.f32 %v16236_v3, %v16237_v35  ;;  %v10261_v61 = vmax.f32 %v16250_v4, %v927_v54  ;;  %v16252_v35 = vld [vmem:[#allocation56_spill] sm:$0xff]  ;;  %v16256_v42 = vld [vmem:[#allocation42_spill] sm:$0xff]  ;;  %v10272_v58 = vmax.f32 %v16258_v48, %v930_v34  ;;  %v16264_v53 = vld [vmem:[#allocation45_spill] sm:$0xff]  ;;  %v16336_v46 = vrot.slane %v16165_v21, 3 }
  0xd7   : > { %16211 = vst [vmem:[#allocation32_spill] sm:$0xff] %v10203_v28  ;;  %v10269_v47 = vmax.f32 %v16256_v42, %v928_v56  ;;  %v10280_v49 = vmax.f32 %v16264_v53, %v931_v11  ;;  %v10282_v54 = vld [vmem:[#allocation2 + $0x10] sm:$0x1]  ;;  %v10284_v4 = vld [vmem:[#allocation2 + $0x24] sm:$0x1]  ;;  %v16273_v34 = vld [vmem:[#allocation85_spill] sm:$0xff] }
  0xd8   : > { %16212 = vst [vmem:[#allocation18_spill] sm:$0xff] %v10206_v14  ;;  %v16278_v11 = vld [vmem:[#allocation48_spill] sm:$0xff]  ;;  %v10390_v28 = vld [vmem:[#allocation2 + $0x150] sm:$0x1]  ;;  %v1256_v14 = vrot.slane %v16173_v51, 3 }
  0xd9   : > { %16215 = vst [vmem:[#allocation28_spill] sm:$0xff] %v10211_v22  ;;  %v10233_v22 = vmax.f32 %v16230_v7, %v920_v59  ;;  %v16245_v59 = vld [vmem:[#allocation82_spill] sm:$0xff] }
  0xda   : > { %16217 = vst [vmem:[#allocation47_spill] sm:$0xff] %v10214_v38  ;;  %v16246_v7 = vmax.f32 %v16244_v41, %v16245_v59  ;;  %v16260_v59 = vld [vmem:[#allocation62_spill] sm:$0xff]  ;;  %v16333_v38 = vunpack.c.l.bf16 %v10284_v4 }
  0xdb   : > { %16219 = vst [vmem:[#allocation89_spill] sm:$0xff] %v10217_v18  ;;  %v10360_v18 = vld [vmem:[#allocation2 + $0xc4] sm:$0x1] }
  0xdc   : > { %16223 = vst [vmem:[#allocation90_spill] sm:$0xff] %v10222_v29  ;;  %v10244_v29 = vmax.f32 %v16238_v37, %v923_v44  ;;  %v16253_v44 = vld [vmem:[#allocation83_spill] sm:$0xff]  ;;  %v1263_v43 = vrot.slane %v16333_v38, 3 }
  0xdd   : > { %16225 = vst [vmem:[#allocation60_spill] sm:$0xff] %v10225_v6  ;;  %v16254_v37 = vmax.f32 %v16252_v35, %v16253_v44  ;;  %v16269_v44 = vld [vmem:[#allocation65_spill] sm:$0xff] }
  0xde   : > { %16227 = vst [vmem:[#allocation10_spill] sm:$0xff] %v10228_v2  ;;  %v16270_v56 = vrot.slane %v16269_v44, 2  ;;  %v16274_v48 = vmax.f32 %v16269_v44, %v16273_v34  ;;  %v16317_v2 = vld [vmem:[#allocation58_spill] sm:$0xff] }
  0xdf   : > { %16231 = vst [vmem:[#allocation73_spill] sm:$0xff] %v10233_v22  ;;  %v10255_v22 = vmax.f32 %v16246_v7, %v926_v24  ;;  %v16261_v24 = vld [vmem:[#allocation84_spill] sm:$0xff] }
  0xe0   : > { %16233 = vst [vmem:[#allocation36_spill] sm:$0xff] %v10236_v62  ;;  %v16262_v7 = vmax.f32 %v16260_v59, %v16261_v24  ;;  %v10296_v24 = vmax.f32 %v16274_v48, %v935_v63  ;;  %v16290_v48 = vld [vmem:[#allocation70_spill] sm:$0xff] }
  0xe1   : > { %16235 = vst [vmem:[#allocation77_spill] sm:$0xff] %v10239_v8  ;;  %v10334_v8 = vld [vmem:[#allocation2 + $0x88] sm:$0x1] }
  0xe2   : > { %16239 = vst [vmem:[#allocation78_spill] sm:$0xff] %v10244_v29  ;;  %v10266_v29 = vmax.f32 %v16254_v37, %v929_v60  ;;  %v10286_v60 = vld [vmem:[#allocation2 + $0x38] sm:$0x1]  ;;  %v16271_v37 = vld [vmem:[#allocation17_spill] sm:$0xff] }
  0xe3   : > { %16241 = vst [vmem:[#allocation30_spill] sm:$0xff] %v10247_v23  ;;  %v10291_v42 = vmax.f32 %v16271_v37, %v16270_v56  ;;  %v10312_v56 = vld [vmem:[#allocation2 + $0x74] sm:$0x1]  ;;  %v16335_v51 = vunpack.c.l.bf16 %v10286_v60 }
  0xe4   : > { %16243 = vst [vmem:[#allocation11_spill] sm:$0xff] %v10250_v15  ;;  %v16287_v37 = vld [vmem:[#allocation86_spill] sm:$0xff]  ;;  %v16300_v15 = vld [vmem:[#allocation21_spill] sm:$0xff] }
  0xe5   : > { %16247 = vst [vmem:[#allocation79_spill] sm:$0xff] %v10255_v22  ;;  %v10277_v22 = vmax.f32 %v16262_v7, %v932_v36  ;;  %v16276_v36 = vld [vmem:[#allocation67_spill] sm:$0xff]  ;;  %v1268_v40 = vrot.slane %v16335_v51, 3 }
  0xe6   : > { %16249 = vst [vmem:[#allocation39_spill] sm:$0xff] %v10258_v17  ;;  %v16277_v7 = vrot.slane %v16276_v36, 2 }
  0xe7   : > { %16251 = vst [vmem:[#allocation33_spill] sm:$0xff] %v10261_v61  ;;  %v10310_v61 = vld [vmem:[#allocation2 + $0x60] sm:$0x1] }
  0xe8   : > { %16255 = vst [vmem:[#allocation49_spill] sm:$0xff] %v10266_v29  ;;  %v10301_v53 = vmax.f32 %v16278_v11, %v16277_v7  ;;  %v10308_v29 = vld [vmem:[#allocation2 + $0x4c] sm:$0x1]  ;;  %v16292_v7 = vld [vmem:[#allocation51_spill] sm:$0xff] }
  0xe9   : > { %16257 = vst [vmem:[#allocation80_spill] sm:$0xff] %v10269_v47  ;;  %v16339_v51 = vunpack.c.l.bf16 %v10308_v29 }
  0xea   : > { %16259 = vst [vmem:[#allocation12_spill] sm:$0xff] %v10272_v58  ;;  %v16282_v58 = vld [vmem:[#allocation19_spill] sm:$0xff] }
  0xeb   : > { %16263 = vst [vmem:[#allocation40_spill] sm:$0xff] %v10277_v22 }
  0xec   : > { %16265 = vst [vmem:[#allocation52_spill] sm:$0xff] %v10280_v49  ;;  %v16280_v49 = vld [vmem:[#allocation66_spill] sm:$0xff] }
  0xed   : > { %16266 = vst [vmem:[#allocation81_spill] sm:$0xff] %v10282_v54  ;;  %v16281_v22 = vrot.slane %v16280_v49, 2  ;;  %v16288_v63 = vmax.f32 %v16280_v49, %v16287_v37  ;;  %v10336_v37 = vld [vmem:[#allocation2 + $0x9c] sm:$0x1] }
  0xee   : > { %16267 = vst [vmem:[#allocation35_spill] sm:$0xff] %v10284_v4  ;;  %v16337_v4 = vld [vmem:[#allocation34_spill] sm:$0xff] }
  0xef   : > { %16268 = vst [vmem:[#allocation13_spill] sm:$0xff] %v10286_v60  ;;  %v10306_v47 = vmax.f32 %v16282_v58, %v16281_v22  ;;  %v10317_v34 = vmax.f32 %v16288_v63, %v938_v20  ;;  %v16296_v22 = vld [vmem:[#allocation20_spill] sm:$0xff]  ;;  %v10338_v20 = vld [vmem:[#allocation2 + $0xb0] sm:$0x1]  ;;  %v16305_v63 = vld [vmem:[#allocation87_spill] sm:$0xff]  ;;  %v1271_v38 = vrot.slane %v16337_v4, 3  ;;  %v16340_v4 = vunpack.c.l.bf16 %v10310_v61 }
  0xf0   : > { %16272 = vst [vmem:[#allocation53_spill] sm:$0xff] %v10291_v42  ;;  %v16344_v60 = vrot.slane %v9644_v0, 3 }
  0xf1   : > { %16275 = vst [vmem:[#allocation82_spill] sm:$0xff] %v10296_v24  ;;  %v16291_v24 = vrot.slane %v16290_v48, 2 }
  0xf2   : > { %16279 = vst [vmem:[#allocation38_spill] sm:$0xff] %v10301_v53  ;;  %v16294_v53 = vld [vmem:[#allocation69_spill] sm:$0xff] }
  0xf3   : > { %16283 = vst [vmem:[#allocation14_spill] sm:$0xff] %v10306_v47  ;;  %v10322_v11 = vmax.f32 %v16292_v7, %v16291_v24  ;;  %v16295_v42 = vrot.slane %v16294_v53, 2  ;;  %v16298_v47 = vld [vmem:[#allocation74_spill] sm:$0xff]  ;;  %v16306_v24 = vmax.f32 %v16294_v53, %v16305_v63  ;;  %v10362_v63 = vld [vmem:[#allocation2 + $0xd8] sm:$0x1] }
  0xf4   : > { %16284 = vst [vmem:[#allocation56_spill] sm:$0xff] %v10308_v29  ;;  %v16299_v17 = vrot.slane %v16298_v47, 2 }
  0xf5   : > { %16285 = vst [vmem:[#allocation83_spill] sm:$0xff] %v10310_v61  ;;  %v10327_v58 = vmax.f32 %v16296_v22, %v16295_v42  ;;  %v10343_v7 = vmax.f32 %v16306_v24, %v941_v52  ;;  %v16310_v42 = vld [vmem:[#allocation55_spill] sm:$0xff]  ;;  %v10364_v52 = vld [vmem:[#allocation2 + $0xec] sm:$0x1]  ;;  %v16322_v24 = vld [vmem:[#allocation76_spill] sm:$0xff]  ;;  %v10452_v61 = vsel %vm1254_vm2, %v16344_v60, %v1271_v38 }
  0xf6   : > { %16286 = vst [vmem:[#allocation42_spill] sm:$0xff] %v10312_v56  ;;  %v10332_v23 = vmax.f32 %v16300_v15, %v16299_v17 }
  0xf7   : > { %16289 = vst [vmem:[#allocation16_spill] sm:$0xff] %v10317_v34 }
  0xf8   : > { %16293 = vst [vmem:[#allocation62_spill] sm:$0xff] %v10322_v11  ;;  %v16308_v11 = vld [vmem:[#allocation72_spill] sm:$0xff] }
  0xf9   : > { %16297 = vst [vmem:[#allocation84_spill] sm:$0xff] %v10327_v58  ;;  %v16309_v34 = vrot.slane %v16308_v11, 2  ;;  %v16312_v58 = vld [vmem:[#allocation88_spill] sm:$0xff] }
  0xfa   : > { %16301 = vst [vmem:[#allocation45_spill] sm:$0xff] %v10332_v23  ;;  %v16313_v15 = vmax.f32 %v16298_v47, %v16312_v58  ;;  %v16315_v23 = vld [vmem:[#allocation75_spill] sm:$0xff]  ;;  %v10375_v58 = vld [vmem:[#allocation2 + $0x128] sm:$0x1] }
  0xfb   : > { %16302 = vst [vmem:[#allocation65_spill] sm:$0xff] %v10334_v8  ;;  %v10348_v22 = vmax.f32 %v16310_v42, %v16309_v34  ;;  %v16316_v62 = vrot.slane %v16315_v23, 2  ;;  %v16324_v34 = vld [vmem:[#allocation22_spill] sm:$0xff] }
  0xfc   : > { %16303 = vst [vmem:[#allocation17_spill] sm:$0xff] %v10336_v37  ;;  %v10353_v17 = vmax.f32 %v16313_v15, %v944_v19  ;;  %v10373_v19 = vld [vmem:[#allocation2 + $0x114] sm:$0x1]  ;;  %v10396_v15 = vld [vmem:[#allocation2 + $0x164] sm:$0x1] }
  0xfd   : > { %16304 = vst [vmem:[#allocation85_spill] sm:$0xff] %v10338_v20  ;;  %v10358_v6 = vmax.f32 %v16317_v2, %v16316_v62  ;;  %v16332_v2 = vunpack.c.l.bf16 %v10282_v54  ;;  %v1278_v54 = vrot.slane %v16340_v4, 3  ;;  %v16352_v4 = vrot.slane %v16061_v10, 3 }
  0xfe   : > { %16307 = vst [vmem:[#allocation48_spill] sm:$0xff] %v10343_v7  ;;  %v16323_v7 = vrot.slane %v16322_v24, 2 }
  0xff   : > { %16311 = vst [vmem:[#allocation66_spill] sm:$0xff] %v10348_v22  ;;  %v10371_v22 = vld [vmem:[#allocation2 + $0x100] sm:$0x1]  ;;  %v1258_v62 = vrot.slane %v16332_v2, 3  ;;  %v1273_v2 = vrot.slane %v16339_v51, 3  ;;  %v1281_v51 = vrot.slane %v9667_v26, 3 }
 0x100   : > { %16314 = vst [vmem:[#allocation19_spill] sm:$0xff] %v10353_v17  ;;  %v10369_v42 = vmax.f32 %v16324_v34, %v16323_v7  ;;  %v10384_v34 = vld [vmem:[#allocation2 + $0x13c] sm:$0x1]  ;;  %v1261_v17 = vrot.slane %v16185_v16, 3  ;;  %v1276_v16 = vrot.slane %v9656_v5, 3  ;;  %v16350_v26 = vld [vmem:[#allocation46_spill] sm:$0xff] }
 0x101   : > { %16318 = vst [vmem:[#allocation86_spill] sm:$0xff] %v10358_v6  ;;  %v10416_v6 = vsel %vm1254_vm2, %v16336_v46, %v1256_v14  ;;  %v10421_v7 = vsel %vm1254_vm2, %v1256_v14, %v1258_v62  ;;  %v16341_v62 = vrot.slane %v9607_v9, 3  ;;  %v16346_v14 = vld [vmem:[#allocation44_spill] sm:$0xff]  ;;  %v1291_v60 = vrot.slane %v16350_v26, 3 }
 0x102   : > { %16319 = vst [vmem:[#allocation51_spill] sm:$0xff] %v10360_v18  ;;  %v10432_v46 = vsel %vm1254_vm2, %v1261_v17, %v1263_v43  ;;  %v16343_v43 = vunpack.c.l.bf16 %v10312_v56  ;;  %v1286_v5 = vrot.slane %v16346_v14, 3  ;;  %v10469_v33 = vsel %vm1254_vm2, %v1276_v16, %v1278_v54  ;;  %v16356_v14 = vld [vmem:[#allocation50_spill] sm:$0xff] }
 0x103   : > { %16320 = vst [vmem:[#allocation69_spill] sm:$0xff] %v10362_v63  ;;  %v16357_v26 = vunpack.c.l.bf16 %v10338_v20  ;;  %v16358_v54 = vrot.slane %v16067_v45, 3 }
 0x104   : > { %16321 = vst [vmem:[#allocation20_spill] sm:$0xff] %v10364_v52 }
 0x105   : > { %16325 = vst [vmem:[#allocation74_spill] sm:$0xff] %v10369_v42  ;;  %v1266_v42 = vrot.slane %v16334_v13, 3  ;;  %v10426_v13 = vsel %vm1254_vm2, %v16338_v30, %v1261_v17  ;;  %v1283_v17 = vrot.slane %v16343_v43, 3  ;;  %v1296_v43 = vrot.slane %v16356_v14, 3 }
 0x106   : > { %16326 = vst [vmem:[#allocation21_spill] sm:$0xff] %v10371_v22  ;;  %v16363_v14 = vrot.slane %v16220_v39, 3  ;;  %v16370_v39 = vld [vmem:[#allocation59_spill] sm:$0xff] }
 0x107   : > { %16327 = vst [vmem:[#allocation87_spill] sm:$0xff] %v10373_v19  ;;  %v10441_v30 = vsel %vm1254_vm2, %v16341_v62, %v1266_v42  ;;  %v10444_v29 = vsel %vm1254_vm2, %v1266_v42, %v1268_v40  ;;  %v16347_v62 = vunpack.c.l.bf16 %v10334_v8  ;;  %v10459_v40 = vsel %vm1254_vm2, %v1271_v38, %v1273_v2 }
 0x108   : > { %16328 = vst [vmem:[#allocation55_spill] sm:$0xff] %v10375_v58  ;;  %v16348_v42 = vrot.slane %v16054_v32, 3  ;;  %v10474_v8 = vsel %vm1254_vm2, %v16352_v4, %v1281_v51  ;;  %v16354_v2 = vunpack.c.l.bf16 %v10336_v37  ;;  %v10489_v4 = vsel %vm1254_vm2, %v16358_v54, %v1286_v5  ;;  %v16366_v54 = vld [vmem:[#allocation57_spill] sm:$0xff] }
 0x109   : > { %16329 = vst [vmem:[#allocation88_spill] sm:$0xff] %v10384_v34  ;;  %v1288_v31 = vrot.slane %v16347_v62, 3  ;;  %v10500_v20 = vsel %vm1254_vm2, %v16363_v14, %v1291_v60  ;;  %v1311_v14 = vrot.slane %v16370_v39, 3  ;;  %v16377_v39 = vunpack.c.l.bf16 %v10371_v22 }
 0x10a   : > { %16330 = vst [vmem:[#allocation58_spill] sm:$0xff] %v10390_v28  ;;  %v10464_v56 = vsel %vm1254_vm2, %v16348_v42, %v1276_v16  ;;  %v1293_v38 = vrot.slane %v16354_v2, 3  ;;  %v10480_v42 = vsel %vm1254_vm2, %v1281_v51, %v1283_v17  ;;  %v16361_v2 = vld [vmem:[#allocation54_spill] sm:$0xff]  ;;  %v16362_v51 = vunpack.c.l.bf16 %v10360_v18 }
 0x10b   : > { %16331 = vst [vmem:[#allocation22_spill] sm:$0xff] %v10396_v15  ;;  %v10492_v37 = vsel %vm1254_vm2, %v1286_v5, %v1288_v31  ;;  %v1301_v62 = vrot.slane %v16361_v2, 3  ;;  %v16367_v5 = vrot.slane %v16228_v25, 3  ;;  %v16369_v18 = vunpack.c.l.bf16 %v10362_v63 }
 0x10c   : > { %16342 = vst [vmem:[#allocation91_spill] sm:$0xff] %v10441_v30  ;;  %v1303_v17 = vrot.slane %v16362_v51, 3  ;;  %v16374_v16 = vunpack.c.l.bf16 %v10364_v52  ;;  %v1321_v52 = vrot.slane %v16276_v36, 3  ;;  %v16382_v22 = vrot.slane %v16252_v35, 3 }
 0x10d   : > { %16345 = vst [vmem:[#allocation92_spill] sm:$0xff] %v10452_v61  ;;  %v10510_v31 = vsel %vm1254_vm2, %v16367_v5, %v1296_v43  ;;  %v1308_v51 = vrot.slane %v16369_v18, 3  ;;  %v16376_v18 = vld [vmem:[#allocation63_spill] sm:$0xff]  ;;  %v1537_v61 = vld [vmem:[#allocation2 + $0x30] sm:$0xe]  ;;  %v16478_v30 = vrot.slane %v16294_v53, 3 }
 0x10e   : > { %16349 = vst [vmem:[#allocation93_spill] sm:$0xff] %v10464_v56  ;;  %v1298_v56 = vrot.slane %v16357_v26, 3  ;;  %v10503_v26 = vsel %vm1254_vm2, %v1291_v60, %v1293_v38  ;;  %v16372_v60 = vrot.slane %v16236_v3, 3  ;;  %v10528_v63 = vsel %vm1254_vm2, %v1301_v62, %v1303_v17 }
 0x10f   : > { %16351 = vst [vmem:[#allocation94_spill] sm:$0xff] %v10469_v33  ;;  %v1316_v2 = vrot.slane %v16376_v18, 3  ;;  %v16435_v33 = vld [vmem:[#allocation43_spill] sm:$0xff] }
 0x110   : > { %16353 = vst [vmem:[#allocation95_spill] sm:$0xff] %v10474_v8  ;;  %v10522_v38 = vsel %vm1254_vm2, %v16372_v60, %v1301_v62 }
 0x111   : > { %16355 = vst [vmem:[#allocation96_spill] sm:$0xff] %v10480_v42 }
 0x112   : > { %16359 = vst [vmem:[#allocation97_spill] sm:$0xff] %v10489_v4  ;;  %v1306_v4 = vrot.slane %v16366_v54, 3  ;;  %v1313_v54 = vrot.slane %v16374_v16, 3  ;;  %v16380_v16 = vunpack.c.l.bf16 %v10373_v19 }
 0x113   : > { %16360 = vst [vmem:[#allocation98_spill] sm:$0xff] %v10492_v37 }
 0x114   : > { %16364 = vst [vmem:[#allocation99_spill] sm:$0xff] %v10500_v20  ;;  %v10517_v20 = vsel %vm1254_vm2, %v1296_v43, %v1298_v56  ;;  %v16378_v43 = vrot.slane %v16244_v41, 3  ;;  %v1323_v5 = vrot.slane %v16380_v16, 3  ;;  %v10544_v17 = vsel %vm1254_vm2, %v1306_v4, %v1308_v51 }
 0x115   : > { %16365 = vst [vmem:[#allocation100_spill] sm:$0xff] %v10503_v26  ;;  %v1326_v56 = vrot.slane %v16290_v48, 3  ;;  %v10555_v36 = vsel %vm1254_vm2, %v1311_v14, %v1313_v54  ;;  %v16386_v16 = vrot.slane %v16260_v59, 3  ;;  %v1331_v51 = vrot.slane %v16308_v11, 3 }
 0x116   : > { %16368 = vst [vmem:[#allocation101_spill] sm:$0xff] %v10510_v31  ;;  %v1318_v31 = vrot.slane %v16377_v39, 3  ;;  %v10537_v60 = vsel %vm1254_vm2, %v16378_v43, %v1306_v4  ;;  %v10549_v39 = vsel %vm1254_vm2, %v16382_v22, %v1311_v14  ;;  %v16384_v43 = vunpack.c.l.bf16 %v10375_v58 }
 0x117   : > { %16371 = vst [vmem:[#allocation102_spill] sm:$0xff] %v10517_v20  ;;  %v10560_v62 = vsel %vm1254_vm2, %v16386_v16, %v1316_v2  ;;  %v16389_v48 = vrot.slane %v16269_v44, 3  ;;  %v16391_v54 = vunpack.c.l.bf16 %v10384_v34  ;;  %v10576_v16 = vsel %vm1254_vm2, %v1321_v52, %v1323_v5 }
 0x118   : > { %16373 = vst [vmem:[#allocation103_spill] sm:$0xff] %v10522_v38  ;;  %v1328_v18 = vrot.slane %v16384_v43, 3  ;;  %v10565_v22 = vsel %vm1254_vm2, %v1316_v2, %v1318_v31  ;;  %v16393_v4 = vrot.slane %v16280_v49, 3  ;;  %v1336_v2 = vrot.slane %v16315_v23, 3  ;;  %v1535_v38 = vld [vmem:[#allocation2 + $0x8] sm:$0xe] }
 0x119   : > { %16375 = vst [vmem:[#allocation104_spill] sm:$0xff] %v10528_v63  ;;  %v10570_v58 = vsel %vm1254_vm2, %v16389_v48, %v1321_v52  ;;  %v1333_v14 = vrot.slane %v16391_v54, 3  ;;  %v16395_v31 = vunpack.c.l.bf16 %v10390_v28  ;;  %v16397_v54 = vrot.slane %v16294_v53, 3  ;;  %v16498_v63 = vld [vmem:[#allocation13_spill] sm:$0xff] }
 0x11a   : > { %16379 = vst [vmem:[#allocation105_spill] sm:$0xff] %v10537_v60  ;;  %v10581_v11 = vsel %vm1254_vm2, %v16393_v4, %v1326_v56  ;;  %v10587_v48 = vsel %vm1254_vm2, %v1326_v56, %v1328_v18  ;;  %v16399_v5 = vunpack.c.l.bf16 %v10396_v15  ;;  %v16401_v23 = vrot.slane %v16298_v47, 3  ;;  %v16404_v56 = vld [vmem:[#allocation61_spill] sm:$0xff]  ;;  %v16474_v60 = vld [vmem:[#allocation14_spill] sm:$0xff] }
 0x11b   : > { %16381 = vst [vmem:[#allocation106_spill] sm:$0xff] %v10544_v17  ;;  %v1338_v19 = vrot.slane %v16395_v31, 3  ;;  %v10592_v43 = vsel %vm1254_vm2, %v16397_v54, %v1331_v51  ;;  %v10598_v4 = vsel %vm1254_vm2, %v1331_v51, %v1333_v14  ;;  %v16403_v18 = vrot.slane %v16165_v21, 3  ;;  %v16405_v54 = vld [vmem:[#allocation23_spill] sm:$0xff]  ;;  %v16409_v14 = vld [vmem:[#allocation64_spill] sm:$0xff] }
 0x11c   : > { %16383 = vst [vmem:[#allocation107_spill] sm:$0xff] %v10549_v39  ;;  %v1343_v34 = vrot.slane %v16399_v5, 3  ;;  %v10603_v31 = vsel %vm1254_vm2, %v16401_v23, %v1336_v2  ;;  %v16407_v5 = vrot.slane %v16322_v24, 3  ;;  %v16410_v15 = vrot.slane %v16177_v50, 3  ;;  %v16411_v21 = vld [vmem:[#allocation24_spill] sm:$0xff] }
 0x11d   : > { %16385 = vst [vmem:[#allocation108_spill] sm:$0xff] %v10555_v36  ;;  %v10608_v28 = vmax.f32 %v16404_v56, %v16403_v18  ;;  %v10613_v52 = vsel %vm1254_vm2, %v1336_v2, %v1338_v19  ;;  %v16412_v18 = vld [vmem:[#allocation68_spill] sm:$0xff]  ;;  %v16413_v2 = vrot.slane %v9607_v9, 3  ;;  %v16417_v19 = vld [vmem:[#allocation25_spill] sm:$0xff]  ;;  %v1536_v39 = vld [vmem:[#allocation2 + $0x1c] sm:$0xe] }
 0x11e   : > { %16387 = vst [vmem:[#allocation109_spill] sm:$0xff] %v10560_v62  ;;  %v10618_v51 = vsel %vm1254_vm2, %v16407_v5, %v1343_v34 }
 0x11f   : > { %16388 = vst [vmem:[#allocation110_spill] sm:$0xff] %v10565_v22  ;;  %v1538_v22 = vld [vmem:[#allocation2 + $0x44] sm:$0xe] }
 0x120   : > { %16390 = vst [vmem:[#allocation111_spill] sm:$0xff] %v10570_v58 }
 0x121   : > { %16392 = vst [vmem:[#allocation112_spill] sm:$0xff] %v10576_v16 }
 0x122   : > { %16394 = vst [vmem:[#allocation113_spill] sm:$0xff] %v10581_v11  ;;  %v10760_v11 = vld [vmem:[#allocation2 + $0x94] sm:$0xe] }
 0x123   : > { %16396 = vst [vmem:[#allocation114_spill] sm:$0xff] %v10587_v48  ;;  %v1616_v48 = vunpack.c.l.bf16 %v1536_v39  ;;  %v10791_v39 = vld [vmem:[#allocation2 + $0x148] sm:$0xe] }
 0x124   : > { %16398 = vst [vmem:[#allocation115_spill] sm:$0xff] %v10592_v43  ;;  %v10634_v43 = vmax.f32 %v10156_v12, %v16413_v2  ;;  %v16418_v12 = vrot.slane %v16054_v32, 3  ;;  %v16419_v2 = vld [vmem:[#allocation31_spill] sm:$0xff] }
 0x125   : > { %16400 = vst [vmem:[#allocation116_spill] sm:$0xff] %v10598_v4  ;;  %v1617_v4 = vunpack.c.l.bf16 %v1537_v61 }
 0x126   : > { %16402 = vst [vmem:[#allocation117_spill] sm:$0xff] %v10603_v31  ;;  %v10625_v31 = vmax.f32 %v16411_v21, %v16410_v15  ;;  %v16414_v15 = vrot.slane %v9644_v0, 3  ;;  %v16416_v21 = vld [vmem:[#allocation6_spill] sm:$0xff]  ;;  %v10652_v23 = vmax.f32 %v16419_v2, %v16418_v12  ;;  %v16429_v12 = vrot.slane %v16067_v45, 3  ;;  %v16504_v45 = vld [vmem:[#allocation83_spill] sm:$0xff] }
 0x127   : > { %16406 = vst [vmem:[#allocation61_spill] sm:$0xff] %v10613_v52  ;;  %v16430_v2 = vld [vmem:[#allocation18_spill] sm:$0xff]  ;;  %v1622_v52 = vunpack.c.l.bf16 %v10760_v11  ;;  %v10806_v61 = vrot.slane %v1617_v4, 4  ;;  %v16505_v56 = vunpack.c.l.bf16 %v16504_v45 }
 0x128   : > { %16408 = vst [vmem:[#allocation23_spill] sm:$0xff] %v10618_v51  ;;  %v10643_v5 = vmax.f32 %v10167_v27, %v16414_v15  ;;  %v16424_v27 = vrot.slane %v16061_v10, 3  ;;  %v16425_v15 = vld [vmem:[#allocation8_spill] sm:$0xff]  ;;  %v16500_v4 = vld [vmem:[#allocation34_spill] sm:$0xff] }
 0x129   : > { %16420 = vst [vmem:[#allocation24_spill] sm:$0xff] %v10652_v23  ;;  %v10670_v23 = vmax.f32 %v16430_v2, %v16429_v12  ;;  %v16442_v12 = vrot.slane %v16228_v25, 3  ;;  %v16443_v2 = vld [vmem:[#allocation10_spill] sm:$0xff]  ;;  %v16495_v25 = vld [vmem:[#allocation35_spill] sm:$0xff]  ;;  %v1679_v20 = vrot.slane %v16505_v56, 4  ;;  %v10868_v8 = vrot.slane %v1622_v52, 4 }
 0x12a   : > { %16415 = vst [vmem:[#allocation64_spill] sm:$0xff] %v10643_v5  ;;  %v10661_v5 = vmax.f32 %v16425_v15, %v16424_v27  ;;  %v16436_v27 = vrot.slane %v16435_v33, 3  ;;  %v16437_v15 = vld [vmem:[#allocation89_spill] sm:$0xff]  ;;  %v16496_v17 = vunpack.c.l.bf16 %v16495_v25  ;;  %v16508_v45 = vld [vmem:[#allocation42_spill] sm:$0xff] }
 0x12b   : > { %16431 = vst [vmem:[#allocation6_spill] sm:$0xff] %v10670_v23  ;;  %v10688_v23 = vmax.f32 %v16443_v2, %v16442_v12  ;;  %v16453_v12 = vrot.slane %v16244_v41, 3  ;;  %v16454_v2 = vld [vmem:[#allocation11_spill] sm:$0xff]  ;;  %v10800_v41 = vrot.slane %v1616_v48, 4  ;;  %v16509_v56 = vunpack.c.l.bf16 %v16508_v45  ;;  %v16515_v45 = vld [vmem:[#allocation46_spill] sm:$0xff] }
 0x12c   : > { %16426 = vst [vmem:[#allocation68_spill] sm:$0xff] %v10661_v5  ;;  %v10679_v5 = vmax.f32 %v16437_v15, %v16436_v27  ;;  %v16448_v27 = vrot.slane %v16236_v3, 3  ;;  %v16449_v15 = vld [vmem:[#allocation77_spill] sm:$0xff]  ;;  %v1664_v33 = vrot.slane %v16496_v17, 4 }
 0x12d   : > { %16444 = vst [vmem:[#allocation31_spill] sm:$0xff] %v10688_v23  ;;  %v10706_v23 = vmax.f32 %v16454_v2, %v16453_v12  ;;  %v16463_v12 = vrot.slane %v16260_v59, 3  ;;  %v16464_v2 = vld [vmem:[#allocation12_spill] sm:$0xff] }
 0x12e   : > { %16438 = vst [vmem:[#allocation25_spill] sm:$0xff] %v10679_v5  ;;  %v10697_v5 = vmax.f32 %v16449_v15, %v16448_v27  ;;  %v16458_v27 = vrot.slane %v16252_v35, 3  ;;  %v16459_v15 = vld [vmem:[#allocation33_spill] sm:$0xff]  ;;  %v16479_v59 = vld [vmem:[#allocation84_spill] sm:$0xff] }
 0x12f   : > { %16455 = vst [vmem:[#allocation18_spill] sm:$0xff] %v10706_v23  ;;  %v10724_v23 = vmax.f32 %v16464_v2, %v16463_v12  ;;  %v10751_v58 = vmax.f32 %v16479_v59, %v16478_v30  ;;  %v10762_v35 = vld [vmem:[#allocation2 + $0xa8] sm:$0xe]  ;;  %v10780_v12 = vld [vmem:[#allocation2 + $0x10c] sm:$0xe]  ;;  %v1618_v30 = vunpack.c.l.bf16 %v1538_v22 }
 0x130   : > { %16450 = vst [vmem:[#allocation8_spill] sm:$0xff] %v10697_v5  ;;  %v10715_v5 = vmax.f32 %v16459_v15, %v16458_v27  ;;  %v16468_v27 = vrot.slane %v16269_v44, 3  ;;  %v16469_v15 = vld [vmem:[#allocation53_spill] sm:$0xff]  ;;  %v1541_v44 = vld [vmem:[#allocation2 + $0x80] sm:$0xe]  ;;  %v1623_v3 = vunpack.c.l.bf16 %v10762_v35 }
 0x131   : > { %16465 = vst [vmem:[#allocation89_spill] sm:$0xff] %v10724_v23  ;;  %v16473_v23 = vrot.slane %v16280_v49, 3  ;;  %v10770_v49 = vld [vmem:[#allocation2 + $0xbc] sm:$0xe]  ;;  %v10783_v59 = vld [vmem:[#allocation2 + $0x120] sm:$0xe] }
 0x132   : > { %16460 = vst [vmem:[#allocation43_spill] sm:$0xff] %v10715_v5  ;;  %v10733_v5 = vmax.f32 %v16469_v15, %v16468_v27  ;;  %v1539_v27 = vld [vmem:[#allocation2 + $0x58] sm:$0xe]  ;;  %v1540_v15 = vld [vmem:[#allocation2 + $0x6c] sm:$0xe]  ;;  %v10813_v48 = vrot.slane %v1618_v30, 4 }
 0x133   : > { %v10742_v62 = vmax.f32 %v16474_v60, %v16473_v23  ;;  %16480 = vst [vmem:[#allocation11_spill] sm:$0xff] %v10751_v58  ;;  %v16483_v60 = vrot.slane %v16298_v47, 3  ;;  %v16484_v23 = vld [vmem:[#allocation45_spill] sm:$0xff]  ;;  %v10772_v47 = vld [vmem:[#allocation2 + $0xd0] sm:$0xe]  ;;  %v1619_v53 = vunpack.c.l.bf16 %v1539_v27  ;;  %v1621_v58 = vunpack.c.l.bf16 %v1541_v44  ;;  %v16491_v44 = vld [vmem:[#allocation7_spill] sm:$0xff] }
 0x134   : > { %16470 = vst [vmem:[#allocation10_spill] sm:$0xff] %v10733_v5  ;;  %v1620_v5 = vunpack.c.l.bf16 %v1540_v15  ;;  %v1625_v16 = vunpack.c.l.bf16 %v10772_v47  ;;  %v10789_v2 = vld [vmem:[#allocation2 + $0x134] sm:$0xe]  ;;  %v1657_v27 = vrot.slane %v16491_v44, 4  ;;  %v16492_v35 = vld [vmem:[#allocation81_spill] sm:$0xff]  ;;  %v10877_v0 = vrot.slane %v1623_v3, 4 }
 0x135   : > { %16475 = vst [vmem:[#allocation77_spill] sm:$0xff] %v10742_v62  ;;  %v10758_v62 = vmax.f32 %v16484_v23, %v16483_v60  ;;  %v10774_v60 = vld [vmem:[#allocation2 + $0xe4] sm:$0xe]  ;;  %v1615_v23 = vunpack.c.l.bf16 %v1535_v38  ;;  %v1624_v38 = vunpack.c.l.bf16 %v10770_v49  ;;  %v16493_v15 = vunpack.c.l.bf16 %v16492_v35  ;;  %v16494_v47 = vld [vmem:[#allocation9_spill] sm:$0xff] }
 0x136   : > { %v1626_v51 = vunpack.c.l.bf16 %v10774_v60  ;;  %v1662_v60 = vrot.slane %v16494_v47, 4  ;;  %v16497_v22 = vld [vmem:[#allocation29_spill] sm:$0xff]  ;;  %v16499_v35 = vunpack.c.l.bf16 %v16498_v63  ;;  %v10829_v63 = vrot.slane %v1619_v53, 4  ;;  %16514 = vst [vmem:[#allocation14_spill] sm:$0xff] %v10868_v8 }
 0x137   : > { %16485 = vst [vmem:[#allocation33_spill] sm:$0xff] %v10758_v62  ;;  %v10778_v62 = vld [vmem:[#allocation2 + $0xf8] sm:$0xe]  ;;  %v10795_v11 = vrot.slane %v1615_v23, 4  ;;  %v1659_v49 = vrot.slane %v16493_v15, 4  ;;  %v1667_v34 = vrot.slane %v16497_v22, 4  ;;  %v1630_v23 = vunpack.c.l.bf16 %v10789_v2 }
 0x138   : > { %v1669_v15 = vrot.slane %v16499_v35, 4  ;;  %v10824_v17 = vsel %vm1655_vm3, %v10800_v41, %v1662_v60  ;;  %v1672_v2 = vrot.slane %v16500_v4, 4  ;;  %v16501_v22 = vld [vmem:[#allocation56_spill] sm:$0xff]  ;;  %v16503_v30 = vld [vmem:[#allocation37_spill] sm:$0xff]  ;;  %v10835_v10 = vsel %vm1655_vm3, %v1662_v60, %v1664_v33  ;;  %16519 = vst [vmem:[#allocation45_spill] sm:$0xff] %v10877_v0 }
 0x139   : > { %v10817_v47 = vsel %vm1655_vm3, %v10795_v11, %v1657_v27  ;;  %v10820_v25 = vsel %vm1655_vm3, %v1657_v27, %v1659_v49  ;;  %v16502_v44 = vunpack.c.l.bf16 %v16501_v22  ;;  %v1677_v35 = vrot.slane %v16503_v30, 4  ;;  %v16507_v4 = vld [vmem:[#allocation41_spill] sm:$0xff]  ;;  %v16511_v30 = vld [vmem:[#allocation44_spill] sm:$0xff] }
 0x13a   : > { %v10839_v27 = vsel %vm1655_vm3, %v10806_v61, %v1667_v34  ;;  %v10841_v49 = vrot.slane %v1620_v5, 4  ;;  %v1682_v1 = vrot.slane %v16507_v4, 4  ;;  %v10849_v53 = vsel %vm1655_vm3, %v10813_v48, %v1672_v2 }
 0x13b   : > { %v1674_v36 = vrot.slane %v16502_v44, 4  ;;  %v10845_v44 = vsel %vm1655_vm3, %v1667_v34, %v1669_v15  ;;  %v1684_v22 = vrot.slane %v16509_v56, 4  ;;  %v10853_v33 = vrot.slane %v1621_v58, 4  ;;  %v16512_v34 = vld [vmem:[#allocation65_spill] sm:$0xff] }
 0x13c   : > { %16506 = vst [vmem:[#allocation12_spill] sm:$0xff] %v10841_v49  ;;  %v10860_v5 = vsel %vm1655_vm3, %v10829_v63, %v1677_v35  ;;  %v1687_v4 = vrot.slane %v16511_v30, 4  ;;  %v16513_v15 = vunpack.c.l.bf16 %v16512_v34  ;;  %v10866_v32 = vsel %vm1655_vm3, %v1677_v35, %v1679_v20  ;;  %v16516_v56 = vld [vmem:[#allocation17_spill] sm:$0xff]  ;;  %v16520_v30 = vld [vmem:[#allocation50_spill] sm:$0xff] }
 0x13d   : > { %16510 = vst [vmem:[#allocation53_spill] sm:$0xff] %v10853_v33  ;;  %v10856_v60 = vsel %vm1655_vm3, %v1672_v2, %v1674_v36  ;;  %v1692_v58 = vrot.slane %v16515_v45, 4  ;;  %v16517_v37 = vunpack.c.l.bf16 %v16516_v56  ;;  %v10875_v2 = vsel %vm1655_vm3, %v10841_v49, %v1682_v1  ;;  %v16521_v34 = vld [vmem:[#allocation85_spill] sm:$0xff] }
 0x13e   : > { %v1689_v26 = vrot.slane %v16513_v15, 4  ;;  %16518 = vst [vmem:[#allocation84_spill] sm:$0xff] %v10875_v2  ;;  %v1697_v42 = vrot.slane %v16520_v30, 4  ;;  %v16522_v15 = vunpack.c.l.bf16 %v16521_v34  ;;  %v10883_v20 = vsel %vm1655_vm3, %v1682_v1, %v1684_v22  ;;  %v16529_v30 = vld [vmem:[#allocation51_spill] sm:$0xff] }
 0x13f   : > { %v1694_v36 = vrot.slane %v16517_v37, 4  ;;  %16523 = vst [vmem:[#allocation7_spill] sm:$0xff] %v10883_v20  ;;  %v10887_v52 = vsel %vm1655_vm3, %v10853_v33, %v1687_v4  ;;  %v10889_v35 = vrot.slane %v1624_v38, 4  ;;  %v16526_v37 = vld [vmem:[#allocation54_spill] sm:$0xff]  ;;  %v10897_v3 = vsel %vm1655_vm3, %v10868_v8, %v1692_v58  ;;  %v16534_v33 = vld [vmem:[#allocation69_spill] sm:$0xff] }
 0x140   : > { %v1699_v9 = vrot.slane %v16522_v15, 4  ;;  %16524 = vst [vmem:[#allocation81_spill] sm:$0xff] %v10887_v52  ;;  %v1702_v45 = vrot.slane %v16526_v37, 4  ;;  %v10893_v56 = vsel %vm1655_vm3, %v1687_v4, %v1689_v26  ;;  %v16530_v34 = vunpack.c.l.bf16 %v16529_v30  ;;  %v16533_v52 = vld [vmem:[#allocation57_spill] sm:$0xff]  ;;  %v16539_v30 = vld [vmem:[#allocation59_spill] sm:$0xff] }
 0x141   : > { %16525 = vst [vmem:[#allocation9_spill] sm:$0xff] %v10889_v35  ;;  %v10901_v1 = vrot.slane %v1625_v16, 4  ;;  %v10904_v22 = vsel %vm1655_vm3, %v1692_v58, %v1694_v36  ;;  %v1707_v38 = vrot.slane %v16533_v52, 4  ;;  %v16535_v20 = vunpack.c.l.bf16 %v16534_v33  ;;  %v16544_v52 = vld [vmem:[#allocation63_spill] sm:$0xff] }
 0x142   : > { %16527 = vst [vmem:[#allocation35_spill] sm:$0xff] %v10893_v56  ;;  %v1704_v15 = vrot.slane %v16530_v34, 4  ;;  %v10909_v2 = vrot.slane %v1626_v51, 4  ;;  %v10913_v26 = vsel %vm1655_vm3, %v10877_v0, %v1697_v42  ;;  %v10916_v4 = vsel %vm1655_vm3, %v1697_v42, %v1699_v9  ;;  %v16540_v34 = vld [vmem:[#allocation20_spill] sm:$0xff]  ;;  %v16545_v9 = vld [vmem:[#allocation21_spill] sm:$0xff] }
 0x143   : > { %16528 = vst [vmem:[#allocation29_spill] sm:$0xff] %v10897_v3  ;;  %v1709_v37 = vrot.slane %v16535_v20, 4  ;;  %v1712_v16 = vrot.slane %v16539_v30, 4  ;;  %v16541_v3 = vunpack.c.l.bf16 %v16540_v34  ;;  %v1703_v36 = vsel %vm1655_vm3, %v10889_v35, %v1702_v45 }
 0x144   : > { %16531 = vst [vmem:[#allocation13_spill] sm:$0xff] %v10901_v1  ;;  %v1705_v33 = vsel %vm1655_vm3, %v1702_v45, %v1704_v15  ;;  %v16542_v51 = vunpack.c.l.bf16 %v10778_v62  ;;  %v1717_v0 = vrot.slane %v16544_v52, 4  ;;  %v1708_v42 = vsel %vm1655_vm3, %v10901_v1, %v1707_v38  ;;  %v16549_v15 = vld [vmem:[#allocation87_spill] sm:$0xff] }
 0x145   : > { %16532 = vst [vmem:[#allocation34_spill] sm:$0xff] %v10904_v22  ;;  %v1714_v58 = vrot.slane %v16541_v3, 4  ;;  %v16547_v34 = vunpack.c.l.bf16 %v10780_v12  ;;  %v1710_v45 = vsel %vm1655_vm3, %v1707_v38, %v1709_v37  ;;  %v1713_v62 = vsel %vm1655_vm3, %v10909_v2, %v1712_v16  ;;  %v16555_v37 = vld [vmem:[#allocation72_spill] sm:$0xff] }
 0x146   : > { %16536 = vst [vmem:[#allocation56_spill] sm:$0xff] %v10909_v2  ;;  %v10926_v20 = vrot.slane %v16542_v51, 4  ;;  %v16550_v51 = vunpack.c.l.bf16 %v16549_v15  ;;  %v16551_v22 = vunpack.c.l.bf16 %v10783_v59  ;;  %v1732_v2 = vrot.slane %v16555_v37, 4  ;;  %v16556_v15 = vld [vmem:[#allocation88_spill] sm:$0xff] }
 0x147   : > { %16537 = vst [vmem:[#allocation37_spill] sm:$0xff] %v10913_v26  ;;  %v10935_v3 = vrot.slane %v16547_v34, 4  ;;  %v16548_v26 = vld [vmem:[#allocation67_spill] sm:$0xff]  ;;  %v16558_v59 = vunpack.c.l.bf16 %v10791_v39 }
 0x148   : > { %16538 = vst [vmem:[#allocation83_spill] sm:$0xff] %v10916_v4  ;;  %v16546_v4 = vunpack.c.l.bf16 %v16545_v9  ;;  %v1722_v35 = vrot.slane %v16548_v26, 4  ;;  %v1724_v52 = vrot.slane %v16550_v51, 4  ;;  %v10945_v1 = vrot.slane %v16551_v22, 4  ;;  %v16552_v9 = vld [vmem:[#allocation70_spill] sm:$0xff]  ;;  %v16553_v34 = vld [vmem:[#allocation55_spill] sm:$0xff] }
 0x149   : > { %16543 = vst [vmem:[#allocation41_spill] sm:$0xff] %v10926_v20  ;;  %v1727_v12 = vrot.slane %v16552_v9, 4  ;;  %v16554_v8 = vunpack.c.l.bf16 %v16553_v34  ;;  %v10951_v26 = vrot.slane %v1630_v23, 4  ;;  %v1718_v38 = vsel %vm1655_vm3, %v10926_v20, %v1717_v0  ;;  %v16559_v9 = vld [vmem:[#allocation75_spill] sm:$0xff]  ;;  %v16560_v23 = vld [vmem:[#allocation58_spill] sm:$0xff] }
 0x14a   : > { %v1719_v30 = vrot.slane %v16546_v4, 4  ;;  %v1715_v4 = vsel %vm1655_vm3, %v1712_v16, %v1714_v58  ;;  %v16557_v51 = vunpack.c.l.bf16 %v16556_v15  ;;  %v1736_v22 = vrot.slane %v16558_v59, 4 }
 0x14b   : > { %v1729_v56 = vrot.slane %v16554_v8, 4  ;;  %v1723_v58 = vsel %vm1655_vm3, %v10935_v3, %v1722_v35  ;;  %v1737_v8 = vrot.slane %v16559_v9, 4  ;;  %v16561_v34 = vunpack.c.l.bf16 %v16560_v23 }
 0x14c   : > { %v1734_v49 = vrot.slane %v16557_v51, 4  ;;  %v1720_v16 = vsel %vm1655_vm3, %v1717_v0, %v1719_v30  ;;  %v1725_v20 = vsel %vm1655_vm3, %v1722_v35, %v1724_v52  ;;  %v1728_v37 = vsel %vm1655_vm3, %v10945_v1, %v1727_v12  ;;  %v16562_v51 = vld [vmem:[#allocation22_spill] sm:$0xff] }
 0x14d   : > { %v1739_v50 = vrot.slane %v16561_v34, 4  ;;  %v15624_v15 = vrot.slane %v16322_v24, 4  ;;  %v16563_v39 = vunpack.c.l.bf16 %v16562_v51  ;;  %v1730_v0 = vsel %vm1655_vm3, %v1727_v12, %v1729_v56  ;;  %v16645_v24 = vld [vmem:[#allocation30_spill] sm:$0xff] }
 0x14e   : > { %v1733_v30 = vsel %vm1655_vm3, %v10951_v26, %v1732_v2  ;;  %v1735_v9 = vsel %vm1655_vm3, %v1732_v2, %v1734_v49  ;;  %v1738_v23 = vsel %vm1655_vm3, %v1736_v22, %v1737_v8  ;;  %v1816_v52 = vmax.f32 %v10608_v28, %v10795_v11 }
 0x14f   : > { %v1744_v59 = vrot.slane %v16563_v39, 4  ;;  %v1740_v34 = vsel %vm1655_vm3, %v1737_v8, %v1739_v50  ;;  %v16564_v56 = vmax.f32 %v16405_v54, %v10416_v6  ;;  %v16565_v49 = vmax.f32 %v16409_v14, %v10421_v7  ;;  %v16568_v14 = vld [vmem:[#allocation71_spill] sm:$0xff] }
 0x150   : > { %v10997_v50 = vmax.f32 %v10625_v31, %v10800_v41  ;;  %v16566_v28 = vmax.f32 %v16412_v18, %v10426_v13  ;;  %v16567_v6 = vmax.f32 %v10153_v55, %v10432_v46  ;;  %v11013_v7 = vmax.f32 %v10634_v43, %v10806_v61  ;;  %v16569_v31 = vld [vmem:[#allocation91_spill] sm:$0xff]  ;;  %v16572_v55 = vld [vmem:[#allocation64_spill] sm:$0xff] }
 0x151   : > { %v1745_v35 = vsel %vm1655_vm3, %v15624_v15, %v1744_v59  ;;  %v10987_v12 = vmax.f32 %v16564_v56, %v10817_v47  ;;  %v10993_v2 = vmax.f32 %v16565_v49, %v10820_v25  ;;  %v16570_v41 = vmax.f32 %v16568_v14, %v16569_v31  ;;  %v16573_v43 = vld [vmem:[#allocation92_spill] sm:$0xff]  ;;  %v16590_v56 = vld [vmem:[#allocation27_spill] sm:$0xff]  ;;  %v16638_v15 = vld [vmem:[#allocation9_spill] sm:$0xff] }
 0x152   : > { %v11003_v11 = vmax.f32 %v16566_v28, %v10824_v17  ;;  %v11009_v54 = vmax.f32 %v16567_v6, %v10835_v10  ;;  %v16571_v13 = vmax.f32 %v10164_v57, %v10444_v29  ;;  %v11029_v46 = vmax.f32 %v16572_v55, %v10813_v48  ;;  %v16576_v57 = vld [vmem:[#allocation24_spill] sm:$0xff]  ;;  %v16579_v48 = vld [vmem:[#allocation93_spill] sm:$0xff]  ;;  %v16594_v6 = vld [vmem:[#allocation7_spill] sm:$0xff] }
 0x153   : > { %v11019_v47 = vmax.f32 %v16570_v41, %v10839_v27  ;;  %v16574_v10 = vmax.f32 %v16416_v21, %v16573_v43  ;;  %v16575_v25 = vmax.f32 %v16417_v19, %v10459_v40  ;;  %v11045_v29 = vmax.f32 %v16576_v57, %v10829_v63  ;;  %v16578_v27 = vld [vmem:[#allocation15_spill] sm:$0xff]  ;;  %v16582_v21 = vld [vmem:[#allocation26_spill] sm:$0xff]  ;;  %v16586_v59 = vld [vmem:[#allocation12_spill] sm:$0xff] }
 0x154   : > { %v11025_v18 = vmax.f32 %v16571_v13, %v10845_v44  ;;  %v16580_v44 = vmax.f32 %v16578_v27, %v16579_v48  ;;  %v16587_v40 = vld [vmem:[#allocation68_spill] sm:$0xff]  ;;  %v16591_v63 = vld [vmem:[#allocation95_spill] sm:$0xff]  ;;  %v16599_v13 = vld [vmem:[#allocation53_spill] sm:$0xff] }
 0x155   : > { %v11035_v61 = vmax.f32 %v16574_v10, %v10849_v53  ;;  %v11041_v17 = vmax.f32 %v16575_v25, %v10856_v60  ;;  %16577 = vst [vmem:[#allocation42_spill] sm:$0xff] %v11045_v29  ;;  %v16583_v53 = vld [vmem:[#allocation94_spill] sm:$0xff]  ;;  %v11061_v19 = vmax.f32 %v16587_v40, %v16586_v59  ;;  %v16589_v60 = vld [vmem:[#allocation84_spill] sm:$0xff]  ;;  %v16592_v49 = vmax.f32 %v16590_v56, %v16591_v63  ;;  %v16602_v43 = vld [vmem:[#allocation81_spill] sm:$0xff] }
 0x156   : > { %v11051_v8 = vmax.f32 %v16580_v44, %v10860_v5  ;;  %v16584_v51 = vmax.f32 %v16582_v21, %v16583_v53  ;;  %v16595_v14 = vld [vmem:[#allocation32_spill] sm:$0xff]  ;;  %v16600_v55 = vld [vmem:[#allocation6_spill] sm:$0xff]  ;;  %v16604_v25 = vld [vmem:[#allocation97_spill] sm:$0xff] }
 0x157   : > { %16588 = vst [vmem:[#allocation46_spill] sm:$0xff] %v11061_v19  ;;  %v11067_v28 = vmax.f32 %v16592_v49, %v16589_v60  ;;  %v16596_v5 = vld [vmem:[#allocation96_spill] sm:$0xff]  ;;  %v16607_v48 = vld [vmem:[#allocation35_spill] sm:$0xff]  ;;  %v16609_v21 = vld [vmem:[#allocation98_spill] sm:$0xff] }
 0x158   : > { %16581 = vst [vmem:[#allocation44_spill] sm:$0xff] %v11051_v8  ;;  %v11057_v39 = vmax.f32 %v16584_v51, %v10866_v32  ;;  %v16597_v31 = vmax.f32 %v16595_v14, %v16596_v5  ;;  %v11077_v32 = vmax.f32 %v16600_v55, %v16599_v13  ;;  %v16603_v10 = vld [vmem:[#allocation28_spill] sm:$0xff]  ;;  %v16608_v44 = vld [vmem:[#allocation47_spill] sm:$0xff]  ;;  %v16612_v59 = vld [vmem:[#allocation14_spill] sm:$0xff] }
 0x159   : > { %16593 = vst [vmem:[#allocation17_spill] sm:$0xff] %v11067_v28  ;;  %v16605_v57 = vmax.f32 %v16603_v10, %v16604_v25  ;;  %v16610_v53 = vmax.f32 %v16608_v44, %v16609_v21  ;;  %v16613_v40 = vld [vmem:[#allocation25_spill] sm:$0xff]  ;;  %v16616_v63 = vld [vmem:[#allocation90_spill] sm:$0xff]  ;;  %v16617_v49 = vld [vmem:[#allocation99_spill] sm:$0xff] }
 0x15a   : > { %16585 = vst [vmem:[#allocation65_spill] sm:$0xff] %v11057_v39  ;;  %v11073_v41 = vmax.f32 %v16597_v31, %v16594_v6  ;;  %v11093_v60 = vmax.f32 %v16613_v40, %v16612_v59  ;;  %v16615_v56 = vld [vmem:[#allocation29_spill] sm:$0xff]  ;;  %v16618_v6 = vmax.f32 %v16616_v63, %v16617_v49  ;;  %v16620_v5 = vld [vmem:[#allocation34_spill] sm:$0xff]  ;;  %v16621_v31 = vld [vmem:[#allocation60_spill] sm:$0xff] }
 0x15b   : > { %16601 = vst [vmem:[#allocation85_spill] sm:$0xff] %v11077_v32  ;;  %v11083_v27 = vmax.f32 %v16605_v57, %v16602_v43  ;;  %v11089_v51 = vmax.f32 %v16610_v53, %v16607_v48  ;;  %v16622_v13 = vld [vmem:[#allocation100_spill] sm:$0xff]  ;;  %v16625_v10 = vld [vmem:[#allocation45_spill] sm:$0xff]  ;;  %v16626_v25 = vld [vmem:[#allocation31_spill] sm:$0xff] }
 0x15c   : > { %16598 = vst [vmem:[#allocation50_spill] sm:$0xff] %v11073_v41  ;;  %v11099_v14 = vmax.f32 %v16618_v6, %v16615_v56  ;;  %v16623_v55 = vmax.f32 %v16621_v31, %v16622_v13  ;;  %v11109_v57 = vmax.f32 %v16626_v25, %v16625_v10  ;;  %v16628_v48 = vld [vmem:[#allocation37_spill] sm:$0xff]  ;;  %v16633_v40 = vld [vmem:[#allocation83_spill] sm:$0xff]  ;;  %v16634_v63 = vld [vmem:[#allocation36_spill] sm:$0xff] }
 0x15d   : > { %16606 = vst [vmem:[#allocation54_spill] sm:$0xff] %v11083_v27  ;;  %v16629_v44 = vld [vmem:[#allocation73_spill] sm:$0xff]  ;;  %v16635_v56 = vld [vmem:[#allocation102_spill] sm:$0xff]  ;;  %v16639_v31 = vld [vmem:[#allocation8_spill] sm:$0xff] }
 0x15e   : > { %16611 = vst [vmem:[#allocation51_spill] sm:$0xff] %v11089_v51  ;;  %v11105_v43 = vmax.f32 %v16623_v55, %v16620_v5  ;;  %v16630_v21 = vld [vmem:[#allocation101_spill] sm:$0xff]  ;;  %v16636_v49 = vmax.f32 %v16634_v63, %v16635_v56  ;;  %v11125_v5 = vmax.f32 %v16639_v31, %v16638_v15  ;;  %v16641_v13 = vld [vmem:[#allocation78_spill] sm:$0xff]  ;;  %v16642_v55 = vld [vmem:[#allocation103_spill] sm:$0xff] }
 0x15f   : > { %16614 = vst [vmem:[#allocation57_spill] sm:$0xff] %v11093_v60  ;;  %v16631_v53 = vmax.f32 %v16629_v44, %v16630_v21  ;;  %v16643_v10 = vmax.f32 %v16641_v13, %v16642_v55  ;;  %v16649_v21 = vld [vmem:[#allocation13_spill] sm:$0xff]  ;;  %v16656_v15 = vld [vmem:[#allocation39_spill] sm:$0xff]  ;;  %v16657_v31 = vld [vmem:[#allocation106_spill] sm:$0xff] }
 0x160   : > { %16619 = vst [vmem:[#allocation69_spill] sm:$0xff] %v11099_v14  ;;  %v11121_v6 = vmax.f32 %v16636_v49, %v16633_v40  ;;  %v16652_v40 = vld [vmem:[#allocation79_spill] sm:$0xff]  ;;  %v16653_v63 = vld [vmem:[#allocation105_spill] sm:$0xff] }
 0x161   : > { %16624 = vst [vmem:[#allocation59_spill] sm:$0xff] %v11105_v43  ;;  %v11115_v59 = vmax.f32 %v16631_v53, %v16628_v48  ;;  %v11130_v25 = vmax.f32 %v16643_v10, %v1703_v36  ;;  %v16650_v53 = vld [vmem:[#allocation18_spill] sm:$0xff]  ;;  %v16654_v56 = vmax.f32 %v16652_v40, %v16653_v63  ;;  %v16660_v36 = vld [vmem:[#allocation56_spill] sm:$0xff]  ;;  %v16661_v55 = vld [vmem:[#allocation43_spill] sm:$0xff] }
 0x162   : > { %16627 = vst [vmem:[#allocation20_spill] sm:$0xff] %v11109_v57  ;;  %v16646_v57 = vld [vmem:[#allocation104_spill] sm:$0xff]  ;;  %v11153_v10 = vmax.f32 %v16661_v55, %v16660_v36  ;;  %v16672_v63 = vld [vmem:[#allocation89_spill] sm:$0xff]  ;;  %v16679_v55 = vld [vmem:[#allocation110_spill] sm:$0xff] }
 0x163   : > { %16632 = vst [vmem:[#allocation63_spill] sm:$0xff] %v11115_v59  ;;  %v16647_v44 = vmax.f32 %v16645_v24, %v16646_v57  ;;  %v11139_v59 = vmax.f32 %v16650_v53, %v16649_v21  ;;  %v11144_v49 = vmax.f32 %v16654_v56, %v1708_v42  ;;  %v16663_v24 = vld [vmem:[#allocation49_spill] sm:$0xff]  ;;  %v16667_v21 = vld [vmem:[#allocation80_spill] sm:$0xff] }
 0x164   : > { %16637 = vst [vmem:[#allocation21_spill] sm:$0xff] %v11121_v6  ;;  %v16668_v53 = vld [vmem:[#allocation108_spill] sm:$0xff]  ;;  %v16671_v42 = vld [vmem:[#allocation41_spill] sm:$0xff] }
 0x165   : > { %16640 = vst [vmem:[#allocation67_spill] sm:$0xff] %v11125_v5  ;;  %v11135_v48 = vmax.f32 %v16647_v44, %v1705_v33  ;;  %v16658_v5 = vmax.f32 %v16656_v15, %v16657_v31  ;;  %v16664_v33 = vld [vmem:[#allocation107_spill] sm:$0xff]  ;;  %v11167_v56 = vmax.f32 %v16672_v63, %v16671_v42  ;;  %v16678_v36 = vld [vmem:[#allocation52_spill] sm:$0xff] }
 0x166   : > { %16644 = vst [vmem:[#allocation87_spill] sm:$0xff] %v11130_v25  ;;  %v16665_v57 = vmax.f32 %v16663_v24, %v16664_v33  ;;  %v16689_v42 = vld [vmem:[#allocation112_spill] sm:$0xff] }
 0x167   : > { %16648 = vst [vmem:[#allocation70_spill] sm:$0xff] %v11135_v48  ;;  %v11149_v13 = vmax.f32 %v16658_v5, %v1710_v45  ;;  %v16674_v45 = vld [vmem:[#allocation40_spill] sm:$0xff]  ;;  %v16675_v5 = vld [vmem:[#allocation109_spill] sm:$0xff] }
 0x168   : > { %16651 = vst [vmem:[#allocation55_spill] sm:$0xff] %v11139_v59  ;;  %v11158_v44 = vmax.f32 %v16665_v57, %v1713_v62  ;;  %v16669_v59 = vmax.f32 %v16667_v21, %v16668_v53  ;;  %v16676_v15 = vmax.f32 %v16674_v45, %v16675_v5  ;;  %v16682_v62 = vld [vmem:[#allocation10_spill] sm:$0xff] }
 0x169   : > { %16655 = vst [vmem:[#allocation72_spill] sm:$0xff] %v11144_v49  ;;  %v11181_v33 = vmax.f32 %v16682_v62, %v10935_v3  ;;  %v16688_v53 = vld [vmem:[#allocation38_spill] sm:$0xff] }
 0x16a   : > { %16659 = vst [vmem:[#allocation88_spill] sm:$0xff] %v11149_v13  ;;  %v11163_v40 = vmax.f32 %v16669_v59, %v1715_v4  ;;  %v11172_v31 = vmax.f32 %v16676_v15, %v1718_v38  ;;  %v16684_v4 = vld [vmem:[#allocation82_spill] sm:$0xff]  ;;  %v16685_v59 = vld [vmem:[#allocation111_spill] sm:$0xff]  ;;  %v16690_v63 = vmax.f32 %v16688_v53, %v16689_v42  ;;  %v16692_v38 = vld [vmem:[#allocation77_spill] sm:$0xff] }
 0x16b   : > { %16662 = vst [vmem:[#allocation75_spill] sm:$0xff] %v11153_v10  ;;  %v16680_v10 = vmax.f32 %v16678_v36, %v16679_v55  ;;  %v16686_v57 = vmax.f32 %v16684_v4, %v16685_v59  ;;  %v11195_v5 = vmax.f32 %v16692_v38, %v10945_v1  ;;  %v16698_v3 = vld [vmem:[#allocation62_spill] sm:$0xff]  ;;  %v16706_v53 = vld [vmem:[#allocation48_spill] sm:$0xff]  ;;  %v16707_v1 = vld [vmem:[#allocation115_spill] sm:$0xff] }
 0x16c   : > { %16666 = vst [vmem:[#allocation58_spill] sm:$0xff] %v11158_v44  ;;  %v11191_v45 = vmax.f32 %v16690_v63, %v1725_v20  ;;  %v16699_v55 = vld [vmem:[#allocation114_spill] sm:$0xff]  ;;  %v16704_v20 = vld [vmem:[#allocation11_spill] sm:$0xff]  ;;  %v16708_v42 = vmax.f32 %v16706_v53, %v16707_v1  ;;  %v11240_v1 = vmax.f32 %v1816_v52, %v10997_v50  ;;  %v1994_v52 = vmax.f32 %v11019_v47, %v11035_v61 }
 0x16d   : > { %16670 = vst [vmem:[#allocation22_spill] sm:$0xff] %v11163_v40  ;;  %v11177_v24 = vmax.f32 %v16680_v10, %v1720_v16  ;;  %v11186_v21 = vmax.f32 %v16686_v57, %v1723_v58  ;;  %v16694_v16 = vld [vmem:[#allocation16_spill] sm:$0xff]  ;;  %v16695_v10 = vld [vmem:[#allocation113_spill] sm:$0xff]  ;;  %v16700_v62 = vmax.f32 %v16698_v3, %v16699_v55  ;;  %v11212_v57 = vmax.f32 %v16704_v20, %v10951_v26  ;;  %v16710_v38 = vld [vmem:[#allocation66_spill] sm:$0xff] }
 0x16e   : > { %16673 = vst [vmem:[#allocation71_spill] sm:$0xff] %v11167_v56  ;;  %v16696_v15 = vmax.f32 %v16694_v16, %v16695_v10  ;;  %v16702_v58 = vld [vmem:[#allocation33_spill] sm:$0xff]  ;;  %v11217_v63 = vmax.f32 %v16708_v42, %v1733_v30  ;;  %v16722_v20 = vld [vmem:[#allocation74_spill] sm:$0xff]  ;;  %v1990_v42 = vmax.f32 %v10997_v50, %v11013_v7  ;;  %v1997_v50 = vmax.f32 %v11035_v61, %v11051_v8 }
 0x16f   : > { %16677 = vst [vmem:[#allocation91_spill] sm:$0xff] %v11172_v31  ;;  %v11205_v4 = vmax.f32 %v16700_v62, %v1730_v0  ;;  %v11208_v59 = vmax.f32 %v16702_v58, %v1736_v22  ;;  %v16715_v0 = vld [vmem:[#allocation117_spill] sm:$0xff]  ;;  %v16718_v22 = vld [vmem:[#allocation86_spill] sm:$0xff] }
 0x170   : > { %16681 = vst [vmem:[#allocation64_spill] sm:$0xff] %v11177_v24  ;;  %v11200_v36 = vmax.f32 %v16696_v15, %v1728_v37  ;;  %v16711_v37 = vld [vmem:[#allocation116_spill] sm:$0xff]  ;;  %v16714_v15 = vld [vmem:[#allocation19_spill] sm:$0xff]  ;;  %v16719_v62 = vld [vmem:[#allocation61_spill] sm:$0xff] }
 0x171   : > { %16683 = vst [vmem:[#allocation92_spill] sm:$0xff] %v11181_v33  ;;  %v16712_v16 = vmax.f32 %v16710_v38, %v16711_v37  ;;  %v16716_v3 = vmax.f32 %v16714_v15, %v16715_v0  ;;  %v16720_v58 = vmax.f32 %v16718_v22, %v16719_v62  ;;  %v2000_v38 = vmax.f32 %v11051_v8, %v11067_v28 }
 0x172   : > { %16687 = vst [vmem:[#allocation24_spill] sm:$0xff] %v11186_v21  ;;  %v2001_v37 = vmax.f32 %v11057_v39, %v11073_v41  ;;  %v2003_v15 = vmax.f32 %v11067_v28, %v11083_v27  ;;  %v2004_v0 = vmax.f32 %v11073_v41, %v11089_v51  ;;  %v2006_v22 = vmax.f32 %v11083_v27, %v11099_v14  ;;  %v16729_v28 = vld [vmem:[#allocation55_spill] sm:$0xff] }
 0x173   : > { %16691 = vst [vmem:[#allocation15_spill] sm:$0xff] %v11191_v45  ;;  %v11222_v10 = vmax.f32 %v16712_v16, %v1735_v9  ;;  %v11227_v55 = vmax.f32 %v16716_v3, %v1738_v23  ;;  %v11232_v26 = vmax.f32 %v16720_v58, %v1740_v34  ;;  %v1988_v9 = vmax.f32 %v10987_v12, %v11003_v11  ;;  %v16726_v58 = vld [vmem:[#allocation20_spill] sm:$0xff] }
 0x174   : > { %16693 = vst [vmem:[#allocation93_spill] sm:$0xff] %v11195_v5  ;;  %v1989_v23 = vmax.f32 %v10993_v2, %v11009_v54  ;;  %v1991_v34 = vmax.f32 %v11003_v11, %v11019_v47  ;;  %v1995_v12 = vmax.f32 %v11025_v18, %v11041_v17  ;;  %v1996_v2 = vmax.f32 %v11029_v46, %v11045_v29 }
 0x175   : > { %16697 = vst [vmem:[#allocation26_spill] sm:$0xff] %v11200_v36  ;;  %v1998_v11 = vmax.f32 %v11041_v17, %v11057_v39  ;;  %v2002_v16 = vmax.f32 %v11061_v19, %v11077_v32  ;;  %v2005_v3 = vmax.f32 %v11077_v32, %v11093_v60  ;;  %v2007_v62 = vmax.f32 %v11089_v51, %v11105_v43 }
 0x176   : > { %16701 = vst [vmem:[#allocation94_spill] sm:$0xff] %v11205_v4  ;;  %v2013_v27 = vmax.f32 %v11121_v6, %v11135_v48  ;;  %v2025_v39 = vmax.f32 %v11177_v24, %v11191_v45 }
 0x177   : > { %16703 = vst [vmem:[#allocation12_spill] sm:$0xff] %v11208_v59  ;;  %v16723_v59 = vld [vmem:[#allocation23_spill] sm:$0xff] }
 0x178   : > { %16705 = vst [vmem:[#allocation68_spill] sm:$0xff] %v11212_v57  ;;  %v16724_v53 = vmax.f32 %v16722_v20, %v16723_v59  ;;  %v1992_v59 = vmax.f32 %v11009_v54, %v11025_v18  ;;  %v1999_v54 = vmax.f32 %v11045_v29, %v11061_v19  ;;  %v2008_v20 = vmax.f32 %v11093_v60, %v16726_v58  ;;  %v16730_v19 = vld [vmem:[#allocation75_spill] sm:$0xff] }
 0x179   : > { %16709 = vst [vmem:[#allocation84_spill] sm:$0xff] %v11217_v63  ;;  %v2015_v60 = vmax.f32 %v11130_v25, %v11144_v49 }
 0x17a   : > { %16713 = vst [vmem:[#allocation27_spill] sm:$0xff] %v11222_v10  ;;  %v11237_v30 = vmax.f32 %v16724_v53, %v1745_v35  ;;  %v1993_v35 = vmax.f32 %v11013_v7, %v11029_v46  ;;  %v16727_v53 = vld [vmem:[#allocation63_spill] sm:$0xff] }
 0x17b   : > { %16717 = vst [vmem:[#allocation95_spill] sm:$0xff] %v11227_v55  ;;  %v2010_v55 = vmax.f32 %v11105_v43, %v11121_v6  ;;  %v2012_v32 = vmax.f32 %v16727_v53, %v11130_v25  ;;  %v2017_v43 = vmax.f32 %v16729_v28, %v16730_v19  ;;  %v2023_v6 = vmax.f32 %v11167_v56, %v11181_v33 }
 0x17c   : > { %16721 = vst [vmem:[#allocation7_spill] sm:$0xff] %v11232_v26  ;;  %v16728_v26 = vld [vmem:[#allocation67_spill] sm:$0xff]  ;;  %v2021_v25 = vmax.f32 %v11158_v44, %v11172_v31 }
 0x17d   : > { %16725 = vst [vmem:[#allocation32_spill] sm:$0xff] %v11237_v30  ;;  %v2009_v30 = vmax.f32 %v11099_v14, %v16727_v53  ;;  %v2011_v41 = vmax.f32 %v16726_v58, %v16728_v26  ;;  %v2014_v51 = vmax.f32 %v16728_v26, %v16729_v28  ;;  %v2016_v14 = vmax.f32 %v11135_v48, %v11149_v13 }
 0x17e   : > { %v2018_v58 = vmax.f32 %v11144_v49, %v11158_v44  ;;  %v2019_v53 = vmax.f32 %v11149_v13, %v11163_v40  ;;  %v2020_v26 = vmax.f32 %v16730_v19, %v11167_v56  ;;  %v2026_v48 = vmax.f32 %v11181_v33, %v11195_v5 }
 0x17f   : > { %v2027_v28 = vmax.f32 %v11186_v21, %v11200_v36  ;;  %v2022_v49 = vmax.f32 %v11163_v40, %v11177_v24  ;;  %v2024_v13 = vmax.f32 %v11172_v31, %v11186_v21  ;;  %v2028_v56 = vmax.f32 %v11191_v45, %v11205_v4 }
 0x180   : > { %v2029_v44 = vmax.f32 %v11195_v5, %v11212_v57  ;;  %v2031_v19 = vmax.f32 %v11205_v4, %v11222_v10  ;;  %v2134_v40 = vmax.f32 %v11240_v1, %v11013_v7  ;;  %v11333_v21 = vmax.f32 %v1988_v9, %v11019_v47  ;;  %v16735_v47 = vld [vmem:[#allocation65_spill] sm:$0xff] }
 0x181   : > { %v11336_v24 = vmax.f32 %v1989_v23, %v11025_v18  ;;  %v11339_v45 = vmax.f32 %v1990_v42, %v11029_v46  ;;  %v11342_v57 = vmax.f32 %v1991_v34, %v11035_v61  ;;  %v11345_v33 = vmax.f32 %v1992_v59, %v11041_v17  ;;  %v16737_v18 = vld [vmem:[#allocation46_spill] sm:$0xff]  ;;  %v16739_v23 = vld [vmem:[#allocation17_spill] sm:$0xff] }
 0x182   : > { %v11348_v10 = vmax.f32 %v1993_v35, %v11045_v29  ;;  %v11351_v7 = vmax.f32 %v1994_v52, %v11051_v8  ;;  %v11354_v1 = vmax.f32 %v1995_v12, %v16735_v47  ;;  %v11357_v9 = vmax.f32 %v1996_v2, %v16737_v18  ;;  %v16741_v34 = vld [vmem:[#allocation50_spill] sm:$0xff]  ;;  %v16743_v59 = vld [vmem:[#allocation85_spill] sm:$0xff]  ;;  %v16747_v52 = vld [vmem:[#allocation51_spill] sm:$0xff] }
 0x183   : > { %16731 = vst [vmem:[#allocation96_spill] sm:$0xff] %v11342_v57  ;;  %v11360_v42 = vmax.f32 %v1997_v50, %v16739_v23  ;;  %v11363_v57 = vmax.f32 %v1998_v11, %v16741_v34  ;;  %v16745_v35 = vld [vmem:[#allocation54_spill] sm:$0xff]  ;;  %v16749_v12 = vld [vmem:[#allocation57_spill] sm:$0xff]  ;;  %v16753_v50 = vld [vmem:[#allocation59_spill] sm:$0xff] }
 0x184   : > { %16732 = vst [vmem:[#allocation53_spill] sm:$0xff] %v11345_v33  ;;  %v11366_v33 = vmax.f32 %v1999_v54, %v16743_v59  ;;  %v16751_v2 = vld [vmem:[#allocation69_spill] sm:$0xff]  ;;  %v16755_v11 = vld [vmem:[#allocation20_spill] sm:$0xff]  ;;  %v16757_v54 = vld [vmem:[#allocation63_spill] sm:$0xff] }
 0x185   : > { %16733 = vst [vmem:[#allocation6_spill] sm:$0xff] %v11348_v10  ;;  %v11369_v10 = vmax.f32 %v2000_v38, %v16745_v35  ;;  %v16759_v38 = vld [vmem:[#allocation21_spill] sm:$0xff] }
 0x186   : > { %16734 = vst [vmem:[#allocation81_spill] sm:$0xff] %v11351_v7  ;;  %v11372_v7 = vmax.f32 %v2001_v37, %v16747_v52  ;;  %v16761_v37 = vld [vmem:[#allocation67_spill] sm:$0xff] }
 0x187   : > { %16736 = vst [vmem:[#allocation28_spill] sm:$0xff] %v11354_v1  ;;  %v11375_v1 = vmax.f32 %v2002_v16, %v16749_v12  ;;  %v16763_v16 = vld [vmem:[#allocation87_spill] sm:$0xff] }
 0x188   : > { %16738 = vst [vmem:[#allocation97_spill] sm:$0xff] %v11357_v9  ;;  %v11378_v9 = vmax.f32 %v2003_v15, %v16751_v2  ;;  %v16765_v15 = vld [vmem:[#allocation70_spill] sm:$0xff] }
 0x189   : > { %16740 = vst [vmem:[#allocation35_spill] sm:$0xff] %v11360_v42  ;;  %v11381_v42 = vmax.f32 %v2004_v0, %v16753_v50  ;;  %v16767_v0 = vld [vmem:[#allocation55_spill] sm:$0xff] }
 0x18a   : > { %16742 = vst [vmem:[#allocation47_spill] sm:$0xff] %v11363_v57  ;;  %v11384_v57 = vmax.f32 %v2005_v3, %v16755_v11  ;;  %v16768_v3 = vld [vmem:[#allocation72_spill] sm:$0xff] }
 0x18b   : > { %16744 = vst [vmem:[#allocation98_spill] sm:$0xff] %v11366_v33  ;;  %v11387_v33 = vmax.f32 %v2006_v22, %v16757_v54  ;;  %v16770_v22 = vld [vmem:[#allocation88_spill] sm:$0xff] }
 0x18c   : > { %16746 = vst [vmem:[#allocation14_spill] sm:$0xff] %v11369_v10  ;;  %v11390_v10 = vmax.f32 %v2007_v62, %v16759_v38  ;;  %v16772_v62 = vld [vmem:[#allocation75_spill] sm:$0xff] }
 0x18d   : > { %16748 = vst [vmem:[#allocation25_spill] sm:$0xff] %v11372_v7  ;;  %v11393_v7 = vmax.f32 %v2008_v20, %v16761_v37  ;;  %v16774_v20 = vld [vmem:[#allocation58_spill] sm:$0xff] }
 0x18e   : > { %16750 = vst [vmem:[#allocation29_spill] sm:$0xff] %v11375_v1  ;;  %v11396_v1 = vmax.f32 %v2009_v30, %v16763_v16  ;;  %v16776_v30 = vld [vmem:[#allocation22_spill] sm:$0xff] }
 0x18f   : > { %16752 = vst [vmem:[#allocation90_spill] sm:$0xff] %v11378_v9  ;;  %v11399_v9 = vmax.f32 %v2010_v55, %v16765_v15  ;;  %v16777_v55 = vld [vmem:[#allocation71_spill] sm:$0xff] }
 0x190   : > { %16754 = vst [vmem:[#allocation99_spill] sm:$0xff] %v11381_v42  ;;  %v11402_v42 = vmax.f32 %v2011_v41, %v16767_v0  ;;  %v11423_v41 = vmax.f32 %v2018_v58, %v11172_v31  ;;  %v11444_v58 = vmax.f32 %v2025_v39, %v11205_v4  ;;  %v2282_v39 = vmax.f32 %v11333_v21, %v11035_v61  ;;  %v16799_v61 = vld [vmem:[#allocation28_spill] sm:$0xff] }
 0x191   : > { %16756 = vst [vmem:[#allocation34_spill] sm:$0xff] %v11384_v57  ;;  %v11405_v57 = vmax.f32 %v2012_v32, %v16768_v3  ;;  %v16778_v32 = vld [vmem:[#allocation64_spill] sm:$0xff]  ;;  %v2289_v21 = vmax.f32 %v16799_v61, %v16741_v34 }
 0x192   : > { %16758 = vst [vmem:[#allocation60_spill] sm:$0xff] %v11387_v33  ;;  %v11408_v33 = vmax.f32 %v2013_v27, %v16770_v22  ;;  %v16780_v27 = vld [vmem:[#allocation92_spill] sm:$0xff] }
 0x193   : > { %16760 = vst [vmem:[#allocation100_spill] sm:$0xff] %v11390_v10  ;;  %v11411_v10 = vmax.f32 %v2014_v51, %v16772_v62  ;;  %v16781_v51 = vld [vmem:[#allocation24_spill] sm:$0xff] }
 0x194   : > { %16762 = vst [vmem:[#allocation45_spill] sm:$0xff] %v11393_v7  ;;  %v11414_v7 = vmax.f32 %v2015_v60, %v16774_v20  ;;  %v16783_v60 = vld [vmem:[#allocation15_spill] sm:$0xff] }
 0x195   : > { %16764 = vst [vmem:[#allocation31_spill] sm:$0xff] %v11396_v1  ;;  %v11417_v1 = vmax.f32 %v2016_v14, %v16776_v30  ;;  %v11438_v14 = vmax.f32 %v2023_v6, %v11195_v5  ;;  %v16793_v6 = vld [vmem:[#allocation7_spill] sm:$0xff]  ;;  %v16806_v61 = vld [vmem:[#allocation29_spill] sm:$0xff] }
 0x196   : > { %16766 = vst [vmem:[#allocation37_spill] sm:$0xff] %v11399_v9  ;;  %v11420_v9 = vmax.f32 %v2017_v43, %v16777_v55  ;;  %v11441_v43 = vmax.f32 %v2024_v13, %v11200_v36  ;;  %v2281_v13 = vmax.f32 %v2134_v40, %v11029_v46  ;;  %v16798_v46 = vld [vmem:[#allocation81_spill] sm:$0xff]  ;;  %v2296_v34 = vmax.f32 %v16806_v61, %v16755_v11 }
 0x197   : > { %16769 = vst [vmem:[#allocation73_spill] sm:$0xff] %v11405_v57  ;;  %v11426_v57 = vmax.f32 %v2019_v53, %v16778_v32  ;;  %v16786_v53 = vld [vmem:[#allocation68_spill] sm:$0xff]  ;;  %v2288_v40 = vmax.f32 %v16798_v46, %v16739_v23  ;;  %v16805_v46 = vld [vmem:[#allocation25_spill] sm:$0xff] }
 0x198   : > { %16771 = vst [vmem:[#allocation101_spill] sm:$0xff] %v11408_v33  ;;  %v11429_v33 = vmax.f32 %v2020_v26, %v16780_v27  ;;  %v11450_v26 = vmax.f32 %v2027_v28, %v11217_v63  ;;  %v2284_v28 = vmax.f32 %v11339_v45, %v11045_v29  ;;  %v16801_v45 = vld [vmem:[#allocation35_spill] sm:$0xff]  ;;  %v2295_v23 = vmax.f32 %v16805_v46, %v16753_v50 }
 0x199   : > { %16773 = vst [vmem:[#allocation83_spill] sm:$0xff] %v11411_v10  ;;  %v11432_v10 = vmax.f32 %v2021_v25, %v16781_v51  ;;  %v16789_v25 = vld [vmem:[#allocation27_spill] sm:$0xff]  ;;  %v2291_v29 = vmax.f32 %v16801_v45, %v16745_v35 }
 0x19a   : > { %16775 = vst [vmem:[#allocation36_spill] sm:$0xff] %v11414_v7  ;;  %v11435_v7 = vmax.f32 %v2022_v49, %v16783_v60  ;;  %v16791_v49 = vld [vmem:[#allocation12_spill] sm:$0xff]  ;;  %v16808_v45 = vld [vmem:[#allocation99_spill] sm:$0xff] }
 0x19b   : > { %16779 = vst [vmem:[#allocation102_spill] sm:$0xff] %v11426_v57  ;;  %v11447_v57 = vmax.f32 %v2026_v48, %v16786_v53  ;;  %v2283_v48 = vmax.f32 %v11336_v24, %v11041_v17  ;;  %v16800_v17 = vld [vmem:[#allocation97_spill] sm:$0xff]  ;;  %v2298_v35 = vmax.f32 %v16808_v45, %v16759_v38  ;;  %v2305_v45 = vmax.f32 %v11402_v42, %v16772_v62 }
 0x19c   : > { %16782 = vst [vmem:[#allocation9_spill] sm:$0xff] %v11432_v10  ;;  %v11453_v10 = vmax.f32 %v2028_v56, %v16789_v25  ;;  %v16795_v56 = vld [vmem:[#allocation96_spill] sm:$0xff]  ;;  %v2290_v24 = vmax.f32 %v16800_v17, %v16743_v59  ;;  %v16807_v17 = vld [vmem:[#allocation90_spill] sm:$0xff]  ;;  %v16812_v46 = vld [vmem:[#allocation45_spill] sm:$0xff]  ;;  %v2312_v42 = vmax.f32 %v11423_v41, %v16781_v51  ;;  %v2319_v41 = vmax.f32 %v11444_v58, %v16789_v25 }
 0x19d   : > { %16784 = vst [vmem:[#allocation8_spill] sm:$0xff] %v11435_v7  ;;  %v11456_v7 = vmax.f32 %v2029_v44, %v16791_v49  ;;  %v16796_v44 = vld [vmem:[#allocation53_spill] sm:$0xff]  ;;  %v2297_v59 = vmax.f32 %v16807_v17, %v16757_v54  ;;  %v2302_v50 = vmax.f32 %v16812_v46, %v16767_v0  ;;  %v16813_v61 = vld [vmem:[#allocation31_spill] sm:$0xff]  ;;  %v16827_v51 = vld [vmem:[#allocation42_spill] sm:$0xff] }
 0x19e   : > { %16785 = vst [vmem:[#allocation78_spill] sm:$0xff] %v11438_v14  ;;  %v11459_v14 = vmax.f32 %v2031_v19, %v16793_v6  ;;  %v16797_v19 = vld [vmem:[#allocation6_spill] sm:$0xff]  ;;  %v2303_v11 = vmax.f32 %v16813_v61, %v16768_v3  ;;  %v16814_v17 = vld [vmem:[#allocation37_spill] sm:$0xff]  ;;  %v2310_v61 = vmax.f32 %v11417_v1, %v16778_v32 }
 0x19f   : > { %16787 = vst [vmem:[#allocation103_spill] sm:$0xff] %v11447_v57  ;;  %v2304_v54 = vmax.f32 %v16814_v17, %v16770_v22  ;;  %v2311_v17 = vmax.f32 %v11420_v9, %v16780_v27  ;;  %v2318_v9 = vmax.f32 %v11441_v43, %v11217_v63  ;;  %v16829_v63 = vld [vmem:[#allocation65_spill] sm:$0xff]  ;;  %v16830_v25 = vld [vmem:[#allocation46_spill] sm:$0xff] }
 0x1a0   : > { %16788 = vst [vmem:[#allocation30_spill] sm:$0xff] %v11450_v26  ;;  %v11553_v58 = vmax.f32 %v2283_v48, %v16829_v63  ;;  %v16831_v57 = vld [vmem:[#allocation17_spill] sm:$0xff]  ;;  %v16832_v26 = vld [vmem:[#allocation50_spill] sm:$0xff] }
 0x1a1   : > { %16790 = vst [vmem:[#allocation104_spill] sm:$0xff] %v11453_v10  ;;  %v2285_v10 = vmax.f32 %v16795_v56, %v11051_v8  ;;  %v16802_v56 = vld [vmem:[#allocation47_spill] sm:$0xff]  ;;  %v16818_v46 = vld [vmem:[#allocation36_spill] sm:$0xff]  ;;  %v16836_v63 = vld [vmem:[#allocation57_spill] sm:$0xff] }
 0x1a2   : > { %16792 = vst [vmem:[#allocation13_spill] sm:$0xff] %v11456_v7  ;;  %v2286_v7 = vmax.f32 %v16796_v44, %v16735_v47  ;;  %v2292_v8 = vmax.f32 %v16802_v56, %v16747_v52  ;;  %v16803_v44 = vld [vmem:[#allocation98_spill] sm:$0xff]  ;;  %v2309_v0 = vmax.f32 %v16818_v46, %v11172_v31  ;;  %v11574_v48 = vmax.f32 %v2290_v24, %v16836_v63  ;;  %v16842_v24 = vld [vmem:[#allocation87_spill] sm:$0xff] }
 0x1a3   : > { %16794 = vst [vmem:[#allocation18_spill] sm:$0xff] %v11459_v14  ;;  %v2287_v14 = vmax.f32 %v16797_v19, %v16737_v18  ;;  %v2293_v47 = vmax.f32 %v16803_v44, %v16749_v12  ;;  %v16804_v19 = vld [vmem:[#allocation14_spill] sm:$0xff]  ;;  %v16810_v44 = vld [vmem:[#allocation60_spill] sm:$0xff] }
 0x1a4   : > { %v2294_v18 = vmax.f32 %v16804_v19, %v16751_v2  ;;  %v16809_v56 = vld [vmem:[#allocation34_spill] sm:$0xff]  ;;  %v2300_v12 = vmax.f32 %v16810_v44, %v16763_v16  ;;  %v16811_v19 = vld [vmem:[#allocation100_spill] sm:$0xff]  ;;  %v16816_v44 = vld [vmem:[#allocation101_spill] sm:$0xff] }
 0x1a5   : > { %v2299_v52 = vmax.f32 %v16809_v56, %v16761_v37  ;;  %v2301_v2 = vmax.f32 %v16811_v19, %v16765_v15  ;;  %v16815_v56 = vld [vmem:[#allocation73_spill] sm:$0xff]  ;;  %v2307_v16 = vmax.f32 %v16816_v44, %v16776_v30  ;;  %v16817_v19 = vld [vmem:[#allocation83_spill] sm:$0xff]  ;;  %v2314_v44 = vmax.f32 %v11429_v33, %v11195_v5  ;;  %v16821_v46 = vld [vmem:[#allocation8_spill] sm:$0xff] }
 0x1a6   : > { %v2306_v37 = vmax.f32 %v16815_v56, %v16774_v20  ;;  %v2308_v15 = vmax.f32 %v16817_v19, %v16777_v55  ;;  %v16819_v56 = vld [vmem:[#allocation102_spill] sm:$0xff]  ;;  %v16820_v19 = vld [vmem:[#allocation9_spill] sm:$0xff]  ;;  %v2316_v31 = vmax.f32 %v16821_v46, %v11205_v4  ;;  %v16825_v5 = vld [vmem:[#allocation32_spill] sm:$0xff]  ;;  %v11559_v33 = vmax.f32 %v2285_v10, %v16831_v57 }
 0x1a7   : > { %v2313_v20 = vmax.f32 %v16819_v56, %v16783_v60  ;;  %v2315_v55 = vmax.f32 %v16820_v19, %v11200_v36  ;;  %v16822_v1 = vld [vmem:[#allocation78_spill] sm:$0xff]  ;;  %v16823_v60 = vld [vmem:[#allocation95_spill] sm:$0xff]  ;;  %v11556_v56 = vmax.f32 %v2284_v28, %v16830_v25  ;;  %v16837_v25 = vld [vmem:[#allocation69_spill] sm:$0xff] }
 0x1a8   : > { %v2317_v32 = vmax.f32 %v16822_v1, %v16786_v53  ;;  %v16824_v19 = vld [vmem:[#allocation104_spill] sm:$0xff]  ;;  %v11547_v1 = vmax.f32 %v2281_v13, %v16827_v51  ;;  %v16834_v51 = vld [vmem:[#allocation54_spill] sm:$0xff]  ;;  %v11577_v28 = vmax.f32 %v2291_v29, %v16837_v25  ;;  %v16838_v57 = vld [vmem:[#allocation59_spill] sm:$0xff] }
 0x1a9   : > { %v2322_v36 = vmax.f32 %v16824_v19, %v16793_v6  ;;  %v16828_v53 = vld [vmem:[#allocation44_spill] sm:$0xff]  ;;  %v11562_v19 = vmax.f32 %v2286_v7, %v16832_v26  ;;  %v16833_v6 = vld [vmem:[#allocation85_spill] sm:$0xff]  ;;  %v11568_v13 = vmax.f32 %v2288_v40, %v16834_v51  ;;  %v11580_v10 = vmax.f32 %v2292_v8, %v16838_v57  ;;  %v16843_v29 = vld [vmem:[#allocation70_spill] sm:$0xff] }
 0x1aa   : > { %v11550_v43 = vmax.f32 %v2282_v39, %v16828_v53  ;;  %v11565_v4 = vmax.f32 %v2287_v14, %v16833_v6  ;;  %v16835_v53 = vld [vmem:[#allocation51_spill] sm:$0xff]  ;;  %v16839_v7 = vld [vmem:[#allocation20_spill] sm:$0xff]  ;;  %v11589_v40 = vmax.f32 %v2295_v23, %v16759_v38  ;;  %v11598_v63 = vmax.f32 %v2298_v35, %v16843_v29 }
 0x1ab   : > { %v11571_v39 = vmax.f32 %v2289_v21, %v16835_v53  ;;  %v11583_v26 = vmax.f32 %v2293_v47, %v16839_v7  ;;  %v16840_v14 = vld [vmem:[#allocation63_spill] sm:$0xff]  ;;  %v11595_v53 = vmax.f32 %v2297_v59, %v16842_v24  ;;  %v11604_v47 = vmax.f32 %v2300_v12, %v16768_v3  ;;  %v16848_v12 = vld [vmem:[#allocation64_spill] sm:$0xff] }
 0x1ac   : > { %v11586_v6 = vmax.f32 %v2294_v18, %v16840_v14  ;;  %v16841_v21 = vld [vmem:[#allocation67_spill] sm:$0xff]  ;;  %v11607_v18 = vmax.f32 %v2301_v2, %v16770_v22  ;;  %v11610_v23 = vmax.f32 %v2302_v50, %v16772_v62  ;;  %v11616_v59 = vmax.f32 %v2304_v54, %v16776_v30  ;;  %v16849_v50 = vld [vmem:[#allocation24_spill] sm:$0xff]  ;;  %v16851_v54 = vld [vmem:[#allocation93_spill] sm:$0xff] }
 0x1ad   : > { %v11592_v51 = vmax.f32 %v2296_v34, %v16841_v21  ;;  %v16844_v8 = vld [vmem:[#allocation55_spill] sm:$0xff]  ;;  %v16845_v34 = vld [vmem:[#allocation58_spill] sm:$0xff]  ;;  %v11625_v3 = vmax.f32 %v2307_v16, %v16848_v12  ;;  %v11628_v2 = vmax.f32 %v2308_v15, %v16780_v27  ;;  %v11631_v22 = vmax.f32 %v2309_v0, %v16849_v50  ;;  %v16854_v16 = vld [vmem:[#allocation68_spill] sm:$0xff] }
 0x1ae   : > { %v11601_v25 = vmax.f32 %v2299_v52, %v16844_v8  ;;  %v11613_v38 = vmax.f32 %v2303_v11, %v16845_v34  ;;  %v16846_v35 = vld [vmem:[#allocation71_spill] sm:$0xff]  ;;  %v11637_v30 = vmax.f32 %v2311_v17, %v16851_v54  ;;  %v11646_v24 = vmax.f32 %v2314_v44, %v16854_v16  ;;  %v16855_v15 = vld [vmem:[#allocation84_spill] sm:$0xff] }
 0x1af   : > { %v11619_v57 = vmax.f32 %v2305_v45, %v16846_v35  ;;  %v16847_v52 = vld [vmem:[#allocation91_spill] sm:$0xff]  ;;  %v16852_v45 = vld [vmem:[#allocation26_spill] sm:$0xff]  ;;  %v11649_v27 = vmax.f32 %v2315_v55, %v16855_v15  ;;  %v11658_v17 = vmax.f32 %v2318_v9, %v16823_v60  ;;  %v2476_v44 = vpack.c.bf16 %v11547_v1, %v11547_v1  ;;  %v11994_v60 = vld [vmem:[#allocation2 + $0xcc] sm:$0x8] }
 0x1b0   : > { %v11622_v7 = vmax.f32 %v2306_v37, %v16847_v52  ;;  %v16850_v11 = vld [vmem:[#allocation15_spill] sm:$0xff]  ;;  %v11640_v14 = vmax.f32 %v2312_v42, %v16852_v45  ;;  %v16853_v37 = vld [vmem:[#allocation94_spill] sm:$0xff]  ;;  %v2477_v55 = vpack.c.bf16 %v11550_v43, %v11550_v43  ;;  %v2480_v9 = vpack.c.bf16 %v11559_v33, %v11559_v33  ;;  %16909 = vst [vmem:[#allocation23_spill] sm:$0xff] %v11994_v60 }
 0x1b1   : > { %v11634_v62 = vmax.f32 %v2310_v61, %v16850_v11  ;;  %v11643_v21 = vmax.f32 %v2313_v20, %v16853_v37  ;;  %v16856_v0 = vld [vmem:[#allocation27_spill] sm:$0xff]  ;;  %v11655_v61 = vmax.f32 %v2317_v32, %v16791_v49  ;;  %v11664_v20 = vmax.f32 %v2322_v36, %v16825_v5 }
 0x1b2   : > { %v11652_v29 = vmax.f32 %v2316_v31, %v16856_v0  ;;  %v16857_v42 = vld [vmem:[#allocation7_spill] sm:$0xff]  ;;  %v2478_v31 = vpack.c.bf16 %v11553_v58, %v11553_v58  ;;  %v2479_v32 = vpack.c.bf16 %v11556_v56, %v11556_v56  ;;  %v2482_v36 = vpack.c.bf16 %v11565_v4, %v11565_v4 }
 0x1b3   : > { %v11661_v8 = vmax.f32 %v2319_v41, %v16857_v42  ;;  %16858 = vst [vmem:[#allocation79_spill] sm:$0xff] %v11664_v20  ;;  %v2481_v41 = vpack.c.bf16 %v11562_v19, %v11562_v19  ;;  %v2483_v1 = vpack.c.bf16 %v11568_v13, %v11568_v13  ;;  %v2484_v43 = vpack.c.bf16 %v11571_v39, %v11571_v39  ;;  %v11977_v45 = vld [vmem:[#allocation2 + $0xb8] sm:$0x8]  ;;  %v11996_v42 = vld [vmem:[#allocation2 + $0xe0] sm:$0x8] }
 0x1b4   : > { %v2485_v58 = vpack.c.bf16 %v11574_v48, %v11574_v48  ;;  %v2486_v56 = vpack.c.bf16 %v11577_v28, %v11577_v28  ;;  %v2487_v33 = vpack.c.bf16 %v11580_v10, %v11580_v10  ;;  %v2488_v19 = vpack.c.bf16 %v11583_v26, %v11583_v26  ;;  %16907 = vst [vmem:[#allocation61_spill] sm:$0xff] %v11977_v45 }
 0x1b5   : > { %v2489_v4 = vpack.c.bf16 %v11586_v6, %v11586_v6  ;;  %v2490_v13 = vpack.c.bf16 %v11589_v40, %v11589_v40  ;;  %v2491_v39 = vpack.c.bf16 %v11592_v51, %v11592_v51  ;;  %v2492_v48 = vpack.c.bf16 %v11595_v53, %v11595_v53  ;;  %16910 = vst [vmem:[#allocation21_spill] sm:$0xff] %v11996_v42 }
 0x1b6   : > { %v2493_v28 = vpack.c.bf16 %v11598_v63, %v11598_v63  ;;  %v2494_v10 = vpack.c.bf16 %v11601_v25, %v11601_v25  ;;  %v2495_v26 = vpack.c.bf16 %v11604_v47, %v11604_v47  ;;  %v2496_v6 = vpack.c.bf16 %v11607_v18, %v11607_v18 }
 0x1b7   : > { %v2497_v40 = vpack.c.bf16 %v11610_v23, %v11610_v23  ;;  %v2498_v51 = vpack.c.bf16 %v11613_v38, %v11613_v38  ;;  %v2499_v53 = vpack.c.bf16 %v11616_v59, %v11616_v59  ;;  %v2500_v63 = vpack.c.bf16 %v11619_v57, %v11619_v57 }
 0x1b8   : > { %v8772_v37 = vrot.slane %v2476_v44, 11  ;;  %v2577_v34 = vrot.slane %v2477_v55, 7  ;;  %v2580_v35 = vrot.slane %v2478_v31, 7  ;;  %v16859_v38 = vmov 0 }
 0x1b9   : > { %v16860_v38 = vsel %vm11740_vm6, 4294967295, %v16859_v38  ;;  %v8773_v52 = vrot.slane %v2479_v32, 11  ;;  %v2584_v12 = vrot.slane %v2480_v9, 7  ;;  %v2587_v23 = vrot.slane %v2481_v41, 7 }
 0x1ba   : > { %16861 = vst [vmem:[#allocation105_spill] sm:$0xff] %v16860_v38  ;;  %v8774_v18 = vrot.slane %v2482_v36, 11  ;;  %v11746_v50 = vsel %vm11740_vm6, %v8772_v37, %v2577_v34  ;;  %v2579_v11 = vrot.slane %v2577_v34, 4  ;;  %v2591_v47 = vrot.slane %v2483_v1, 7 }
 0x1bb   : > { %16862 = vst [vmem:[#allocation39_spill] sm:$0xff] %v11746_v50  ;;  %v2594_v54 = vrot.slane %v2484_v43, 7  ;;  %v11750_v44 = vsel %vm11740_vm6, %v8773_v52, %v2584_v12  ;;  %v2586_v55 = vrot.slane %v2584_v12, 4  ;;  %v8775_v31 = vrot.slane %v2485_v58, 11 }
 0x1bc   : > { %16863 = vst [vmem:[#allocation106_spill] sm:$0xff] %v11750_v44  ;;  %v2598_v25 = vrot.slane %v2486_v56, 7  ;;  %v11755_v32 = vsel %vm11740_vm6, %v2579_v11, %v2580_v35  ;;  %v11759_v9 = vsel %vm11740_vm6, %v8774_v18, %v2591_v47  ;;  %v2593_v41 = vrot.slane %v2591_v47, 4 }
 0x1bd   : > { %3169 = vst [vmem:[#allocation2 + $0x30] sm:$0xf] %v11746_v50  ;;  %v2601_v36 = vrot.slane %v2487_v33, 7  ;;  %v11764_v1 = vsel %vm11740_vm6, %v2586_v55, %v2587_v23  ;;  %v8776_v56 = vrot.slane %v2488_v19, 11  ;;  %v2605_v47 = vrot.slane %v2489_v4, 7 }
 0x1be   : > { %16864 = vst [vmem:[#allocation56_spill] sm:$0xff] %v11755_v32  ;;  %v11768_v43 = vsel %vm11740_vm6, %v8775_v31, %v2598_v25  ;;  %v2600_v58 = vrot.slane %v2598_v25, 4  ;;  %v11773_v18 = vsel %vm11740_vm6, %v2593_v41, %v2594_v54  ;;  %v2608_v33 = vrot.slane %v2490_v13, 7 }
 0x1bf   : > { %16865 = vst [vmem:[#allocation43_spill] sm:$0xff] %v11759_v9  ;;  %v8777_v34 = vrot.slane %v2491_v39, 11  ;;  %v2612_v35 = vrot.slane %v2492_v48, 7  ;;  %v2615_v52 = vrot.slane %v2493_v28, 7  ;;  %v8778_v12 = vrot.slane %v2494_v10, 11 }
 0x1c0   : > { %3171 = vst [vmem:[#allocation2 + $0x44] sm:$0xf] %v11750_v44  ;;  %v11778_v23 = vsel %vm11740_vm6, %v2600_v58, %v2601_v36  ;;  %v11783_v19 = vsel %vm11740_vm6, %v8776_v56, %v2605_v47  ;;  %v2607_v25 = vrot.slane %v2605_v47, 4  ;;  %v2619_v11 = vrot.slane %v2495_v26, 7 }
 0x1c1   : > { %16866 = vst [vmem:[#allocation49_spill] sm:$0xff] %v11764_v1  ;;  %v2622_v4 = vrot.slane %v2496_v6, 7  ;;  %v2513_v13 = vpack.c.bf16 %v11658_v17, %v11658_v17  ;;  %v2614_v39 = vrot.slane %v2612_v35, 4  ;;  %v8779_v54 = vrot.slane %v2497_v40, 11 }
 0x1c2   : > { %16867 = vst [vmem:[#allocation107_spill] sm:$0xff] %v11768_v43  ;;  %v2626_v37 = vrot.slane %v2498_v51, 7  ;;  %v11791_v48 = vsel %vm11740_vm6, %v2607_v25, %v2608_v33  ;;  %v11795_v28 = vsel %vm11740_vm6, %v8777_v34, %v2612_v35  ;;  %v2621_v10 = vrot.slane %v2619_v11, 4 }
 0x1c3   : > { %3170 = vst [vmem:[#allocation2 + $0x34] sm:$0xf] %v11755_v32  ;;  %v2629_v26 = vrot.slane %v2499_v53, 7  ;;  %v2514_v17 = vpack.c.bf16 %v11661_v8, %v11661_v8  ;;  %v11805_v6 = vsel %vm11740_vm6, %v2614_v39, %v2615_v52  ;;  %v11809_v40 = vsel %vm11740_vm6, %v8778_v12, %v2619_v11  ;;  %v11851_v52 = vld [vmem:[#allocation2 + $0x4] sm:$0x8] }
 0x1c4   : > { %16868 = vst [vmem:[#allocation80_spill] sm:$0xff] %v11773_v18  ;;  %v2628_v51 = vrot.slane %v2626_v37, 4  ;;  %v11814_v59 = vsel %vm11740_vm6, %v2621_v10, %v2622_v4  ;;  %v11818_v53 = vsel %vm11740_vm6, %v8779_v54, %v2626_v37  ;;  %v8780_v8 = vrot.slane %v2500_v63, 11  ;;  %v11865_v54 = vld [vmem:[#allocation2 + $0xc] sm:$0x7] }
 0x1c5   : > { %3172 = vst [vmem:[#allocation2 + $0x48] sm:$0xf] %v11764_v1  ;;  %v16877_v55 = vpack.c.bf16 %v11622_v7, %v11622_v7  ;;  %v16878_v41 = vpack.c.bf16 %v11625_v3, %v11625_v3  ;;  %v16879_v58 = vpack.c.bf16 %v11628_v2, %v11628_v2  ;;  %v16880_v47 = vpack.c.bf16 %v11631_v22, %v11631_v22  ;;  %v11867_v37 = vld [vmem:[#allocation2 + $0x18] sm:$0x8] }
 0x1c6   : > { %16869 = vst [vmem:[#allocation108_spill] sm:$0xff] %v11778_v23  ;;  %v16881_v57 = vpack.c.bf16 %v11637_v30, %v11637_v30  ;;  %v11842_v7 = vsel %vm11740_vm6, %v2628_v51, %v2629_v26  ;;  %v16883_v34 = vpack.c.bf16 %v11634_v62, %v11634_v62  ;;  %v16884_v35 = vpack.c.bf16 %v11640_v14, %v11640_v14  ;;  %v11863_v14 = vld [vmem:[#allocation2 + $0x8] sm:$0xff]   ;;  %v11879_v51 = vld [vmem:[#allocation2 + $0x20] sm:$0x7] }
 0x1c7   : > { %3173 = vst [vmem:[#allocation2 + $0x58] sm:$0xf] %v11759_v9  ;;  %v2633_v31 = vrot.slane %v16877_v55, 7  ;;  %v2636_v36 = vrot.slane %v16878_v41, 7  ;;  %v8781_v56 = vrot.slane %v16879_v58, 11  ;;  %v2640_v33 = vrot.slane %v16880_v47, 7 }
 0x1c8   : > { %16870 = vst [vmem:[#allocation41_spill] sm:$0xff] %v11783_v19  ;;  %v8782_v63 = vrot.slane %v16881_v57, 11  ;;  %v2643_v2 = vrot.slane %v16883_v34, 7  ;;  %v2647_v22 = vrot.slane %v16884_v35, 7  ;;  %v16885_v12 = vpack.c.bf16 %v11643_v21, %v11643_v21  ;;  %v11881_v55 = vld [vmem:[#allocation2 + $0x2c] sm:$0x8] }
 0x1c9   : > { %3174 = vst [vmem:[#allocation2 + $0x5c] sm:$0xf] %v11773_v18  ;;  %v2635_v3 = vrot.slane %v2633_v31, 4  ;;  %v2642_v30 = vrot.slane %v2640_v33, 4  ;;  %v16886_v11 = vpack.c.bf16 %v11646_v24, %v11646_v24  ;;  %v16887_v62 = vpack.c.bf16 %v11649_v27, %v11649_v27  ;;  %v11900_v57 = vld [vmem:[#allocation2 + $0x40] sm:$0x8] }
 0x1ca   : > { %3175 = vst [vmem:[#allocation2 + $0x6c] sm:$0xf] %v11768_v43  ;;  %v2650_v25 = vrot.slane %v16885_v12, 7  ;;  %v11873_v10 = vsel %vm11740_vm6, %v8780_v8, %v2633_v31  ;;  %v2649_v24 = vrot.slane %v2647_v22, 4  ;;  %v16889_v27 = vpack.c.bf16 %v11652_v29, %v11652_v29  ;;  %v11896_v31 = vld [vmem:[#allocation2 + $0x1c] sm:$0xff]   ;;  %v11898_v47 = vld [vmem:[#allocation2 + $0x30] sm:$0xff]  }
 0x1cb   : > { %16871 = vst [vmem:[#allocation89_spill] sm:$0xff] %v11791_v48  ;;  %v8783_v4 = vrot.slane %v16886_v11, 11  ;;  %v2654_v39 = vrot.slane %v16887_v62, 7  ;;  %v11885_v41 = vsel %vm11740_vm6, %v2635_v3, %v2636_v36  ;;  %v11889_v58 = vsel %vm11740_vm6, %v8781_v56, %v2640_v33  ;;  %v11915_v3 = vld [vmem:[#allocation2 + $0x34] sm:$0x7] }
 0x1cc   : > { %16872 = vst [vmem:[#allocation40_spill] sm:$0xff] %v11795_v28  ;;  %v2657_v26 = vrot.slane %v16889_v27, 7  ;;  %v11893_v8 = vsel %vm11740_vm6, %v8782_v63, %v2647_v22  ;;  %v11902_v34 = vld [vmem:[#allocation2 + $0x44] sm:$0xff]   ;;  %v11906_v36 = vsel %vm11740_vm6, %v2642_v30, %v2643_v2  ;;  %v11912_v33 = vrot.slane %v2513_v13, 7  ;;  %v11917_v35 = vld [vmem:[#allocation2 + $0x54] sm:$0x8] }
 0x1cd   : > { %3176 = vst [vmem:[#allocation2 + $0x70] sm:$0xf] %v11778_v23  ;;  %v2656_v29 = vrot.slane %v2654_v39, 4  ;;  %v11910_v56 = vsel %vm11740_vm6, %v8783_v4, %v2654_v39  ;;  %v2664_v63 = vrot.slane %v2514_v17, 7  ;;  %v11921_v22 = vsel %vm11740_vm6, %v2649_v24, %v2650_v25  ;;  %v11933_v17 = vld [vmem:[#allocation2 + $0x48] sm:$0x7] }
 0x1ce   : > { %16873 = vst [vmem:[#allocation109_spill] sm:$0xff] %v11805_v6  ;;  %v16898_v30 = vpack.c.bf16 %v11655_v61, %v11655_v61  ;;  %v11937_v11 = vld [vmem:[#allocation2 + $0x68] sm:$0x8]  ;;  %v11939_v4 = vld [vmem:[#allocation2 + $0x7c] sm:$0x8]  ;;  %v2663_v62 = vrot.slane %v11912_v33, 4  ;;  %v11951_v27 = vunpack.c.l.bf16 %v11863_v14  ;;  %v11963_v0 = vunpack.c.l.bf16 %v11896_v31 }
 0x1cf   : > { %16874 = vst [vmem:[#allocation52_spill] sm:$0xff] %v11809_v40  ;;  %v11925_v2 = vsel %vm11740_vm6, %v2656_v29, %v2657_v26  ;;  %v11948_v24 = vld [vmem:[#allocation2 + $0x90] sm:$0x8]  ;;  %v11960_v25 = vld [vmem:[#allocation2 + $0xa4] sm:$0x8]  ;;  %v11968_v5 = vunpack.c.l.bf16 %v11898_v47  ;;  %v11982_v16 = vunpack.c.l.bf16 %v11902_v34  ;;  %v16935_v1 = vunpack.c.l.bf16 %v11867_v37 }
 0x1d0   : > { %3177 = vst [vmem:[#allocation2 + $0x80] sm:$0xf] %v11783_v19  ;;  %v11930_v13 = vrot.slane %v16898_v30, 11  ;;  %v11935_v12 = vld [vmem:[#allocation2 + $0x58] sm:$0xff]   ;;  %v11972_v26 = vsel %vm11740_vm6, %v2663_v62, %v2664_v63 }
 0x1d1   : > { %16875 = vst [vmem:[#allocation110_spill] sm:$0xff] %v11814_v59  ;;  %v11944_v39 = vld [vmem:[#allocation2 + $0x5c] sm:$0x7]  ;;  %v3426_v44 = vrot.slane %v16935_v1, 1 }
 0x1d2   : > { %16876 = vst [vmem:[#allocation10_spill] sm:$0xff] %v11818_v53 }
 0x1d3   : > { %3178 = vst [vmem:[#allocation2 + $0x84] sm:$0xf] %v11791_v48 }
 0x1d4   : > { %3179 = vst [vmem:[#allocation2 + $0x94] sm:$0xf] %v11795_v28  ;;  %v11946_v61 = vld [vmem:[#allocation2 + $0x6c] sm:$0xff]  }
 0x1d5   : > { %16882 = vst [vmem:[#allocation82_spill] sm:$0xff] %v11842_v7  ;;  %v11956_v30 = vld [vmem:[#allocation2 + $0x70] sm:$0x7] }
 0x1d6   : > { %3180 = vst [vmem:[#allocation2 + $0x98] sm:$0xf] %v11805_v6  ;;  %v12043_v6 = vunpack.c.h.bf16 %v11902_v34 }
 0x1d7   : > { %3181 = vst [vmem:[#allocation2 + $0xa8] sm:$0xf] %v11809_v40  ;;  %v12037_v40 = vunpack.c.h.bf16 %v11896_v31 }
 0x1d8   : > { %16888 = vst [vmem:[#allocation111_spill] sm:$0xff] %v11873_v10 }
 0x1d9   : > { %3182 = vst [vmem:[#allocation2 + $0xac] sm:$0xf] %v11814_v59 }
 0x1da   : > { %16890 = vst [vmem:[#allocation38_spill] sm:$0xff] %v11885_v41  ;;  %v11958_v21 = vld [vmem:[#allocation2 + $0x84] sm:$0x7] }
 0x1db   : > { %16891 = vst [vmem:[#allocation112_spill] sm:$0xff] %v11889_v58  ;;  %v3220_v29 = vld [vmem:[#allocation2 + $0x80] sm:$0xff]  }
 0x1dc   : > { %16892 = vst [vmem:[#allocation77_spill] sm:$0xff] %v11893_v8  ;;  %v12007_v20 = vunpack.c.l.bf16 %v3220_v29  ;;  %v12054_v19 = vunpack.c.h.bf16 %v3220_v29 }
 0x1dd   : > { %3183 = vst [vmem:[#allocation2 + $0xbc] sm:$0xf] %v11818_v53  ;;  %v3223_v46 = vld [vmem:[#allocation2 + $0x94] sm:$0xff]  }
 0x1de   : > { %16893 = vst [vmem:[#allocation16_spill] sm:$0xff] %v11906_v36  ;;  %v11975_v15 = vld [vmem:[#allocation2 + $0x98] sm:$0x7] }
 0x1df   : > { %16894 = vst [vmem:[#allocation113_spill] sm:$0xff] %v11910_v56 }
 0x1e0   : > { %16895 = vst [vmem:[#allocation62_spill] sm:$0xff] %v11912_v33  ;;  %v3226_v49 = vld [vmem:[#allocation2 + $0xa8] sm:$0xff]   ;;  %v12040_v33 = vunpack.c.h.bf16 %v11898_v47  ;;  %v12058_v47 = vunpack.c.h.bf16 %v3223_v46 }
 0x1e1   : > { %3184 = vst [vmem:[#allocation2 + $0xc0] sm:$0xf] %v11842_v7  ;;  %v11985_v63 = vld [vmem:[#allocation2 + $0xac] sm:$0x7]  ;;  %v12011_v7 = vunpack.c.l.bf16 %v3223_v46  ;;  %v12015_v62 = vunpack.c.l.bf16 %v3226_v49  ;;  %v12060_v43 = vunpack.c.h.bf16 %v3226_v49  ;;  %v3427_v46 = vrot.slane %v11963_v0, 1 }
 0x1e2   : > { %16896 = vst [vmem:[#allocation114_spill] sm:$0xff] %v11921_v22  ;;  %v3434_v50 = vrot.slane %v12040_v33, 1  ;;  %v16939_v49 = vunpack.c.l.bf16 %v11900_v57 }
 0x1e3   : > { %16897 = vst [vmem:[#allocation33_spill] sm:$0xff] %v11925_v2 }
 0x1e4   : > { %16899 = vst [vmem:[#allocation11_spill] sm:$0xff] %v11930_v13 }
 0x1e5   : > { %3185 = vst [vmem:[#allocation2 + $0xd0] sm:$0xf] %v11873_v10 }
 0x1e6   : > { %16900 = vst [vmem:[#allocation48_spill] sm:$0xff] %v11939_v4 }
 0x1e7   : > { %3186 = vst [vmem:[#allocation2 + $0xd4] sm:$0xf] %v11885_v41  ;;  %v12000_v41 = vunpack.c.l.bf16 %v11946_v61 }
 0x1e8   : > { %16901 = vst [vmem:[#allocation115_spill] sm:$0xff] %v11948_v24  ;;  %v3229_v10 = vld [vmem:[#allocation2 + $0xbc] sm:$0xff]  }
 0x1e9   : > { %3187 = vst [vmem:[#allocation2 + $0xe4] sm:$0xf] %v11889_v58  ;;  %v11990_v58 = vunpack.c.l.bf16 %v11935_v12  ;;  %v12005_v13 = vld [vmem:[#allocation2 + $0xc0] sm:$0x7]  ;;  %v12062_v34 = vunpack.c.h.bf16 %v3229_v10 }
 0x1ea   : > { %16902 = vst [vmem:[#allocation66_spill] sm:$0xff] %v11956_v30  ;;  %v16944_v30 = vunpack.c.l.bf16 %v11948_v24 }
 0x1eb   : > { %16903 = vst [vmem:[#allocation116_spill] sm:$0xff] %v11958_v21  ;;  %v3454_v21 = vrot.slane %v12054_v19, 1 }
 0x1ec   : > { %16904 = vst [vmem:[#allocation19_spill] sm:$0xff] %v11960_v25 }
 0x1ed   : > { %16905 = vst [vmem:[#allocation117_spill] sm:$0xff] %v11972_v26 }
 0x1ee   : > { %3188 = vst [vmem:[#allocation2 + $0xe8] sm:$0xf] %v11906_v36  ;;  %v12019_v59 = vld [vmem:[#allocation2 + $0xd4] sm:$0x7]  ;;  %v12052_v36 = vunpack.c.h.bf16 %v11946_v61  ;;  %v3422_v61 = vrot.slane %v11951_v27, 1 }
 0x1ef   : > { %16906 = vst [vmem:[#allocation86_spill] sm:$0xff] %v11975_v15 }
 0x1f0   : > { %3189 = vst [vmem:[#allocation2 + $0xf8] sm:$0xf] %v11893_v8 }
 0x1f1   : > { %16908 = vst [vmem:[#allocation74_spill] sm:$0xff] %v11985_v63 }
 0x1f2   : > { %3190 = vst [vmem:[#allocation2 + $0xfc] sm:$0xf] %v11921_v22  ;;  %v12022_v22 = vunpack.c.l.bf16 %v3229_v10  ;;  %v16936_v10 = vunpack.c.l.bf16 %v11881_v55 }
 0x1f3   : > { %16911 = vst [vmem:[#allocation72_spill] sm:$0xff] %v12000_v41 }
 0x1f4   : > { %3192 = vst [vmem:[#allocation2 + $0x110] sm:$0xf] %v11925_v2  ;;  %v3232_v2 = vld [vmem:[#allocation2 + $0xd0] sm:$0xff]   ;;  %v3431_v32 = vrot.slane %v16936_v10, 1  ;;  %v3437_v10 = vrot.slane %v11982_v16, 1 }
 0x1f5   : > { %16912 = vst [vmem:[#allocation88_spill] sm:$0xff] %v12005_v13  ;;  %v12027_v8 = vunpack.c.l.bf16 %v3232_v2  ;;  %v3235_v28 = vld [vmem:[#allocation2 + $0xe4] sm:$0xff]   ;;  %v12066_v9 = vunpack.c.h.bf16 %v3232_v2  ;;  %v16942_v13 = vunpack.c.l.bf16 %v11937_v11 }
 0x1f6   : > { %16913 = vst [vmem:[#allocation75_spill] sm:$0xff] %v12007_v20  ;;  %v12034_v48 = vld [vmem:[#allocation2 + $0xe8] sm:$0x7]  ;;  %v12048_v53 = vunpack.c.l.bf16 %v3235_v28 }
 0x1f7   : > { %16914 = vst [vmem:[#allocation22_spill] sm:$0xff] %v12011_v7  ;;  %v3446_v63 = vrot.slane %v16942_v13, 1 }
 0x1f8   : > { %16915 = vst [vmem:[#allocation92_spill] sm:$0xff] %v12015_v62 }
 0x1f9   : > { %3191 = vst [vmem:[#allocation2 + $0x10c] sm:$0xf] %v11910_v56  ;;  %v12032_v56 = vunpack.c.h.bf16 %v11863_v14  ;;  %v12056_v31 = vld [vmem:[#allocation2 + $0xfc] sm:$0x7]  ;;  %v12068_v14 = vunpack.c.h.bf16 %v3235_v28  ;;  %v3432_v28 = vrot.slane %v11968_v5, 1 }
 0x1fa   : > { %16916 = vst [vmem:[#allocation96_spill] sm:$0xff] %v12019_v59  ;;  %v3273_v23 = vld [vmem:[#allocation2 + $0xfc] sm:$0xf] }
 0x1fb   : > { %16917 = vst [vmem:[#allocation53_spill] sm:$0xff] %v12022_v22  ;;  %v12079_v2 = vunpack.c.l.bf16 %v3273_v23  ;;  %v16938_v38 = vrot.slane %v12032_v56, 1  ;;  %v16940_v23 = vrot.slane %v12037_v40, 1 }
 0x1fc   : > { %3194 = vst [vmem:[#allocation2 + $0x124] sm:$0xf] %v11972_v26  ;;  %v12046_v26 = vunpack.c.h.bf16 %v11935_v12  ;;  %v16932_v12 = vunpack.c.l.bf16 %v11851_v52 }
 0x1fd   : > { %16918 = vst [vmem:[#allocation6_spill] sm:$0xff] %v12027_v8  ;;  %v12087_v1 = vsel %vm552_vm0, %v3422_v61, %v16938_v38  ;;  %v3433_v38 = vsel %vm552_vm0, %v3431_v32, %v3432_v28 }
 0x1fe   : > { %16919 = vst [vmem:[#allocation81_spill] sm:$0xff] %v12032_v56  ;;  %v3421_v18 = vrot.slane %v16932_v12, 1  ;;  %v3428_v12 = vsel %vm552_vm0, %v3426_v44, %v3427_v46  ;;  %v12107_v44 = vsel %vm552_vm0, %v3432_v28, %v3434_v50 }
 0x1ff   : > { %16920 = vst [vmem:[#allocation28_spill] sm:$0xff] %v12034_v48  ;;  %v3436_v48 = vrot.slane %v16939_v49, 1  ;;  %v3444_v49 = vrot.slane %v12046_v26, 1 }
 0x200   : > { %16921 = vst [vmem:[#allocation97_spill] sm:$0xff] %v12037_v40  ;;  %v3423_v29 = vsel %vm552_vm0, %v3421_v18, %v3422_v61  ;;  %v16941_v18 = vunpack.c.l.bf16 %v11917_v35  ;;  %v3442_v61 = vrot.slane %v11990_v58, 1 }
 0x201   : > { %16922 = vst [vmem:[#allocation35_spill] sm:$0xff] %v12040_v33  ;;  %v3439_v33 = vrot.slane %v12043_v6, 1 }
 0x202   : > { %16923 = vst [vmem:[#allocation47_spill] sm:$0xff] %v12043_v6  ;;  %v3441_v59 = vrot.slane %v16941_v18, 1  ;;  %v16943_v6 = vunpack.c.l.bf16 %v11939_v4  ;;  %v3438_v18 = vsel %vm552_vm0, %v3436_v48, %v3437_v10  ;;  %v12121_v28 = vsel %vm552_vm0, %v3442_v61, %v3444_v49 }
 0x203   : > { %16924 = vst [vmem:[#allocation98_spill] sm:$0xff] %v12046_v26  ;;  %v12115_v32 = vsel %vm552_vm0, %v3437_v10, %v3439_v33  ;;  %v3452_v26 = vrot.slane %v12007_v20, 1  ;;  %v3457_v4 = vrot.slane %v12011_v7, 1  ;;  %v3459_v10 = vrot.slane %v12058_v47, 1 }
 0x204   : > { %16925 = vst [vmem:[#allocation14_spill] sm:$0xff] %v12048_v53  ;;  %v3451_v15 = vrot.slane %v16943_v6, 1  ;;  %v3443_v13 = vsel %vm552_vm0, %v3441_v59, %v3442_v61  ;;  %v16946_v20 = vunpack.c.l.bf16 %v11960_v25  ;;  %v3462_v61 = vrot.slane %v12015_v62, 1 }
 0x205   : > { %16926 = vst [vmem:[#allocation25_spill] sm:$0xff] %v12052_v36  ;;  %v12139_v7 = vsel %vm552_vm0, %v3452_v26, %v3454_v21 }
 0x206   : > { %16927 = vst [vmem:[#allocation29_spill] sm:$0xff] %v12054_v19  ;;  %v3461_v19 = vrot.slane %v16946_v20, 1  ;;  %v3453_v59 = vsel %vm552_vm0, %v3451_v15, %v3452_v26  ;;  %v12147_v15 = vsel %vm552_vm0, %v3457_v4, %v3459_v10 }
 0x207   : > { %16928 = vst [vmem:[#allocation90_spill] sm:$0xff] %v12056_v31  ;;  %v12096_v31 = vsel %vm552_vm0, %v3427_v46, %v16940_v23  ;;  %v3447_v46 = vrot.slane %v12000_v41, 1  ;;  %v3449_v23 = vrot.slane %v12052_v36, 1  ;;  %v3456_v36 = vrot.slane %v16944_v30, 1 }
 0x208   : > { %16929 = vst [vmem:[#allocation99_spill] sm:$0xff] %v12058_v47  ;;  %v3464_v41 = vrot.slane %v12060_v43, 1  ;;  %v16947_v30 = vunpack.c.l.bf16 %v11977_v45  ;;  %v16949_v47 = vunpack.c.l.bf16 %v11994_v60  ;;  %v3474_v45 = vrot.slane %v12066_v9, 1 }
 0x209   : > { %16930 = vst [vmem:[#allocation34_spill] sm:$0xff] %v12060_v43  ;;  %v3448_v6 = vsel %vm552_vm0, %v3446_v63, %v3447_v46  ;;  %v12128_v48 = vsel %vm552_vm0, %v3447_v46, %v3449_v23  ;;  %v3467_v63 = vrot.slane %v12022_v22, 1  ;;  %v3469_v46 = vrot.slane %v12062_v34, 1 }
 0x20a   : > { %16931 = vst [vmem:[#allocation60_spill] sm:$0xff] %v12062_v34  ;;  %v3466_v24 = vrot.slane %v16947_v30, 1  ;;  %v3471_v25 = vrot.slane %v16949_v47, 1  ;;  %v3458_v20 = vsel %vm552_vm0, %v3456_v36, %v3457_v4  ;;  %v3472_v43 = vrot.slane %v12027_v8, 1 }
 0x20b   : > { %16933 = vst [vmem:[#allocation100_spill] sm:$0xff] %v12066_v9  ;;  %v3463_v30 = vsel %vm552_vm0, %v3461_v19, %v3462_v61  ;;  %v12153_v26 = vsel %vm552_vm0, %v3462_v61, %v3464_v41  ;;  %v16952_v22 = vunpack.c.l.bf16 %v11996_v42  ;;  %v3477_v60 = vrot.slane %v12048_v53, 1 }
 0x20c   : > { %16934 = vst [vmem:[#allocation45_spill] sm:$0xff] %v12068_v14  ;;  %v3468_v47 = vsel %vm552_vm0, %v3466_v24, %v3467_v63  ;;  %v12160_v36 = vsel %vm552_vm0, %v3467_v63, %v3469_v46  ;;  %v3473_v4 = vsel %vm552_vm0, %v3471_v25, %v3472_v43  ;;  %v3479_v8 = vrot.slane %v12068_v14, 1 }
 0x20d   : > { %16937 = vst [vmem:[#allocation31_spill] sm:$0xff] %v12079_v2  ;;  %v3476_v34 = vrot.slane %v16952_v22, 1  ;;  %v12165_v9 = vsel %vm552_vm0, %v3472_v43, %v3474_v45  ;;  %v16955_v22 = vunpack.c.l.bf16 %v11851_v52  ;;  %v16957_v25 = vrot.slane %v12032_v56, 1 }
 0x20e   : > { %16945 = vst [vmem:[#allocation37_spill] sm:$0xff] %v12128_v48  ;;  %v12174_v24 = vsel %vm552_vm0, %v3477_v60, %v3479_v8  ;;  %v16958_v14 = vunpack.c.l.bf16 %v11865_v54  ;;  %v16962_v63 = vunpack.c.l.bf16 %v11881_v55  ;;  %v16966_v55 = vunpack.c.l.bf16 %v11917_v35  ;;  %v16974_v35 = vld [vmem:[#allocation48_spill] sm:$0xff] }
 0x20f   : > { %16948 = vst [vmem:[#allocation73_spill] sm:$0xff] %v12139_v7  ;;  %v3478_v19 = vsel %vm552_vm0, %v3476_v34, %v3477_v60  ;;  %v12171_v42 = vmax.f32 %v16955_v22, %v3423_v29  ;;  %v16959_v34 = vunpack.c.l.bf16 %v11867_v37  ;;  %v16960_v29 = vrot.slane %v12037_v40, 1 }
 0x210   : > { %16950 = vst [vmem:[#allocation101_spill] sm:$0xff] %v12147_v15  ;;  %v12182_v43 = vmax.f32 %v16958_v14, %v16957_v25  ;;  %v16961_v60 = vunpack.c.l.bf16 %v11879_v51  ;;  %v12198_v61 = vmax.f32 %v16962_v63, %v3433_v38  ;;  %v16963_v37 = vunpack.c.l.bf16 %v11915_v3 }
 0x211   : > { %16951 = vst [vmem:[#allocation83_spill] sm:$0xff] %v12153_v26  ;;  %v12186_v53 = vmax.f32 %v16959_v34, %v3428_v12  ;;  %v16964_v12 = vunpack.c.l.bf16 %v11900_v57  ;;  %v16965_v34 = vunpack.c.l.bf16 %v11933_v17  ;;  %v12218_v38 = vmax.f32 %v16966_v55, %v3443_v13  ;;  %v16977_v55 = vld [vmem:[#allocation75_spill] sm:$0xff]  ;;  %v16984_v17 = vld [vmem:[#allocation22_spill] sm:$0xff]  ;;  %v17026_v15 = vld [vmem:[#allocation60_spill] sm:$0xff] }
 0x212   : > { %16953 = vst [vmem:[#allocation36_spill] sm:$0xff] %v12160_v36  ;;  %v12194_v22 = vmax.f32 %v16961_v60, %v16960_v29  ;;  %v12204_v14 = vmax.f32 %v16963_v37, %v3434_v50  ;;  %v16967_v50 = vunpack.c.l.bf16 %v11944_v39  ;;  %v16968_v57 = vunpack.c.l.bf16 %v11937_v11  ;;  %v16970_v60 = vld [vmem:[#allocation72_spill] sm:$0xff]  ;;  %v16981_v11 = vld [vmem:[#allocation115_spill] sm:$0xff]  ;;  %v17023_v36 = vld [vmem:[#allocation29_spill] sm:$0xff] }
 0x213   : > { %16954 = vst [vmem:[#allocation102_spill] sm:$0xff] %v12165_v9  ;;  %v12208_v25 = vmax.f32 %v16964_v12, %v3438_v18  ;;  %v12214_v29 = vmax.f32 %v16965_v34, %v3439_v33  ;;  %v16971_v33 = vld [vmem:[#allocation66_spill] sm:$0xff]  ;;  %v16975_v13 = vunpack.c.l.bf16 %v16974_v35 }
 0x214   : > { %16956 = vst [vmem:[#allocation9_spill] sm:$0xff] %v12174_v24  ;;  %v12224_v63 = vmax.f32 %v16967_v50, %v3444_v49  ;;  %v12228_v18 = vmax.f32 %v16968_v57, %v3448_v6  ;;  %v16972_v37 = vunpack.c.l.bf16 %v16971_v33  ;;  %v16978_v49 = vld [vmem:[#allocation116_spill] sm:$0xff]  ;;  %v16982_v6 = vunpack.c.l.bf16 %v16981_v11  ;;  %v16997_v33 = vld [vmem:[#allocation53_spill] sm:$0xff]  ;;  %v17021_v9 = vld [vmem:[#allocation98_spill] sm:$0xff] }
 0x215   : > { %v12238_v34 = vmax.f32 %v16975_v13, %v3453_v59  ;;  %v16979_v50 = vunpack.c.l.bf16 %v16978_v49  ;;  %v16988_v59 = vld [vmem:[#allocation19_spill] sm:$0xff]  ;;  %v17004_v49 = vld [vmem:[#allocation6_spill] sm:$0xff]  ;;  %v17017_v24 = vrot.slane %v12079_v2, 1 }
 0x216   : > { %16969 = vst [vmem:[#allocation8_spill] sm:$0xff] %v12228_v18  ;;  %v12234_v12 = vmax.f32 %v16972_v37, %v3449_v23  ;;  %v12248_v57 = vmax.f32 %v16982_v6, %v3458_v20  ;;  %v16985_v23 = vld [vmem:[#allocation86_spill] sm:$0xff]  ;;  %v16989_v35 = vunpack.c.l.bf16 %v16988_v59  ;;  %v16994_v20 = vld [vmem:[#allocation61_spill] sm:$0xff] }
 0x217   : > { %16976 = vst [vmem:[#allocation104_spill] sm:$0xff] %v12238_v34  ;;  %v12244_v3 = vmax.f32 %v16979_v50, %v3454_v21  ;;  %v16986_v37 = vunpack.c.l.bf16 %v16985_v23  ;;  %v16991_v21 = vld [vmem:[#allocation74_spill] sm:$0xff]  ;;  %v16995_v11 = vunpack.c.l.bf16 %v16994_v20 }
 0x218   : > { %16973 = vst [vmem:[#allocation78_spill] sm:$0xff] %v12234_v12  ;;  %v12258_v13 = vmax.f32 %v16989_v35, %v3463_v30  ;;  %v16992_v50 = vunpack.c.l.bf16 %v16991_v21  ;;  %v17001_v30 = vld [vmem:[#allocation23_spill] sm:$0xff]  ;;  %v17011_v23 = vld [vmem:[#allocation14_spill] sm:$0xff]  ;;  %v17030_v12 = vmax.f32 %v11963_v0, %v12096_v31  ;;  %v17032_v31 = vmax.f32 %v11982_v16, %v12115_v32  ;;  %v17039_v32 = vld [vmem:[#allocation72_spill] sm:$0xff] }
 0x219   : > { %16980 = vst [vmem:[#allocation42_spill] sm:$0xff] %v12244_v3  ;;  %v12254_v51 = vmax.f32 %v16986_v37, %v3459_v10  ;;  %v12268_v6 = vmax.f32 %v16995_v11, %v3468_v47  ;;  %v16998_v10 = vld [vmem:[#allocation88_spill] sm:$0xff]  ;;  %v17002_v59 = vunpack.c.l.bf16 %v17001_v30  ;;  %v17008_v47 = vld [vmem:[#allocation21_spill] sm:$0xff]  ;;  %v3765_v30 = vrot.slane %v12037_v40, 2  ;;  %v17016_v21 = vld [vmem:[#allocation47_spill] sm:$0xff] }
 0x21a   : > { %16983 = vst [vmem:[#allocation44_spill] sm:$0xff] %v12248_v57  ;;  %v12264_v39 = vmax.f32 %v16992_v50, %v3464_v41  ;;  %v16999_v37 = vunpack.c.l.bf16 %v16998_v10  ;;  %v17005_v41 = vld [vmem:[#allocation96_spill] sm:$0xff]  ;;  %v17009_v20 = vunpack.c.l.bf16 %v17008_v47  ;;  %v17015_v47 = vld [vmem:[#allocation35_spill] sm:$0xff]  ;;  %v3771_v10 = vrot.slane %v17016_v21, 2 }
 0x21b   : > { %16987 = vst [vmem:[#allocation65_spill] sm:$0xff] %v12254_v51  ;;  %v12278_v35 = vmax.f32 %v17002_v59, %v3473_v4  ;;  %v17006_v50 = vunpack.c.l.bf16 %v17005_v41  ;;  %v3764_v4 = vrot.slane %v11963_v0, 2  ;;  %v3767_v59 = vrot.slane %v11968_v5, 2  ;;  %v17012_v41 = vld [vmem:[#allocation28_spill] sm:$0xff] }
 0x21c   : > { %16990 = vst [vmem:[#allocation46_spill] sm:$0xff] %v12258_v13  ;;  %v12274_v54 = vmax.f32 %v16999_v37, %v3469_v46  ;;  %v12288_v11 = vmax.f32 %v17009_v20, %v3478_v19  ;;  %v3761_v46 = vrot.slane %v11951_v27, 2  ;;  %v3762_v37 = vrot.slane %v12032_v56, 2  ;;  %v17027_v3 = vld [vmem:[#allocation100_spill] sm:$0xff] }
 0x21d   : > { %16993 = vst [vmem:[#allocation17_spill] sm:$0xff] %v12264_v39  ;;  %v12284_v52 = vmax.f32 %v17006_v50, %v3474_v45  ;;  %v17013_v45 = vunpack.c.l.bf16 %v17012_v41  ;;  %v3768_v19 = vrot.slane %v17015_v47, 2  ;;  %v3770_v20 = vrot.slane %v11982_v16, 2  ;;  %v17022_v47 = vld [vmem:[#allocation25_spill] sm:$0xff]  ;;  %v17025_v39 = vld [vmem:[#allocation34_spill] sm:$0xff] }
 0x21e   : > { %16996 = vst [vmem:[#allocation50_spill] sm:$0xff] %v12268_v6  ;;  %v3773_v40 = vrot.slane %v11990_v58, 2  ;;  %v3776_v41 = vrot.slane %v16970_v60, 2  ;;  %v3779_v21 = vrot.slane %v16977_v55, 2  ;;  %v3785_v6 = vrot.slane %v12015_v62, 2  ;;  %v17028_v55 = vld [vmem:[#allocation45_spill] sm:$0xff] }
 0x21f   : > { %17000 = vst [vmem:[#allocation85_spill] sm:$0xff] %v12274_v54  ;;  %v12299_v50 = vmax.f32 %v17013_v45, %v3479_v8  ;;  %v3774_v54 = vrot.slane %v17021_v9, 2  ;;  %v3763_v8 = vsel %vm893_vm1, %v3761_v46, %v3762_v37  ;;  %v3766_v45 = vsel %vm893_vm1, %v3764_v4, %v3765_v30 }
 0x220   : > { %17003 = vst [vmem:[#allocation54_spill] sm:$0xff] %v12278_v35  ;;  %v3769_v35 = vsel %vm893_vm1, %v3767_v59, %v3768_v19  ;;  %v3772_v9 = vsel %vm893_vm1, %v3770_v20, %v3771_v10  ;;  %v3786_v26 = vrot.slane %v17025_v39, 2  ;;  %v3788_v13 = vrot.slane %v16997_v33, 2 }
 0x221   : > { %17007 = vst [vmem:[#allocation51_spill] sm:$0xff] %v12284_v52  ;;  %v3789_v57 = vrot.slane %v17026_v15, 2  ;;  %v3794_v7 = vrot.slane %v17011_v23, 2  ;;  %v3795_v62 = vrot.slane %v17028_v55, 2  ;;  %v12340_v48 = vmax.f32 %v12171_v42, %v3761_v46 }
 0x222   : > { %17010 = vst [vmem:[#allocation57_spill] sm:$0xff] %v12288_v11  ;;  %v17018_v11 = vld [vmem:[#allocation90_spill] sm:$0xff]  ;;  %v3787_v33 = vsel %vm893_vm1, %v3785_v6, %v3786_v26  ;;  %v12348_v55 = vmax.f32 %v12182_v43, %v3762_v37  ;;  %v12351_v60 = vmax.f32 %v12186_v53, %v3764_v4  ;;  %v12356_v2 = vmax.f32 %v17030_v12, %v3766_v45 }
 0x223   : > { %17014 = vst [vmem:[#allocation69_spill] sm:$0xff] %v12299_v50  ;;  %v17019_v56 = vunpack.c.l.bf16 %v17018_v11  ;;  %v3777_v50 = vrot.slane %v17022_v47, 2  ;;  %v3780_v11 = vrot.slane %v17023_v36, 2  ;;  %v3775_v47 = vsel %vm893_vm1, %v3773_v40, %v3774_v54 }
 0x224   : > { %v3791_v36 = vrot.slane %v17004_v49, 2  ;;  %v3790_v34 = vsel %vm893_vm1, %v3788_v13, %v3789_v57  ;;  %v3796_v49 = vsel %vm893_vm1, %v3794_v7, %v3795_v62  ;;  %v12359_v18 = vmax.f32 %v12194_v22, %v3765_v30  ;;  %v17048_v30 = vld [vmem:[#allocation73_spill] sm:$0xff] }
 0x225   : > { %v12308_v52 = vmax.f32 %v17019_v56, %v17017_v24  ;;  %v3782_v56 = vrot.slane %v16984_v17, 2  ;;  %v17024_v24 = vld [vmem:[#allocation99_spill] sm:$0xff]  ;;  %v3778_v51 = vsel %vm893_vm1, %v3776_v41, %v3777_v50  ;;  %v3781_v17 = vsel %vm893_vm1, %v3779_v21, %v3780_v11 }
 0x226   : > { %v12362_v42 = vmax.f32 %v12198_v61, %v3767_v59  ;;  %v12370_v43 = vmax.f32 %v12204_v14, %v3768_v19  ;;  %v12373_v53 = vmax.f32 %v12208_v25, %v3770_v20  ;;  %v12378_v12 = vmax.f32 %v17032_v31, %v3772_v9  ;;  %v17038_v25 = vld [vmem:[#allocation8_spill] sm:$0xff]  ;;  %v17040_v9 = vld [vmem:[#allocation37_spill] sm:$0xff] }
 0x227   : > { %17020 = vst [vmem:[#allocation59_spill] sm:$0xff] %v12308_v52  ;;  %v3783_v52 = vrot.slane %v17024_v24, 2  ;;  %v3792_v24 = vrot.slane %v17027_v3, 2  ;;  %v17029_v3 = vmax.f32 %v11951_v27, %v12087_v1  ;;  %v17031_v1 = vmax.f32 %v11968_v5, %v12107_v44  ;;  %v17053_v19 = vld [vmem:[#allocation44_spill] sm:$0xff] }
 0x228   : > { %17033 = vst [vmem:[#allocation20_spill] sm:$0xff] %v12378_v12  ;;  %v12381_v22 = vmax.f32 %v12214_v29, %v3771_v10  ;;  %v12384_v61 = vmax.f32 %v12218_v38, %v3773_v40  ;;  %v17035_v44 = vmax.f32 %v11990_v58, %v12121_v28  ;;  %v12392_v14 = vmax.f32 %v12224_v63, %v3774_v54  ;;  %v17043_v29 = vld [vmem:[#allocation78_spill] sm:$0xff]  ;;  %v17045_v40 = vld [vmem:[#allocation104_spill] sm:$0xff]  ;;  %v17047_v28 = vld [vmem:[#allocation75_spill] sm:$0xff] }
 0x229   : > { %v3784_v39 = vsel %vm893_vm1, %v3782_v56, %v3783_v52  ;;  %v3793_v15 = vsel %vm893_vm1, %v3791_v36, %v3792_v24  ;;  %v12345_v23 = vmax.f32 %v17029_v3, %v3763_v8  ;;  %v12367_v3 = vmax.f32 %v17031_v1, %v3769_v35  ;;  %v17051_v54 = vld [vmem:[#allocation42_spill] sm:$0xff] }
 0x22a   : > { %17034 = vst [vmem:[#allocation63_spill] sm:$0xff] %v12381_v22  ;;  %v12389_v35 = vmax.f32 %v17035_v44, %v3775_v47  ;;  %v12395_v46 = vmax.f32 %v17038_v25, %v3776_v41  ;;  %v17041_v37 = vmax.f32 %v17039_v32, %v17040_v9  ;;  %v12403_v10 = vmax.f32 %v17043_v29, %v3777_v50  ;;  %v17055_v41 = vld [vmem:[#allocation22_spill] sm:$0xff]  ;;  %v17059_v50 = vld [vmem:[#allocation65_spill] sm:$0xff]  ;;  %v17063_v44 = vld [vmem:[#allocation92_spill] sm:$0xff] }
 0x22b   : > { %17037 = vst [vmem:[#allocation87_spill] sm:$0xff] %v12392_v14  ;;  %v12406_v38 = vmax.f32 %v17045_v40, %v3779_v21  ;;  %v17049_v59 = vmax.f32 %v17047_v28, %v17048_v30  ;;  %v12414_v63 = vmax.f32 %v17051_v54, %v3780_v11  ;;  %v12417_v20 = vmax.f32 %v17053_v19, %v3782_v56  ;;  %v17061_v21 = vld [vmem:[#allocation46_spill] sm:$0xff]  ;;  %v12437_v56 = vld [vmem:[#allocation2 + $0x24] sm:$0x1]  ;;  %v17070_v29 = vld [vmem:[#allocation17_spill] sm:$0xff] }
 0x22c   : > { %17036 = vst [vmem:[#allocation67_spill] sm:$0xff] %v12389_v35  ;;  %v12400_v4 = vmax.f32 %v17041_v37, %v3778_v51  ;;  %v17056_v51 = vld [vmem:[#allocation101_spill] sm:$0xff]  ;;  %v12425_v1 = vmax.f32 %v17059_v50, %v3783_v52  ;;  %v12428_v31 = vmax.f32 %v17061_v21, %v3785_v6  ;;  %v12435_v11 = vld [vmem:[#allocation2 + $0x10] sm:$0x1]  ;;  %v12439_v37 = vld [vmem:[#allocation2 + $0x38] sm:$0x1] }
 0x22d   : > { %17044 = vst [vmem:[#allocation55_spill] sm:$0xff] %v12403_v10  ;;  %v12411_v47 = vmax.f32 %v17049_v59, %v3781_v17  ;;  %v17057_v8 = vmax.f32 %v17055_v41, %v17056_v51  ;;  %v17064_v17 = vld [vmem:[#allocation83_spill] sm:$0xff]  ;;  %v17072_v40 = vld [vmem:[#allocation50_spill] sm:$0xff]  ;;  %v17074_v30 = vld [vmem:[#allocation53_spill] sm:$0xff] }
 0x22e   : > { %17042 = vst [vmem:[#allocation70_spill] sm:$0xff] %v12400_v4  ;;  %v17065_v25 = vmax.f32 %v17063_v44, %v17064_v17  ;;  %v12445_v52 = vmax.f32 %v17072_v40, %v3788_v13  ;;  %v17075_v6 = vld [vmem:[#allocation36_spill] sm:$0xff]  ;;  %v17078_v19 = vld [vmem:[#allocation54_spill] sm:$0xff]  ;;  %v12455_v51 = vld [vmem:[#allocation2 + $0x4c] sm:$0x1] }
 0x22f   : > { %17046 = vst [vmem:[#allocation58_spill] sm:$0xff] %v12406_v38  ;;  %v12422_v45 = vmax.f32 %v17057_v8, %v3784_v39  ;;  %v12442_v39 = vmax.f32 %v17070_v29, %v3786_v26  ;;  %v17076_v59 = vmax.f32 %v17074_v30, %v17075_v6  ;;  %v12457_v8 = vld [vmem:[#allocation2 + $0x60] sm:$0x1]  ;;  %v12459_v50 = vld [vmem:[#allocation2 + $0x74] sm:$0x1]  ;;  %v17083_v21 = vld [vmem:[#allocation85_spill] sm:$0xff] }
 0x230   : > { %17050 = vst [vmem:[#allocation71_spill] sm:$0xff] %v12411_v47  ;;  %v12433_v9 = vmax.f32 %v17065_v25, %v3787_v33  ;;  %v12453_v33 = vmax.f32 %v17078_v19, %v3791_v36  ;;  %v12462_v26 = vmax.f32 %v17083_v21, %v3789_v57  ;;  %v17085_v17 = vld [vmem:[#allocation6_spill] sm:$0xff]  ;;  %v17089_v40 = vld [vmem:[#allocation51_spill] sm:$0xff]  ;;  %v17091_v6 = vld [vmem:[#allocation57_spill] sm:$0xff] }
 0x231   : > { %17052 = vst [vmem:[#allocation91_spill] sm:$0xff] %v12414_v63  ;;  %v12450_v54 = vmax.f32 %v17076_v59, %v3790_v34  ;;  %v17086_v13 = vld [vmem:[#allocation102_spill] sm:$0xff]  ;;  %v12470_v34 = vmax.f32 %v17089_v40, %v3792_v24  ;;  %v12473_v36 = vmax.f32 %v17091_v6, %v3794_v7  ;;  %v12475_v59 = vld [vmem:[#allocation2 + $0x88] sm:$0x1]  ;;  %v12477_v19 = vld [vmem:[#allocation2 + $0x9c] sm:$0x1]  ;;  %v17112_v7 = vunpack.c.l.bf16 %v12437_v56 }
 0x232   : > { %17054 = vst [vmem:[#allocation64_spill] sm:$0xff] %v12417_v20  ;;  %v17087_v25 = vmax.f32 %v17085_v17, %v17086_v13  ;;  %v17097_v57 = vld [vmem:[#allocation9_spill] sm:$0xff]  ;;  %v12491_v24 = vld [vmem:[#allocation2 + $0xd8] sm:$0x1] }
 0x233   : > { %17058 = vst [vmem:[#allocation24_spill] sm:$0xff] %v12422_v45  ;;  %v17100_v13 = vld [vmem:[#allocation69_spill] sm:$0xff]  ;;  %v17104_v6 = vld [vmem:[#allocation31_spill] sm:$0xff]  ;;  %v4129_v40 = vrot.slane %v17112_v7, 3  ;;  %v4136_v7 = vrot.slane %v11982_v16, 3  ;;  %v4146_v45 = vrot.slane %v17039_v32, 3 }
 0x234   : > { %17060 = vst [vmem:[#allocation15_spill] sm:$0xff] %v12425_v1  ;;  %v12467_v29 = vmax.f32 %v17087_v25, %v3793_v15  ;;  %v12487_v15 = vmax.f32 %v17100_v13, %v3795_v62  ;;  %v12489_v25 = vld [vmem:[#allocation2 + $0xc4] sm:$0x1]  ;;  %v4151_v32 = vrot.slane %v17047_v28, 3  ;;  %v17133_v28 = vunpack.c.l.bf16 %v12477_v19 }
 0x235   : > { %17062 = vst [vmem:[#allocation93_spill] sm:$0xff] %v12428_v31  ;;  %v17113_v31 = vld [vmem:[#allocation35_spill] sm:$0xff] }
 0x236   : > { %17066 = vst [vmem:[#allocation94_spill] sm:$0xff] %v12433_v9  ;;  %v17116_v9 = vrot.slane %v11963_v0, 3  ;;  %v4159_v63 = vrot.slane %v17133_v28, 3 }
 0x237   : > { %17067 = vst [vmem:[#allocation66_spill] sm:$0xff] %v12435_v11 }
 0x238   : > { %17068 = vst [vmem:[#allocation48_spill] sm:$0xff] %v12437_v56 }
 0x239   : > { %17069 = vst [vmem:[#allocation116_spill] sm:$0xff] %v12439_v37 }
 0x23a   : > { %17071 = vst [vmem:[#allocation115_spill] sm:$0xff] %v12442_v39 }
 0x23b   : > { %17073 = vst [vmem:[#allocation86_spill] sm:$0xff] %v12445_v52 }
 0x23c   : > { %17077 = vst [vmem:[#allocation19_spill] sm:$0xff] %v12450_v54  ;;  %v12479_v54 = vld [vmem:[#allocation2 + $0xb0] sm:$0x1] }
 0x23d   : > { %17079 = vst [vmem:[#allocation74_spill] sm:$0xff] %v12453_v33  ;;  %v17096_v33 = vld [vmem:[#allocation14_spill] sm:$0xff] }
 0x23e   : > { %17080 = vst [vmem:[#allocation61_spill] sm:$0xff] %v12455_v51  ;;  %v17098_v21 = vmax.f32 %v17096_v33, %v17097_v57  ;;  %v17109_v57 = vld [vmem:[#allocation81_spill] sm:$0xff] }
 0x23f   : > { %17081 = vst [vmem:[#allocation88_spill] sm:$0xff] %v12457_v8  ;;  %v4122_v62 = vrot.slane %v17109_v57, 3 }
 0x240   : > { %17082 = vst [vmem:[#allocation23_spill] sm:$0xff] %v12459_v50 }
 0x241   : > { %17084 = vst [vmem:[#allocation96_spill] sm:$0xff] %v12462_v26  ;;  %v12484_v26 = vmax.f32 %v17098_v21, %v3796_v49  ;;  %v12503_v21 = vld [vmem:[#allocation2 + $0xec] sm:$0x1]  ;;  %v17114_v49 = vunpack.c.l.bf16 %v12439_v37 }
 0x242   : > { %17088 = vst [vmem:[#allocation21_spill] sm:$0xff] %v12467_v29 }
 0x243   : > { %17090 = vst [vmem:[#allocation28_spill] sm:$0xff] %v12470_v34  ;;  %v17105_v34 = vrot.slane %v17104_v6, 2  ;;  %v4134_v1 = vrot.slane %v17114_v49, 3  ;;  %v17117_v49 = vld [vmem:[#allocation47_spill] sm:$0xff] }
 0x244   : > { %17092 = vst [vmem:[#allocation90_spill] sm:$0xff] %v12473_v36  ;;  %v17106_v36 = vld [vmem:[#allocation59_spill] sm:$0xff]  ;;  %v4137_v57 = vrot.slane %v17117_v49, 3 }
 0x245   : > { %17093 = vst [vmem:[#allocation8_spill] sm:$0xff] %v12475_v59  ;;  %v12498_v29 = vmax.f32 %v17106_v36, %v17105_v34  ;;  %v4132_v36 = vrot.slane %v17113_v31, 3  ;;  %v17118_v31 = vunpack.c.l.bf16 %v12455_v51 }
 0x246   : > { %17094 = vst [vmem:[#allocation72_spill] sm:$0xff] %v12477_v19  ;;  %v17139_v19 = vld [vmem:[#allocation60_spill] sm:$0xff] }
 0x247   : > { %17095 = vst [vmem:[#allocation37_spill] sm:$0xff] %v12479_v54  ;;  %v4139_v56 = vrot.slane %v17118_v31, 3  ;;  %v17124_v31 = vunpack.c.l.bf16 %v12459_v50  ;;  %v4167_v28 = vrot.slane %v17139_v19, 3 }
 0x248   : > { %17099 = vst [vmem:[#allocation78_spill] sm:$0xff] %v12484_v26  ;;  %v12509_v26 = vld [vmem:[#allocation2 + $0x100] sm:$0x1] }
 0x249   : > { %17101 = vst [vmem:[#allocation104_spill] sm:$0xff] %v12487_v15  ;;  %v17111_v15 = vld [vmem:[#allocation97_spill] sm:$0xff] }
 0x24a   : > { %17102 = vst [vmem:[#allocation75_spill] sm:$0xff] %v12489_v25  ;;  %v4127_v39 = vrot.slane %v17111_v15, 3 }
 0x24b   : > { %17103 = vst [vmem:[#allocation73_spill] sm:$0xff] %v12491_v24 }
 0x24c   : > { %17107 = vst [vmem:[#allocation42_spill] sm:$0xff] %v12498_v29  ;;  %v17110_v29 = vunpack.c.l.bf16 %v12435_v11  ;;  %v12539_v34 = vsel %vm1254_vm2, %v17116_v9, %v4127_v39  ;;  %v12542_v37 = vsel %vm1254_vm2, %v4127_v39, %v4129_v40  ;;  %v17119_v11 = vld [vmem:[#allocation98_spill] sm:$0xff]  ;;  %v17121_v9 = vrot.slane %v11968_v5, 3  ;;  %v17123_v40 = vld [vmem:[#allocation25_spill] sm:$0xff] }
 0x24d   : > { %17108 = vst [vmem:[#allocation44_spill] sm:$0xff] %v12509_v26  ;;  %v12558_v39 = vsel %vm1254_vm2, %v4132_v36, %v4134_v1  ;;  %v4147_v51 = vrot.slane %v17123_v40, 3 }
 0x24e   : > { %v4124_v52 = vrot.slane %v17110_v29, 3  ;;  %v17115_v29 = vrot.slane %v11951_v27, 3  ;;  %v12555_v20 = vsel %vm1254_vm2, %v17121_v9, %v4132_v36  ;;  %17122 = vst [vmem:[#allocation22_spill] sm:$0xff] %v12558_v39  ;;  %v17130_v36 = vunpack.c.l.bf16 %v12475_v59 }
 0x24f   : > { %v12581_v40 = vsel %vm1254_vm2, %v4146_v45, %v4147_v51  ;;  %v17136_v59 = vunpack.c.l.bf16 %v12479_v54 }
 0x250   : > { %v12530_v13 = vsel %vm1254_vm2, %v17115_v29, %v4122_v62  ;;  %v12533_v15 = vsel %vm1254_vm2, %v4122_v62, %v4124_v52  ;;  %v4141_v29 = vrot.slane %v11990_v58, 3  ;;  %v4142_v52 = vrot.slane %v17119_v11, 3  ;;  %17131 = vst [vmem:[#allocation83_spill] sm:$0xff] %v12581_v40  ;;  %v17173_v40 = vld [vmem:[#allocation93_spill] sm:$0xff] }
 0x251   : > { %v17120_v62 = vunpack.c.l.bf16 %v12457_v8  ;;  %v4149_v58 = vrot.slane %v17124_v31, 3  ;;  %v12564_v11 = vsel %vm1254_vm2, %v4136_v7, %v4137_v57  ;;  %v17127_v8 = vld [vmem:[#allocation29_spill] sm:$0xff]  ;;  %v4154_v50 = vrot.slane %v17130_v36, 3  ;;  %v17219_v12 = vld [vmem:[#allocation75_spill] sm:$0xff] }
 0x252   : > { %17125 = vst [vmem:[#allocation101_spill] sm:$0xff] %v12564_v11  ;;  %v4152_v49 = vrot.slane %v17127_v8, 3  ;;  %v12572_v9 = vsel %vm1254_vm2, %v4141_v29, %v4142_v52  ;;  %v4156_v31 = vrot.slane %v17055_v41, 3  ;;  %v4161_v8 = vrot.slane %v17063_v44, 3 }
 0x253   : > { %v4144_v16 = vrot.slane %v17120_v62, 3  ;;  %v12567_v62 = vsel %vm1254_vm2, %v4137_v57, %v4139_v56  ;;  %17128 = vst [vmem:[#allocation46_spill] sm:$0xff] %v12572_v9  ;;  %v17132_v56 = vld [vmem:[#allocation99_spill] sm:$0xff]  ;;  %v12588_v47 = vsel %vm1254_vm2, %v4147_v51, %v4149_v58  ;;  %v4164_v36 = vrot.slane %v17136_v59, 3 }
 0x254   : > { %17126 = vst [vmem:[#allocation65_spill] sm:$0xff] %v12567_v62  ;;  %v4157_v57 = vrot.slane %v17132_v56, 3  ;;  %v4166_v41 = vrot.slane %v17074_v30, 3  ;;  %v12595_v38 = vsel %vm1254_vm2, %v4151_v32, %v4152_v49  ;;  %v12598_v56 = vsel %vm1254_vm2, %v4152_v49, %v4154_v50  ;;  %v17143_v30 = vld [vmem:[#allocation100_spill] sm:$0xff] }
 0x255   : > { %v12575_v1 = vsel %vm1254_vm2, %v4142_v52, %v4144_v16  ;;  %17134 = vst [vmem:[#allocation17_spill] sm:$0xff] %v12588_v47  ;;  %v17135_v52 = vld [vmem:[#allocation34_spill] sm:$0xff]  ;;  %v17140_v44 = vunpack.c.l.bf16 %v12489_v25  ;;  %v4171_v59 = vrot.slane %v17085_v17, 3  ;;  %v4172_v54 = vrot.slane %v17143_v30, 3  ;;  %v17149_v17 = vld [vmem:[#allocation45_spill] sm:$0xff] }
 0x256   : > { %17129 = vst [vmem:[#allocation92_spill] sm:$0xff] %v12575_v1  ;;  %v4162_v16 = vrot.slane %v17135_v52, 3  ;;  %v12604_v51 = vsel %vm1254_vm2, %v4156_v31, %v4157_v57  ;;  %v12607_v58 = vsel %vm1254_vm2, %v4157_v57, %v4159_v63  ;;  %v17146_v49 = vunpack.c.l.bf16 %v12491_v24  ;;  %v17185_v47 = vld [vmem:[#allocation90_spill] sm:$0xff] }
 0x257   : > { %17137 = vst [vmem:[#allocation50_spill] sm:$0xff] %v12595_v38  ;;  %v4169_v10 = vrot.slane %v17140_v44, 3  ;;  %v4176_v44 = vrot.slane %v17096_v33, 3  ;;  %v12621_v19 = vsel %vm1254_vm2, %v4166_v41, %v4167_v28  ;;  %v4177_v57 = vrot.slane %v17149_v17, 3  ;;  %v4409_v38 = vld [vmem:[#allocation2 + $0xa8] sm:$0xe] }
 0x258   : > { %17138 = vst [vmem:[#allocation53_spill] sm:$0xff] %v12598_v56  ;;  %v12612_v52 = vsel %vm1254_vm2, %v4161_v8, %v4162_v16  ;;  %v12615_v50 = vsel %vm1254_vm2, %v4162_v16, %v4164_v36  ;;  %v4174_v25 = vrot.slane %v17146_v49, 3  ;;  %v17150_v30 = vunpack.c.l.bf16 %v12503_v21  ;;  %v17178_v56 = vld [vmem:[#allocation86_spill] sm:$0xff] }
 0x259   : > { %17141 = vst [vmem:[#allocation36_spill] sm:$0xff] %v12604_v51  ;;  %v12624_v63 = vsel %vm1254_vm2, %v4167_v28, %v4169_v10  ;;  %v15852_v36 = vrot.slane %v17104_v6, 3  ;;  %v17153_v33 = vunpack.c.l.bf16 %v12509_v26  ;;  %v12639_v24 = vsel %vm1254_vm2, %v4176_v44, %v4177_v57  ;;  %v4404_v51 = vld [vmem:[#allocation2 + $0x44] sm:$0xe] }
 0x25a   : > { %17142 = vst [vmem:[#allocation54_spill] sm:$0xff] %v12607_v58  ;;  %v4179_v58 = vrot.slane %v17150_v30, 3  ;;  %v12633_v16 = vsel %vm1254_vm2, %v4172_v54, %v4174_v25  ;;  %v17156_v28 = vrot.slane %v11951_v27, 3  ;;  %v17158_v26 = vrot.slane %v11963_v0, 3  ;;  %v17168_v27 = vld [vmem:[#allocation64_spill] sm:$0xff] }
 0x25b   : > { %17144 = vst [vmem:[#allocation85_spill] sm:$0xff] %v12612_v52  ;;  %v12630_v52 = vsel %vm1254_vm2, %v4171_v59, %v4172_v54  ;;  %v4184_v49 = vrot.slane %v17153_v33, 3  ;;  %v12691_v0 = vmax.f32 %v12395_v46, %v4146_v45  ;;  %v4403_v45 = vld [vmem:[#allocation2 + $0x30] sm:$0xe]  ;;  %v4405_v54 = vld [vmem:[#allocation2 + $0x58] sm:$0xe] }
 0x25c   : > { %17145 = vst [vmem:[#allocation6_spill] sm:$0xff] %v12615_v50  ;;  %v12642_v10 = vsel %vm1254_vm2, %v4177_v57, %v4179_v58  ;;  %v12647_v30 = vmax.f32 %v12340_v48, %v17156_v28  ;;  %v12661_v58 = vmax.f32 %v12351_v60, %v17158_v26  ;;  %v17159_v57 = vrot.slane %v11968_v5, 3 }
 0x25d   : > { %17147 = vst [vmem:[#allocation102_spill] sm:$0xff] %v12621_v19  ;;  %v12654_v25 = vsel %vm1254_vm2, %v15852_v36, %v4184_v49  ;;  %v12677_v60 = vmax.f32 %v12373_v53, %v4136_v7  ;;  %v12684_v5 = vmax.f32 %v12384_v61, %v4141_v29  ;;  %v17164_v49 = vld [vmem:[#allocation58_spill] sm:$0xff]  ;;  %v12712_v26 = vmax.f32 %v17173_v40, %v4161_v8  ;;  %v4410_v40 = vld [vmem:[#allocation2 + $0xbc] sm:$0xe] }
 0x25e   : > { %17148 = vst [vmem:[#allocation51_spill] sm:$0xff] %v12624_v63  ;;  %v12670_v28 = vmax.f32 %v12362_v42, %v17159_v57  ;;  %v12698_v36 = vmax.f32 %v17164_v49, %v4151_v32  ;;  %v12705_v57 = vmax.f32 %v17168_v27, %v4156_v31  ;;  %v4401_v32 = vld [vmem:[#allocation2 + $0x8] sm:$0xe]  ;;  %v4402_v49 = vld [vmem:[#allocation2 + $0x1c] sm:$0xe]  ;;  %v12719_v31 = vmax.f32 %v17178_v56, %v4166_v41  ;;  %v17180_v27 = vld [vmem:[#allocation74_spill] sm:$0xff] }
 0x25f   : > { %17151 = vst [vmem:[#allocation57_spill] sm:$0xff] %v12630_v52  ;;  %v12731_v48 = vmax.f32 %v17185_v47, %v4176_v44  ;;  %v4406_v56 = vld [vmem:[#allocation2 + $0x6c] sm:$0xe]  ;;  %v4407_v41 = vld [vmem:[#allocation2 + $0x80] sm:$0xe]  ;;  %v4481_v19 = vunpack.c.l.bf16 %v4401_v32  ;;  %v4482_v8 = vunpack.c.l.bf16 %v4402_v49  ;;  %v4483_v44 = vunpack.c.l.bf16 %v4403_v45 }
 0x260   : > { %17152 = vst [vmem:[#allocation14_spill] sm:$0xff] %v12633_v16  ;;  %v4411_v52 = vld [vmem:[#allocation2 + $0xd0] sm:$0xe]  ;;  %v4485_v29 = vunpack.c.l.bf16 %v4405_v54  ;;  %v4487_v53 = vunpack.c.l.bf16 %v4407_v41  ;;  %v4412_v16 = vld [vmem:[#allocation2 + $0xe4] sm:$0xe]  ;;  %v4490_v50 = vunpack.c.l.bf16 %v4410_v40  ;;  %v17191_v32 = vld [vmem:[#allocation81_spill] sm:$0xff] }
 0x261   : > { %17154 = vst [vmem:[#allocation9_spill] sm:$0xff] %v12639_v24  ;;  %v12741_v24 = vrot.slane %v4481_v19, 4  ;;  %v4522_v49 = vrot.slane %v17191_v32, 4  ;;  %v17194_v47 = vld [vmem:[#allocation97_spill] sm:$0xff]  ;;  %v12751_v41 = vrot.slane %v4483_v44, 4  ;;  %v17198_v40 = vld [vmem:[#allocation116_spill] sm:$0xff]  ;;  %v4492_v33 = vunpack.c.l.bf16 %v4412_v16 }
 0x262   : > { %17155 = vst [vmem:[#allocation69_spill] sm:$0xff] %v12642_v10  ;;  %v12746_v10 = vrot.slane %v4482_v8, 4  ;;  %v4527_v45 = vrot.slane %v17194_v47, 4  ;;  %v17199_v19 = vunpack.c.l.bf16 %v17198_v40  ;;  %v17201_v32 = vld [vmem:[#allocation61_spill] sm:$0xff]  ;;  %v4541_v42 = vrot.slane %v4485_v29, 4  ;;  %v17203_v40 = vld [vmem:[#allocation98_spill] sm:$0xff] }
 0x263   : > { %17157 = vst [vmem:[#allocation59_spill] sm:$0xff] %v12654_v25  ;;  %v17204_v16 = vld [vmem:[#allocation88_spill] sm:$0xff] }
 0x264   : > { %17160 = vst [vmem:[#allocation45_spill] sm:$0xff] %v12677_v60  ;;  %v4528_v47 = vsel %vm1655_vm3, %v12746_v10, %v4527_v45  ;;  %v17205_v61 = vunpack.c.l.bf16 %v17204_v16  ;;  %v17210_v16 = vld [vmem:[#allocation8_spill] sm:$0xff] }
 0x265   : > { %17161 = vst [vmem:[#allocation118_spill] sm:$0xff] %v12684_v5  ;;  %v17211_v14 = vunpack.c.l.bf16 %v17210_v16 }
 0x266   : > { %17162 = vst [vmem:[#allocation119_spill] sm:$0xff] %v12691_v0  ;;  %v4544_v7 = vrot.slane %v17205_v61, 4 }
 0x267   : > { %17165 = vst [vmem:[#allocation58_spill] sm:$0xff] %v12698_v36  ;;  %v4534_v36 = vrot.slane %v17199_v19, 4  ;;  %v4542_v19 = vrot.slane %v17203_v40, 4  ;;  %v17209_v40 = vld [vmem:[#allocation29_spill] sm:$0xff]  ;;  %v4554_v9 = vrot.slane %v17211_v14, 4 }
 0x268   : > { %17169 = vst [vmem:[#allocation64_spill] sm:$0xff] %v12705_v57  ;;  %v12722_v57 = vmax.f32 %v17180_v27, %v4171_v59  ;;  %v4489_v59 = vunpack.c.l.bf16 %v4409_v38  ;;  %v4552_v1 = vrot.slane %v17209_v40, 4  ;;  %v17216_v40 = vld [vmem:[#allocation37_spill] sm:$0xff] }
 0x269   : > { %17174 = vst [vmem:[#allocation93_spill] sm:$0xff] %v12712_v26  ;;  %v4486_v26 = vunpack.c.l.bf16 %v4406_v56  ;;  %v4491_v56 = vunpack.c.l.bf16 %v4411_v52  ;;  %v17200_v52 = vld [vmem:[#allocation47_spill] sm:$0xff]  ;;  %v4543_v61 = vsel %vm1655_vm3, %v4541_v42, %v4542_v19  ;;  %v17217_v22 = vunpack.c.l.bf16 %v17216_v40 }
 0x26a   : > { %17179 = vst [vmem:[#allocation86_spill] sm:$0xff] %v12719_v31  ;;  %v4408_v31 = vld [vmem:[#allocation2 + $0x94] sm:$0xe]  ;;  %v4537_v44 = vrot.slane %v17200_v52, 4  ;;  %v4561_v62 = vrot.slane %v4489_v59, 4  ;;  %v4555_v14 = vsel %vm1655_vm3, %v4552_v1, %v4554_v9  ;;  %v4576_v9 = vrot.slane %v4492_v33, 4 }
 0x26b   : > { %17181 = vst [vmem:[#allocation74_spill] sm:$0xff] %v12722_v57  ;;  %v4488_v27 = vunpack.c.l.bf16 %v4408_v31  ;;  %v17192_v57 = vld [vmem:[#allocation66_spill] sm:$0xff]  ;;  %v17197_v31 = vld [vmem:[#allocation35_spill] sm:$0xff]  ;;  %v4546_v4 = vrot.slane %v4486_v26, 4  ;;  %v4545_v26 = vsel %vm1655_vm3, %v4542_v19, %v4544_v7  ;;  %v4564_v11 = vrot.slane %v17217_v22, 4 }
 0x26c   : > { %17186 = vst [vmem:[#allocation90_spill] sm:$0xff] %v12731_v48  ;;  %v4484_v48 = vunpack.c.l.bf16 %v4404_v51  ;;  %v17193_v46 = vunpack.c.l.bf16 %v17192_v57  ;;  %v17195_v51 = vld [vmem:[#allocation48_spill] sm:$0xff]  ;;  %v4532_v38 = vrot.slane %v17197_v31, 4  ;;  %v4523_v57 = vsel %vm1655_vm3, %v12741_v24, %v4522_v49 }
 0x26d   : > { %v17196_v25 = vunpack.c.l.bf16 %v17195_v51  ;;  %v17202_v51 = vunpack.c.l.bf16 %v17201_v32  ;;  %v4566_v7 = vrot.slane %v4490_v50, 4  ;;  %v17222_v50 = vld [vmem:[#allocation73_spill] sm:$0xff] }
 0x26e   : > { %v4524_v63 = vrot.slane %v17193_v46, 4  ;;  %v4536_v8 = vrot.slane %v4484_v48, 4  ;;  %v4535_v48 = vsel %vm1655_vm3, %v4532_v38, %v4534_v36  ;;  %v4556_v36 = vrot.slane %v4488_v27, 4  ;;  %v17218_v27 = vld [vmem:[#allocation60_spill] sm:$0xff] }
 0x26f   : > { %v4529_v54 = vrot.slane %v17196_v25, 4  ;;  %v4539_v31 = vrot.slane %v17202_v51, 4  ;;  %v4551_v51 = vrot.slane %v4487_v53, 4  ;;  %v4567_v16 = vrot.slane %v17218_v27, 4 }
 0x270   : > { %v4525_v46 = vsel %vm1655_vm3, %v4522_v49, %v4524_v63  ;;  %v4533_v63 = vsel %vm1655_vm3, %v12751_v41, %v4532_v38  ;;  %v17206_v49 = vld [vmem:[#allocation25_spill] sm:$0xff]  ;;  %v4538_v32 = vsel %vm1655_vm3, %v4536_v8, %v4537_v44  ;;  %v17223_v40 = vunpack.c.l.bf16 %v17222_v50 }
 0x271   : > { %v4530_v25 = vsel %vm1655_vm3, %v4527_v45, %v4529_v54  ;;  %v4547_v0 = vrot.slane %v17206_v49, 4  ;;  %v17207_v45 = vld [vmem:[#allocation23_spill] sm:$0xff]  ;;  %v4540_v29 = vsel %vm1655_vm3, %v4537_v44, %v4539_v31  ;;  %v17215_v44 = vld [vmem:[#allocation34_spill] sm:$0xff]  ;;  %v4553_v19 = vsel %vm1655_vm3, %v4551_v51, %v4552_v1 }
 0x272   : > { %v17208_v54 = vunpack.c.l.bf16 %v17207_v45  ;;  %v17212_v49 = vld [vmem:[#allocation99_spill] sm:$0xff]  ;;  %v4562_v31 = vrot.slane %v17215_v44, 4  ;;  %v4574_v39 = vrot.slane %v17223_v40, 4  ;;  %v4568_v1 = vsel %vm1655_vm3, %v4566_v7, %v4567_v16 }
 0x273   : > { %v4548_v38 = vsel %vm1655_vm3, %v4546_v4, %v4547_v0  ;;  %v4557_v45 = vrot.slane %v17212_v49, 4  ;;  %v17220_v49 = vunpack.c.l.bf16 %v17219_v12  ;;  %v4577_v27 = vrot.slane %v17149_v17, 4 }
 0x274   : > { %v4549_v52 = vrot.slane %v17208_v54, 4  ;;  %v17213_v54 = vld [vmem:[#allocation72_spill] sm:$0xff]  ;;  %v4563_v44 = vsel %vm1655_vm3, %v4561_v62, %v4562_v31  ;;  %v4565_v22 = vsel %vm1655_vm3, %v4562_v31, %v4564_v11 }
 0x275   : > { %v17214_v35 = vunpack.c.l.bf16 %v17213_v54  ;;  %v4569_v60 = vrot.slane %v17220_v49, 4  ;;  %v17224_v49 = vunpack.c.l.bf16 %v12503_v21  ;;  %v17225_v11 = vld [vmem:[#allocation44_spill] sm:$0xff]  ;;  %v4578_v33 = vsel %vm1655_vm3, %v4576_v9, %v4577_v27 }
 0x276   : > { %v4550_v53 = vsel %vm1655_vm3, %v4547_v0, %v4549_v52  ;;  %v4571_v0 = vrot.slane %v4491_v56, 4  ;;  %v17221_v52 = vld [vmem:[#allocation100_spill] sm:$0xff]  ;;  %v17226_v31 = vunpack.c.l.bf16 %v17225_v11  ;;  %v17227_v21 = vmax.f32 %v12345_v23, %v12530_v13 }
 0x277   : > { %v4559_v5 = vrot.slane %v17214_v35, 4  ;;  %v4558_v35 = vsel %vm1655_vm3, %v4556_v36, %v4557_v45  ;;  %v4572_v54 = vrot.slane %v17221_v52, 4  ;;  %v4570_v12 = vsel %vm1655_vm3, %v4567_v16, %v4569_v60 }
 0x278   : > { %v15876_v52 = vrot.slane %v17104_v6, 4  ;;  %v4584_v50 = vrot.slane %v17226_v31, 4  ;;  %v4681_v60 = vmax.f32 %v12647_v30, %v12741_v24  ;;  %v12818_v17 = vmax.f32 %v17227_v21, %v4523_v57  ;;  %v17246_v31 = vld [vmem:[#allocation92_spill] sm:$0xff] }
 0x279   : > { %v4560_v59 = vsel %vm1655_vm3, %v4557_v45, %v4559_v5  ;;  %v4579_v5 = vrot.slane %v17224_v49, 4  ;;  %v4573_v56 = vsel %vm1655_vm3, %v4571_v0, %v4572_v54  ;;  %v4575_v45 = vsel %vm1655_vm3, %v4572_v54, %v4574_v39 }
 0x27a   : > { %v4585_v39 = vsel %vm1655_vm3, %v15876_v52, %v4584_v50  ;;  %v17228_v16 = vmax.f32 %v12348_v55, %v12533_v15  ;;  %v17229_v24 = vmax.f32 %v12356_v2, %v12539_v34  ;;  %v17230_v23 = vmax.f32 %v12359_v18, %v12542_v37  ;;  %v17234_v34 = vld [vmem:[#allocation45_spill] sm:$0xff]  ;;  %v17235_v18 = vld [vmem:[#allocation20_spill] sm:$0xff] }
 0x27b   : > { %v4580_v40 = vsel %vm1655_vm3, %v4577_v27, %v4579_v5  ;;  %v12830_v27 = vmax.f32 %v12661_v58, %v12746_v10  ;;  %v12844_v57 = vmax.f32 %v12670_v28, %v12751_v41  ;;  %v17231_v55 = vmax.f32 %v12367_v3, %v12555_v20  ;;  %v17232_v10 = vld [vmem:[#allocation22_spill] sm:$0xff]  ;;  %v17236_v37 = vld [vmem:[#allocation101_spill] sm:$0xff]  ;;  %v17238_v28 = vld [vmem:[#allocation63_spill] sm:$0xff] }
 0x27c   : > { %v12826_v54 = vmax.f32 %v17228_v16, %v4525_v46  ;;  %v12835_v30 = vmax.f32 %v17229_v24, %v4528_v47  ;;  %v12840_v13 = vmax.f32 %v17230_v23, %v4530_v25  ;;  %v17233_v58 = vmax.f32 %v12370_v43, %v17232_v10  ;;  %v17239_v41 = vld [vmem:[#allocation65_spill] sm:$0xff]  ;;  %v17241_v3 = vld [vmem:[#allocation118_spill] sm:$0xff]  ;;  %v17250_v23 = vld [vmem:[#allocation83_spill] sm:$0xff] }
 0x27d   : > { %v12849_v15 = vmax.f32 %v17231_v55, %v4533_v63  ;;  %v12857_v46 = vmax.f32 %v17234_v34, %v4536_v8  ;;  %v17237_v47 = vmax.f32 %v17235_v18, %v17236_v37  ;;  %v17240_v49 = vmax.f32 %v17238_v28, %v17239_v41  ;;  %v17242_v63 = vld [vmem:[#allocation67_spill] sm:$0xff]  ;;  %v17243_v43 = vld [vmem:[#allocation46_spill] sm:$0xff]  ;;  %v17253_v10 = vld [vmem:[#allocation17_spill] sm:$0xff] }
 0x27e   : > { %v12854_v2 = vmax.f32 %v17233_v58, %v4535_v48  ;;  %v12870_v20 = vmax.f32 %v17241_v3, %v4541_v42  ;;  %v17244_v48 = vmax.f32 %v17242_v63, %v17243_v43  ;;  %v17245_v8 = vld [vmem:[#allocation87_spill] sm:$0xff]  ;;  %v17249_v24 = vld [vmem:[#allocation70_spill] sm:$0xff]  ;;  %v17260_v41 = vld [vmem:[#allocation53_spill] sm:$0xff] }
 0x27f   : > { %v12862_v25 = vmax.f32 %v17237_v47, %v4538_v32  ;;  %v12867_v5 = vmax.f32 %v17240_v49, %v4540_v29  ;;  %v17247_v50 = vmax.f32 %v17245_v8, %v17246_v31  ;;  %v17248_v32 = vld [vmem:[#allocation119_spill] sm:$0xff]  ;;  %v17251_v29 = vmax.f32 %v17249_v24, %v17250_v23  ;;  %v17257_v47 = vld [vmem:[#allocation50_spill] sm:$0xff]  ;;  %v17263_v43 = vld [vmem:[#allocation24_spill] sm:$0xff] }
 0x280   : > { %v12875_v11 = vmax.f32 %v17244_v48, %v4543_v61  ;;  %v12883_v16 = vmax.f32 %v17248_v32, %v4546_v4  ;;  %v17252_v42 = vld [vmem:[#allocation55_spill] sm:$0xff]  ;;  %v17255_v61 = vld [vmem:[#allocation58_spill] sm:$0xff]  ;;  %v17264_v48 = vld [vmem:[#allocation36_spill] sm:$0xff] }
 0x281   : > { %v12880_v21 = vmax.f32 %v17247_v50, %v4545_v26  ;;  %v12888_v55 = vmax.f32 %v17251_v29, %v4548_v38  ;;  %v17254_v58 = vmax.f32 %v17252_v42, %v17253_v10  ;;  %v12896_v18 = vmax.f32 %v17255_v61, %v4551_v51  ;;  %v17256_v37 = vld [vmem:[#allocation71_spill] sm:$0xff]  ;;  %v17262_v38 = vld [vmem:[#allocation64_spill] sm:$0xff]  ;;  %v17267_v31 = vld [vmem:[#allocation54_spill] sm:$0xff] }
 0x282   : > { %v17258_v26 = vmax.f32 %v17256_v37, %v17257_v47  ;;  %v17259_v4 = vld [vmem:[#allocation91_spill] sm:$0xff]  ;;  %v12909_v63 = vmax.f32 %v17262_v38, %v4556_v36  ;;  %v17270_v23 = vld [vmem:[#allocation94_spill] sm:$0xff]  ;;  %v17271_v29 = vld [vmem:[#allocation85_spill] sm:$0xff] }
 0x283   : > { %v12893_v34 = vmax.f32 %v17254_v58, %v4550_v53  ;;  %v17261_v49 = vmax.f32 %v17259_v4, %v17260_v41  ;;  %v17265_v53 = vmax.f32 %v17263_v43, %v17264_v48  ;;  %v17266_v51 = vld [vmem:[#allocation15_spill] sm:$0xff]  ;;  %v17274_v10 = vld [vmem:[#allocation6_spill] sm:$0xff]  ;;  %v17288_v48 = vld [vmem:[#allocation21_spill] sm:$0xff] }
 0x284   : > { %v12901_v28 = vmax.f32 %v17258_v26, %v4553_v19  ;;  %v17268_v50 = vmax.f32 %v17266_v51, %v17267_v31  ;;  %v17269_v19 = vld [vmem:[#allocation93_spill] sm:$0xff]  ;;  %v17273_v36 = vld [vmem:[#allocation115_spill] sm:$0xff]  ;;  %v17278_v47 = vld [vmem:[#allocation74_spill] sm:$0xff] }
 0x285   : > { %v12906_v3 = vmax.f32 %v17261_v49, %v4555_v14  ;;  %v12914_v8 = vmax.f32 %v17265_v53, %v4558_v35  ;;  %v12922_v24 = vmax.f32 %v17269_v19, %v4561_v62  ;;  %v17272_v14 = vmax.f32 %v17270_v23, %v17271_v29  ;;  %v17276_v35 = vld [vmem:[#allocation86_spill] sm:$0xff]  ;;  %v17284_v49 = vld [vmem:[#allocation96_spill] sm:$0xff]  ;;  %v17285_v38 = vld [vmem:[#allocation51_spill] sm:$0xff] }
 0x286   : > { %v12919_v32 = vmax.f32 %v17268_v50, %v4560_v59  ;;  %v17275_v58 = vmax.f32 %v17273_v36, %v17274_v10  ;;  %v12935_v37 = vmax.f32 %v17276_v35, %v4566_v7  ;;  %v12938_v26 = vmax.f32 %v17278_v47, %v4571_v0  ;;  %v17280_v59 = vld [vmem:[#allocation19_spill] sm:$0xff]  ;;  %v17281_v4 = vld [vmem:[#allocation102_spill] sm:$0xff]  ;;  %v17289_v53 = vld [vmem:[#allocation57_spill] sm:$0xff] }
 0x287   : > { %v12927_v42 = vmax.f32 %v17272_v14, %v4563_v44  ;;  %v17282_v62 = vmax.f32 %v17280_v59, %v17281_v4  ;;  %v17286_v44 = vmax.f32 %v17284_v49, %v17285_v38  ;;  %v17292_v7 = vld [vmem:[#allocation90_spill] sm:$0xff]  ;;  %v17294_v0 = vld [vmem:[#allocation28_spill] sm:$0xff]  ;;  %v17299_v29 = vld [vmem:[#allocation9_spill] sm:$0xff]  ;;  %v4852_v4 = vmax.f32 %v4681_v60, %v12830_v27 }
 0x288   : > { %v12932_v61 = vmax.f32 %v17275_v58, %v4565_v22  ;;  %17277 = vst [vmem:[#allocation81_spill] sm:$0xff] %v12935_v37  ;;  %v17290_v22 = vmax.f32 %v17288_v48, %v17289_v53  ;;  %v12956_v31 = vmax.f32 %v17292_v7, %v4576_v9  ;;  %v17295_v50 = vld [vmem:[#allocation14_spill] sm:$0xff]  ;;  %v17303_v10 = vld [vmem:[#allocation69_spill] sm:$0xff]  ;;  %v17307_v47 = vld [vmem:[#allocation59_spill] sm:$0xff]  ;;  %v4857_v49 = vmax.f32 %v12840_v13, %v12854_v2 }
 0x289   : > { %17279 = vst [vmem:[#allocation66_spill] sm:$0xff] %v12938_v26  ;;  %v12943_v41 = vmax.f32 %v17282_v62, %v4568_v1  ;;  %v12948_v43 = vmax.f32 %v17286_v44, %v4570_v12  ;;  %v17296_v19 = vmax.f32 %v17294_v0, %v17295_v50  ;;  %v17298_v1 = vld [vmem:[#allocation78_spill] sm:$0xff]  ;;  %v17302_v12 = vld [vmem:[#allocation104_spill] sm:$0xff]  ;;  %v4854_v62 = vmax.f32 %v12826_v54, %v12840_v13 }
 0x28a   : > { %v12953_v51 = vmax.f32 %v17290_v22, %v4573_v56  ;;  %17293 = vst [vmem:[#allocation116_spill] sm:$0xff] %v12956_v31  ;;  %v17300_v14 = vmax.f32 %v17298_v1, %v17299_v29  ;;  %v17304_v58 = vmax.f32 %v17302_v12, %v17303_v10  ;;  %v17306_v56 = vld [vmem:[#allocation42_spill] sm:$0xff]  ;;  %v4859_v60 = vmax.f32 %v12849_v15, %v12862_v25 }
 0x28b   : > { %17283 = vst [vmem:[#allocation97_spill] sm:$0xff] %v12943_v41  ;;  %v12961_v23 = vmax.f32 %v17296_v19, %v4575_v45  ;;  %v17308_v59 = vmax.f32 %v17306_v56, %v17307_v47  ;;  %v4853_v45 = vmax.f32 %v12818_v17, %v12835_v30  ;;  %v4860_v17 = vmax.f32 %v12854_v2, %v12867_v5 }
 0x28c   : > { %17287 = vst [vmem:[#allocation48_spill] sm:$0xff] %v12948_v43  ;;  %v12966_v36 = vmax.f32 %v17300_v14, %v4578_v33  ;;  %v12971_v35 = vmax.f32 %v17304_v58, %v4580_v40  ;;  %v4855_v33 = vmax.f32 %v12830_v27, %v12844_v57  ;;  %v4856_v40 = vmax.f32 %v12835_v30, %v12849_v15 }
 0x28d   : > { %17291 = vst [vmem:[#allocation35_spill] sm:$0xff] %v12953_v51  ;;  %v12976_v9 = vmax.f32 %v17308_v59, %v4585_v39  ;;  %v4858_v39 = vmax.f32 %v12844_v57, %v12857_v46  ;;  %v4861_v54 = vmax.f32 %v12857_v46, %v12870_v20  ;;  %v4862_v27 = vmax.f32 %v12862_v25, %v12875_v11 }
 0x28e   : > { %17297 = vst [vmem:[#allocation47_spill] sm:$0xff] %v12961_v23  ;;  %v4863_v30 = vmax.f32 %v12867_v5, %v12880_v21  ;;  %v4864_v13 = vmax.f32 %v12870_v20, %v12883_v16  ;;  %v4865_v38 = vmax.f32 %v12875_v11, %v12888_v55  ;;  %v4866_v44 = vmax.f32 %v12880_v21, %v12893_v34 }
 0x28f   : > { %17301 = vst [vmem:[#allocation61_spill] sm:$0xff] %v12966_v36  ;;  %v4867_v48 = vmax.f32 %v12883_v16, %v12896_v18  ;;  %v4868_v53 = vmax.f32 %v12888_v55, %v12901_v28  ;;  %v4869_v22 = vmax.f32 %v12893_v34, %v12906_v3  ;;  %v4870_v7 = vmax.f32 %v12896_v18, %v12909_v63 }
 0x290   : > { %17305 = vst [vmem:[#allocation98_spill] sm:$0xff] %v12971_v35  ;;  %v4873_v0 = vmax.f32 %v12909_v63, %v12922_v24  ;;  %v4871_v50 = vmax.f32 %v12901_v28, %v12914_v8  ;;  %v4872_v19 = vmax.f32 %v12906_v3, %v12919_v32  ;;  %v4874_v1 = vmax.f32 %v12914_v8, %v12927_v42 }
 0x291   : > { %17309 = vst [vmem:[#allocation88_spill] sm:$0xff] %v12976_v9  ;;  %v4875_v29 = vmax.f32 %v12919_v32, %v12932_v61  ;;  %v4876_v14 = vmax.f32 %v12922_v24, %v12935_v37  ;;  %v4877_v12 = vmax.f32 %v12927_v42, %v12943_v41  ;;  %v4878_v10 = vmax.f32 %v12932_v61, %v12948_v43 }
 0x292   : > { %v4999_v56 = vmax.f32 %v4852_v4, %v12844_v57  ;;  %v5000_v47 = vmax.f32 %v4853_v45, %v12849_v15  ;;  %v13036_v59 = vmax.f32 %v4854_v62, %v12854_v2  ;;  %v13039_v52 = vmax.f32 %v4855_v33, %v12857_v46 }
 0x293   : > { %v13042_v6 = vmax.f32 %v4856_v40, %v12862_v25  ;;  %v13045_v9 = vmax.f32 %v4857_v49, %v12867_v5  ;;  %v13048_v35 = vmax.f32 %v4858_v39, %v12870_v20  ;;  %v13051_v58 = vmax.f32 %v4859_v60, %v12875_v11 }
 0x294   : > { %v13054_v57 = vmax.f32 %v4860_v17, %v12880_v21  ;;  %v13057_v15 = vmax.f32 %v4861_v54, %v12883_v16  ;;  %v13060_v2 = vmax.f32 %v4862_v27, %v12888_v55  ;;  %v13063_v4 = vmax.f32 %v4863_v30, %v12893_v34 }
 0x295   : > { %v13066_v45 = vmax.f32 %v4864_v13, %v12896_v18  ;;  %v13069_v62 = vmax.f32 %v4865_v38, %v12901_v28  ;;  %v13072_v33 = vmax.f32 %v4866_v44, %v12906_v3  ;;  %v13075_v40 = vmax.f32 %v4867_v48, %v12909_v63 }
 0x296   : > { %v13078_v49 = vmax.f32 %v4868_v53, %v12914_v8  ;;  %v13081_v39 = vmax.f32 %v4869_v22, %v12919_v32  ;;  %v13084_v60 = vmax.f32 %v4870_v7, %v12922_v24  ;;  %v13087_v17 = vmax.f32 %v4871_v50, %v12927_v42 }
 0x297   : > { %v13090_v54 = vmax.f32 %v4872_v19, %v12932_v61  ;;  %v13093_v27 = vmax.f32 %v4873_v0, %v12935_v37  ;;  %v13096_v30 = vmax.f32 %v4874_v1, %v12943_v41  ;;  %v13099_v13 = vmax.f32 %v4875_v29, %v12948_v43  ;;  %v9034_v29 = vld [vmem:[%s15385_s1] sm:$0xff] }
 0x298   : > { %v13102_v38 = vmax.f32 %v4876_v14, %v12938_v26  ;;  %v13105_v44 = vmax.f32 %v4877_v12, %v12953_v51  ;;  %v13108_v48 = vmax.f32 %v4878_v10, %v12961_v23  ;;  %v5146_v53 = vmax.f32 %v4999_v56, %v12857_v46  ;;  %v9059_v14 = vld [vmem:[%s15385_s1 + $0xc8] sm:$0xff]  ;;  %3055 = vmatpush.bf16.msra.mxu1 %v9034_v29 }
 0x299   : > { %v5147_v22 = vmax.f32 %v5000_v47, %v12862_v25  ;;  %v5148_v7 = vmax.f32 %v13036_v59, %v12867_v5  ;;  %v5149_v0 = vmax.f32 %v13039_v52, %v12870_v20  ;;  %v5150_v50 = vmax.f32 %v13042_v6, %v12875_v11  ;;  %8344 = vmatpush.bf16.msra.mxu3 %v9059_v14 }
 0x29a   : > { %17310 = vst [vmem:[#allocation25_spill] sm:$0xff] %v13102_v38  ;;  %v5151_v19 = vmax.f32 %v13045_v9, %v12880_v21  ;;  %v5152_v1 = vmax.f32 %v13048_v35, %v12883_v16  ;;  %v5153_v46 = vmax.f32 %v13051_v58, %v12888_v55  ;;  %v5154_v25 = vmax.f32 %v13054_v57, %v12893_v34  ;;  %v9042_v35 = vld [vmem:[%s15385_s1 + $0x40] sm:$0xff] }
 0x29b   : > { %17311 = vst [vmem:[#allocation23_spill] sm:$0xff] %v13105_v44  ;;  %v5155_v5 = vmax.f32 %v13057_v15, %v12896_v18  ;;  %v5156_v52 = vmax.f32 %v13060_v2, %v12901_v28  ;;  %v5157_v6 = vmax.f32 %v13063_v4, %v12906_v3  ;;  %v5158_v9 = vmax.f32 %v13066_v45, %v12909_v63  ;;  %v9018_v2 = vld [vmem:[%s9454_s30] sm:$0xff] }
 0x29c   : > { %v5159_v12 = vmax.f32 %v13069_v62, %v12914_v8  ;;  %v5160_v10 = vmax.f32 %v13072_v33, %v12919_v32  ;;  %v5161_v58 = vmax.f32 %v13075_v40, %v12922_v24  ;;  %v5162_v56 = vmax.f32 %v13078_v49, %v12927_v42  ;;  %2822 = vmatpush.bf16.msra.mxu0 %v9042_v35  ;;  %v17312_v49 = vld [vmem:[#allocation98_spill] sm:$0xff] }
 0x29d   : > { %v5163_v47 = vmax.f32 %v13081_v39, %v12932_v61  ;;  %v5164_v59 = vmax.f32 %v13084_v60, %v12935_v37  ;;  %v5165_v57 = vmax.f32 %v13087_v17, %v12943_v41  ;;  %v5166_v15 = vmax.f32 %v13090_v54, %v12948_v43  ;;  %v9058_v54 = vld [vmem:[%s15385_s1 + $0xc0] sm:$0xff]  ;;  %3056 = vmatmul.bf16.vlgmr.msra.gmra.mxu1 %v9018_v2 }
 0x29e   : > { %v5167_v4 = vmax.f32 %v13093_v27, %v12938_v26  ;;  %v5168_v45 = vmax.f32 %v13096_v30, %v12953_v51  ;;  %v5169_v62 = vmax.f32 %v13099_v13, %v12961_v23  ;;  %v5172_v39 = vmax.f32 %v13108_v48, %v17312_v49  ;;  %8345 = vmatpush.bf16.msra.mxu3 %v9058_v54 }
 0x29f   : > { %v5293_v60 = vmax.f32 %v5146_v53, %v12870_v20  ;;  %v5294_v17 = vmax.f32 %v5147_v22, %v12875_v11  ;;  %v5295_v27 = vmax.f32 %v5148_v7, %v12880_v21  ;;  %v5296_v30 = vmax.f32 %v5149_v0, %v12883_v16 }
 0x2a0   : > { %v5297_v13 = vmax.f32 %v5150_v50, %v12888_v55  ;;  %v5298_v35 = vmax.f32 %v5151_v19, %v12893_v34  ;;  %v5299_v29 = vmax.f32 %v5152_v1, %v12896_v18  ;;  %v5300_v48 = vmax.f32 %v5153_v46, %v12901_v28 }
 0x2a1   : > { %v5301_v20 = vmax.f32 %v5154_v25, %v12906_v3  ;;  %v5302_v11 = vmax.f32 %v5155_v5, %v12909_v63  ;;  %v5303_v53 = vmax.f32 %v5156_v52, %v12914_v8  ;;  %v5304_v22 = vmax.f32 %v5157_v6, %v12919_v32 }
 0x2a2   : > { %v5305_v21 = vmax.f32 %v5158_v9, %v12922_v24  ;;  %v5306_v16 = vmax.f32 %v5159_v12, %v12927_v42  ;;  %v13190_v55 = vmax.f32 %v5160_v10, %v12932_v61  ;;  %v13193_v34 = vmax.f32 %v5161_v58, %v12935_v37  ;;  %v17313_v61 = vld [vmem:[#allocation88_spill] sm:$0xff] }
 0x2a3   : > { %v13196_v18 = vmax.f32 %v5162_v56, %v12943_v41  ;;  %v13199_v28 = vmax.f32 %v5163_v47, %v12948_v43  ;;  %v13202_v3 = vmax.f32 %v5164_v59, %v12938_v26  ;;  %v13205_v63 = vmax.f32 %v5165_v57, %v12953_v51 }
 0x2a4   : > { %v13208_v8 = vmax.f32 %v5166_v15, %v12961_v23  ;;  %v13211_v32 = vmax.f32 %v5167_v4, %v12956_v31  ;;  %v13214_v24 = vmax.f32 %v5168_v45, %v12966_v36  ;;  %v13217_v42 = vmax.f32 %v5169_v62, %v17312_v49 }
 0x2a5   : > { %v13220_v7 = vmax.f32 %v5172_v39, %v17313_v61  ;;  %v5341_v0 = vpack.c.bf16 %v5293_v60, %v5293_v60  ;;  %v5342_v50 = vpack.c.bf16 %v5294_v17, %v5294_v17  ;;  %v5343_v19 = vpack.c.bf16 %v5295_v27, %v5295_v27 }
 0x2a6   : > { %v5344_v1 = vpack.c.bf16 %v5296_v30, %v5296_v30  ;;  %v5345_v46 = vpack.c.bf16 %v5297_v13, %v5297_v13  ;;  %v5346_v25 = vpack.c.bf16 %v5298_v35, %v5298_v35  ;;  %v5347_v5 = vpack.c.bf16 %v5299_v29, %v5299_v29 }
 0x2a7   : > { %17314 = vst [vmem:[#allocation29_spill] sm:$0xff] %v13220_v7  ;;  %v5348_v52 = vpack.c.bf16 %v5300_v48, %v5300_v48  ;;  %v5349_v6 = vpack.c.bf16 %v5301_v20, %v5301_v20  ;;  %v5350_v9 = vpack.c.bf16 %v5302_v11, %v5302_v11  ;;  %v5351_v14 = vpack.c.bf16 %v5303_v53, %v5303_v53 }
 0x2a8   : > { %v5352_v12 = vpack.c.bf16 %v5304_v22, %v5304_v22  ;;  %v5353_v10 = vpack.c.bf16 %v5305_v21, %v5305_v21  ;;  %v5354_v58 = vpack.c.bf16 %v5306_v16, %v5306_v16  ;;  %v5355_v56 = vpack.c.bf16 %v13190_v55, %v13190_v55 }
 0x2a9   : > { %v5356_v47 = vpack.c.bf16 %v13193_v34, %v13193_v34  ;;  %v5357_v59 = vpack.c.bf16 %v13196_v18, %v13196_v18  ;;  %v5358_v57 = vpack.c.bf16 %v13199_v28, %v13199_v28  ;;  %v5359_v15 = vpack.c.bf16 %v13202_v3, %v13202_v3 }
 0x2aa   : > { %v5360_v2 = vpack.c.bf16 %v13205_v63, %v13205_v63  ;;  %v5361_v4 = vpack.c.bf16 %v13208_v8, %v13208_v8  ;;  %v5363_v45 = vpack.c.bf16 %v13214_v24, %v13214_v24  ;;  %v5364_v62 = vpack.c.bf16 %v13217_v42, %v13217_v42 }
 0x2ab   : > { %v8916_v39 = vrot.slane %v5341_v0, 11  ;;  %v5439_v60 = vrot.slane %v5342_v50, 7  ;;  %v5442_v17 = vrot.slane %v5343_v19, 7  ;;  %v8917_v54 = vrot.slane %v5344_v1, 11 }
 0x2ac   : > { %v5446_v27 = vrot.slane %v5345_v46, 7  ;;  %v5449_v30 = vrot.slane %v5346_v25, 7  ;;  %v8918_v48 = vrot.slane %v5347_v5, 11  ;;  %v5453_v20 = vrot.slane %v5348_v52, 7 }
 0x2ad   : > { %v13242_v35 = vsel %vm11740_vm6, %v8916_v39, %v5439_v60  ;;  %v5441_v29 = vrot.slane %v5439_v60, 4  ;;  %v5456_v22 = vrot.slane %v5349_v6, 7  ;;  %v8919_v21 = vrot.slane %v5350_v9, 11  ;;  %v5863_v60 = vld [vmem:[#allocation2 + $0x8] sm:$0xff]  }
 0x2ae   : > { %v13246_v11 = vsel %vm11740_vm6, %v8917_v54, %v5446_v27  ;;  %v5448_v53 = vrot.slane %v5446_v27, 4  ;;  %5830 = vst [vmem:[#allocation2 + $0x30] sm:$0xf] %v13242_v35  ;;  %v13253_v55 = vsel %vm11740_vm6, %v8918_v48, %v5453_v20  ;;  %v5455_v34 = vrot.slane %v5453_v20, 4 }
 0x2af   : > { %v5443_v16 = vsel %vm11740_vm6, %v5441_v29, %v5442_v17  ;;  %v5460_v18 = vrot.slane %v5351_v14, 7  ;;  %5832 = vst [vmem:[#allocation2 + $0x44] sm:$0xf] %v13246_v11  ;;  %v5463_v3 = vrot.slane %v5352_v12, 7  ;;  %v8920_v63 = vrot.slane %v5353_v10, 11 }
 0x2b0   : > { %v13258_v28 = vsel %vm11740_vm6, %v5448_v53, %v5449_v30  ;;  %v5467_v8 = vrot.slane %v5354_v58, 7  ;;  %5831 = vst [vmem:[#allocation2 + $0x34] sm:$0xf] %v5443_v16  ;;  %v13262_v24 = vsel %vm11740_vm6, %v5455_v34, %v5456_v22  ;;  %v5470_v50 = vrot.slane %v5355_v56, 7  ;;  %v13283_v14 = vld [vmem:[#allocation2 + $0x4] sm:$0x8] }
 0x2b1   : > { %v13266_v42 = vsel %vm11740_vm6, %v8919_v21, %v5460_v18  ;;  %v5462_v0 = vrot.slane %v5460_v18, 4  ;;  %5833 = vst [vmem:[#allocation2 + $0x48] sm:$0xf] %v13258_v28  ;;  %v5362_v19 = vpack.c.bf16 %v13211_v32, %v13211_v32  ;;  %v8921_v46 = vrot.slane %v5356_v47, 11  ;;  %v13285_v32 = vld [vmem:[#allocation2 + $0xc] sm:$0x7] }
 0x2b2   : > { %v5469_v1 = vrot.slane %v5467_v8, 4  ;;  %v5474_v25 = vrot.slane %v5357_v59, 7  ;;  %5834 = vst [vmem:[#allocation2 + $0x58] sm:$0xf] %v13253_v55  ;;  %v13278_v52 = vsel %vm11740_vm6, %v8920_v63, %v5467_v8  ;;  %v5477_v6 = vrot.slane %v5358_v57, 7  ;;  %v17317_v53 = vld [vmem:[#allocation39_spill] sm:$0xff] }
 0x2b3   : > { %v13274_v5 = vsel %vm11740_vm6, %v5462_v0, %v5463_v3  ;;  %v13280_v9 = vrot.slane %v5360_v2, 7  ;;  %5835 = vst [vmem:[#allocation2 + $0x5c] sm:$0xf] %v13262_v24  ;;  %v13291_v58 = vrot.slane %v5359_v15, 11  ;;  %v5484_v56 = vrot.slane %v5361_v4, 7  ;;  %v17318_v21 = vld [vmem:[#allocation56_spill] sm:$0xff] }
 0x2b4   : > { %v13289_v12 = vsel %vm11740_vm6, %v5469_v1, %v5470_v50  ;;  %v5476_v10 = vrot.slane %v5474_v25, 4  ;;  %5836 = vst [vmem:[#allocation2 + $0x6c] sm:$0xf] %v13266_v42  ;;  %v13294_v47 = vld [vmem:[#allocation2 + $0x18] sm:$0x8]  ;;  %v13298_v59 = vsel %vm11740_vm6, %v8921_v46, %v5474_v25  ;;  %v13301_v2 = vrot.slane %v5363_v45, 7 }
 0x2b5   : > { %v5483_v57 = vrot.slane %v13280_v9, 4  ;;  %v5491_v39 = vrot.slane %v5364_v62, 7  ;;  %5837 = vst [vmem:[#allocation2 + $0x70] sm:$0xf] %v13274_v5  ;;  %v13304_v17 = vld [vmem:[#allocation2 + $0x20] sm:$0x7]  ;;  %v5565_v27 = vunpack.c.l.b16 %v13242_v35  ;;  %v5566_v30 = vunpack.c.l.b16 %v5443_v16 }
 0x2b6   : > { %v13306_v15 = vld [vmem:[#allocation2 + $0x2c] sm:$0x8]  ;;  %v13310_v4 = vsel %vm11740_vm6, %v5476_v10, %v5477_v6  ;;  %v13312_v54 = vrot.slane %v5362_v19, 11  ;;  %5838 = vst [vmem:[#allocation2 + $0x80] sm:$0xf] %v13278_v52  ;;  %v5866_v45 = vld [vmem:[#allocation2 + $0x1c] sm:$0xff]   ;;  %v2703_v22 = vunpack.c.l.b16 %v17317_v53  ;;  %v2704_v35 = vunpack.c.l.b16 %v17318_v21 }
 0x2b7   : > { %v13316_v62 = vld [vmem:[#allocation2 + $0x40] sm:$0x8]  ;;  %v13318_v29 = vld [vmem:[#allocation2 + $0x54] sm:$0x8]  ;;  %v13322_v48 = vsel %vm11740_vm6, %v5483_v57, %v5484_v56  ;;  %v5490_v20 = vrot.slane %v13301_v2, 4  ;;  %v5597_v18 = vpack.c.b16 %v5566_v30, %v5565_v27  ;;  %v5942_v8 = vunpack.c.l.bf16 %v13283_v14 }
 0x2b8   : > { %17316 = vst [vmem:[#allocation8_spill] sm:$0xff] %v13322_v48  ;;  %v5869_v16 = vld [vmem:[#allocation2 + $0x30] sm:$0xff]   ;;  %v5872_v3 = vld [vmem:[#allocation2 + $0x44] sm:$0xff]   ;;  %v13334_v0 = vunpack.c.l.bf16 %v5863_v60  ;;  %v5944_v50 = vunpack.c.l.bf16 %v13285_v32  ;;  %v2735_v1 = vpack.c.b16 %v2704_v35, %v2703_v22  ;;  %v5945_v46 = vunpack.c.l.bf16 %v13294_v47 }
 0x2b9   : > { %5839 = vst [vmem:[#allocation2 + $0x84] sm:$0xf] %v13289_v12  ;;  %v13328_v34 = vld [vmem:[#allocation2 + $0x34] sm:$0x7]  ;;  %v13331_v63 = vld [vmem:[#allocation2 + $0x48] sm:$0x7]  ;;  %v13339_v19 = vsel %vm11740_vm6, %v5490_v20, %v5491_v39  ;;  %v13343_v25 = vunpack.c.l.bf16 %v5866_v45  ;;  %5685 = vmatmul.bf16.vlgmr.msra.gmra.mxu2 %v5597_v18  ;;  %v5947_v10 = vunpack.c.l.bf16 %v13304_v17  ;;  %v5948_v32 = vunpack.c.l.bf16 %v13306_v15 }
 0x2ba   : > { %5840 = vst [vmem:[#allocation2 + $0x94] sm:$0xf] %v13298_v59  ;;  %v5875_v6 = vld [vmem:[#allocation2 + $0x58] sm:$0xff]   ;;  %v13348_v56 = vunpack.c.l.bf16 %v5869_v16  ;;  %v5950_v57 = vunpack.c.l.bf16 %v13328_v34  ;;  %2823 = vmatmul.bf16.vlgmr.msra.gmra.mxu0 %v2735_v1  ;;  %v5951_v47 = vunpack.c.l.bf16 %v13316_v62  ;;  %v13353_v39 = vunpack.c.l.bf16 %v5872_v3 }
 0x2bb   : > { %17319 = vst [vmem:[#allocation99_spill] sm:$0xff] %v13339_v19  ;;  %v5876_v14 = vld [vmem:[#allocation2 + $0x5c] sm:$0x7]  ;;  %v5953_v27 = vunpack.c.l.bf16 %v13331_v63  ;;  %v5954_v30 = vunpack.c.l.bf16 %v13318_v29  ;;  %v13357_v20 = vunpack.c.l.bf16 %v5875_v6  ;;  %v13359_v53 = vunpack.c.h.bf16 %v5863_v60 }
 0x2bc   : > { %5841 = vst [vmem:[#allocation2 + $0x98] sm:$0xf] %v13310_v4  ;;  %v5956_v17 = vunpack.c.l.bf16 %v5876_v14  ;;  %v13361_v15 = vunpack.c.h.bf16 %v5866_v45  ;;  %v13363_v22 = vunpack.c.h.bf16 %v5869_v16  ;;  %v13365_v21 = vunpack.c.h.bf16 %v5872_v3 }
 0x2bd   : > { %5843 = vst [vmem:[#allocation2 + $0xac] sm:$0xf] %v13322_v48  ;;  %v13367_v35 = vunpack.c.h.bf16 %v5875_v6  ;;  %v6082_v62 = vrot.slane %v5942_v8, 1  ;;  %v6083_v34 = vrot.slane %v13334_v0, 1  ;;  %v6085_v18 = vrot.slane %v13359_v53, 1 }
 0x2be   : > { %5845 = vst [vmem:[#allocation2 + $0xc0] sm:$0xf] %v13339_v19  ;;  %v6087_v63 = vrot.slane %v5945_v46, 1  ;;  %v6088_v29 = vrot.slane %v13343_v25, 1  ;;  %v6090_v1 = vrot.slane %v13361_v15, 1  ;;  %v6092_v60 = vrot.slane %v5948_v32, 1 }
 0x2bf   : > { %v6093_v45 = vrot.slane %v13348_v56, 1  ;;  %v6095_v16 = vrot.slane %v13363_v22, 1  ;;  %v6084_v3 = vsel %vm552_vm0, %v6082_v62, %v6083_v34  ;;  %v6086_v6 = vsel %vm552_vm0, %v6083_v34, %v6085_v18 }
 0x2c0   : > { %v6089_v14 = vsel %vm552_vm0, %v6087_v63, %v6088_v29  ;;  %v6097_v40 = vrot.slane %v5951_v47, 1  ;;  %v6091_v33 = vsel %vm552_vm0, %v6088_v29, %v6090_v1  ;;  %v6098_v23 = vrot.slane %v13353_v39, 1 }
 0x2c1   : > { %v6094_v61 = vsel %vm552_vm0, %v6092_v60, %v6093_v45  ;;  %v6096_v19 = vsel %vm552_vm0, %v6093_v45, %v6095_v16  ;;  %v6100_v43 = vrot.slane %v13365_v21, 1  ;;  %v6102_v49 = vrot.slane %v5954_v30, 1 }
 0x2c2   : > { %v6103_v41 = vrot.slane %v13357_v20, 1  ;;  %v6105_v62 = vrot.slane %v13367_v35, 1  ;;  %v6099_v34 = vsel %vm552_vm0, %v6097_v40, %v6098_v23  ;;  %v6242_v51 = vmax.f32 %v5942_v8, %v6084_v3 }
 0x2c3   : > { %v6243_v63 = vmax.f32 %v13334_v0, %v6086_v6  ;;  %v6244_v37 = vmax.f32 %v5944_v50, %v6085_v18  ;;  %v6101_v29 = vsel %vm552_vm0, %v6098_v23, %v6100_v43  ;;  %v6245_v26 = vmax.f32 %v5945_v46, %v6089_v14 }
 0x2c4   : > { %v6104_v60 = vsel %vm552_vm0, %v6102_v49, %v6103_v41  ;;  %v6106_v45 = vsel %vm552_vm0, %v6103_v41, %v6105_v62  ;;  %v6246_v36 = vmax.f32 %v13343_v25, %v6091_v33  ;;  %v6247_v44 = vmax.f32 %v5947_v10, %v6090_v1 }
 0x2c5   : > { %v6248_v31 = vmax.f32 %v5948_v32, %v6094_v61  ;;  %v6249_v38 = vmax.f32 %v13348_v56, %v6096_v19  ;;  %v6250_v7 = vmax.f32 %v5950_v57, %v6095_v16  ;;  %v6251_v48 = vmax.f32 %v5951_v47, %v6099_v34 }
 0x2c6   : > { %v6252_v40 = vmax.f32 %v13353_v39, %v6101_v29  ;;  %v6253_v8 = vmax.f32 %v5953_v27, %v6100_v43  ;;  %v6254_v3 = vmax.f32 %v5954_v30, %v6104_v60  ;;  %v6255_v50 = vmax.f32 %v13357_v20, %v6106_v45  ;;  %v13417_v29 = vld [vmem:[#allocation2 + $0x10] sm:$0x1]  ;;  %v13419_v60 = vld [vmem:[#allocation2 + $0x24] sm:$0x1] }
 0x2c7   : > { %v6256_v23 = vmax.f32 %v5956_v17, %v6105_v62  ;;  %v6422_v49 = vrot.slane %v13334_v0, 2  ;;  %v6423_v41 = vrot.slane %v13359_v53, 2  ;;  %v6425_v46 = vrot.slane %v13343_v25, 2 }
 0x2c8   : > { %v6426_v33 = vrot.slane %v13361_v15, 2  ;;  %v6428_v61 = vrot.slane %v13348_v56, 2  ;;  %v6429_v19 = vrot.slane %v13363_v22, 2  ;;  %v6431_v10 = vrot.slane %v13353_v39, 2 }
 0x2c9   : > { %v6432_v43 = vrot.slane %v13365_v21, 2  ;;  %v6434_v32 = vrot.slane %v13357_v20, 2  ;;  %v6424_v57 = vsel %vm893_vm1, %v6422_v49, %v6423_v41  ;;  %v6435_v27 = vrot.slane %v13367_v35, 2 }
 0x2ca   : > { %v6427_v47 = vsel %vm893_vm1, %v6425_v46, %v6426_v33  ;;  %v6542_v30 = vmax.f32 %v6242_v51, %v6422_v49  ;;  %v6430_v17 = vsel %vm893_vm1, %v6428_v61, %v6429_v19  ;;  %v13408_v1 = vmax.f32 %v6243_v63, %v6424_v57  ;;  %v13421_v51 = vld [vmem:[#allocation2 + $0x38] sm:$0x1]  ;;  %v13429_v57 = vld [vmem:[#allocation2 + $0x60] sm:$0x1] }
 0x2cb   : > { %v6433_v18 = vsel %vm893_vm1, %v6431_v10, %v6432_v43  ;;  %v13410_v16 = vmax.f32 %v6244_v37, %v6423_v41  ;;  %v6436_v6 = vsel %vm893_vm1, %v6434_v32, %v6435_v27  ;;  %v6545_v14 = vmax.f32 %v6245_v26, %v6425_v46  ;;  %v13427_v41 = vld [vmem:[#allocation2 + $0x4c] sm:$0x1] }
 0x2cc   : > { %v13413_v62 = vmax.f32 %v6246_v36, %v6427_v47  ;;  %v13415_v34 = vmax.f32 %v6247_v44, %v6426_v33  ;;  %v6548_v45 = vmax.f32 %v6248_v31, %v6428_v61  ;;  %v13423_v49 = vmax.f32 %v6249_v38, %v6430_v17 }
 0x2cd   : > { %v13425_v63 = vmax.f32 %v6250_v7, %v6429_v19  ;;  %v6551_v37 = vmax.f32 %v6251_v48, %v6431_v10  ;;  %v13431_v26 = vmax.f32 %v6252_v40, %v6433_v18  ;;  %v13433_v36 = vmax.f32 %v6253_v8, %v6432_v43 }
 0x2ce   : > { %v6554_v44 = vmax.f32 %v6254_v3, %v6434_v32  ;;  %v13435_v46 = vmax.f32 %v6255_v50, %v6436_v6  ;;  %v13437_v33 = vmax.f32 %v6256_v23, %v6435_v27  ;;  %v6742_v31 = vunpack.c.l.bf16 %v13417_v29 }
 0x2cf   : > { %v6743_v38 = vunpack.c.l.bf16 %v13419_v60  ;;  %v6744_v7 = vunpack.c.l.bf16 %v13421_v51  ;;  %v15899_v48 = vunpack.c.l.bf16 %v13427_v41  ;;  %v15898_v61 = vunpack.c.l.bf16 %v13429_v57 }
 0x2d0   : > { %v6782_v40 = vrot.slane %v13334_v0, 3  ;;  %v6783_v8 = vrot.slane %v13359_v53, 3  ;;  %v6785_v19 = vrot.slane %v6742_v31, 3  ;;  %v6787_v3 = vrot.slane %v13343_v25, 3 }
 0x2d1   : > { %v6788_v50 = vrot.slane %v13361_v15, 3  ;;  %v6790_v23 = vrot.slane %v6743_v38, 3  ;;  %v6792_v43 = vrot.slane %v13348_v56, 3  ;;  %v6793_v32 = vrot.slane %v13363_v22, 3 }
 0x2d2   : > { %v13449_v10 = vsel %vm1254_vm2, %v6782_v40, %v6783_v8  ;;  %v6795_v47 = vrot.slane %v6744_v7, 3  ;;  %v13454_v27 = vsel %vm1254_vm2, %v6783_v8, %v6785_v19  ;;  %v6797_v25 = vrot.slane %v13353_v39, 3 }
 0x2d3   : > { %v13457_v0 = vsel %vm1254_vm2, %v6787_v3, %v6788_v50  ;;  %v13460_v17 = vsel %vm1254_vm2, %v6788_v50, %v6790_v23  ;;  %v13464_v18 = vsel %vm1254_vm2, %v6792_v43, %v6793_v32  ;;  %v6798_v56 = vrot.slane %v13365_v21, 3 }
 0x2d4   : > { %v13467_v6 = vsel %vm1254_vm2, %v6793_v32, %v6795_v47  ;;  %v6800_v29 = vrot.slane %v15899_v48, 3  ;;  %v6802_v60 = vrot.slane %v13357_v20, 3  ;;  %v6803_v51 = vrot.slane %v13367_v35, 3 }
 0x2d5   : > { %v6805_v8 = vrot.slane %v15898_v61, 3  ;;  %v13476_v19 = vmax.f32 %v6542_v30, %v6782_v40  ;;  %v13479_v39 = vsel %vm1254_vm2, %v6797_v25, %v6798_v56  ;;  %v6943_v23 = vmax.f32 %v13408_v1, %v13449_v10  ;;  %v7062_v61 = vld [vmem:[#allocation2 + $0x8] sm:$0xe] }
 0x2d6   : > { %v13482_v50 = vsel %vm1254_vm2, %v6798_v56, %v6800_v29  ;;  %v6944_v32 = vmax.f32 %v13410_v16, %v13454_v27  ;;  %v13489_v20 = vsel %vm1254_vm2, %v6802_v60, %v6803_v51  ;;  %v6945_v30 = vmax.f32 %v6545_v14, %v6787_v3  ;;  %v7063_v56 = vld [vmem:[#allocation2 + $0x1c] sm:$0xe]  ;;  %v7064_v27 = vld [vmem:[#allocation2 + $0x30] sm:$0xe] }
 0x2d7   : > { %v13492_v47 = vsel %vm1254_vm2, %v6803_v51, %v6805_v8  ;;  %v6946_v40 = vmax.f32 %v13413_v62, %v13457_v0  ;;  %v6947_v29 = vmax.f32 %v13415_v34, %v13460_v17  ;;  %v6948_v1 = vmax.f32 %v6548_v45, %v6792_v43  ;;  %v7065_v51 = vld [vmem:[#allocation2 + $0x44] sm:$0xe]  ;;  %v7066_v8 = vld [vmem:[#allocation2 + $0x58] sm:$0xe]  ;;  %v9019_v0 = vld [vmem:[%s9454_s30 + $0x8] sm:$0xff] }
 0x2d8   : > { %v6949_v16 = vmax.f32 %v13423_v49, %v13464_v18  ;;  %v6950_v10 = vmax.f32 %v13425_v63, %v13467_v6  ;;  %v6951_v48 = vmax.f32 %v6551_v37, %v6797_v25  ;;  %v6952_v14 = vmax.f32 %v13431_v26, %v13479_v39  ;;  %3061 = vmatmul.bf16.gmra.mxu1 %v9019_v0 }
 0x2d9   : > { %v6953_v62 = vmax.f32 %v13433_v36, %v13482_v50  ;;  %v6954_v3 = vmax.f32 %v6554_v44, %v6802_v60  ;;  %v6955_v34 = vmax.f32 %v13435_v46, %v13489_v20  ;;  %v6956_v45 = vmax.f32 %v13437_v33, %v13492_v47 }
 0x2da   : > { %v7142_v49 = vunpack.c.l.bf16 %v7062_v61  ;;  %v7143_v63 = vunpack.c.l.bf16 %v7063_v56  ;;  %v7144_v43 = vunpack.c.l.bf16 %v7064_v27  ;;  %v7145_v17 = vunpack.c.l.bf16 %v7065_v51 }
 0x2db   : > { %v7146_v18 = vunpack.c.l.bf16 %v7066_v8  ;;  %v7183_v37 = vrot.slane %v13359_v53, 4  ;;  %v7185_v25 = vrot.slane %v6742_v31, 4  ;;  %v7188_v36 = vrot.slane %v13361_v15, 4 }
 0x2dc   : > { %v7182_v26 = vrot.slane %v7142_v49, 4  ;;  %v7187_v6 = vrot.slane %v7143_v63, 4  ;;  %v7190_v44 = vrot.slane %v6743_v38, 4  ;;  %v7192_v60 = vrot.slane %v7144_v43, 4 }
 0x2dd   : > { %v7193_v46 = vrot.slane %v13363_v22, 4  ;;  %v7195_v39 = vrot.slane %v6744_v7, 4  ;;  %v7186_v61 = vsel %vm1655_vm3, %v7183_v37, %v7185_v25  ;;  %v7197_v20 = vrot.slane %v7145_v17, 4 }
 0x2de   : > { %v7184_v33 = vsel %vm1655_vm3, %v7182_v26, %v7183_v37  ;;  %v7189_v50 = vsel %vm1655_vm3, %v7187_v6, %v7188_v36  ;;  %v7191_v53 = vsel %vm1655_vm3, %v7188_v36, %v7190_v44  ;;  %v7198_v15 = vrot.slane %v13365_v21, 4  ;;  %v17323_v44 = vld [vmem:[#allocation49_spill] sm:$0xff] }
 0x2df   : > { %v7194_v47 = vsel %vm1655_vm3, %v7192_v60, %v7193_v46  ;;  %v7196_v31 = vsel %vm1655_vm3, %v7193_v46, %v7195_v39  ;;  %v17320_v38 = vunpack.c.l.bf16 %v13427_v41  ;;  %v7202_v22 = vrot.slane %v7146_v18, 4 }
 0x2e0   : > { %v7203_v7 = vrot.slane %v13367_v35, 4  ;;  %v17321_v27 = vunpack.c.l.bf16 %v13429_v57  ;;  %v7199_v8 = vsel %vm1655_vm3, %v7197_v20, %v7198_v15  ;;  %v7342_v0 = vmax.f32 %v13476_v19, %v7182_v26  ;;  %v5877_v26 = vld [vmem:[#allocation2 + $0x68] sm:$0x8] }
 0x2e1   : > { %v7200_v56 = vrot.slane %v17320_v38, 4  ;;  %v7343_v49 = vmax.f32 %v6943_v23, %v7184_v33  ;;  %v7344_v63 = vmax.f32 %v6944_v32, %v7186_v61  ;;  %v13531_v41 = vmax.f32 %v6945_v30, %v7187_v6  ;;  %v17322_v6 = vld [vmem:[#allocation106_spill] sm:$0xff] }
 0x2e2   : > { %v7205_v51 = vrot.slane %v17321_v27, 4  ;;  %v7204_v17 = vsel %vm1655_vm3, %v7202_v22, %v7203_v7  ;;  %v13533_v18 = vmax.f32 %v6946_v40, %v7189_v50  ;;  %v13535_v35 = vmax.f32 %v6947_v29, %v7191_v53 }
 0x2e3   : > { %v7201_v43 = vsel %vm1655_vm3, %v7198_v15, %v7200_v56  ;;  %v13537_v57 = vmax.f32 %v6948_v1, %v7192_v60  ;;  %v13539_v37 = vmax.f32 %v6949_v16, %v7194_v47  ;;  %v13541_v25 = vmax.f32 %v6950_v10, %v7196_v31  ;;  %v5878_v1 = vld [vmem:[#allocation2 + $0x6c] sm:$0xff]  }
 0x2e4   : > { %v7206_v21 = vsel %vm1655_vm3, %v7203_v7, %v7205_v51  ;;  %v13543_v19 = vmax.f32 %v6951_v48, %v7197_v20  ;;  %v13545_v23 = vmax.f32 %v6952_v14, %v7199_v8  ;;  %v13547_v32 = vmax.f32 %v6953_v62, %v7201_v43  ;;  %v5879_v62 = vld [vmem:[#allocation2 + $0x70] sm:$0x7] }
 0x2e5   : > { %v13549_v36 = vmax.f32 %v6954_v3, %v7202_v22  ;;  %v13551_v30 = vmax.f32 %v6955_v34, %v7204_v17  ;;  %v13553_v40 = vmax.f32 %v6956_v45, %v7206_v21  ;;  %v7513_v29 = vmax.f32 %v7342_v0, %v13531_v41  ;;  %v9020_v47 = vld [vmem:[%s9454_s30 + $0x10] sm:$0xff] }
 0x2e6   : > { %v7514_v16 = vmax.f32 %v7343_v49, %v13533_v18  ;;  %v7515_v10 = vmax.f32 %v7344_v63, %v13535_v35  ;;  %v5567_v48 = vunpack.c.l.b16 %v13246_v11  ;;  %v5568_v14 = vunpack.c.l.b16 %v13258_v28  ;;  %v6667_v28 = vld [vmem:[#allocation2 + $0x74] sm:$0x1] }
 0x2e7   : > { %v7660_v3 = vmax.f32 %v7513_v29, %v13537_v57  ;;  %v2705_v34 = vunpack.c.l.b16 %v17322_v6  ;;  %v2706_v45 = vunpack.c.l.b16 %v17323_v44  ;;  %v5957_v60 = vunpack.c.l.bf16 %v5877_v26 }
 0x2e8   : > { %v7661_v46 = vmax.f32 %v7514_v16, %v13539_v37  ;;  %v7662_v39 = vmax.f32 %v7515_v10, %v13541_v25  ;;  %v5598_v33 = vpack.c.b16 %v5568_v14, %v5567_v48  ;;  %v5958_v61 = vunpack.c.l.bf16 %v5878_v1  ;;  %3066 = vmatmul.bf16.gmra.mxu1 %v9020_v47  ;;  %v7067_v48 = vld [vmem:[#allocation2 + $0x6c] sm:$0xe] }
 0x2e9   : > { %v7807_v50 = vmax.f32 %v7660_v3, %v13543_v19  ;;  %v2736_v11 = vpack.c.b16 %v2706_v45, %v2705_v34  ;;  %v5959_v20 = vunpack.c.l.bf16 %v5879_v62  ;;  %v6007_v53 = vunpack.c.h.bf16 %v5878_v1 }
 0x2ea   : > { %v7808_v31 = vmax.f32 %v7661_v46, %v13545_v23  ;;  %v7809_v15 = vmax.f32 %v7662_v39, %v13547_v32  ;;  %5690 = vmatmul.bf16.gmra.mxu2 %v5598_v33  ;;  %v6107_v38 = vrot.slane %v5957_v60, 1  ;;  %v6108_v56 = vrot.slane %v5958_v61, 1 }
 0x2eb   : > { %v7954_v22 = vmax.f32 %v7807_v50, %v13549_v36  ;;  %2828 = vmatmul.bf16.gmra.mxu0 %v2736_v11  ;;  %v6110_v7 = vrot.slane %v6007_v53, 1  ;;  %v6437_v27 = vrot.slane %v5958_v61, 2  ;;  %v6438_v51 = vrot.slane %v6007_v53, 2 }
 0x2ec   : > { %v7955_v8 = vmax.f32 %v7808_v31, %v13551_v30  ;;  %v7956_v0 = vmax.f32 %v7809_v15, %v13553_v40  ;;  %v6109_v49 = vsel %vm552_vm0, %v6107_v38, %v6108_v56  ;;  %v6747_v63 = vunpack.c.l.bf16 %v6667_v28 }
 0x2ed   : > { %v8002_v43 = vpack.c.bf16 %v7954_v22, %v7954_v22  ;;  %v6111_v17 = vsel %vm552_vm0, %v6108_v56, %v6110_v7  ;;  %v6257_v21 = vmax.f32 %v5957_v60, %v6109_v49  ;;  %v6259_v26 = vmax.f32 %v5959_v20, %v6110_v7 }
 0x2ee   : > { %v8003_v29 = vpack.c.bf16 %v7955_v8, %v7955_v8  ;;  %v8004_v1 = vpack.c.bf16 %v7956_v0, %v7956_v0  ;;  %v6258_v16 = vmax.f32 %v5958_v61, %v6111_v17  ;;  %v6439_v10 = vsel %vm893_vm1, %v6437_v27, %v6438_v51 }
 0x2ef   : > { %v8964_v14 = vrot.slane %v8002_v43, 11  ;;  %v6557_v62 = vmax.f32 %v6257_v21, %v6437_v27  ;;  %v6559_v3 = vmax.f32 %v6259_v26, %v6438_v51  ;;  %v6807_v6 = vrot.slane %v5958_v61, 3  ;;  %v5880_v21 = vld [vmem:[#allocation2 + $0x7c] sm:$0x8]  ;;  %v5881_v26 = vld [vmem:[#allocation2 + $0x80] sm:$0xff]  }
 0x2f0   : > { %v8100_v34 = vrot.slane %v8003_v29, 7  ;;  %v8103_v44 = vrot.slane %v8004_v1, 7  ;;  %v6558_v45 = vmax.f32 %v6258_v16, %v6439_v10  ;;  %v6808_v46 = vrot.slane %v6007_v53, 3 }
 0x2f1   : > { %v6810_v39 = vrot.slane %v6747_v63, 3  ;;  %v6957_v33 = vmax.f32 %v6557_v62, %v6807_v6  ;;  %v7147_v50 = vunpack.c.l.bf16 %v7067_v48  ;;  %v7208_v11 = vrot.slane %v6007_v53, 4 }
 0x2f2   : > { %v8101_v60 = vsel %vm11740_vm6, %v8964_v14, %v8100_v34  ;;  %v8102_v20 = vrot.slane %v8100_v34, 4  ;;  %v6809_v28 = vsel %vm1254_vm2, %v6807_v6, %v6808_v46  ;;  %v7210_v47 = vrot.slane %v6747_v63, 4  ;;  %v17324_v14 = vld [vmem:[#allocation43_spill] sm:$0xff] }
 0x2f3   : > { %v8226_v31 = vunpack.c.l.b16 %v8101_v60  ;;  %v6811_v15 = vsel %vm1254_vm2, %v6808_v46, %v6810_v39  ;;  %v6958_v38 = vmax.f32 %v6558_v45, %v6809_v28  ;;  %v7207_v61 = vrot.slane %v7147_v50, 4  ;;  %v6668_v46 = vld [vmem:[#allocation2 + $0x88] sm:$0x1]  ;;  %v9021_v39 = vld [vmem:[%s9454_s30 + $0x18] sm:$0xff] }
 0x2f4   : > { %v8104_v56 = vsel %vm11740_vm6, %v8102_v20, %v8103_v44  ;;  %v6959_v22 = vmax.f32 %v6559_v3, %v6811_v15  ;;  %v7211_v7 = vsel %vm1655_vm3, %v7208_v11, %v7210_v47  ;;  %v7516_v53 = vmax.f32 %v13531_v41, %v13537_v57 }
 0x2f5   : > { %v8227_v27 = vunpack.c.l.b16 %v8104_v56  ;;  %v7209_v51 = vsel %vm1655_vm3, %v7207_v61, %v7208_v11  ;;  %v13585_v8 = vmax.f32 %v6957_v33, %v7207_v61  ;;  %v7517_v0 = vmax.f32 %v13533_v18, %v13539_v37  ;;  %v5882_v18 = vld [vmem:[#allocation2 + $0x84] sm:$0x7] }
 0x2f6   : > { %v13589_v49 = vmax.f32 %v6958_v38, %v7209_v51  ;;  %v13591_v63 = vmax.f32 %v6959_v22, %v7211_v7  ;;  %v7518_v43 = vmax.f32 %v13535_v35, %v13541_v25  ;;  %v7663_v17 = vmax.f32 %v7516_v53, %v13543_v19  ;;  %v17325_v35 = vld [vmem:[#allocation80_spill] sm:$0xff] }
 0x2f7   : > { %v8258_v41 = vpack.c.b16 %v8227_v27, %v8226_v31  ;;  %v7664_v29 = vmax.f32 %v7517_v0, %v13545_v23  ;;  %v5569_v1 = vunpack.c.l.b16 %v13253_v55  ;;  %v5570_v16 = vunpack.c.l.b16 %v13262_v24 }
 0x2f8   : > { %v7665_v10 = vmax.f32 %v7518_v43, %v13547_v32  ;;  %v7810_v48 = vmax.f32 %v7663_v17, %v13549_v36  ;;  %v2707_v62 = vunpack.c.l.b16 %v17324_v14  ;;  %v2708_v3 = vunpack.c.l.b16 %v17325_v35  ;;  %3071 = vmatmul.bf16.gmra.mxu1 %v9021_v39 }
 0x2f9   : > { %8346 = vmatmul.bf16.vlgmr.msra.gmra.mxu3 %v8258_v41  ;;  %v7811_v6 = vmax.f32 %v7664_v29, %v13551_v30  ;;  %v5599_v34 = vpack.c.b16 %v5570_v16, %v5569_v1  ;;  %v5960_v44 = vunpack.c.l.bf16 %v5880_v21  ;;  %v5961_v45 = vunpack.c.l.bf16 %v5881_v26 }
 0x2fa   : > { %v7812_v55 = vmax.f32 %v7665_v10, %v13553_v40  ;;  %v7957_v24 = vmax.f32 %v7810_v48, %v13585_v8  ;;  %v2737_v33 = vpack.c.b16 %v2708_v3, %v2707_v62  ;;  %v5962_v50 = vunpack.c.l.bf16 %v5882_v18  ;;  %v7068_v18 = vld [vmem:[#allocation2 + $0x80] sm:$0xe] }
 0x2fb   : > { %v7958_v11 = vmax.f32 %v7811_v6, %v13589_v49  ;;  %5695 = vmatmul.bf16.gmra.mxu2 %v5599_v34  ;;  %v6008_v60 = vunpack.c.h.bf16 %v5881_v26  ;;  %v6112_v20 = vrot.slane %v5960_v44, 1  ;;  %v6113_v28 = vrot.slane %v5961_v45, 1 }
 0x2fc   : > { %v7959_v47 = vmax.f32 %v7812_v55, %v13591_v63  ;;  %v8005_v31 = vpack.c.bf16 %v7957_v24, %v7957_v24  ;;  %2833 = vmatmul.bf16.gmra.mxu0 %v2737_v33  ;;  %v6440_v15 = vrot.slane %v5961_v45, 2  ;;  %v6748_v38 = vunpack.c.l.bf16 %v6668_v46 }
 0x2fd   : > { %v8006_v61 = vpack.c.bf16 %v7958_v11, %v7958_v11  ;;  %v6114_v56 = vsel %vm552_vm0, %v6112_v20, %v6113_v28  ;;  %v6115_v22 = vrot.slane %v6008_v60, 1  ;;  %v6441_v7 = vrot.slane %v6008_v60, 2 }
 0x2fe   : > { %v8007_v53 = vpack.c.bf16 %v7959_v47, %v7959_v47  ;;  %v8965_v27 = vrot.slane %v8005_v31, 11  ;;  %v6260_v51 = vmax.f32 %v5960_v44, %v6114_v56  ;;  %v6812_v0 = vrot.slane %v5961_v45, 3  ;;  %v5883_v56 = vld [vmem:[#allocation2 + $0x90] sm:$0x8] }
 0x2ff   : > { %v8107_v43 = vrot.slane %v8006_v61, 7  ;;  %v6116_v17 = vsel %vm552_vm0, %v6113_v28, %v6115_v22  ;;  %v6262_v21 = vmax.f32 %v5962_v50, %v6115_v22  ;;  %v6442_v26 = vsel %vm893_vm1, %v6440_v15, %v6441_v7 }
 0x300   : > { %v8110_v41 = vrot.slane %v8007_v53, 7  ;;  %v6261_v29 = vmax.f32 %v5961_v45, %v6116_v17  ;;  %v6560_v1 = vmax.f32 %v6260_v51, %v6440_v15  ;;  %v6813_v16 = vrot.slane %v6008_v60, 3  ;;  %v5885_v53 = vld [vmem:[#allocation2 + $0x98] sm:$0x7]  ;;  %v17327_v17 = vld [vmem:[#allocation108_spill] sm:$0xff] }
 0x301   : > { %v8108_v10 = vsel %vm11740_vm6, %v8965_v27, %v8107_v43  ;;  %v8109_v48 = vrot.slane %v8107_v43, 4  ;;  %v6562_v14 = vmax.f32 %v6262_v21, %v6441_v7  ;;  %v6815_v62 = vrot.slane %v6748_v38, 3  ;;  %v5884_v7 = vld [vmem:[#allocation2 + $0x94] sm:$0xff]  }
 0x302   : > { %v8228_v35 = vunpack.c.l.b16 %v8108_v10  ;;  %v6561_v3 = vmax.f32 %v6261_v29, %v6442_v26  ;;  %v6814_v6 = vsel %vm1254_vm2, %v6812_v0, %v6813_v16  ;;  %v6960_v34 = vmax.f32 %v6560_v1, %v6812_v0  ;;  %v17326_v0 = vld [vmem:[#allocation107_spill] sm:$0xff] }
 0x303   : > { %v8111_v44 = vsel %vm11740_vm6, %v8109_v48, %v8110_v41  ;;  %v6816_v46 = vsel %vm1254_vm2, %v6813_v16, %v6815_v62  ;;  %v7148_v45 = vunpack.c.l.bf16 %v7068_v18  ;;  %v7213_v39 = vrot.slane %v6008_v60, 4  ;;  %v9022_v41 = vld [vmem:[%s9454_s30 + $0x20] sm:$0xff]  ;;  %v6669_v10 = vld [vmem:[#allocation2 + $0x9c] sm:$0x1] }
 0x304   : > { %v8229_v55 = vunpack.c.l.b16 %v8111_v44  ;;  %v6961_v24 = vmax.f32 %v6561_v3, %v6814_v6  ;;  %v6962_v33 = vmax.f32 %v6562_v14, %v6816_v46  ;;  %v7215_v50 = vrot.slane %v6748_v38, 4 }
 0x305   : > { %v7212_v11 = vrot.slane %v7148_v45, 4  ;;  %v7519_v20 = vmax.f32 %v13537_v57, %v13543_v19  ;;  %v7520_v28 = vmax.f32 %v13539_v37, %v13545_v23  ;;  %v7521_v47 = vmax.f32 %v13541_v25, %v13547_v32 }
 0x306   : > { %v8259_v31 = vpack.c.b16 %v8229_v55, %v8228_v35  ;;  %v7216_v15 = vsel %vm1655_vm3, %v7213_v39, %v7215_v50  ;;  %v5571_v61 = vunpack.c.l.b16 %v13266_v42  ;;  %v5572_v60 = vunpack.c.l.b16 %v13274_v5 }
 0x307   : > { %v7214_v38 = vsel %vm1655_vm3, %v7212_v11, %v7213_v39  ;;  %v13628_v22 = vmax.f32 %v6960_v34, %v7212_v11  ;;  %v13630_v57 = vmax.f32 %v6962_v33, %v7216_v15  ;;  %v7666_v37 = vmax.f32 %v7519_v20, %v13549_v36  ;;  %v7069_v15 = vld [vmem:[#allocation2 + $0x94] sm:$0xe] }
 0x308   : > { %v13633_v25 = vmax.f32 %v6961_v24, %v7214_v38  ;;  %v7667_v27 = vmax.f32 %v7520_v28, %v13551_v30  ;;  %v7668_v42 = vmax.f32 %v7521_v47, %v13553_v40  ;;  %v5600_v51 = vpack.c.b16 %v5572_v60, %v5571_v61  ;;  %3076 = vmatmul.bf16.gmra.mxu1 %v9022_v41 }
 0x309   : > { %8351 = vmatmul.bf16.gmra.mxu3 %v8259_v31  ;;  %v7813_v5 = vmax.f32 %v7666_v37, %v13585_v8  ;;  %v2709_v43 = vunpack.c.l.b16 %v17326_v0  ;;  %v2710_v21 = vunpack.c.l.b16 %v17327_v17  ;;  %v5963_v26 = vunpack.c.l.bf16 %v5883_v56 }
 0x30a   : > { %v7814_v29 = vmax.f32 %v7667_v27, %v13589_v49  ;;  %v7815_v1 = vmax.f32 %v7668_v42, %v13591_v63  ;;  %v5964_v16 = vunpack.c.l.bf16 %v5884_v7  ;;  %v5965_v18 = vunpack.c.l.bf16 %v5885_v53 }
 0x30b   : > { %v7960_v48 = vmax.f32 %v7813_v5, %v13628_v22  ;;  %5700 = vmatmul.bf16.gmra.mxu2 %v5600_v51  ;;  %v2738_v14 = vpack.c.b16 %v2710_v21, %v2709_v43  ;;  %v6009_v62 = vunpack.c.h.bf16 %v5884_v7  ;;  %v6117_v35 = vrot.slane %v5963_v26, 1 }
 0x30c   : > { %v7961_v3 = vmax.f32 %v7814_v29, %v13633_v25  ;;  %v7962_v6 = vmax.f32 %v7815_v1, %v13630_v57  ;;  %v6118_v34 = vrot.slane %v5964_v16, 1  ;;  %v6443_v44 = vrot.slane %v5964_v16, 2 }
 0x30d   : > { %v8008_v46 = vpack.c.bf16 %v7960_v48, %v7960_v48  ;;  %2838 = vmatmul.bf16.gmra.mxu0 %v2738_v14  ;;  %v6120_v45 = vrot.slane %v6009_v62, 1  ;;  %v6444_v39 = vrot.slane %v6009_v62, 2  ;;  %v6749_v55 = vunpack.c.l.bf16 %v6669_v10 }
 0x30e   : > { %v8009_v24 = vpack.c.bf16 %v7961_v3, %v7961_v3  ;;  %v8010_v33 = vpack.c.bf16 %v7962_v6, %v7962_v6  ;;  %v6119_v50 = vsel %vm552_vm0, %v6117_v35, %v6118_v34  ;;  %v6817_v11 = vrot.slane %v5964_v16, 3 }
 0x30f   : > { %v8966_v20 = vrot.slane %v8008_v46, 11  ;;  %v6121_v28 = vsel %vm552_vm0, %v6118_v34, %v6120_v45  ;;  %v6263_v47 = vmax.f32 %v5963_v26, %v6119_v50  ;;  %v6265_v31 = vmax.f32 %v5965_v18, %v6120_v45  ;;  %v17328_v50 = vld [vmem:[#allocation41_spill] sm:$0xff] }
 0x310   : > { %v8114_v61 = vrot.slane %v8009_v24, 7  ;;  %v8117_v60 = vrot.slane %v8010_v33, 7  ;;  %v6264_v56 = vmax.f32 %v5964_v16, %v6121_v28  ;;  %v6445_v38 = vsel %vm893_vm1, %v6443_v44, %v6444_v39 }
 0x311   : > { %v6563_v37 = vmax.f32 %v6263_v47, %v6443_v44  ;;  %v6565_v7 = vmax.f32 %v6265_v31, %v6444_v39  ;;  %v6818_v53 = vrot.slane %v6009_v62, 3  ;;  %v6820_v27 = vrot.slane %v6749_v55, 3  ;;  %v13667_v39 = vld [vmem:[#allocation2 + $0xa4] sm:$0x8]  ;;  %v6670_v47 = vld [vmem:[#allocation2 + $0xb0] sm:$0x1] }
 0x312   : > { %v8115_v42 = vsel %vm11740_vm6, %v8966_v20, %v8114_v61  ;;  %v8116_v51 = vrot.slane %v8114_v61, 4  ;;  %v6564_v5 = vmax.f32 %v6264_v56, %v6445_v38  ;;  %v7149_v0 = vunpack.c.l.bf16 %v7069_v15  ;;  %v17329_v20 = vld [vmem:[#allocation89_spill] sm:$0xff] }
 0x313   : > { %v8230_v43 = vunpack.c.l.b16 %v8115_v42  ;;  %v6819_v17 = vsel %vm1254_vm2, %v6817_v11, %v6818_v53  ;;  %v6821_v21 = vsel %vm1254_vm2, %v6818_v53, %v6820_v27  ;;  %v6963_v26 = vmax.f32 %v6563_v37, %v6817_v11 }
 0x314   : > { %v8118_v41 = vsel %vm11740_vm6, %v8116_v51, %v8117_v60  ;;  %v6964_v29 = vmax.f32 %v6564_v5, %v6819_v17  ;;  %v6965_v1 = vmax.f32 %v6565_v7, %v6821_v21  ;;  %v7217_v16 = vrot.slane %v7149_v0, 4  ;;  %v9023_v0 = vld [vmem:[%s9454_s30 + $0x28] sm:$0xff] }
 0x315   : > { %v8231_v18 = vunpack.c.l.b16 %v8118_v41  ;;  %v7218_v10 = vrot.slane %v6009_v62, 4  ;;  %v7220_v48 = vrot.slane %v6749_v55, 4  ;;  %v7522_v14 = vmax.f32 %v13543_v19, %v13549_v36 }
 0x316   : > { %v13657_v35 = vmax.f32 %v6963_v26, %v7217_v16  ;;  %v7523_v3 = vmax.f32 %v13545_v23, %v13551_v30  ;;  %v7524_v6 = vmax.f32 %v13547_v32, %v13553_v40  ;;  %v5573_v34 = vunpack.c.l.b16 %v13278_v52  ;;  %v13675_v32 = vld [vmem:[#allocation2 + $0xac] sm:$0x7] }
 0x317   : > { %v8260_v44 = vpack.c.b16 %v8231_v18, %v8230_v43  ;;  %v7219_v46 = vsel %vm1655_vm3, %v7217_v16, %v7218_v10  ;;  %v7221_v45 = vsel %vm1655_vm3, %v7218_v10, %v7220_v48  ;;  %v7669_v62 = vmax.f32 %v7522_v14, %v13585_v8  ;;  %v17330_v18 = vld [vmem:[#allocation40_spill] sm:$0xff] }
 0x318   : > { %v13669_v19 = vmax.f32 %v6964_v29, %v7219_v46  ;;  %v13671_v55 = vmax.f32 %v6965_v1, %v7221_v45  ;;  %v7670_v23 = vmax.f32 %v7523_v3, %v13589_v49  ;;  %v7671_v24 = vmax.f32 %v7524_v6, %v13591_v63  ;;  %3081 = vmatmul.bf16.gmra.mxu1 %v9023_v0  ;;  %v17331_v3 = vld [vmem:[#allocation109_spill] sm:$0xff] }
 0x319   : > { %8356 = vmatmul.bf16.gmra.mxu3 %v8260_v44  ;;  %v7816_v52 = vmax.f32 %v7669_v62, %v13628_v22  ;;  %v5574_v33 = vunpack.c.l.b16 %v13289_v12  ;;  %v2711_v11 = vunpack.c.l.b16 %v17328_v50  ;;  %v2712_v28 = vunpack.c.l.b16 %v17329_v20 }
 0x31a   : > { %v7817_v31 = vmax.f32 %v7670_v23, %v13633_v25  ;;  %v7818_v15 = vmax.f32 %v7671_v24, %v13630_v57  ;;  %v13687_v61 = vsel %vm11740_vm6, %v13291_v58, %v13280_v9  ;;  %v5966_v60 = vunpack.c.l.bf16 %v13667_v39 }
 0x31b   : > { %v7963_v12 = vmax.f32 %v7816_v52, %v13657_v35  ;;  %v5601_v56 = vpack.c.b16 %v5574_v33, %v5573_v34  ;;  %v2739_v38 = vpack.c.b16 %v2712_v28, %v2711_v11  ;;  %5842 = vst [vmem:[#allocation2 + $0xa8] sm:$0xf] %v13687_v61  ;;  %v5968_v37 = vunpack.c.l.bf16 %v13675_v32  ;;  %v13721_v34 = vld [vmem:[#allocation2 + $0xb8] sm:$0x8] }
 0x31c   : > { %v7964_v7 = vmax.f32 %v7817_v31, %v13669_v19  ;;  %v7965_v53 = vmax.f32 %v7818_v15, %v13671_v55  ;;  %v6122_v27 = vrot.slane %v5966_v60, 1  ;;  %v6750_v9 = vunpack.c.l.bf16 %v6670_v47 }
 0x31d   : > { %v8011_v58 = vpack.c.bf16 %v7963_v12, %v7963_v12  ;;  %5705 = vmatmul.bf16.gmra.mxu2 %v5601_v56  ;;  %2843 = vmatmul.bf16.gmra.mxu0 %v2739_v38  ;;  %v7525_v42 = vmax.f32 %v13549_v36, %v13585_v8  ;;  %v7526_v51 = vmax.f32 %v13551_v30, %v13589_v49  ;;  %v5575_v5 = vunpack.c.l.b16 %v13298_v59 }
 0x31e   : > { %v8012_v43 = vpack.c.bf16 %v7964_v7, %v7964_v7  ;;  %v8013_v17 = vpack.c.bf16 %v7965_v53, %v7965_v53  ;;  %v6825_v21 = vrot.slane %v6750_v9, 3  ;;  %v7225_v26 = vrot.slane %v6750_v9, 4  ;;  %v5891_v7 = vld [vmem:[#allocation2 + $0xc0] sm:$0x7] }
 0x31f   : > { %v8967_v41 = vrot.slane %v8011_v58, 11  ;;  %v7527_v29 = vmax.f32 %v13553_v40, %v13591_v63  ;;  %v13706_v1 = vmax.f32 %v7525_v42, %v13628_v22  ;;  %v13709_v16 = vmax.f32 %v7526_v51, %v13633_v25  ;;  %v13739_v51 = vld [vmem:[#allocation2 + $0xc4] sm:$0x1] }
 0x320   : > { %v8121_v36 = vrot.slane %v8012_v43, 7  ;;  %v8124_v30 = vrot.slane %v8013_v17, 7  ;;  %v5576_v59 = vunpack.c.l.b16 %v13310_v4  ;;  %v2713_v10 = vunpack.c.l.b16 %v17330_v18 }
 0x321   : > { %v13714_v48 = vmax.f32 %v7527_v29, %v13630_v57  ;;  %v7819_v14 = vmax.f32 %v13706_v1, %v13657_v35  ;;  %v7820_v40 = vmax.f32 %v13709_v16, %v13669_v19  ;;  %v2714_v6 = vunpack.c.l.b16 %v17331_v3 }
 0x322   : > { %v8122_v44 = vsel %vm11740_vm6, %v8967_v41, %v8121_v36  ;;  %v8123_v46 = vrot.slane %v8121_v36, 4  ;;  %v5887_v4 = vld [vmem:[#allocation2 + $0xa8] sm:$0xff]   ;;  %v5602_v62 = vpack.c.b16 %v5576_v59, %v5575_v5  ;;  %v13729_v23 = vsel %vm11740_vm6, %v13312_v54, %v13301_v2 }
 0x323   : > { %v7070_v45 = vld [vmem:[#allocation2 + $0xa8] sm:$0xe]  ;;  %v8232_v24 = vunpack.c.l.b16 %v8122_v44  ;;  %v5967_v32 = vunpack.c.l.bf16 %v5887_v4  ;;  %v6010_v52 = vunpack.c.h.bf16 %v5887_v4  ;;  %5844 = vst [vmem:[#allocation2 + $0xbc] sm:$0xf] %v13729_v23  ;;  %v7821_v11 = vmax.f32 %v13714_v48, %v13671_v55 }
 0x324   : > { %v7150_v33 = vunpack.c.l.bf16 %v7070_v45  ;;  %v8125_v50 = vsel %vm11740_vm6, %v8123_v46, %v8124_v30  ;;  %v2740_v20 = vpack.c.b16 %v2714_v6, %v2713_v10  ;;  %v5969_v28 = vunpack.c.l.bf16 %v13721_v34 }
 0x325   : > { %v8233_v47 = vunpack.c.l.b16 %v8125_v50  ;;  %v6123_v31 = vrot.slane %v5967_v32, 1  ;;  %v6125_v15 = vrot.slane %v6010_v52, 1  ;;  %v6446_v2 = vrot.slane %v5967_v32, 2 }
 0x326   : > { %v6447_v54 = vrot.slane %v6010_v52, 2  ;;  %v6822_v12 = vrot.slane %v5967_v32, 3  ;;  %v6823_v56 = vrot.slane %v6010_v52, 3  ;;  %v7222_v38 = vrot.slane %v7150_v33, 4 }
 0x327   : > { %v8261_v53 = vpack.c.b16 %v8233_v47, %v8232_v24  ;;  %v6124_v9 = vsel %vm552_vm0, %v6122_v27, %v6123_v31  ;;  %v6126_v58 = vsel %vm552_vm0, %v6123_v31, %v6125_v15  ;;  %v6268_v42 = vmax.f32 %v5968_v37, %v6125_v15 }
 0x328   : > { %v6266_v5 = vmax.f32 %v5966_v60, %v6124_v9  ;;  %v6267_v0 = vmax.f32 %v5967_v32, %v6126_v58  ;;  %v6448_v43 = vsel %vm893_vm1, %v6446_v2, %v6447_v54  ;;  %v6824_v17 = vsel %vm1254_vm2, %v6822_v12, %v6823_v56 }
 0x329   : > { %8361 = vmatmul.bf16.gmra.mxu3 %v8261_v53  ;;  %v6568_v41 = vmax.f32 %v6268_v42, %v6447_v54  ;;  %v6826_v29 = vsel %vm1254_vm2, %v6823_v56, %v6825_v21  ;;  %v7223_v36 = vrot.slane %v6010_v52, 4  ;;  %v5971_v30 = vunpack.c.l.bf16 %v5891_v7  ;;  %v9024_v52 = vld [vmem:[%s9454_s30 + $0x30] sm:$0xff] }
 0x32a   : > { %v6566_v27 = vmax.f32 %v6266_v5, %v6446_v2  ;;  %v6567_v59 = vmax.f32 %v6267_v0, %v6448_v43  ;;  %v5890_v18 = vld [vmem:[#allocation2 + $0xbc] sm:$0xff]   ;;  %v6127_v37 = vrot.slane %v5969_v28, 1  ;;  %v6751_v10 = vunpack.c.l.bf16 %v13739_v51  ;;  %3086 = vmatmul.bf16.gmra.mxu1 %v9024_v52 }
 0x32b   : > { %v6968_v39 = vmax.f32 %v6568_v41, %v6826_v29  ;;  %v7224_v60 = vsel %vm1655_vm3, %v7222_v38, %v7223_v36  ;;  %v7226_v48 = vsel %vm1655_vm3, %v7223_v36, %v7225_v26  ;;  %v5970_v3 = vunpack.c.l.bf16 %v5890_v18  ;;  %v7071_v21 = vld [vmem:[#allocation2 + $0xbc] sm:$0xe] }
 0x32c   : > { %v6966_v6 = vmax.f32 %v6566_v27, %v6822_v12  ;;  %v6967_v34 = vmax.f32 %v6567_v59, %v6824_v17  ;;  %v6011_v44 = vunpack.c.h.bf16 %v5890_v18  ;;  %v6830_v46 = vrot.slane %v6751_v10, 3 }
 0x32d   : > { %v13749_v4 = vmax.f32 %v6968_v39, %v7226_v48  ;;  %5710 = vmatmul.bf16.gmra.mxu2 %v5602_v62  ;;  %2848 = vmatmul.bf16.gmra.mxu0 %v2740_v20  ;;  %v6128_v45 = vrot.slane %v5970_v3, 1  ;;  %v6449_v24 = vrot.slane %v5970_v3, 2  ;;  %v6827_v32 = vrot.slane %v5970_v3, 3 }
 0x32e   : > { %v13752_v33 = vmax.f32 %v6966_v6, %v7222_v38  ;;  %v13754_v50 = vmax.f32 %v6967_v34, %v7224_v60  ;;  %v6130_v47 = vrot.slane %v6011_v44, 1  ;;  %v6450_v26 = vrot.slane %v6011_v44, 2 }
 0x32f   : > { %v7968_v31 = vmax.f32 %v7821_v11, %v13749_v4  ;;  %v6129_v15 = vsel %vm552_vm0, %v6127_v37, %v6128_v45  ;;  %v6828_v2 = vrot.slane %v6011_v44, 3  ;;  %v7151_v54 = vunpack.c.l.bf16 %v7071_v21 }
 0x330   : > { %v7966_v62 = vmax.f32 %v7819_v14, %v13752_v33  ;;  %v7967_v20 = vmax.f32 %v7820_v40, %v13754_v50  ;;  %v6131_v12 = vsel %vm552_vm0, %v6128_v45, %v6130_v47  ;;  %v6269_v56 = vmax.f32 %v5969_v28, %v6129_v15 }
 0x331   : > { %v8016_v38 = vpack.c.bf16 %v7968_v31, %v7968_v31  ;;  %v6270_v11 = vmax.f32 %v5970_v3, %v6131_v12  ;;  %v6271_v7 = vmax.f32 %v5971_v30, %v6130_v47  ;;  %v6451_v53 = vsel %vm893_vm1, %v6449_v24, %v6450_v26  ;;  %v17335_v47 = vld [vmem:[#allocation52_spill] sm:$0xff]  ;;  %v17336_v31 = vld [vmem:[#allocation110_spill] sm:$0xff] }
 0x332   : > { %v8014_v9 = vpack.c.bf16 %v7966_v62, %v7966_v62  ;;  %v8015_v58 = vpack.c.bf16 %v7967_v20, %v7967_v20  ;;  %v6569_v42 = vmax.f32 %v6269_v56, %v6449_v24  ;;  %v6829_v51 = vsel %vm1254_vm2, %v6827_v32, %v6828_v2  ;;  %v3238_v24 = vld [vmem:[#allocation2 + $0xf8] sm:$0xf] }
 0x333   : > { %v8131_v1 = vrot.slane %v8016_v38, 7  ;;  %v6570_v14 = vmax.f32 %v6270_v11, %v6451_v53  ;;  %v6571_v5 = vmax.f32 %v6271_v7, %v6450_v26  ;;  %v6831_v0 = vsel %vm1254_vm2, %v6828_v2, %v6830_v46  ;;  %v4413_v2 = vld [vmem:[#allocation2 + $0xf8] sm:$0xe] }
 0x334   : > { %v8968_v16 = vrot.slane %v8014_v9, 11  ;;  %v8128_v40 = vrot.slane %v8015_v58, 7  ;;  %v6969_v43 = vmax.f32 %v6569_v42, %v6827_v32  ;;  %v7227_v17 = vrot.slane %v7151_v54, 4  ;;  %v17334_v32 = vld [vmem:[#allocation8_spill] sm:$0xff] }
 0x335   : > { %v6970_v28 = vmax.f32 %v6570_v14, %v6829_v51  ;;  %v6971_v41 = vmax.f32 %v6571_v5, %v6831_v0  ;;  %v7228_v29 = vrot.slane %v6011_v44, 4  ;;  %v7230_v36 = vrot.slane %v6751_v10, 4  ;;  %v3237_v44 = vld [vmem:[#allocation2 + $0xf4] sm:$0x8]  ;;  %v17337_v14 = vld [vmem:[#allocation29_spill] sm:$0xff] }
 0x336   : > { %v8129_v30 = vsel %vm11740_vm6, %v8968_v16, %v8128_v40  ;;  %v8130_v27 = vrot.slane %v8128_v40, 4  ;;  %v13772_v59 = vmax.f32 %v6969_v43, %v7227_v17  ;;  %v7528_v18 = vmax.f32 %v13585_v8, %v13628_v22  ;;  %v13803_v43 = vld [vmem:[#allocation2 + $0xcc] sm:$0x8] }
 0x337   : > { %v8234_v37 = vunpack.c.l.b16 %v8129_v30  ;;  %v7229_v39 = vsel %vm1655_vm3, %v7227_v17, %v7228_v29  ;;  %v7231_v60 = vsel %vm1655_vm3, %v7228_v29, %v7230_v36  ;;  %v7529_v48 = vmax.f32 %v13589_v49, %v13633_v25  ;;  %v281_v17 = vld [vmem:[%s9454_s30 + $0x78] sm:$0xf] }
 0x338   : > { %v8132_v10 = vsel %vm11740_vm6, %v8130_v27, %v8131_v1  ;;  %v13782_v3 = vmax.f32 %v6970_v28, %v7229_v39  ;;  %v13784_v6 = vmax.f32 %v6971_v41, %v7231_v60  ;;  %v7530_v34 = vmax.f32 %v13591_v63, %v13630_v57  ;;  %v17338_v29 = vld [vmem:[#allocation31_spill] sm:$0xff]  ;;  %330 = vst [vmem:[#allocation2 + $0x15c] sm:$0xf] %v281_v17 }
 0x339   : > { %v8235_v8 = vunpack.c.l.b16 %v8132_v10  ;;  %v7675_v46 = vmax.f32 %v7528_v18, %v13657_v35  ;;  %v7676_v21 = vmax.f32 %v7529_v48, %v13669_v19  ;;  %v5577_v45 = vunpack.c.l.b16 %v13687_v61  ;;  %v6672_v10 = vld [vmem:[#allocation2 + $0xd8] sm:$0x1] }
 0x33a   : > { %17332 = vst [vmem:[#allocation72_spill] sm:$0xff] %v13782_v3  ;;  %v7677_v49 = vmax.f32 %v7530_v34, %v13671_v55  ;;  %v5578_v52 = vunpack.c.l.b16 %v17334_v32  ;;  %v2715_v26 = vunpack.c.l.b16 %v17335_v47  ;;  %v2716_v15 = vunpack.c.l.b16 %v17336_v31  ;;  %v17346_v17 = vld [vmem:[#allocation23_spill] sm:$0xff] }
 0x33b   : > { %17333 = vst [vmem:[#allocation34_spill] sm:$0xff] %v13784_v6  ;;  %v8262_v54 = vpack.c.b16 %v8235_v8, %v8234_v37  ;;  %v7822_v63 = vmax.f32 %v7675_v46, %v13752_v33  ;;  %v7823_v62 = vmax.f32 %v7676_v21, %v13754_v50  ;;  %v3317_v20 = vunpack.c.l.bf16 %v3237_v44 }
 0x33c   : > { %v7824_v12 = vmax.f32 %v7677_v49, %v13749_v4  ;;  %v5603_v56 = vpack.c.b16 %v5578_v52, %v5577_v45  ;;  %v2741_v61 = vpack.c.b16 %v2716_v15, %v2715_v26  ;;  %v3318_v38 = vunpack.c.l.bf16 %v3238_v24 }
 0x33d   : > { %8366 = vmatmul.bf16.gmra.mxu3 %v8262_v54  ;;  %v7969_v11 = vmax.f32 %v7822_v63, %v13772_v59  ;;  %v7970_v7 = vmax.f32 %v7823_v62, %v13782_v3  ;;  %v3481_v53 = vrot.slane %v3317_v20, 1  ;;  %v4493_v9 = vunpack.c.l.bf16 %v4413_v2 }
 0x33e   : > { %v7971_v58 = vmax.f32 %v7824_v12, %v13784_v6  ;;  %5715 = vmatmul.bf16.gmra.mxu2 %v5603_v56  ;;  %2853 = vmatmul.bf16.gmra.mxu0 %v2741_v61  ;;  %v3482_v42 = vrot.slane %v3318_v38, 1  ;;  %v3797_v51 = vrot.slane %v3318_v38, 2  ;;  %v4181_v1 = vrot.slane %v3318_v38, 3  ;;  %v3241_v12 = vld [vmem:[#allocation2 + $0x10c] sm:$0xff]  }
 0x33f   : > { %v5367_v5 = vpack.c.bf16 %v17337_v14, %v17337_v14  ;;  %v8017_v0 = vpack.c.bf16 %v7969_v11, %v7969_v11  ;;  %v8018_v16 = vpack.c.bf16 %v7970_v7, %v7970_v7  ;;  %v4581_v40 = vrot.slane %v4493_v9, 4 }
 0x340   : > { %v8019_v28 = vpack.c.bf16 %v7971_v58, %v7971_v58  ;;  %v3483_v41 = vsel %vm552_vm0, %v3481_v53, %v3482_v42  ;;  %v17339_v36 = vrot.slane %v17338_v29, 1  ;;  %v17340_v27 = vrot.slane %v17338_v29, 2 }
 0x341   : > { %v8969_v37 = vrot.slane %v8017_v0, 11  ;;  %v8135_v39 = vrot.slane %v8018_v16, 7  ;;  %v3617_v60 = vmax.f32 %v3317_v20, %v3483_v41  ;;  %v17341_v44 = vrot.slane %v17338_v29, 3  ;;  %v3240_v20 = vld [vmem:[#allocation2 + $0x108] sm:$0x8]  ;;  %v17344_v0 = vld [vmem:[#allocation116_spill] sm:$0xff] }
 0x342   : > { %v3485_v30 = vsel %vm552_vm0, %v3482_v42, %v17339_v36  ;;  %v3799_v18 = vsel %vm893_vm1, %v3797_v51, %v17340_v27  ;;  %v8138_v34 = vrot.slane %v8019_v28, 7  ;;  %v17342_v46 = vrot.slane %v17338_v29, 4  ;;  %v17347_v28 = vld [vmem:[#allocation61_spill] sm:$0xff] }
 0x343   : > { %v3618_v48 = vmax.f32 %v3318_v38, %v3485_v30  ;;  %v4183_v8 = vsel %vm1254_vm2, %v4181_v1, %v17341_v44  ;;  %v5972_v45 = vunpack.c.l.bf16 %v13803_v43  ;;  %v8136_v24 = vsel %vm11740_vm6, %v8969_v37, %v8135_v39  ;;  %v13933_v43 = vld [vmem:[#allocation2 + $0x11c] sm:$0x8] }
 0x344   : > { %v4583_v21 = vsel %vm1655_vm3, %v4581_v40, %v17342_v46  ;;  %v8137_v49 = vrot.slane %v8135_v39, 4  ;;  %v3917_v32 = vmax.f32 %v3617_v60, %v3797_v51  ;;  %v8236_v47 = vunpack.c.l.b16 %v8136_v24 }
 0x345   : > { %v3918_v52 = vmax.f32 %v3618_v48, %v3799_v18  ;;  %v6752_v26 = vunpack.c.l.bf16 %v6672_v10  ;;  %v7531_v31 = vmax.f32 %v13628_v22, %v13657_v35  ;;  %v7532_v15 = vmax.f32 %v13633_v25, %v13669_v19 }
 0x346   : > { %v8139_v2 = vsel %vm11740_vm6, %v8137_v49, %v8138_v34  ;;  %v4317_v54 = vmax.f32 %v3917_v32, %v4181_v1  ;;  %v7533_v62 = vmax.f32 %v13630_v57, %v13671_v55  ;;  %v5498_v56 = vrot.slane %v5367_v5, 7  ;;  %v3242_v57 = vld [vmem:[#allocation2 + $0x110] sm:$0x7]  ;;  %v4014_v1 = vld [vmem:[#allocation2 + $0x114] sm:$0x1]  ;;  %v17343_v5 = vld [vmem:[#allocation25_spill] sm:$0xff] }
 0x347   : > { %v4318_v63 = vmax.f32 %v3918_v52, %v4183_v8  ;;  %v8237_v61 = vunpack.c.l.b16 %v8139_v2  ;;  %v13832_v38 = vrot.slane %v5972_v45, 1  ;;  %v13835_v22 = vmax.f32 %v7531_v31, %v13752_v33  ;;  %v4414_v52 = vld [vmem:[#allocation2 + $0x10c] sm:$0xe] }
 0x348   : > { %v13837_v25 = vmax.f32 %v4317_v54, %v4581_v40  ;;  %v13841_v7 = vrot.slane %v6752_v26, 3  ;;  %v13843_v53 = vrot.slane %v6752_v26, 4  ;;  %v13846_v9 = vmax.f32 %v7532_v15, %v13754_v50 }
 0x349   : > { %v13839_v11 = vmax.f32 %v4318_v63, %v4583_v21  ;;  %v13849_v58 = vmax.f32 %v7533_v62, %v13749_v4  ;;  %v3320_v42 = vunpack.c.l.bf16 %v3240_v20  ;;  %v3321_v51 = vunpack.c.l.bf16 %v3241_v12 }
 0x34a   : > { %v8263_v14 = vpack.c.b16 %v8237_v61, %v8236_v47  ;;  %v17345_v16 = vmax.f32 %v17343_v5, %v17344_v0  ;;  %v17348_v41 = vmax.f32 %v17346_v17, %v17347_v28  ;;  %v7825_v36 = vmax.f32 %v13835_v22, %v13772_v59 }
 0x34b   : > { %v3322_v30 = vunpack.c.l.bf16 %v3242_v57  ;;  %v3354_v27 = vunpack.c.h.bf16 %v3241_v12  ;;  %v3486_v18 = vrot.slane %v3320_v42, 1  ;;  %v3487_v37 = vrot.slane %v3321_v51, 1 }
 0x34c   : > { %v5317_v40 = vmax.f32 %v17345_v16, %v13837_v25  ;;  %v5318_v29 = vmax.f32 %v17348_v41, %v13839_v11  ;;  %v3800_v48 = vrot.slane %v3321_v51, 2  ;;  %v4094_v10 = vunpack.c.l.bf16 %v4014_v1  ;;  %v17349_v41 = vld [vmem:[#allocation66_spill] sm:$0xff] }
 0x34d   : > { %v3488_v34 = vsel %vm552_vm0, %v3486_v18, %v3487_v37  ;;  %v3489_v44 = vrot.slane %v3354_v27, 1  ;;  %v3801_v8 = vrot.slane %v3354_v27, 2  ;;  %v4186_v46 = vrot.slane %v3321_v51, 3  ;;  %8371 = vmatmul.bf16.gmra.mxu3 %v8263_v14 }
 0x34e   : > { %v5365_v39 = vpack.c.bf16 %v5317_v40, %v5317_v40  ;;  %v5366_v60 = vpack.c.bf16 %v5318_v29, %v5318_v29  ;;  %v3620_v49 = vmax.f32 %v3320_v42, %v3488_v34  ;;  %v4187_v32 = vrot.slane %v3354_v27, 3  ;;  %v13871_v42 = vld [vmem:[#allocation2 + $0xe0] sm:$0x8]  ;;  %v17350_v29 = vld [vmem:[#allocation81_spill] sm:$0xff] }
 0x34f   : > { %v3490_v47 = vsel %vm552_vm0, %v3487_v37, %v3489_v44  ;;  %v3622_v26 = vmax.f32 %v3322_v30, %v3489_v44  ;;  %v3802_v31 = vsel %vm893_vm1, %v3800_v48, %v3801_v8  ;;  %v4189_v15 = vrot.slane %v4094_v10, 3  ;;  %v17351_v37 = vld [vmem:[#allocation35_spill] sm:$0xff]  ;;  %v17354_v34 = vld [vmem:[#allocation48_spill] sm:$0xff] }
 0x350   : > { %v8924_v21 = vrot.slane %v5365_v39, 11  ;;  %v5495_v24 = vrot.slane %v5366_v60, 7  ;;  %v3621_v63 = vmax.f32 %v3321_v51, %v3490_v47  ;;  %v3920_v62 = vmax.f32 %v3620_v49, %v3800_v48  ;;  %v17352_v39 = vld [vmem:[#allocation97_spill] sm:$0xff]  ;;  %v17353_v48 = vld [vmem:[#allocation98_spill] sm:$0xff]  ;;  %v9025_v47 = vld [vmem:[%s9454_s30 + $0x38] sm:$0xff] }
 0x351   : > { %v3922_v20 = vmax.f32 %v3622_v26, %v3801_v8  ;;  %v4188_v12 = vsel %vm1254_vm2, %v4186_v46, %v4187_v32  ;;  %v4190_v61 = vsel %vm1254_vm2, %v4187_v32, %v4189_v15  ;;  %v4494_v57 = vunpack.c.l.bf16 %v4414_v52  ;;  %v17358_v49 = vld [vmem:[#allocation10_spill] sm:$0xff]  ;;  %3091 = vmatmul.bf16.gmra.mxu1 %v9025_v47 }
 0x352   : > { %v13866_v2 = vsel %vm11740_vm6, %v8924_v21, %v5495_v24  ;;  %v5497_v54 = vrot.slane %v5495_v24, 4  ;;  %v3921_v14 = vmax.f32 %v3621_v63, %v3802_v31  ;;  %v4320_v5 = vmax.f32 %v3920_v62, %v4186_v46  ;;  %v17357_v21 = vld [vmem:[#allocation99_spill] sm:$0xff]  ;;  %v17359_v32 = vld [vmem:[#allocation82_spill] sm:$0xff]  ;;  %v6673_v63 = vld [vmem:[#allocation2 + $0xec] sm:$0x1] }
 0x353   : > { %5846 = vst [vmem:[#allocation2 + $0xd0] sm:$0xf] %v13866_v2  ;;  %v4587_v16 = vrot.slane %v3354_v27, 4  ;;  %v4322_v51 = vmax.f32 %v3922_v20, %v4190_v61  ;;  %v4586_v40 = vrot.slane %v4494_v57, 4  ;;  %v4589_v17 = vrot.slane %v4094_v10, 4 }
 0x354   : > { %v13875_v1 = vsel %vm11740_vm6, %v5497_v54, %v5498_v56  ;;  %v4879_v30 = vmax.f32 %v17350_v29, %v17349_v41  ;;  %v4321_v18 = vmax.f32 %v3921_v14, %v4188_v12  ;;  %v4880_v60 = vmax.f32 %v17352_v39, %v17351_v37  ;;  %v17355_v56 = vld [vmem:[#allocation47_spill] sm:$0xff] }
 0x355   : > { %5847 = vst [vmem:[#allocation2 + $0xd4] sm:$0xf] %v13875_v1  ;;  %v17356_v44 = vmax.f32 %v17354_v34, %v17355_v56  ;;  %v5975_v46 = vunpack.c.l.bf16 %v13871_v42  ;;  %v5579_v27 = vunpack.c.l.b16 %v13729_v23  ;;  %v5580_v24 = vunpack.c.l.b16 %v17357_v21 }
 0x356   : > { %v2717_v10 = vunpack.c.l.b16 %v17358_v49  ;;  %v2718_v52 = vunpack.c.l.b16 %v17359_v32  ;;  %v4588_v26 = vsel %vm1655_vm3, %v4586_v40, %v4587_v16  ;;  %v4590_v31 = vsel %vm1655_vm3, %v4587_v16, %v4589_v17 }
 0x357   : > { %v5028_v8 = vmax.f32 %v17356_v44, %v17353_v48  ;;  %v13894_v15 = vmax.f32 %v4320_v5, %v4586_v40  ;;  %v5026_v54 = vmax.f32 %v4879_v30, %v17344_v0  ;;  %v7826_v62 = vmax.f32 %v13846_v9, %v13782_v3  ;;  %v17363_v5 = vld [vmem:[#allocation88_spill] sm:$0xff]  ;;  %v2824_v9 = vpop.f32.mrf.mxu0 }
 0x358   : > { %v5604_v23 = vpack.c.b16 %v5580_v24, %v5579_v27  ;;  %v2742_v20 = vpack.c.b16 %v2718_v52, %v2717_v10  ;;  %v13899_v12 = vmax.f32 %v4322_v51, %v4590_v31  ;;  %v13901_v57 = vmax.f32 %v4321_v18, %v4588_v26 }
 0x359   : > { %17360 = vst [vmem:[#allocation37_spill] sm:$0xff] %v13894_v15  ;;  %v5027_v14 = vmax.f32 %v4880_v60, %v17347_v28  ;;  %v5173_v16 = vmax.f32 %v5026_v54, %v13837_v25  ;;  %v5175_v40 = vmax.f32 %v5028_v8, %v17363_v5  ;;  %v7827_v29 = vmax.f32 %v13849_v58, %v13784_v6 }
 0x35a   : > { %17361 = vst [vmem:[#allocation60_spill] sm:$0xff] %v13899_v12  ;;  %v7072_v61 = vld [vmem:[#allocation2 + $0xd0] sm:$0xe]  ;;  %5720 = vmatmul.bf16.gmra.mxu2 %v5604_v23  ;;  %2858 = vmatmul.bf16.gmra.mxu0 %v2742_v20  ;;  %v13910_v30 = vrot.slane %v5975_v46, 1  ;;  %v6753_v51 = vunpack.c.l.bf16 %v6673_v63  ;;  %v7534_v8 = vmax.f32 %v13657_v35, %v13752_v33  ;;  %v7535_v49 = vmax.f32 %v13669_v19, %v13754_v50 }
 0x35b   : > { %17362 = vst [vmem:[#allocation75_spill] sm:$0xff] %v13901_v57  ;;  %v7152_v17 = vunpack.c.l.bf16 %v7072_v61  ;;  %v5174_v34 = vmax.f32 %v5027_v14, %v13839_v11  ;;  %v5320_v60 = vmax.f32 %v5173_v16, %v13894_v15  ;;  %v5322_v44 = vmax.f32 %v5175_v40, %v13899_v12 }
 0x35c   : > { %v5893_v39 = vld [vmem:[#allocation2 + $0xd0] sm:$0xff]  }
 0x35d   : > { %v5894_v18 = vld [vmem:[#allocation2 + $0xd4] sm:$0x7]  ;;  %v5973_v27 = vunpack.c.l.bf16 %v5893_v39  ;;  %v6012_v24 = vunpack.c.h.bf16 %v5893_v39  ;;  %v7232_v10 = vrot.slane %v7152_v17, 4  ;;  %v5321_v32 = vmax.f32 %v5174_v34, %v13901_v57 }
 0x35e   : > { %v5974_v21 = vunpack.c.l.bf16 %v5894_v18  ;;  %v5368_v52 = vpack.c.bf16 %v5320_v60, %v5320_v60  ;;  %v5370_v47 = vpack.c.bf16 %v5322_v44, %v5322_v44  ;;  %v7536_v34 = vmax.f32 %v13671_v55, %v13749_v4 }
 0x35f   : > { %v6133_v26 = vrot.slane %v5973_v27, 1  ;;  %v6135_v31 = vrot.slane %v6012_v24, 1  ;;  %v6452_v54 = vrot.slane %v5973_v27, 2  ;;  %v6453_v63 = vrot.slane %v6012_v24, 2 }
 0x360   : > { %v6832_v23 = vrot.slane %v5973_v27, 3  ;;  %v6833_v20 = vrot.slane %v6012_v24, 3  ;;  %v7233_v61 = vrot.slane %v6012_v24, 4  ;;  %v5369_v14 = vpack.c.bf16 %v5321_v32, %v5321_v32 }
 0x361   : > { %v6134_v35 = vsel %vm552_vm0, %v13832_v38, %v6133_v26  ;;  %v6136_v16 = vsel %vm552_vm0, %v6133_v26, %v6135_v31  ;;  %v6274_v40 = vmax.f32 %v5974_v21, %v6135_v31  ;;  %v6454_v19 = vsel %vm893_vm1, %v6452_v54, %v6453_v63 }
 0x362   : > { %v6272_v17 = vmax.f32 %v5972_v45, %v6134_v35  ;;  %v6273_v39 = vmax.f32 %v5973_v27, %v6136_v16  ;;  %v6836_v18 = vsel %vm1254_vm2, %v6833_v20, %v13841_v7  ;;  %v6834_v44 = vsel %vm1254_vm2, %v6832_v23, %v6833_v20  ;;  %v4015_v16 = vld [vmem:[#allocation2 + $0x128] sm:$0x1] }
 0x363   : > { %v6574_v60 = vmax.f32 %v6274_v40, %v6453_v63  ;;  %v7236_v38 = vsel %vm1655_vm3, %v7233_v61, %v13843_v53  ;;  %v8925_v24 = vrot.slane %v5368_v52, 11  ;;  %v5502_v26 = vrot.slane %v5369_v14, 7  ;;  %v13944_v52 = vld [vmem:[#allocation2 + $0x124] sm:$0x7]  ;;  %v17366_v14 = vld [vmem:[#allocation11_spill] sm:$0xff] }
 0x364   : > { %v6572_v21 = vmax.f32 %v6272_v17, %v6452_v54  ;;  %v6573_v32 = vmax.f32 %v6273_v39, %v6454_v19  ;;  %v5505_v31 = vrot.slane %v5370_v47, 7  ;;  %v7234_v27 = vsel %vm1655_vm3, %v7232_v10, %v7233_v61  ;;  %v17365_v61 = vld [vmem:[#allocation62_spill] sm:$0xff] }
 0x365   : > { %v6974_v45 = vmax.f32 %v6574_v60, %v6836_v18  ;;  %v13936_v7 = vrot.slane %v6753_v51, 3  ;;  %v13938_v35 = vrot.slane %v6753_v51, 4  ;;  %v13942_v20 = vsel %vm11740_vm6, %v8925_v24, %v5502_v26 }
 0x366   : > { %v6972_v55 = vmax.f32 %v6572_v21, %v6832_v23  ;;  %v6973_v63 = vmax.f32 %v6573_v32, %v6834_v44  ;;  %v5504_v53 = vrot.slane %v5502_v26, 4  ;;  %5848 = vst [vmem:[#allocation2 + $0xe4] sm:$0xf] %v13942_v20  ;;  %v13950_v47 = vmax.f32 %v7536_v34, %v13784_v6  ;;  %v17368_v21 = vld [vmem:[#allocation111_spill] sm:$0xff]  ;;  %v9026_v26 = vld [vmem:[%s9454_s30 + $0x40] sm:$0xff] }
 0x367   : > { %v13946_v54 = vmax.f32 %v6974_v45, %v7236_v38  ;;  %v13956_v51 = vsel %vm11740_vm6, %v17366_v14, %v17365_v61  ;;  %v15900_v23 = vunpack.c.l.bf16 %v13933_v43  ;;  %v13968_v39 = vmax.f32 %v7534_v8, %v13772_v59  ;;  %v17369_v45 = vld [vmem:[#allocation38_spill] sm:$0xff]  ;;  %3096 = vmatmul.bf16.gmra.mxu1 %v9026_v26 }
 0x368   : > { %17367 = vst [vmem:[#allocation73_spill] sm:$0xff] %v13956_v51  ;;  %v13959_v40 = vmax.f32 %v6972_v55, %v7232_v10  ;;  %v13961_v19 = vmax.f32 %v6973_v63, %v7234_v27  ;;  %v13965_v17 = vsel %vm11740_vm6, %v5504_v53, %v5505_v31  ;;  %v13977_v10 = vmax.f32 %v7535_v49, %v13782_v3 }
 0x369   : > { %17364 = vst [vmem:[#allocation100_spill] sm:$0xff] %v13946_v54  ;;  %v7974_v18 = vmax.f32 %v7827_v29, %v13946_v54  ;;  %v13992_v29 = vrot.slane %v15900_v23, 1  ;;  %v4095_v49 = vunpack.c.l.bf16 %v4015_v16  ;;  %v5581_v38 = vunpack.c.l.b16 %v13866_v2 }
 0x36a   : > { %3193 = vst [vmem:[#allocation2 + $0x120] sm:$0xf] %v13956_v51  ;;  %v7972_v8 = vmax.f32 %v7825_v36, %v13959_v40  ;;  %v7973_v58 = vmax.f32 %v7826_v62, %v13961_v19  ;;  %v5582_v24 = vunpack.c.l.b16 %v13875_v1  ;;  %v2719_v32 = vunpack.c.l.b16 %v17368_v21  ;;  %v3057_v62 = vpop.f32.mrf.mxu1 }
 0x36b   : > { %5849 = vst [vmem:[#allocation2 + $0xe8] sm:$0xf] %v13965_v17  ;;  %v8022_v44 = vpack.c.bf16 %v7974_v18, %v7974_v18  ;;  %v2720_v27 = vunpack.c.l.b16 %v17369_v45  ;;  %v14003_v2 = vadd.f32 %v3057_v62, %v2824_v9  ;;  %v14005_v18 = vrot.slane %v4095_v49, 3 }
 0x36c   : > { %v8020_v22 = vpack.c.bf16 %v7972_v8, %v7972_v8  ;;  %v8021_v36 = vpack.c.bf16 %v7973_v58, %v7973_v58  ;;  %v5605_v53 = vpack.c.b16 %v5582_v24, %v5581_v38  ;;  %v14007_v21 = vrot.slane %v4095_v49, 4 }
 0x36d   : > { %v8145_v55 = vrot.slane %v8022_v44, 7  ;;  %v7073_v14 = vld [vmem:[#allocation2 + $0xe4] sm:$0xe]  ;;  %v2743_v16 = vpack.c.b16 %v2720_v27, %v2719_v32 }
 0x36e   : > { %v8970_v1 = vrot.slane %v8020_v22, 11  ;;  %v8142_v61 = vrot.slane %v8021_v36, 7  ;;  %v7153_v8 = vunpack.c.l.bf16 %v7073_v14  ;;  %5725 = vmatmul.bf16.gmra.mxu2 %v5605_v53 }
 0x36f   : > { %2863 = vmatmul.bf16.gmra.mxu0 %v2743_v16 }
 0x370   : > { %v8143_v24 = vsel %vm11740_vm6, %v8970_v1, %v8142_v61  ;;  %v8144_v26 = vrot.slane %v8142_v61, 4  ;;  %v7237_v14 = vrot.slane %v7153_v8, 4 }
 0x371   : > { %v3244_v58 = vld [vmem:[#allocation2 + $0x120] sm:$0xff]   ;;  %v8238_v62 = vunpack.c.l.b16 %v8143_v24 }
 0x372   : > { %v5896_v22 = vld [vmem:[#allocation2 + $0xe4] sm:$0xff]   ;;  %v3324_v32 = vunpack.c.l.bf16 %v3244_v58  ;;  %v14015_v9 = vunpack.c.h.bf16 %v3244_v58  ;;  %v8146_v53 = vsel %vm11740_vm6, %v8144_v26, %v8145_v55 }
 0x373   : > { %v5897_v36 = vld [vmem:[#allocation2 + $0xe8] sm:$0x7]  ;;  %v5976_v45 = vunpack.c.l.bf16 %v5896_v22  ;;  %v6013_v27 = vunpack.c.h.bf16 %v5896_v22  ;;  %v8239_v63 = vunpack.c.l.b16 %v8146_v53  ;;  %v4884_v53 = vmax.f32 %v17355_v56, %v17353_v48 }
 0x374   : > { %v5977_v49 = vunpack.c.l.bf16 %v5897_v36  ;;  %v3492_v44 = vrot.slane %v3324_v32, 1  ;;  %v3494_v38 = vrot.slane %v14015_v9, 1 }
 0x375   : > { %v6138_v1 = vrot.slane %v5976_v45, 1  ;;  %v6140_v61 = vrot.slane %v6013_v27, 1  ;;  %v6455_v31 = vrot.slane %v5976_v45, 2  ;;  %v6456_v34 = vrot.slane %v6013_v27, 2 }
 0x376   : > { %v6837_v16 = vrot.slane %v5976_v45, 3  ;;  %v6838_v60 = vrot.slane %v6013_v27, 3  ;;  %v7238_v58 = vrot.slane %v6013_v27, 4  ;;  %v8264_v23 = vpack.c.b16 %v8239_v63, %v8238_v62 }
 0x377   : > { %v6139_v24 = vsel %vm552_vm0, %v13910_v30, %v6138_v1  ;;  %v6141_v22 = vsel %vm552_vm0, %v6138_v1, %v6140_v61  ;;  %v6277_v36 = vmax.f32 %v5977_v49, %v6140_v61  ;;  %v6457_v26 = vsel %vm893_vm1, %v6455_v31, %v6456_v34 }
 0x378   : > { %v6275_v55 = vmax.f32 %v5975_v46, %v6139_v24  ;;  %v6276_v8 = vmax.f32 %v5976_v45, %v6141_v22  ;;  %8376 = vmatmul.bf16.gmra.mxu3 %v8264_v23  ;;  %v6839_v27 = vsel %vm1254_vm2, %v6837_v16, %v6838_v60  ;;  %v6841_v63 = vsel %vm1254_vm2, %v6838_v60, %v13936_v7  ;;  %v4415_v7 = vld [vmem:[#allocation2 + $0x120] sm:$0xe] }
 0x379   : > { %v6577_v51 = vmax.f32 %v6277_v36, %v6456_v34  ;;  %v7239_v30 = vsel %vm1655_vm3, %v7237_v14, %v7238_v58  ;;  %v7241_v42 = vsel %vm1655_vm3, %v7238_v58, %v13938_v35  ;;  %v3493_v46 = vsel %vm552_vm0, %v13992_v29, %v3492_v44 }
 0x37a   : > { %v6575_v62 = vmax.f32 %v6275_v55, %v6455_v31  ;;  %v6576_v49 = vmax.f32 %v6276_v8, %v6457_v26  ;;  %v3495_v56 = vsel %vm552_vm0, %v3492_v44, %v3494_v38  ;;  %v17370_v23 = vunpack.c.l.bf16 %v13933_v43 }
 0x37b   : > { %v6977_v45 = vmax.f32 %v6577_v51, %v6841_v63  ;;  %v17371_v1 = vunpack.c.l.bf16 %v13944_v52  ;;  %v3624_v31 = vmax.f32 %v3324_v32, %v3495_v56  ;;  %v3803_v22 = vrot.slane %v3324_v32, 2 }
 0x37c   : > { %v3623_v34 = vmax.f32 %v17370_v23, %v3493_v46  ;;  %v6975_v60 = vmax.f32 %v6575_v62, %v6837_v16  ;;  %v6976_v24 = vmax.f32 %v6576_v49, %v6839_v27  ;;  %v3804_v35 = vrot.slane %v14015_v9, 2 }
 0x37d   : > { %v3625_v61 = vmax.f32 %v17371_v1, %v3494_v38  ;;  %v14041_v36 = vmax.f32 %v6977_v45, %v7241_v42  ;;  %v4191_v58 = vrot.slane %v3324_v32, 3  ;;  %v4192_v51 = vrot.slane %v14015_v9, 3 }
 0x37e   : > { %v14045_v29 = vmax.f32 %v6975_v60, %v7237_v14  ;;  %v14047_v44 = vmax.f32 %v6976_v24, %v7239_v30  ;;  %v3923_v43 = vmax.f32 %v3623_v34, %v3803_v22  ;;  %v4495_v55 = vunpack.c.l.bf16 %v4415_v7 }
 0x37f   : > { %v17372_v52 = vmax.f32 %v13950_v47, %v13946_v54  ;;  %v3805_v16 = vsel %vm893_vm1, %v3803_v22, %v3804_v35  ;;  %v3925_v8 = vmax.f32 %v3625_v61, %v3804_v35  ;;  %v4193_v26 = vsel %vm1254_vm2, %v4191_v58, %v4192_v51  ;;  %v2826_v22 = vpop.f32.mrf.mxu0  ;;  %v3059_v35 = vpop.f32.mrf.mxu1 }
 0x380   : > { %v17373_v32 = vmax.f32 %v13968_v39, %v13959_v40  ;;  %v17374_v27 = vmax.f32 %v13977_v10, %v13961_v19  ;;  %v3924_v30 = vmax.f32 %v3624_v31, %v3805_v16  ;;  %v4195_v47 = vsel %vm1254_vm2, %v4192_v51, %v14005_v18 }
 0x381   : > { %v7977_v38 = vmax.f32 %v17372_v52, %v14041_v36  ;;  %v4323_v49 = vmax.f32 %v3923_v43, %v4191_v58  ;;  %v4325_v42 = vmax.f32 %v3925_v8, %v4195_v47  ;;  %v4591_v46 = vrot.slane %v4495_v55, 4  ;;  %v17380_v55 = vld [vmem:[#allocation79_spill] sm:$0xff] }
 0x382   : > { %v7975_v14 = vmax.f32 %v17373_v32, %v14045_v29  ;;  %v7976_v63 = vmax.f32 %v17374_v27, %v14047_v44  ;;  %v4324_v23 = vmax.f32 %v3924_v30, %v4193_v26  ;;  %v4592_v34 = vrot.slane %v14015_v9, 4  ;;  %v14093_v26 = vld [vmem:[#allocation2 + $0xf4] sm:$0x8] }
 0x383   : > { %v8025_v62 = vpack.c.bf16 %v7977_v38, %v7977_v38  ;;  %v14066_v1 = vmax.f32 %v4323_v49, %v4591_v46  ;;  %v17376_v10 = vmax.f32 %v17349_v41, %v17344_v0  ;;  %v17377_v18 = vmax.f32 %v17351_v37, %v17347_v28 }
 0x384   : > { %v8023_v45 = vpack.c.bf16 %v7975_v14, %v7975_v14  ;;  %v8024_v56 = vpack.c.bf16 %v7976_v63, %v7976_v63  ;;  %v4593_v31 = vsel %vm1655_vm3, %v4591_v46, %v4592_v34  ;;  %v4595_v9 = vsel %vm1655_vm3, %v4592_v34, %v14007_v21  ;;  %v5686_v21 = vpop.f32.mrf.mxu2  ;;  %v6674_v63 = vld [vmem:[#allocation2 + $0x100] sm:$0x1] }
 0x385   : > { %v8152_v39 = vrot.slane %v8025_v62, 7  ;;  %17375 = vst [vmem:[#allocation44_spill] sm:$0xff] %v14066_v1  ;;  %v5029_v61 = vmax.f32 %v17376_v10, %v13837_v25  ;;  %v5030_v7 = vmax.f32 %v17377_v18, %v13839_v11  ;;  %v14079_v58 = vmax.f32 %v4324_v23, %v4593_v31  ;;  %v1552_v18 = vld [vmem:[#allocation2 + $0x15c] sm:$0xe] }
 0x386   : > { %v8971_v60 = vrot.slane %v8023_v45, 11  ;;  %v8149_v24 = vrot.slane %v8024_v56, 7  ;;  %v14081_v51 = vmax.f32 %v4325_v42, %v4595_v9  ;;  %v5031_v41 = vmax.f32 %v4884_v53, %v17363_v5  ;;  %v383_v56 = vld [vmem:[#allocation2 + $0x158] sm:$0x8] }
 0x387   : > { %17378 = vst [vmem:[#allocation22_spill] sm:$0xff] %v14079_v58  ;;  %v5176_v43 = vmax.f32 %v5029_v61, %v13894_v15  ;;  %v17381_v37 = vpack.c.bf16 %v17380_v55, %v17380_v55  ;;  %v5177_v8 = vmax.f32 %v5030_v7, %v13901_v57  ;;  %v14096_v14 = vadd.f32 %v5686_v21, %v14003_v2  ;;  %v384_v61 = vld [vmem:[#allocation2 + $0x15c] sm:$0xf]  ;;  %v14134_v21 = vld [vmem:[#allocation2 + $0x16c] sm:$0x8] }
 0x388   : > { %17379 = vst [vmem:[#allocation45_spill] sm:$0xff] %v14081_v51  ;;  %v8150_v38 = vsel %vm11740_vm6, %v8971_v60, %v8149_v24  ;;  %v8151_v16 = vrot.slane %v8149_v24, 4  ;;  %v5178_v53 = vmax.f32 %v5031_v41, %v13899_v12  ;;  %v14102_v47 = vadd.f32 %v3059_v35, %v2826_v22 }
 0x389   : > { %v14088_v52 = vrot.slane %v17381_v37, 7  ;;  %v8240_v32 = vunpack.c.l.b16 %v8150_v38  ;;  %v5323_v27 = vmax.f32 %v5176_v43, %v14066_v1  ;;  %v5324_v62 = vmax.f32 %v5177_v8, %v14079_v58 }
 0x38a   : > { %v8153_v30 = vsel %vm11740_vm6, %v8151_v16, %v8152_v39  ;;  %v7537_v49 = vmax.f32 %v13752_v33, %v13772_v59  ;;  %v5325_v46 = vmax.f32 %v5178_v53, %v14081_v51  ;;  %v15902_v45 = vunpack.c.l.bf16 %v14093_v26 }
 0x38b   : > { %v8241_v42 = vunpack.c.l.b16 %v8153_v30  ;;  %v5371_v2 = vpack.c.bf16 %v5323_v27, %v5323_v27  ;;  %v5372_v23 = vpack.c.bf16 %v5324_v62, %v5324_v62  ;;  %v6754_v34 = vunpack.c.l.bf16 %v6674_v63 }
 0x38c   : > { %v7538_v10 = vmax.f32 %v13754_v50, %v13782_v3  ;;  %v7539_v39 = vmax.f32 %v13749_v4, %v13784_v6  ;;  %v5373_v60 = vpack.c.bf16 %v5325_v46, %v5325_v46  ;;  %v14114_v24 = vmax.f32 %v7537_v49, %v13959_v40  ;;  %v17384_v46 = vld [vmem:[#allocation76_spill] sm:$0xff]  ;;  %v3062_v6 = vpop.f32.mrf.mxu1 }
 0x38d   : > { %v8265_v7 = vpack.c.b16 %v8241_v42, %v8240_v32  ;;  %v8926_v33 = vrot.slane %v5371_v2, 11  ;;  %v5509_v31 = vrot.slane %v5372_v23, 7  ;;  %v463_v35 = vunpack.c.l.bf16 %v383_v56 }
 0x38e   : > { %v14117_v9 = vmax.f32 %v7538_v10, %v13961_v19  ;;  %v14120_v22 = vmax.f32 %v7539_v39, %v13946_v54  ;;  %v5512_v50 = vrot.slane %v5373_v60, 7  ;;  %v14124_v4 = vrot.slane %v15902_v45, 1  ;;  %v387_v39 = vld [vmem:[#allocation2 + $0x170] sm:$0xff]  }
 0x38f   : > { %8381 = vmatmul.bf16.gmra.mxu3 %v8265_v7  ;;  %v464_v41 = vunpack.c.l.bf16 %v384_v61  ;;  %v1632_v43 = vunpack.c.l.bf16 %v1552_v18  ;;  %v14128_v55 = vsel %vm11740_vm6, %v8926_v33, %v5509_v31  ;;  %v5511_v37 = vrot.slane %v5509_v31, 4  ;;  %v14158_v33 = vld [vmem:[#allocation2 + $0x130] sm:$0x8] }
 0x390   : > { %17382 = vst [vmem:[#allocation20_spill] sm:$0xff] %v14128_v55  ;;  %v14130_v38 = vrot.slane %v6754_v34, 3  ;;  %v14132_v16 = vrot.slane %v6754_v34, 4  ;;  %v638_v8 = vrot.slane %v463_v35, 1  ;;  %v17385_v2 = vrot.slane %v17384_v46, 1 }
 0x391   : > { %5850 = vst [vmem:[#allocation2 + $0xf8] sm:$0xf] %v14128_v55  ;;  %v639_v32 = vrot.slane %v464_v41, 1  ;;  %v945_v53 = vrot.slane %v464_v41, 2  ;;  %v1340_v27 = vrot.slane %v464_v41, 3  ;;  %v14139_v63 = vsel %vm11740_vm6, %v5511_v37, %v5512_v50  ;;  %v8347_v50 = vpop.f32.mrf.mxu3  ;;  %v2829_v55 = vpop.f32.mrf.mxu0 }
 0x392   : > { %17383 = vst [vmem:[#allocation101_spill] sm:$0xff] %v14139_v63  ;;  %v17386_v23 = vrot.slane %v17384_v46, 2  ;;  %v1741_v10 = vrot.slane %v1632_v43, 4  ;;  %v17387_v7 = vrot.slane %v17384_v46, 3  ;;  %v14164_v37 = vld [vmem:[%s15386_s2] ss:$0 sm:$0xff]  ;;  %v5584_v43 = vunpack.c.l.b16 %v13965_v17 }
 0x393   : > { %5851 = vst [vmem:[#allocation2 + $0xfc] sm:$0xf] %v14139_v63  ;;  %v640_v42 = vsel %vm552_vm0, %v638_v8, %v639_v32  ;;  %v642_v56 = vsel %vm552_vm0, %v639_v32, %v17385_v2  ;;  %v5583_v8 = vunpack.c.l.b16 %v13942_v20  ;;  %v17389_v32 = vld [vmem:[#allocation16_spill] sm:$0xff]  ;;  %v9027_v2 = vld [vmem:[%s9454_s30 + $0x48] sm:$0xff]  ;;  %v14174_v49 = vunpack.c.l.bf16 %v387_v39 }
 0x394   : > { %v947_v34 = vsel %vm893_vm1, %v945_v53, %v17386_v23  ;;  %v764_v61 = vmax.f32 %v463_v35, %v640_v42  ;;  %v765_v18 = vmax.f32 %v464_v41, %v642_v56  ;;  %v1342_v60 = vsel %vm1254_vm2, %v1340_v27, %v17387_v7  ;;  %v17388_v35 = vld [vmem:[#allocation112_spill] sm:$0xff]  ;;  %v14171_v56 = vld [vmem:[#allocation2 + $0x174] sm:$0x7]  ;;  %v5688_v23 = vpop.f32.mrf.mxu2  ;;  %3101 = vmatmul.bf16.gmra.mxu1 %v9027_v2 }
 0x395   : > { %v2721_v41 = vunpack.c.l.b16 %v17388_v35  ;;  %v2722_v42 = vunpack.c.l.b16 %v17389_v32  ;;  %v8427_v7 = vadd.f32 %v8347_v50, %v14096_v14  ;;  %v5606_v45 = vpack.c.b16 %v5584_v43, %v5583_v8 }
 0x396   : > { %v1065_v62 = vmax.f32 %v764_v61, %v945_v53  ;;  %v1066_v30 = vmax.f32 %v765_v18, %v947_v34  ;;  %v17390_v20 = vrot.slane %v17384_v46, 4  ;;  %v15906_v35 = vunpack.c.l.bf16 %v14158_v33  ;;  %v14183_v34 = vld [vmem:[#allocation2 + $0x13c] sm:$0x1] }
 0x397   : > { %v2744_v31 = vpack.c.b16 %v2722_v42, %v2721_v41  ;;  %v14181_v63 = vadd.f32 %v14164_v37, %v8427_v7  ;;  %v5767_v50 = vadd.f32 %v5688_v23, %v14102_v47  ;;  %5730 = vmatmul.bf16.gmra.mxu2 %v5606_v45  ;;  %v14187_v46 = vadd.f32 %v3062_v6, %v2829_v55 }
 0x398   : > { %v1743_v17 = vsel %vm1655_vm3, %v1741_v10, %v17390_v20  ;;  %v7074_v32 = vld [vmem:[#allocation2 + $0xf8] sm:$0xe]  ;;  %v1466_v14 = vmax.f32 %v1065_v62, %v1340_v27  ;;  %v1467_v53 = vmax.f32 %v1066_v30, %v1342_v60  ;;  %v14189_v8 = vunpack.c.h.bf16 %v387_v39  ;;  %v17394_v60 = vld [vmem:[#allocation12_spill] sm:$0xff] }
 0x399   : > { %v7154_v18 = vunpack.c.l.bf16 %v7074_v32  ;;  %2868 = vmatmul.bf16.gmra.mxu0 %v2744_v31  ;;  %v8495_v42 = vmul.f32 0.5, %v14181_v63  ;;  %v14198_v30 = vrot.slane %v15906_v35, 1  ;;  %v17393_v39 = vld [vmem:[#allocation103_spill] sm:$0xff]  ;;  %v8349_v35 = vpop.f32.mrf.mxu3 }
 0x39a   : > { %v5899_v43 = vld [vmem:[#allocation2 + $0xf8] sm:$0xff]   ;;  %v14192_v2 = vmax.f32 %v1466_v14, %v1741_v10  ;;  %v14194_v27 = vmax.f32 %v1467_v53, %v1743_v17  ;;  %v17395_v31 = vmax.f32 %v17393_v39, %v17394_v60  ;;  %v17396_v10 = vunpack.c.l.bf16 %v14134_v21 }
 0x39b   : > { %v5900_v41 = vld [vmem:[#allocation2 + $0xfc] sm:$0x7]  ;;  %v5979_v62 = vunpack.c.l.bf16 %v5899_v43  ;;  %v6014_v45 = vunpack.c.h.bf16 %v5899_v43  ;;  %v7242_v55 = vrot.slane %v7154_v18, 4  ;;  %9110 = vtanh.f32 %v8495_v42  ;;  %v17397_v18 = vld [vmem:[#allocation30_spill] sm:$0xff] }
 0x39c   : > { %17391 = vst [vmem:[#allocation63_spill] sm:$0xff] %v14192_v2  ;;  %v5980_v47 = vunpack.c.l.bf16 %v5900_v41  ;;  %v2467_v23 = vmax.f32 %v17395_v31, %v14192_v2  ;;  %v14207_v7 = vrot.slane %v17396_v10, 1  ;;  %v17398_v42 = vld [vmem:[#allocation95_spill] sm:$0xff]  ;;  %v17400_v2 = vunpack.c.l.bf16 %v14093_v26 }
 0x39d   : > { %17392 = vst [vmem:[#allocation65_spill] sm:$0xff] %v14194_v27  ;;  %v6143_v20 = vrot.slane %v5979_v62, 1  ;;  %v6145_v17 = vrot.slane %v6014_v45, 1  ;;  %v6458_v32 = vrot.slane %v5979_v62, 2  ;;  %v6459_v14 = vrot.slane %v6014_v45, 2 }
 0x39e   : > { %v6842_v53 = vrot.slane %v5979_v62, 3  ;;  %v6843_v43 = vrot.slane %v6014_v45, 3  ;;  %v7243_v41 = vrot.slane %v6014_v45, 4  ;;  %v17399_v61 = vmax.f32 %v17397_v18, %v17398_v42 }
 0x39f   : > { %v6144_v39 = vsel %vm552_vm0, %v14124_v4, %v6143_v20  ;;  %v6146_v31 = vsel %vm552_vm0, %v6143_v20, %v6145_v17  ;;  %v6280_v10 = vmax.f32 %v5980_v47, %v6145_v17  ;;  %v6460_v60 = vsel %vm893_vm1, %v6458_v32, %v6459_v14 }
 0x3a0   : > { %v2468_v6 = vmax.f32 %v17399_v61, %v14194_v27  ;;  %v6278_v54 = vmax.f32 %v17400_v2, %v6144_v39  ;;  %v6279_v3 = vmax.f32 %v5979_v62, %v6146_v31  ;;  %v6846_v45 = vsel %vm1254_vm2, %v6843_v43, %v14130_v38 }
 0x3a1   : > { %v4886_v61 = vmax.f32 %v17347_v28, %v13839_v11  ;;  %v6580_v18 = vmax.f32 %v6280_v10, %v6459_v14  ;;  %v6844_v4 = vsel %vm1254_vm2, %v6842_v53, %v6843_v43  ;;  %v7244_v20 = vsel %vm1655_vm3, %v7242_v55, %v7243_v41  ;;  %v9111_v17 = vpop.eup %9110  ;;  %v3064_v10 = vpop.f32.mrf.mxu1 }
 0x3a2   : > { %v8428_v47 = vadd.f32 %v8349_v35, %v5767_v50  ;;  %v6578_v27 = vmax.f32 %v6278_v54, %v6458_v32  ;;  %v6579_v42 = vmax.f32 %v6279_v3, %v6460_v60  ;;  %v7246_v26 = vsel %vm1655_vm3, %v7243_v41, %v14132_v16  ;;  %v2831_v41 = vpop.f32.mrf.mxu0 }
 0x3a3   : > { %v2515_v2 = vpack.c.bf16 %v2467_v23, %v2467_v23  ;;  %v6980_v62 = vmax.f32 %v6580_v18, %v6846_v45  ;;  %v8559_v38 = vadd.f32 1.0, %v9111_v17  ;;  %v2516_v28 = vpack.c.bf16 %v2468_v6, %v2468_v6 }
 0x3a4   : > { %v14231_v39 = vadd.f32 %v14164_v37, %v8428_v47  ;;  %v6978_v14 = vmax.f32 %v6578_v27, %v6842_v53  ;;  %v6979_v43 = vmax.f32 %v6579_v42, %v6844_v4  ;;  %v17401_v35 = vunpack.c.l.bf16 %v14183_v34 }
 0x3a5   : > { %v8785_v31 = vrot.slane %v2515_v2, 11  ;;  %v14237_v3 = vmax.f32 %v6980_v62, %v7246_v26  ;;  %v8591_v54 = vmul.f32 0.5, %v8559_v38  ;;  %v2668_v60 = vrot.slane %v2516_v28, 7 }
 0x3a6   : > { %v14235_v50 = vrot.slane %v17401_v35, 3  ;;  %v8496_v16 = vmul.f32 0.5, %v14231_v39  ;;  %v14240_v23 = vmax.f32 %v6978_v14, %v7242_v55  ;;  %v14242_v32 = vmax.f32 %v6979_v43, %v7244_v20  ;;  %v5691_v20 = vpop.f32.mrf.mxu2  ;;  %v1553_v43 = vld [vmem:[#allocation2 + $0x170] sm:$0xe] }
 0x3a7   : > { %v4885_v27 = vmax.f32 %v17344_v0, %v13837_v25  ;;  %v4887_v6 = vmax.f32 %v17353_v48, %v17363_v5  ;;  %v17402_v53 = vmax.f32 %v14120_v22, %v14041_v36  ;;  %v8623_v45 = vmul.f32 %v8591_v54, %v14181_v63 }
 0x3a8   : > { %9112 = vtanh.f32 %v8496_v16  ;;  %v14255_v55 = vsel %vm11740_vm6, %v8785_v31, %v2668_v60  ;;  %v17404_v18 = vmax.f32 %v14114_v24, %v14045_v29  ;;  %v17405_v48 = vmax.f32 %v14117_v9, %v14047_v44 }
 0x3a9   : > { %v7980_v42 = vmax.f32 %v17402_v53, %v14237_v3  ;;  %17403 = vst [vmem:[#allocation118_spill] sm:$0xff] %v14255_v55  ;;  %v2670_v22 = vrot.slane %v2668_v60, 4  ;;  %v14267_v63 = vmax.f32 %v4885_v27, %v13894_v15  ;;  %v14273_v24 = vadd.f32 %v5691_v20, %v14187_v46  ;;  %v14299_v60 = vld [vmem:[#allocation2 + $0x108] sm:$0x8] }
 0x3aa   : > { %v7978_v0 = vmax.f32 %v17404_v18, %v14240_v23  ;;  %v7979_v4 = vmax.f32 %v17405_v48, %v14242_v32  ;;  %3195 = vst [vmem:[#allocation2 + $0x134] sm:$0xf] %v14255_v55  ;;  %v14275_v17 = vadd.f32 %v3064_v10, %v2831_v41  ;;  %v644_v9 = vrot.slane %v14174_v49, 1  ;;  %v14309_v18 = vld [vmem:[#allocation2 + $0x178] sm:$0x1] }
 0x3ab   : > { %v8028_v47 = vpack.c.bf16 %v7980_v42, %v7980_v42  ;;  %8655 = vst [vmem:[%s14269_s25] sm:$0xff] %v8623_v45  ;;  %v14281_v62 = vsel %vm11740_vm6, %v2670_v22, %v14088_v52  ;;  %v17407_v38 = vmov %v17401_v35  ;;  %v14289_v46 = vmax.f32 %v4886_v61, %v13901_v57 }
 0x3ac   : > { %v8026_v26 = vpack.c.bf16 %v7978_v0, %v7978_v0  ;;  %v8027_v2 = vpack.c.bf16 %v7979_v4, %v7979_v4  ;;  %17406 = vst [vmem:[#allocation67_spill] sm:$0xff] %v14281_v62  ;;  %v14285_v28 = vrot.slane %v17407_v38, 4  ;;  %v14292_v14 = vmax.f32 %v4887_v6, %v13899_v12 }
 0x3ad   : > { %3196 = vst [vmem:[#allocation2 + $0x138] sm:$0xf] %v14281_v62  ;;  %v645_v31 = vsel %vm552_vm0, %v14207_v7, %v644_v9  ;;  %v8159_v54 = vrot.slane %v8028_v47, 7  ;;  %v646_v34 = vrot.slane %v14189_v8, 1  ;;  %v17408_v61 = vunpack.c.l.bf16 %v14134_v21 }
 0x3ae   : > { %v8972_v52 = vrot.slane %v8026_v26, 11  ;;  %v8156_v35 = vrot.slane %v8027_v2, 7  ;;  %v9113_v16 = vpop.eup %9112  ;;  %v948_v10 = vrot.slane %v14174_v49, 2  ;;  %v949_v27 = vrot.slane %v14189_v8, 2 }
 0x3af   : > { %v767_v41 = vmax.f32 %v17408_v61, %v645_v31  ;;  %v1345_v6 = vrot.slane %v14174_v49, 3  ;;  %v8560_v42 = vadd.f32 1.0, %v9113_v16  ;;  %v647_v45 = vsel %vm552_vm0, %v644_v9, %v646_v34 }
 0x3b0   : > { %v8157_v7 = vsel %vm11740_vm6, %v8972_v52, %v8156_v35  ;;  %v8158_v53 = vrot.slane %v8156_v35, 4  ;;  %v768_v21 = vmax.f32 %v14174_v49, %v647_v45  ;;  %v17409_v4 = vunpack.c.l.bf16 %v14171_v56 }
 0x3b1   : > { %v8242_v0 = vunpack.c.l.b16 %v8157_v7  ;;  %v4416_v48 = vld [vmem:[#allocation2 + $0x134] sm:$0xe]  ;;  %v950_v22 = vsel %vm893_vm1, %v948_v10, %v949_v27  ;;  %v8592_v26 = vmul.f32 0.5, %v8560_v42  ;;  %v15914_v38 = vunpack.c.l.bf16 %v14299_v60 }
 0x3b2   : > { %v769_v20 = vmax.f32 %v17409_v4, %v646_v34  ;;  %v8160_v47 = vsel %vm11740_vm6, %v8158_v53, %v8159_v54  ;;  %v4496_v2 = vunpack.c.l.bf16 %v4416_v48  ;;  %v5181_v49 = vmax.f32 %v14292_v14, %v14081_v51 }
 0x3b3   : > { %v8243_v9 = vunpack.c.l.b16 %v8160_v47  ;;  %v15916_v56 = vunpack.c.l.bf16 %v14309_v18  ;;  %v8624_v52 = vmul.f32 %v8592_v26, %v14231_v39  ;;  %v1068_v16 = vmax.f32 %v767_v41, %v948_v10 }
 0x3b4   : > { %v3247_v35 = vld [vmem:[#allocation2 + $0x134] sm:$0xff]   ;;  %v14324_v54 = vmax.f32 %v768_v21, %v950_v22  ;;  %v1346_v61 = vrot.slane %v14189_v8, 3  ;;  %v4596_v48 = vrot.slane %v4496_v2, 4  ;;  %v14330_v14 = vrot.slane %v15914_v38, 1 }
 0x3b5   : > { %v3248_v34 = vld [vmem:[#allocation2 + $0x138] sm:$0x7]  ;;  %v8266_v7 = vpack.c.b16 %v8243_v9, %v8242_v0  ;;  %v3327_v53 = vunpack.c.l.bf16 %v3247_v35  ;;  %v3356_v45 = vunpack.c.h.bf16 %v3247_v35  ;;  %8656 = vst [vmem:[%s14269_s25 + $0x8] sm:$0xff] %v8624_v52  ;;  %v14332_v4 = vmax.f32 %v769_v20, %v949_v27  ;;  %v6675_v9 = vld [vmem:[#allocation2 + $0x114] sm:$0x1] }
 0x3b6   : > { %v3328_v42 = vunpack.c.l.bf16 %v3248_v34  ;;  %v1347_v39 = vsel %vm1254_vm2, %v1345_v6, %v1346_v61  ;;  %v1348_v2 = vrot.slane %v15916_v56, 3  ;;  %v17410_v34 = vunpack.c.l.bf16 %v14158_v33  ;;  %v17411_v33 = vld [vmem:[#allocation72_spill] sm:$0xff] }
 0x3b7   : > { %8386 = vmatmul.bf16.gmra.mxu3 %v8266_v7  ;;  %v3497_v41 = vrot.slane %v3327_v53, 1  ;;  %v3499_v10 = vrot.slane %v3356_v45, 1  ;;  %v3806_v21 = vrot.slane %v3327_v53, 2  ;;  %v3807_v22 = vrot.slane %v3356_v45, 2 }
 0x3b8   : > { %v4196_v47 = vrot.slane %v3327_v53, 3  ;;  %v4197_v0 = vrot.slane %v3356_v45, 3  ;;  %v4597_v26 = vrot.slane %v3356_v45, 4  ;;  %v1469_v45 = vmax.f32 %v1068_v16, %v1345_v6  ;;  %v17412_v6 = vld [vmem:[#allocation100_spill] sm:$0xff]  ;;  %v17413_v16 = vld [vmem:[#allocation34_spill] sm:$0xff] }
 0x3b9   : > { %v3498_v52 = vsel %vm552_vm0, %v14198_v30, %v3497_v41  ;;  %v3500_v27 = vsel %vm552_vm0, %v3497_v41, %v3499_v10  ;;  %v3628_v20 = vmax.f32 %v3328_v42, %v3499_v10  ;;  %v3808_v35 = vsel %vm893_vm1, %v3806_v21, %v3807_v22 }
 0x3ba   : > { %v3626_v7 = vmax.f32 %v17410_v34, %v3498_v52  ;;  %v3627_v38 = vmax.f32 %v3327_v53, %v3500_v27  ;;  %v4200_v31 = vsel %vm1254_vm2, %v4197_v0, %v14235_v50  ;;  %v4198_v56 = vsel %vm1254_vm2, %v4196_v47, %v4197_v0 }
 0x3bb   : > { %v3928_v62 = vmax.f32 %v3628_v20, %v3807_v22  ;;  %v4600_v30 = vsel %vm1655_vm3, %v4597_v26, %v14285_v28  ;;  %v6755_v55 = vunpack.c.l.bf16 %v6675_v9  ;;  %v7540_v10 = vmax.f32 %v13772_v59, %v13959_v40 }
 0x3bc   : > { %v3926_v41 = vmax.f32 %v3626_v7, %v3806_v21  ;;  %v3927_v42 = vmax.f32 %v3627_v38, %v3808_v35  ;;  %v7541_v53 = vmax.f32 %v17411_v33, %v13961_v19  ;;  %v4598_v50 = vsel %vm1655_vm3, %v4596_v48, %v4597_v26 }
 0x3bd   : > { %v4328_v52 = vmax.f32 %v3928_v62, %v4200_v31  ;;  %v7542_v22 = vmax.f32 %v17413_v16, %v17412_v6  ;;  %v1633_v27 = vunpack.c.l.bf16 %v1553_v43  ;;  %v14355_v34 = vrot.slane %v6755_v55, 3 }
 0x3be   : > { %v4326_v0 = vmax.f32 %v3926_v41, %v4196_v47  ;;  %v4327_v20 = vmax.f32 %v3927_v42, %v4198_v56  ;;  %v1349_v28 = vsel %vm1254_vm2, %v1346_v61, %v1348_v2  ;;  %v14360_v21 = vrot.slane %v6755_v55, 4  ;;  %v17419_v41 = vld [vmem:[#allocation84_spill] sm:$0xff] }
 0x3bf   : > { %v14358_v38 = vmax.f32 %v4328_v52, %v4600_v30  ;;  %v14363_v59 = vmax.f32 %v7540_v10, %v14045_v29  ;;  %v14366_v62 = vmax.f32 %v7541_v53, %v14047_v44  ;;  %v14373_v43 = vmax.f32 %v7542_v22, %v14041_v36  ;;  %v17423_v53 = vld [vmem:[#allocation13_spill] sm:$0xff] }
 0x3c0   : > { %v14368_v31 = vmax.f32 %v4326_v0, %v4596_v48  ;;  %v14370_v26 = vmax.f32 %v4327_v20, %v4598_v50  ;;  %v1470_v56 = vmax.f32 %v14324_v54, %v1347_v39  ;;  %v1471_v55 = vmax.f32 %v14332_v4, %v1349_v28  ;;  %v17417_v39 = vld [vmem:[#allocation95_spill] sm:$0xff]  ;;  %v14398_v50 = vld [vmem:[#allocation2 + $0x144] sm:$0x8]  ;;  %v17426_v28 = vld [vmem:[#allocation65_spill] sm:$0xff] }
 0x3c1   : > { %v5328_v61 = vmax.f32 %v5181_v49, %v14358_v38  ;;  %v1746_v47 = vrot.slane %v1633_v27, 4  ;;  %v1747_v9 = vrot.slane %v14189_v8, 4  ;;  %v17414_v2 = vmax.f32 %v14267_v63, %v14066_v1  ;;  %v17418_v49 = vld [vmem:[#allocation26_spill] sm:$0xff]  ;;  %v17422_v63 = vld [vmem:[#allocation63_spill] sm:$0xff] }
 0x3c2   : > { %v17415_v35 = vmax.f32 %v14289_v46, %v14079_v58  ;;  %v17416_v30 = vunpack.c.l.bf16 %v14309_v18  ;;  %v17420_v4 = vmax.f32 %v17418_v49, %v17419_v41  ;;  %v2323_v52 = vmax.f32 %v17423_v53, %v17422_v63  ;;  %v4017_v46 = vld [vmem:[#allocation2 + $0x150] sm:$0x1]  ;;  %v17434_v53 = vld [vmem:[#allocation77_spill] sm:$0xff] }
 0x3c3   : > { %v5326_v48 = vmax.f32 %v17414_v2, %v14368_v31  ;;  %v5376_v10 = vpack.c.bf16 %v5328_v61, %v5328_v61  ;;  %v1748_v8 = vsel %vm1655_vm3, %v1746_v47, %v1747_v9  ;;  %v14394_v33 = vmax.f32 %v1469_v45, %v1746_v47 }
 0x3c4   : > { %v5327_v7 = vmax.f32 %v17415_v35, %v14370_v26  ;;  %v1749_v54 = vrot.slane %v17416_v30, 4  ;;  %v2177_v42 = vmax.f32 %v17420_v4, %v17417_v39  ;;  %v14401_v27 = vmax.f32 %v1470_v56, %v1748_v8  ;;  %v17432_v8 = vld [vmem:[#allocation20_spill] sm:$0xff] }
 0x3c5   : > { %17421 = vst [vmem:[#allocation46_spill] sm:$0xff] %v14394_v33  ;;  %v5374_v16 = vpack.c.bf16 %v5326_v48, %v5326_v48  ;;  %v5519_v0 = vrot.slane %v5376_v10, 7  ;;  %v2470_v45 = vmax.f32 %v2323_v52, %v14394_v33  ;;  %v15918_v35 = vunpack.c.l.bf16 %v14398_v50  ;;  %v17427_v48 = vld [vmem:[#allocation18_spill] sm:$0xff] }
 0x3c6   : > { %v5375_v22 = vpack.c.bf16 %v5327_v7, %v5327_v7  ;;  %v1750_v18 = vsel %vm1655_vm3, %v1747_v9, %v1749_v54  ;;  %17424 = vst [vmem:[#allocation87_spill] sm:$0xff] %v14401_v27  ;;  %v2324_v61 = vmax.f32 %v2177_v42, %v17426_v28  ;;  %v4097_v30 = vunpack.c.l.bf16 %v4017_v46  ;;  %v17428_v7 = vld [vmem:[#allocation32_spill] sm:$0xff] }
 0x3c7   : > { %v14403_v20 = vmax.f32 %v1471_v55, %v1750_v18  ;;  %v8927_v47 = vrot.slane %v5374_v16, 11  ;;  %v17429_v9 = vmax.f32 %v17427_v48, %v17428_v7  ;;  %v2518_v54 = vpack.c.bf16 %v2470_v45, %v2470_v45  ;;  %v14430_v16 = vld [vmem:[#allocation2 + $0x180] sm:$0x8] }
 0x3c8   : > { %v5516_v2 = vrot.slane %v5375_v22, 7  ;;  %v2471_v49 = vmax.f32 %v2324_v61, %v14401_v27  ;;  %v4888_v55 = vmax.f32 %v13837_v25, %v13894_v15  ;;  %v14428_v25 = vrot.slane %v15918_v35, 1  ;;  %v390_v22 = vld [vmem:[#allocation2 + $0x184] sm:$0xff]  }
 0x3c9   : > { %17425 = vst [vmem:[#allocation92_spill] sm:$0xff] %v14403_v20  ;;  %v2472_v56 = vmax.f32 %v17429_v9, %v14403_v20  ;;  %v8786_v61 = vrot.slane %v2518_v54, 11  ;;  %v4889_v45 = vmax.f32 %v13839_v11, %v13901_v57  ;;  %v14443_v48 = vrot.slane %v4097_v30, 4  ;;  %v14459_v15 = vld [vmem:[#allocation2 + $0x188] sm:$0x7] }
 0x3ca   : > { %v14417_v4 = vsel %vm11740_vm6, %v8927_v47, %v5516_v2  ;;  %v5518_v42 = vrot.slane %v5516_v2, 4  ;;  %v2519_v52 = vpack.c.bf16 %v2471_v49, %v2471_v49  ;;  %v4890_v47 = vmax.f32 %v17363_v5, %v13899_v12  ;;  %v5693_v5 = vpop.f32.mrf.mxu2  ;;  %v17435_v12 = vld [vmem:[#allocation114_spill] sm:$0xff] }
 0x3cb   : > { %17430 = vst [vmem:[#allocation119_spill] sm:$0xff] %v14417_v4  ;;  %v2520_v46 = vpack.c.bf16 %v2472_v56, %v2472_v56  ;;  %v14441_v49 = vrot.slane %v4097_v30, 3  ;;  %v14446_v9 = vmax.f32 %v4888_v55, %v14066_v1  ;;  %v14449_v56 = vmax.f32 %v4889_v45, %v14079_v58  ;;  %v9028_v55 = vld [vmem:[%s9454_s30 + $0x50] sm:$0xff] }
 0x3cc   : > { %5852 = vst [vmem:[#allocation2 + $0x10c] sm:$0xf] %v14417_v4  ;;  %v14434_v18 = vsel %vm11740_vm6, %v5518_v42, %v5519_v0  ;;  %v2675_v2 = vrot.slane %v2519_v52, 7  ;;  %v14452_v54 = vunpack.c.l.bf16 %v390_v22  ;;  %v8352_v42 = vpop.f32.mrf.mxu3  ;;  %v5585_v10 = vunpack.c.l.b16 %v17432_v8  ;;  %v17433_v52 = vld [vmem:[#allocation101_spill] sm:$0xff]  ;;  %3106 = vmatmul.bf16.gmra.mxu1 %v9028_v55 }
 0x3cd   : > { %17431 = vst [vmem:[#allocation70_spill] sm:$0xff] %v14434_v18  ;;  %v2678_v0 = vrot.slane %v2520_v46, 7  ;;  %v5586_v35 = vunpack.c.l.b16 %v17433_v52  ;;  %v2723_v30 = vunpack.c.l.b16 %v17434_v53  ;;  %v2724_v57 = vunpack.c.l.b16 %v17435_v12 }
 0x3ce   : > { %5853 = vst [vmem:[#allocation2 + $0x110] sm:$0xf] %v14434_v18  ;;  %v8429_v46 = vadd.f32 %v8352_v42, %v14273_v24  ;;  %v14464_v45 = vsel %vm11740_vm6, %v8786_v61, %v2675_v2  ;;  %v2677_v11 = vrot.slane %v2675_v2, 4  ;;  %v14467_v58 = vmax.f32 %v4890_v47, %v14081_v51  ;;  %v2834_v2 = vpop.f32.mrf.mxu0  ;;  %v3067_v42 = vpop.f32.mrf.mxu1 }
 0x3cf   : > { %17436 = vst [vmem:[#allocation83_spill] sm:$0xff] %v14464_v45  ;;  %v5607_v8 = vpack.c.b16 %v5586_v35, %v5585_v10  ;;  %v2745_v1 = vpack.c.b16 %v2724_v57, %v2723_v30  ;;  %v14472_v53 = vunpack.c.h.bf16 %v390_v22  ;;  %v5769_v24 = vadd.f32 %v5693_v5, %v14275_v17  ;;  %v14490_v30 = vld [vmem:[#allocation2 + $0x18c] sm:$0x1] }
 0x3d0   : > { %3197 = vst [vmem:[#allocation2 + $0x148] sm:$0xf] %v14464_v45  ;;  %v14476_v61 = vadd.f32 %v14164_v37, %v8429_v46  ;;  %v14480_v35 = vsel %vm11740_vm6, %v2677_v11, %v2678_v0  ;;  %v14483_v47 = vadd.f32 %v3067_v42, %v2834_v2  ;;  %v17438_v22 = vunpack.c.l.bf16 %v14430_v16 }
 0x3d1   : > { %17437 = vst [vmem:[#allocation55_spill] sm:$0xff] %v14480_v35  ;;  %5735 = vmatmul.bf16.gmra.mxu2 %v5607_v8  ;;  %2873 = vmatmul.bf16.gmra.mxu0 %v2745_v1  ;;  %v649_v8 = vrot.slane %v14452_v54, 1  ;;  %v17439_v57 = vunpack.c.l.bf16 %v14299_v60 }
 0x3d2   : > { %3198 = vst [vmem:[#allocation2 + $0x14c] sm:$0xf] %v14480_v35  ;;  %v648_v5 = vrot.slane %v17438_v22, 1  ;;  %v8497_v11 = vmul.f32 0.5, %v14476_v61 }
 0x3d3   : > { %v7075_v52 = vld [vmem:[#allocation2 + $0x10c] sm:$0xe] }
 0x3d4   : > { %v7155_v10 = vunpack.c.l.bf16 %v7075_v52  ;;  %9114 = vtanh.f32 %v8497_v11  ;;  %v8354_v7 = vpop.f32.mrf.mxu3  ;;  %v14501_v1 = vsel %vm552_vm0, %v648_v5, %v649_v8  ;;  %v17440_v5 = vrot.slane %v14472_v53, 1 }
 0x3d5   : > { %v5902_v55 = vld [vmem:[#allocation2 + $0x10c] sm:$0xff]  }
 0x3d6   : > { %v5903_v0 = vld [vmem:[#allocation2 + $0x110] sm:$0x7]  ;;  %v5982_v52 = vunpack.c.l.bf16 %v5902_v55  ;;  %v6015_v42 = vunpack.c.h.bf16 %v5902_v55  ;;  %v7247_v12 = vrot.slane %v7155_v10, 4  ;;  %v14514_v41 = vsel %vm552_vm0, %v649_v8, %v17440_v5 }
 0x3d7   : > { %v5983_v2 = vunpack.c.l.bf16 %v5903_v0 }
 0x3d8   : > { %v6148_v35 = vrot.slane %v5982_v52, 1  ;;  %v6150_v45 = vrot.slane %v6015_v42, 1  ;;  %v6461_v51 = vrot.slane %v5982_v52, 2  ;;  %v6462_v20 = vrot.slane %v6015_v42, 2 }
 0x3d9   : > { %v6847_v46 = vrot.slane %v5982_v52, 3  ;;  %v6848_v27 = vrot.slane %v6015_v42, 3  ;;  %v7248_v33 = vrot.slane %v6015_v42, 4  ;;  %v3250_v42 = vld [vmem:[#allocation2 + $0x148] sm:$0xff]  }
 0x3da   : > { %v6149_v55 = vsel %vm552_vm0, %v14330_v14, %v6148_v35  ;;  %v6151_v10 = vsel %vm552_vm0, %v6148_v35, %v6150_v45  ;;  %v6283_v0 = vmax.f32 %v5983_v2, %v6150_v45  ;;  %v6463_v11 = vsel %vm893_vm1, %v6461_v51, %v6462_v20  ;;  %v3251_v63 = vld [vmem:[#allocation2 + $0x14c] sm:$0x7]  ;;  %v9115_v39 = vpop.eup %9114 }
 0x3db   : > { %v6281_v17 = vmax.f32 %v17439_v57, %v6149_v55  ;;  %v6282_v22 = vmax.f32 %v5982_v52, %v6151_v10  ;;  %v6851_v28 = vsel %vm1254_vm2, %v6848_v27, %v14355_v34  ;;  %v6849_v35 = vsel %vm1254_vm2, %v6847_v46, %v6848_v27 }
 0x3dc   : > { %v6583_v14 = vmax.f32 %v6283_v0, %v6462_v20  ;;  %v7249_v45 = vsel %vm1655_vm3, %v7247_v12, %v7248_v33  ;;  %v8430_v2 = vadd.f32 %v8354_v7, %v5769_v24  ;;  %v7251_v52 = vsel %vm1655_vm3, %v7248_v33, %v14360_v21 }
 0x3dd   : > { %v6581_v60 = vmax.f32 %v6281_v17, %v6461_v51  ;;  %v6582_v57 = vmax.f32 %v6282_v22, %v6463_v11  ;;  %v3330_v34 = vunpack.c.l.bf16 %v3250_v42  ;;  %v8561_v10 = vadd.f32 1.0, %v9115_v39 }
 0x3de   : > { %v6983_v55 = vmax.f32 %v6583_v14, %v6851_v28  ;;  %v14521_v18 = vadd.f32 %v14164_v37, %v8430_v2  ;;  %v3331_v8 = vunpack.c.l.bf16 %v3251_v63  ;;  %v3357_v0 = vunpack.c.h.bf16 %v3250_v42 }
 0x3df   : > { %v6981_v5 = vmax.f32 %v6581_v60, %v6847_v46  ;;  %v6982_v20 = vmax.f32 %v6582_v57, %v6849_v35  ;;  %v3502_v27 = vrot.slane %v3330_v34, 1  ;;  %v8593_v7 = vmul.f32 0.5, %v8561_v10 }
 0x3e0   : > { %v14523_v4 = vmax.f32 %v6983_v55, %v7251_v52  ;;  %v8498_v51 = vmul.f32 0.5, %v14521_v18  ;;  %v3809_v24 = vrot.slane %v3330_v34, 2  ;;  %v3504_v33 = vrot.slane %v3357_v0, 1 }
 0x3e1   : > { %v14526_v17 = vmax.f32 %v6981_v5, %v7247_v12  ;;  %v14528_v21 = vmax.f32 %v6982_v20, %v7249_v45  ;;  %v3503_v39 = vsel %vm552_vm0, %v14428_v25, %v3502_v27  ;;  %v17444_v63 = vmax.f32 %v14373_v43, %v14237_v3  ;;  %v4417_v45 = vld [vmem:[#allocation2 + $0x148] sm:$0xe] }
 0x3e2   : > { %17441 = vst [vmem:[#allocation17_spill] sm:$0xff] %v14523_v4  ;;  %v8625_v46 = vmul.f32 %v8593_v7, %v14476_v61  ;;  %9116 = vtanh.f32 %v8498_v51  ;;  %v17445_v22 = vunpack.c.l.bf16 %v14398_v50  ;;  %v17446_v12 = vmax.f32 %v14363_v59, %v14240_v23 }
 0x3e3   : > { %17442 = vst [vmem:[#allocation58_spill] sm:$0xff] %v14526_v17  ;;  %v7983_v28 = vmax.f32 %v17444_v63, %v14523_v4  ;;  %v17447_v25 = vmax.f32 %v14366_v62, %v14242_v32  ;;  %v3505_v35 = vsel %vm552_vm0, %v3502_v27, %v3504_v33  ;;  %v3631_v43 = vmax.f32 %v3331_v8, %v3504_v33 }
 0x3e4   : > { %17443 = vst [vmem:[#allocation71_spill] sm:$0xff] %v14528_v21  ;;  %v3629_v11 = vmax.f32 %v17445_v22, %v3503_v39  ;;  %v7981_v42 = vmax.f32 %v17446_v12, %v14526_v17  ;;  %v3630_v61 = vmax.f32 %v3330_v34, %v3505_v35  ;;  %v3810_v60 = vrot.slane %v3357_v0, 2  ;;  %v14555_v12 = vld [vmem:[#allocation2 + $0x11c] sm:$0x8] }
 0x3e5   : > { %v7982_v14 = vmax.f32 %v17447_v25, %v14528_v21  ;;  %v8031_v2 = vpack.c.bf16 %v7983_v28, %v7983_v28  ;;  %8657 = vst [vmem:[%s14269_s25 + $0x10] sm:$0xff] %v8625_v46  ;;  %v4201_v55 = vrot.slane %v3330_v34, 3  ;;  %v4202_v10 = vrot.slane %v3357_v0, 3 }
 0x3e6   : > { %v3929_v50 = vmax.f32 %v3629_v11, %v3809_v24  ;;  %v8029_v57 = vpack.c.bf16 %v7981_v42, %v7981_v42  ;;  %v3811_v5 = vsel %vm893_vm1, %v3809_v24, %v3810_v60  ;;  %v3931_v20 = vmax.f32 %v3631_v43, %v3810_v60  ;;  %v6676_v43 = vld [vmem:[#allocation2 + $0x128] sm:$0x1]  ;;  %v2836_v60 = vpop.f32.mrf.mxu0 }
 0x3e7   : > { %v8030_v52 = vpack.c.bf16 %v7982_v14, %v7982_v14  ;;  %v8166_v59 = vrot.slane %v8031_v2, 7  ;;  %v4497_v7 = vunpack.c.l.bf16 %v4417_v45  ;;  %v3930_v39 = vmax.f32 %v3630_v61, %v3811_v5  ;;  %v5696_v5 = vpop.f32.mrf.mxu2 }
 0x3e8   : > { %v8973_v62 = vrot.slane %v8029_v57, 11  ;;  %v4203_v8 = vsel %vm1254_vm2, %v4201_v55, %v4202_v10  ;;  %v9117_v27 = vpop.eup %9116  ;;  %v4205_v33 = vsel %vm1254_vm2, %v4202_v10, %v14441_v49  ;;  %v4329_v63 = vmax.f32 %v3929_v50, %v4201_v55  ;;  %v3069_v50 = vpop.f32.mrf.mxu1 }
 0x3e9   : > { %v8163_v51 = vrot.slane %v8030_v52, 7  ;;  %v4601_v28 = vrot.slane %v4497_v7, 4  ;;  %v4602_v46 = vrot.slane %v3357_v0, 4  ;;  %v8562_v11 = vadd.f32 1.0, %v9117_v27 }
 0x3ea   : > { %v4330_v24 = vmax.f32 %v3930_v39, %v4203_v8  ;;  %v4331_v25 = vmax.f32 %v3931_v20, %v4205_v33  ;;  %v5984_v52 = vunpack.c.l.bf16 %v14555_v12  ;;  %v17448_v55 = vrot.slane %v14472_v53, 1  ;;  %v17475_v12 = vld [vmem:[#allocation92_spill] sm:$0xff] }
 0x3eb   : > { %v8164_v34 = vsel %vm11740_vm6, %v8973_v62, %v8163_v51  ;;  %v8165_v22 = vrot.slane %v8163_v51, 4  ;;  %v4603_v14 = vsel %vm1655_vm3, %v4601_v28, %v4602_v46  ;;  %v4605_v35 = vsel %vm1655_vm3, %v4602_v46, %v14443_v48 }
 0x3ec   : > { %v8244_v42 = vunpack.c.l.b16 %v8164_v34  ;;  %v8594_v0 = vmul.f32 0.5, %v8562_v11  ;;  %v14562_v45 = vmax.f32 %v4329_v63, %v4601_v28  ;;  %v14564_v2 = vmax.f32 %v4330_v24, %v4603_v14 }
 0x3ed   : > { %v8167_v49 = vsel %vm11740_vm6, %v8165_v22, %v8166_v59  ;;  %v14566_v57 = vmax.f32 %v4331_v25, %v4605_v35  ;;  %v17449_v48 = vunpack.c.l.bf16 %v14459_v15  ;;  %v17450_v20 = vmax.f32 %v14446_v9, %v14368_v31 }
 0x3ee   : > { %v8245_v61 = vunpack.c.l.b16 %v8167_v49  ;;  %v8626_v59 = vmul.f32 %v8594_v0, %v14521_v18  ;;  %v17451_v62 = vmax.f32 %v14449_v56, %v14370_v26  ;;  %v6756_v39 = vunpack.c.l.bf16 %v6676_v43 }
 0x3ef   : > { %v772_v10 = vmax.f32 %v17449_v48, %v17448_v55  ;;  %v5329_v7 = vmax.f32 %v17450_v20, %v14562_v45  ;;  %v5770_v27 = vadd.f32 %v5696_v5, %v14483_v47  ;;  %v17452_v15 = vmax.f32 %v14467_v58, %v14358_v38 }
 0x3f0   : > { %v5330_v51 = vmax.f32 %v17451_v62, %v14564_v2  ;;  %v8267_v8 = vpack.c.b16 %v8245_v61, %v8244_v42  ;;  %v7543_v18 = vmax.f32 %v13959_v40, %v14045_v29  ;;  %8658 = vst [vmem:[%s14269_s25 + $0x18] sm:$0xff] %v8626_v59  ;;  %v3070_v9 = vadd.f32 %v3069_v50, %v2836_v60 }
 0x3f1   : > { %v5331_v33 = vmax.f32 %v17452_v15, %v14566_v57  ;;  %v5377_v63 = vpack.c.bf16 %v5329_v7, %v5329_v7  ;;  %v7544_v56 = vmax.f32 %v13961_v19, %v14047_v44  ;;  %v14594_v47 = vrot.slane %v5984_v52, 1 }
 0x3f2   : > { %v5378_v28 = vpack.c.bf16 %v5330_v51, %v5330_v51  ;;  %8391 = vmatmul.bf16.gmra.mxu3 %v8267_v8  ;;  %v7545_v58 = vmax.f32 %v17412_v6, %v14041_v36  ;;  %v17453_v34 = vunpack.c.l.bf16 %v14430_v16  ;;  %v14601_v24 = vrot.slane %v6756_v39, 3 }
 0x3f3   : > { %v5379_v46 = vpack.c.bf16 %v5331_v33, %v5331_v33  ;;  %v8928_v22 = vrot.slane %v5377_v63, 11  ;;  %v771_v19 = vmax.f32 %v14452_v54, %v14514_v41  ;;  %v14606_v25 = vmax.f32 %v7543_v18, %v14240_v23 }
 0x3f4   : > { %v770_v40 = vmax.f32 %v17453_v34, %v14501_v1  ;;  %v5523_v11 = vrot.slane %v5378_v28, 7  ;;  %v14609_v14 = vmax.f32 %v7544_v56, %v14242_v32  ;;  %v17454_v6 = vrot.slane %v14472_v53, 2  ;;  %v1554_v1 = vld [vmem:[#allocation2 + $0x184] sm:$0xe]  ;;  %v5698_v56 = vpop.f32.mrf.mxu2 }
 0x3f5   : > { %v5526_v42 = vrot.slane %v5379_v46, 7  ;;  %v17455_v35 = vrot.slane %v14452_v54, 2  ;;  %v14620_v41 = vrot.slane %v6756_v39, 4  ;;  %v14626_v60 = vmax.f32 %v7545_v58, %v14237_v3  ;;  %v8357_v46 = vpop.f32.mrf.mxu3  ;;  %v17460_v58 = vld [vmem:[#allocation119_spill] sm:$0xff] }
 0x3f6   : > { %v14618_v43 = vsel %vm11740_vm6, %v8928_v22, %v5523_v11  ;;  %v5525_v49 = vrot.slane %v5523_v11, 4  ;;  %v17457_v55 = vmov %v17454_v6  ;;  %v1350_v5 = vrot.slane %v14452_v54, 3  ;;  %v17462_v11 = vld [vmem:[#allocation113_spill] sm:$0xff] }
 0x3f7   : > { %v953_v16 = vsel %vm893_vm1, %v17455_v35, %v17454_v6  ;;  %v17456_v0 = vmov %v17455_v35  ;;  %5854 = vst [vmem:[#allocation2 + $0x120] sm:$0xf] %v14618_v43  ;;  %v1073_v48 = vmax.f32 %v772_v10, %v17457_v55  ;;  %v1351_v20 = vrot.slane %v14472_v53, 3 }
 0x3f8   : > { %v1071_v61 = vmax.f32 %v770_v40, %v17456_v0  ;;  %v1072_v50 = vmax.f32 %v771_v19, %v953_v16  ;;  %v14633_v59 = vsel %vm11740_vm6, %v5525_v49, %v5526_v42  ;;  %v17458_v7 = vunpack.c.l.bf16 %v14490_v30  ;;  %v17461_v40 = vld [vmem:[#allocation70_spill] sm:$0xff]  ;;  %v17463_v42 = vld [vmem:[#allocation33_spill] sm:$0xff]  ;;  %v17464_v49 = vld [vmem:[#allocation12_spill] sm:$0xff] }
 0x3f9   : > { %v1634_v51 = vunpack.c.l.bf16 %v1554_v1  ;;  %5855 = vst [vmem:[#allocation2 + $0x124] sm:$0xf] %v14633_v59  ;;  %v7837_v39 = vmax.f32 %v14606_v25, %v14526_v17  ;;  %v7838_v10 = vmax.f32 %v14609_v14, %v14528_v21  ;;  %v1752_v8 = vrot.slane %v14472_v53, 4  ;;  %v9029_v53 = vld [vmem:[%s9454_s30 + $0x58] sm:$0xff]  ;;  %v17465_v0 = vld [vmem:[#allocation68_spill] sm:$0xff] }
 0x3fa   : > { %v1353_v62 = vrot.slane %v17458_v7, 3  ;;  %v14643_v54 = vmax.f32 %v1071_v61, %v1350_v5  ;;  %v1352_v15 = vsel %vm1254_vm2, %v1350_v5, %v1351_v20  ;;  %v17459_v63 = vmov %v17458_v7  ;;  %3111 = vmatmul.bf16.gmra.mxu1 %v9029_v53  ;;  %v17467_v7 = vld [vmem:[#allocation84_spill] sm:$0xff] }
 0x3fb   : > { %v14648_v18 = vrot.slane %v1634_v51, 4  ;;  %v1754_v28 = vrot.slane %v17459_v63, 4  ;;  %v5587_v34 = vunpack.c.l.b16 %v17460_v58  ;;  %v5588_v22 = vunpack.c.l.b16 %v17461_v40  ;;  %v17468_v40 = vld [vmem:[#allocation7_spill] sm:$0xff] }
 0x3fc   : > { %v1354_v33 = vsel %vm1254_vm2, %v1351_v20, %v1353_v62  ;;  %v2725_v19 = vunpack.c.l.b16 %v17462_v11  ;;  %v2726_v6 = vunpack.c.l.b16 %v17463_v42  ;;  %v8431_v35 = vadd.f32 %v8357_v46, %v5770_v27  ;;  %v17466_v20 = vld [vmem:[#allocation95_spill] sm:$0xff] }
 0x3fd   : > { %v1473_v16 = vmax.f32 %v1072_v50, %v1352_v15  ;;  %v1474_v1 = vmax.f32 %v1073_v48, %v1354_v33  ;;  %v2032_v61 = vmax.f32 %v17465_v0, %v17464_v49  ;;  %v5608_v55 = vpack.c.b16 %v5588_v22, %v5587_v34  ;;  %v2839_v50 = vpop.f32.mrf.mxu0  ;;  %v3072_v48 = vpop.f32.mrf.mxu1  ;;  %v17469_v22 = vld [vmem:[#allocation27_spill] sm:$0xff]  ;;  %v17471_v0 = vld [vmem:[#allocation65_spill] sm:$0xff] }
 0x3fe   : > { %v2746_v30 = vpack.c.b16 %v2726_v6, %v2725_v19  ;;  %v1753_v5 = vsel %vm1655_vm3, %v14648_v18, %v1752_v8  ;;  %v2033_v62 = vmax.f32 %v17467_v7, %v17466_v20  ;;  %v7076_v51 = vld [vmem:[#allocation2 + $0x120] sm:$0xe]  ;;  %v7839_v63 = vmax.f32 %v14626_v60, %v14523_v4  ;;  %v14675_v19 = vld [vmem:[#allocation2 + $0x158] sm:$0x8] }
 0x3ff   : > { %v5771_v58 = vadd.f32 %v5698_v56, %v3070_v9  ;;  %v14666_v27 = vadd.f32 %v14164_v37, %v8431_v35  ;;  %v1755_v15 = vsel %vm1655_vm3, %v1752_v8, %v1754_v28  ;;  %v7156_v33 = vunpack.c.l.bf16 %v7076_v51  ;;  %5740 = vmatmul.bf16.gmra.mxu2 %v5608_v55  ;;  %v17470_v8 = vld [vmem:[#allocation63_spill] sm:$0xff] }
 0x400   : > { %v14669_v46 = vadd.f32 %v3072_v48, %v2839_v50  ;;  %2878 = vmatmul.bf16.gmra.mxu0 %v2746_v30  ;;  %v1873_v34 = vmax.f32 %v14643_v54, %v14648_v18  ;;  %v2034_v11 = vmax.f32 %v17469_v22, %v17468_v40  ;;  %v5905_v9 = vld [vmem:[#allocation2 + $0x120] sm:$0xff]   ;;  %v1874_v42 = vmax.f32 %v1473_v16, %v1753_v5  ;;  %v8359_v5 = vpop.f32.mrf.mxu3 }
 0x401   : > { %v5906_v37 = vld [vmem:[#allocation2 + $0x124] sm:$0x7]  ;;  %v8499_v56 = vmul.f32 0.5, %v14666_v27  ;;  %v1875_v6 = vmax.f32 %v1474_v1, %v1755_v15  ;;  %v2179_v28 = vmax.f32 %v2032_v61, %v17470_v8  ;;  %v5985_v53 = vunpack.c.l.bf16 %v5905_v9  ;;  %v17473_v61 = vld [vmem:[#allocation46_spill] sm:$0xff]  ;;  %v17474_v8 = vld [vmem:[#allocation87_spill] sm:$0xff] }
 0x402   : > { %v5986_v35 = vunpack.c.l.bf16 %v5906_v37  ;;  %v6016_v49 = vunpack.c.h.bf16 %v5905_v9  ;;  %v2180_v55 = vmax.f32 %v2033_v62, %v17471_v0  ;;  %v7252_v30 = vrot.slane %v7156_v33, 4  ;;  %v17472_v54 = vld [vmem:[#allocation32_spill] sm:$0xff] }
 0x403   : > { %9118 = vtanh.f32 %v8499_v56  ;;  %v2181_v18 = vmax.f32 %v2034_v11, %v17472_v54  ;;  %v15935_v20 = vunpack.c.l.bf16 %v14675_v19  ;;  %v6153_v7 = vrot.slane %v5985_v53, 1 }
 0x404   : > { %v6155_v51 = vrot.slane %v6016_v49, 1  ;;  %v6464_v50 = vrot.slane %v5985_v53, 2  ;;  %v6465_v48 = vrot.slane %v6016_v49, 2  ;;  %v6852_v40 = vrot.slane %v5985_v53, 3 }
 0x405   : > { %v6853_v16 = vrot.slane %v6016_v49, 3  ;;  %v7253_v1 = vrot.slane %v6016_v49, 4  ;;  %v2326_v15 = vmax.f32 %v2179_v28, %v17473_v61  ;;  %v6154_v22 = vsel %vm552_vm0, %v14594_v47, %v6153_v7 }
 0x406   : > { %v6156_v62 = vsel %vm552_vm0, %v6153_v7, %v6155_v51  ;;  %v6286_v33 = vmax.f32 %v5986_v35, %v6155_v51  ;;  %v6466_v11 = vsel %vm893_vm1, %v6464_v50, %v6465_v48  ;;  %v6284_v9 = vmax.f32 %v5984_v52, %v6154_v22 }
 0x407   : > { %v6285_v37 = vmax.f32 %v5985_v53, %v6156_v62  ;;  %v6856_v56 = vsel %vm1254_vm2, %v6853_v16, %v14601_v24  ;;  %v2327_v49 = vmax.f32 %v2180_v55, %v17474_v8  ;;  %v6854_v28 = vsel %vm1254_vm2, %v6852_v40, %v6853_v16  ;;  %v14700_v24 = vld [vmem:[%s15386_s2] ss:$0 sm:$0xff]  ;;  %v2841_v8 = vpop.f32.mrf.mxu0 }
 0x408   : > { %v6586_v0 = vmax.f32 %v6286_v33, %v6465_v48  ;;  %v7254_v54 = vsel %vm1655_vm3, %v7252_v30, %v7253_v1  ;;  %v8432_v47 = vadd.f32 %v8359_v5, %v5771_v58  ;;  %v6584_v7 = vmax.f32 %v6284_v9, %v6464_v50  ;;  %17476 = vst [vmem:[#allocation50_spill] sm:$0xff] %v14700_v24 }
 0x409   : > { %v9119_v61 = vpop.eup %9118  ;;  %v6585_v35 = vmax.f32 %v6285_v37, %v6466_v11  ;;  %v7256_v51 = vsel %vm1655_vm3, %v7253_v1, %v14620_v41  ;;  %v2328_v52 = vmax.f32 %v2181_v18, %v17475_v12  ;;  %v2473_v48 = vmax.f32 %v2326_v15, %v1873_v34 }
 0x40a   : > { %v6986_v53 = vmax.f32 %v6586_v0, %v6856_v56  ;;  %v8563_v22 = vadd.f32 1.0, %v9119_v61  ;;  %v14703_v55 = vadd.f32 %v14700_v24, %v8432_v47  ;;  %v6984_v58 = vmax.f32 %v6584_v7, %v6852_v40  ;;  %v4018_v56 = vld [vmem:[#allocation2 + $0x164] sm:$0x1]  ;;  %v17478_v47 = vld [vmem:[#allocation37_spill] sm:$0xff] }
 0x40b   : > { %v6985_v16 = vmax.f32 %v6585_v35, %v6854_v28  ;;  %v2474_v50 = vmax.f32 %v2327_v49, %v1874_v42  ;;  %v2475_v5 = vmax.f32 %v2328_v52, %v1875_v6  ;;  %v2521_v1 = vpack.c.bf16 %v2473_v48, %v2473_v48  ;;  %v5701_v6 = vpop.f32.mrf.mxu2  ;;  %v3074_v49 = vpop.f32.mrf.mxu1  ;;  %v3256_v35 = vld [vmem:[#allocation2 + $0x170] sm:$0xff]  }
 0x40c   : > { %v14705_v62 = vmax.f32 %v6986_v53, %v7256_v51  ;;  %v8595_v41 = vmul.f32 0.5, %v8563_v22  ;;  %v8500_v18 = vmul.f32 0.5, %v14703_v55  ;;  %v14708_v33 = vmax.f32 %v6984_v58, %v7252_v30  ;;  %v17481_v52 = vld [vmem:[#allocation22_spill] sm:$0xff]  ;;  %v17482_v53 = vld [vmem:[#allocation75_spill] sm:$0xff] }
 0x40d   : > { %v14710_v11 = vmax.f32 %v6985_v16, %v7254_v54  ;;  %v2522_v9 = vpack.c.bf16 %v2474_v50, %v2474_v50  ;;  %v2523_v37 = vpack.c.bf16 %v2475_v5, %v2475_v5  ;;  %v8787_v40 = vrot.slane %v2521_v1, 11  ;;  %v17477_v54 = vld [vmem:[#allocation44_spill] sm:$0xff]  ;;  %v17484_v50 = vld [vmem:[#allocation45_spill] sm:$0xff] }
 0x40e   : > { %v7986_v34 = vmax.f32 %v7839_v63, %v14705_v62  ;;  %v8627_v42 = vmul.f32 %v8595_v41, %v14666_v27  ;;  %9120 = vtanh.f32 %v8500_v18  ;;  %v7984_v30 = vmax.f32 %v7837_v39, %v14708_v33  ;;  %v17485_v5 = vld [vmem:[#allocation60_spill] sm:$0xff] }
 0x40f   : > { %v7985_v15 = vmax.f32 %v7838_v10, %v14710_v11  ;;  %v2682_v0 = vrot.slane %v2522_v9, 7  ;;  %v2685_v60 = vrot.slane %v2523_v37, 7  ;;  %v14727_v27 = vadd.f32 %v5701_v6, %v14669_v46  ;;  %v3255_v10 = vld [vmem:[#allocation2 + $0x16c] sm:$0x8]  ;;  %v3257_v37 = vld [vmem:[#allocation2 + $0x174] sm:$0x7] }
 0x410   : > { %v8034_v63 = vpack.c.bf16 %v7986_v34, %v7986_v34  ;;  %8659 = vst [vmem:[%s14269_s25 + $0x20] sm:$0xff] %v8627_v42  ;;  %v4098_v28 = vunpack.c.l.bf16 %v4018_v56  ;;  %v4891_v61 = vmax.f32 %v17478_v47, %v17477_v54  ;;  %v8032_v25 = vpack.c.bf16 %v7984_v30, %v7984_v30 }
 0x411   : > { %v8033_v39 = vpack.c.bf16 %v7985_v15, %v7985_v15  ;;  %v14733_v7 = vsel %vm11740_vm6, %v8787_v40, %v2682_v0  ;;  %v2684_v14 = vrot.slane %v2682_v0, 4  ;;  %v14735_v12 = vadd.f32 %v3074_v49, %v2841_v8 }
 0x412   : > { %17479 = vst [vmem:[#allocation91_spill] sm:$0xff] %v14733_v7  ;;  %v8173_v51 = vrot.slane %v8034_v63, 7  ;;  %v14740_v46 = vrot.slane %v15935_v20, 1  ;;  %v4892_v22 = vmax.f32 %v17482_v53, %v17481_v52  ;;  %v8974_v48 = vrot.slane %v8032_v25, 11  ;;  %v14776_v53 = vld [vmem:[#allocation2 + $0x178] sm:$0x1] }
 0x413   : > { %17480 = vst [vmem:[#allocation53_spill] sm:$0xff] %v14735_v12  ;;  %v8170_v58 = vrot.slane %v8033_v39, 7  ;;  %v14746_v16 = vsel %vm11740_vm6, %v2684_v14, %v2685_v60  ;;  %v4893_v41 = vmax.f32 %v17485_v5, %v17484_v50  ;;  %v14751_v1 = vrot.slane %v4098_v28, 3  ;;  %v14768_v60 = vld [vmem:[#allocation2 + $0x130] sm:$0x8] }
 0x414   : > { %3199 = vst [vmem:[#allocation2 + $0x15c] sm:$0xf] %v14733_v7  ;;  %v9121_v18 = vpop.eup %9120  ;;  %v14754_v9 = vmax.f32 %v4891_v61, %v14368_v31  ;;  %v3335_v56 = vunpack.c.l.bf16 %v3255_v10  ;;  %v14756_v34 = vunpack.c.l.bf16 %v3256_v35  ;;  %v4609_v30 = vrot.slane %v4098_v28, 4  ;;  %v6677_v7 = vld [vmem:[#allocation2 + $0x13c] sm:$0x1] }
 0x415   : > { %17483 = vst [vmem:[#allocation64_spill] sm:$0xff] %v14746_v16  ;;  %v8171_v42 = vsel %vm11740_vm6, %v8974_v48, %v8170_v58  ;;  %v8172_v6 = vrot.slane %v8170_v58, 4  ;;  %v8564_v40 = vadd.f32 1.0, %v9121_v18  ;;  %v14761_v8 = vmax.f32 %v4892_v22, %v14370_v26 }
 0x416   : > { %3200 = vst [vmem:[#allocation2 + $0x160] sm:$0xf] %v14746_v16  ;;  %v8246_v15 = vunpack.c.l.b16 %v8171_v42  ;;  %v14764_v49 = vmax.f32 %v4893_v41, %v14358_v38  ;;  %v3337_v61 = vunpack.c.l.bf16 %v3257_v37  ;;  %v14772_v25 = vunpack.c.h.bf16 %v3256_v35 }
 0x417   : > { %17486 = vst [vmem:[#allocation24_spill] sm:$0xff] %v14768_v60  ;;  %v8174_v63 = vsel %vm11740_vm6, %v8172_v6, %v8173_v51  ;;  %v8596_v47 = vmul.f32 0.5, %v8564_v40  ;;  %v3511_v39 = vrot.slane %v3335_v56, 1  ;;  %v3512_v14 = vrot.slane %v14756_v34, 1 }
 0x418   : > { %v8247_v28 = vunpack.c.l.b16 %v8174_v63  ;;  %v3815_v10 = vrot.slane %v14756_v34, 2  ;;  %v15938_v58 = vunpack.c.l.bf16 %v14768_v60  ;;  %v3514_v51 = vrot.slane %v14772_v25, 1 }
 0x419   : > { %v8628_v22 = vmul.f32 %v8596_v47, %v14703_v55  ;;  %v3816_v5 = vrot.slane %v14772_v25, 2  ;;  %v3513_v37 = vsel %vm552_vm0, %v3511_v39, %v3512_v14  ;;  %v5187_v55 = vmax.f32 %v14764_v49, %v14566_v57 }
 0x41a   : > { %v8268_v41 = vpack.c.b16 %v8247_v28, %v8246_v15  ;;  %v3515_v40 = vsel %vm552_vm0, %v3512_v14, %v3514_v51  ;;  %v3635_v63 = vmax.f32 %v3335_v56, %v3513_v37  ;;  %v3637_v18 = vmax.f32 %v3337_v61, %v3514_v51 }
 0x41b   : > { %v4418_v48 = vld [vmem:[#allocation2 + $0x15c] sm:$0xe]  ;;  %8660 = vst [vmem:[%s14269_s25 + $0x28] sm:$0xff] %v8628_v22  ;;  %v3636_v22 = vmax.f32 %v14756_v34, %v3515_v40  ;;  %v3817_v20 = vsel %vm893_vm1, %v3815_v10, %v3816_v5  ;;  %v17488_v61 = vunpack.c.l.bf16 %v14675_v19  ;;  %v7547_v19 = vmax.f32 %v14047_v44, %v14242_v32 }
 0x41c   : > { %v4498_v35 = vunpack.c.l.bf16 %v4418_v48  ;;  %8396 = vmatmul.bf16.gmra.mxu3 %v8268_v41  ;;  %v14792_v48 = vrot.slane %v15938_v58, 1  ;;  %v14804_v24 = vmax.f32 %v3637_v18, %v3816_v5  ;;  %v4211_v44 = vrot.slane %v14756_v34, 3 }
 0x41d   : > { %v3253_v42 = vld [vmem:[#allocation2 + $0x15c] sm:$0xff]   ;;  %v3936_v5 = vmax.f32 %v3636_v22, %v3817_v20  ;;  %v4419_v22 = vld [vmem:[#allocation2 + $0x170] sm:$0xe]  ;;  %v17489_v34 = vunpack.c.l.bf16 %v14776_v53 }
 0x41e   : > { %v3254_v6 = vld [vmem:[#allocation2 + $0x160] sm:$0x7]  ;;  %v3333_v0 = vunpack.c.l.bf16 %v3253_v42  ;;  %v3358_v28 = vunpack.c.h.bf16 %v3253_v42  ;;  %17487 = vst [vmem:[#allocation36_spill] sm:$0xff] %v14792_v48  ;;  %v4606_v39 = vrot.slane %v4498_v35, 4 }
 0x41f   : > { %v3334_v15 = vunpack.c.l.bf16 %v3254_v6  ;;  %v3935_v6 = vmax.f32 %v3635_v63, %v3815_v10 }
 0x420   : > { %v3507_v49 = vrot.slane %v3333_v0, 1  ;;  %v3509_v16 = vrot.slane %v3358_v28, 1  ;;  %v3812_v14 = vrot.slane %v3333_v0, 2  ;;  %v3813_v56 = vrot.slane %v3358_v28, 2 }
 0x421   : > { %v4206_v37 = vrot.slane %v3333_v0, 3  ;;  %v4207_v47 = vrot.slane %v3358_v28, 3  ;;  %v4607_v41 = vrot.slane %v3358_v28, 4 }
 0x422   : > { %v3508_v42 = vsel %vm552_vm0, %v14740_v46, %v3507_v49  ;;  %v3510_v58 = vsel %vm552_vm0, %v3507_v49, %v3509_v16  ;;  %v3634_v35 = vmax.f32 %v3334_v15, %v3509_v16  ;;  %v3814_v40 = vsel %vm893_vm1, %v3812_v14, %v3813_v56 }
 0x423   : > { %v3632_v51 = vmax.f32 %v17488_v61, %v3508_v42  ;;  %v3633_v60 = vmax.f32 %v3333_v0, %v3510_v58  ;;  %v4210_v48 = vsel %vm1254_vm2, %v4207_v47, %v14751_v1  ;;  %v4208_v10 = vsel %vm1254_vm2, %v4206_v37, %v4207_v47 }
 0x424   : > { %v3934_v28 = vmax.f32 %v3634_v35, %v3813_v56  ;;  %v4610_v63 = vsel %vm1655_vm3, %v4607_v41, %v4609_v30  ;;  %v6757_v46 = vunpack.c.l.bf16 %v6677_v7  ;;  %v7546_v16 = vmax.f32 %v14045_v29, %v14240_v23 }
 0x425   : > { %v3932_v12 = vmax.f32 %v3632_v51, %v3812_v14  ;;  %v3933_v49 = vmax.f32 %v3633_v60, %v3814_v40  ;;  %v4608_v58 = vsel %vm1655_vm3, %v4606_v39, %v4607_v41  ;;  %v7548_v1 = vmax.f32 %v14041_v36, %v14237_v3 }
 0x426   : > { %v4334_v0 = vmax.f32 %v3934_v28, %v4210_v48  ;;  %v14816_v30 = vmax.f32 %v7546_v16, %v14526_v17  ;;  %v14819_v7 = vmax.f32 %v7547_v19, %v14528_v21  ;;  %v14823_v29 = vrot.slane %v6757_v46, 3 }
 0x427   : > { %v4332_v18 = vmax.f32 %v3932_v12, %v4206_v37  ;;  %v4333_v47 = vmax.f32 %v3933_v49, %v4208_v10  ;;  %v4212_v15 = vrot.slane %v14772_v25, 3  ;;  %v14831_v20 = vrot.slane %v6757_v46, 4 }
 0x428   : > { %v14821_v60 = vmax.f32 %v4334_v0, %v4610_v63  ;;  %v14834_v12 = vmax.f32 %v7548_v1, %v14523_v4  ;;  %v4214_v41 = vrot.slane %v17489_v34, 3  ;;  %v17491_v35 = vmax.f32 %v14761_v8, %v14564_v2 }
 0x429   : > { %v14827_v48 = vmax.f32 %v4332_v18, %v4606_v39  ;;  %v14829_v36 = vmax.f32 %v4333_v47, %v4608_v58  ;;  %v4213_v37 = vsel %vm1254_vm2, %v4211_v44, %v4212_v15  ;;  %v17490_v39 = vmax.f32 %v14754_v9, %v14562_v45 }
 0x42a   : > { %v5334_v14 = vmax.f32 %v5187_v55, %v14821_v60  ;;  %v4335_v61 = vmax.f32 %v3935_v6, %v4211_v44  ;;  %v4215_v28 = vsel %vm1254_vm2, %v4212_v15, %v4214_v41  ;;  %v4499_v10 = vunpack.c.l.bf16 %v4419_v22  ;;  %v14863_v44 = vld [vmem:[#allocation2 + $0x144] sm:$0x8] }
 0x42b   : > { %v5332_v42 = vmax.f32 %v17490_v39, %v14827_v48  ;;  %v5333_v40 = vmax.f32 %v17491_v35, %v14829_v36  ;;  %v4612_v63 = vrot.slane %v14772_v25, 4  ;;  %v4336_v16 = vmax.f32 %v3936_v5, %v4213_v37  ;;  %v14877_v37 = vld [vmem:[#allocation2 + $0x180] sm:$0x8] }
 0x42c   : > { %v5382_v51 = vpack.c.bf16 %v5334_v14, %v5334_v14  ;;  %v17492_v9 = vmov %v17489_v34  ;;  %v4337_v0 = vmax.f32 %v14804_v24, %v4215_v28  ;;  %v4611_v8 = vrot.slane %v4499_v10, 4 }
 0x42d   : > { %v5380_v46 = vpack.c.bf16 %v5332_v42, %v5332_v42  ;;  %v5381_v49 = vpack.c.bf16 %v5333_v40, %v5333_v40  ;;  %v4614_v19 = vrot.slane %v17492_v9, 4  ;;  %v4894_v58 = vmax.f32 %v17477_v54, %v14368_v31  ;;  %v17502_v40 = vld [vmem:[#allocation24_spill] sm:$0xff] }
 0x42e   : > { %v4895_v6 = vmax.f32 %v17481_v52, %v14370_v26  ;;  %v5533_v47 = vrot.slane %v5382_v51, 7  ;;  %v4896_v25 = vmax.f32 %v17484_v50, %v14358_v38  ;;  %v4613_v53 = vsel %vm1655_vm3, %v4611_v8, %v4612_v63  ;;  %v6678_v50 = vld [vmem:[#allocation2 + $0x150] sm:$0x1] }
 0x42f   : > { %v8929_v1 = vrot.slane %v5380_v46, 11  ;;  %v5530_v18 = vrot.slane %v5381_v49, 7  ;;  %v4615_v5 = vsel %vm1655_vm3, %v4612_v63, %v4614_v19  ;;  %v14867_v24 = vmax.f32 %v4335_v61, %v4611_v8  ;;  %v8362_v8 = vpop.f32.mrf.mxu3 }
 0x430   : > { %v5041_v15 = vmax.f32 %v4894_v58, %v14562_v45  ;;  %v14874_v22 = vmax.f32 %v4336_v16, %v4613_v53  ;;  %v5042_v14 = vmax.f32 %v4895_v6, %v14564_v2  ;;  %v5043_v34 = vmax.f32 %v4896_v25, %v14566_v57  ;;  %v9030_v25 = vld [vmem:[%s9454_s30 + $0x60] sm:$0xff] }
 0x431   : > { %17493 = vst [vmem:[#allocation15_spill] sm:$0xff] %v14867_v24  ;;  %v14872_v54 = vsel %vm11740_vm6, %v8929_v1, %v5530_v18  ;;  %v5532_v52 = vrot.slane %v5530_v18, 4  ;;  %v15942_v39 = vunpack.c.l.bf16 %v14863_v44  ;;  %v6758_v42 = vunpack.c.l.bf16 %v6678_v50  ;;  %v17497_v18 = vld [vmem:[#allocation117_spill] sm:$0xff]  ;;  %3116 = vmatmul.bf16.gmra.mxu1 %v9030_v25 }
 0x432   : > { %17494 = vst [vmem:[#allocation54_spill] sm:$0xff] %v14874_v22  ;;  %v5188_v41 = vmax.f32 %v5041_v15, %v14827_v48  ;;  %v14889_v61 = vmax.f32 %v4337_v0, %v4615_v5  ;;  %v5189_v51 = vmax.f32 %v5042_v14, %v14829_v36  ;;  %v5190_v28 = vmax.f32 %v5043_v34, %v14821_v60  ;;  %v5703_v0 = vpop.f32.mrf.mxu2  ;;  %v2844_v5 = vpop.f32.mrf.mxu0 }
 0x433   : > { %5856 = vst [vmem:[#allocation2 + $0x134] sm:$0xf] %v14872_v54  ;;  %v14885_v35 = vsel %vm11740_vm6, %v5532_v52, %v5533_v47  ;;  %v7550_v63 = vmax.f32 %v14242_v32, %v14528_v21  ;;  %v14901_v16 = vrot.slane %v15942_v39, 1  ;;  %v14903_v9 = vrot.slane %v6758_v42, 3  ;;  %v17496_v32 = vld [vmem:[#allocation73_spill] sm:$0xff]  ;;  %v3077_v15 = vpop.f32.mrf.mxu1 }
 0x434   : > { %17495 = vst [vmem:[#allocation93_spill] sm:$0xff] %v14889_v61  ;;  %v5335_v10 = vmax.f32 %v5188_v41, %v14867_v24  ;;  %v5336_v49 = vmax.f32 %v5189_v51, %v14874_v22  ;;  %v7549_v19 = vmax.f32 %v14240_v23, %v14526_v17  ;;  %v5589_v58 = vunpack.c.l.b16 %v14618_v43  ;;  %v17498_v51 = vld [vmem:[#allocation53_spill] sm:$0xff] }
 0x435   : > { %5857 = vst [vmem:[#allocation2 + $0x138] sm:$0xf] %v14885_v35  ;;  %v5590_v6 = vunpack.c.l.b16 %v14633_v59  ;;  %v2727_v1 = vunpack.c.l.b16 %v17496_v32  ;;  %v2728_v47 = vunpack.c.l.b16 %v17497_v18  ;;  %v8433_v53 = vadd.f32 %v8362_v8, %v14727_v27  ;;  %v17499_v18 = vld [vmem:[#allocation50_spill] sm:$0xff] }
 0x436   : > { %v5337_v52 = vmax.f32 %v5190_v28, %v14889_v61  ;;  %v5383_v14 = vpack.c.bf16 %v5335_v10, %v5335_v10  ;;  %v7551_v23 = vmax.f32 %v14237_v3, %v14523_v4  ;;  %v5384_v43 = vpack.c.bf16 %v5336_v49, %v5336_v49  ;;  %v3259_v28 = vld [vmem:[#allocation2 + $0x184] sm:$0xff]  }
 0x437   : > { %v5609_v50 = vpack.c.b16 %v5590_v6, %v5589_v58  ;;  %v2747_v34 = vpack.c.b16 %v2728_v47, %v2727_v1  ;;  %v14917_v59 = vmax.f32 %v7550_v63, %v14710_v11  ;;  %v5773_v32 = vadd.f32 %v5703_v0, %v17498_v51  ;;  %v8364_v51 = vpop.f32.mrf.mxu3 }
 0x438   : > { %v14921_v27 = vadd.f32 %v17499_v18, %v8433_v53  ;;  %v5385_v8 = vpack.c.bf16 %v5337_v52, %v5337_v52  ;;  %v8930_v39 = vrot.slane %v5383_v14, 11  ;;  %v3078_v55 = vadd.f32 %v3077_v15, %v2844_v5 }
 0x439   : > { %5745 = vmatmul.bf16.gmra.mxu2 %v5609_v50  ;;  %2883 = vmatmul.bf16.gmra.mxu0 %v2747_v34  ;;  %v5537_v3 = vrot.slane %v5384_v43, 7  ;;  %v14923_v58 = vrot.slane %v6758_v42, 4  ;;  %v14927_v0 = vmax.f32 %v7549_v19, %v14708_v33  ;;  %v14930_v47 = vmax.f32 %v7551_v23, %v14705_v62 }
 0x43a   : > { %v7077_v41 = vld [vmem:[#allocation2 + $0x134] sm:$0xe]  ;;  %v8501_v63 = vmul.f32 0.5, %v14921_v27  ;;  %v5540_v1 = vrot.slane %v5385_v8, 7  ;;  %v14932_v14 = vunpack.c.l.bf16 %v3259_v28  ;;  %v17503_v46 = vunpack.c.l.bf16 %v17502_v40  ;;  %v2846_v22 = vpop.f32.mrf.mxu0 }
 0x43b   : > { %v7157_v10 = vunpack.c.l.bf16 %v7077_v41  ;;  %v14936_v42 = vsel %vm11740_vm6, %v8930_v39, %v5537_v3  ;;  %v5539_v15 = vrot.slane %v5537_v3, 4  ;;  %v5706_v41 = vpop.f32.mrf.mxu2  ;;  %v8434_v24 = vadd.f32 %v8364_v51, %v5773_v32 }
 0x43c   : > { %v5908_v49 = vld [vmem:[#allocation2 + $0x134] sm:$0xff]   ;;  %9122 = vtanh.f32 %v8501_v63  ;;  %17500 = vst [vmem:[#allocation94_spill] sm:$0xff] %v14936_v42  ;;  %v5774_v61 = vadd.f32 %v5706_v41, %v3078_v55 }
 0x43d   : > { %v5909_v6 = vld [vmem:[#allocation2 + $0x138] sm:$0x7]  ;;  %v5988_v25 = vunpack.c.l.bf16 %v5908_v49  ;;  %v6017_v52 = vunpack.c.h.bf16 %v5908_v49  ;;  %v7257_v5 = vrot.slane %v7157_v10, 4  ;;  %5858 = vst [vmem:[#allocation2 + $0x148] sm:$0xf] %v14936_v42  ;;  %v17501_v10 = vld [vmem:[#allocation36_spill] sm:$0xff] }
 0x43e   : > { %v5989_v53 = vunpack.c.l.bf16 %v5909_v6  ;;  %v14939_v6 = vunpack.c.h.bf16 %v3259_v28 }
 0x43f   : > { %v6158_v50 = vrot.slane %v5988_v25, 1  ;;  %v6160_v34 = vrot.slane %v6017_v52, 1  ;;  %v6467_v43 = vrot.slane %v5988_v25, 2  ;;  %v6468_v19 = vrot.slane %v6017_v52, 2  ;;  %v8367_v51 = vpop.f32.mrf.mxu3 }
 0x440   : > { %v6857_v23 = vrot.slane %v5988_v25, 3  ;;  %v6858_v8 = vrot.slane %v6017_v52, 3  ;;  %v7258_v49 = vrot.slane %v6017_v52, 4  ;;  %v3079_v52 = vpop.f32.mrf.mxu1 }
 0x441   : > { %v6159_v63 = vsel %vm552_vm0, %v17501_v10, %v6158_v50  ;;  %v6161_v39 = vsel %vm552_vm0, %v6158_v50, %v6160_v34  ;;  %v6289_v56 = vmax.f32 %v5989_v53, %v6160_v34  ;;  %v6469_v3 = vsel %vm893_vm1, %v6467_v43, %v6468_v19 }
 0x442   : > { %v6287_v4 = vmax.f32 %v17503_v46, %v6159_v63  ;;  %v6288_v21 = vmax.f32 %v5988_v25, %v6161_v39  ;;  %v6861_v42 = vsel %vm1254_vm2, %v6858_v8, %v14823_v29  ;;  %v6859_v17 = vsel %vm1254_vm2, %v6857_v23, %v6858_v8  ;;  %v9123_v50 = vpop.eup %9122 }
 0x443   : > { %v6589_v28 = vmax.f32 %v6289_v56, %v6468_v19  ;;  %v7259_v10 = vsel %vm1655_vm3, %v7257_v5, %v7258_v49  ;;  %v7261_v40 = vsel %vm1655_vm3, %v7258_v49, %v14831_v20  ;;  %v14955_v46 = vsel %vm11740_vm6, %v5539_v15, %v5540_v1 }
 0x444   : > { %v6587_v53 = vmax.f32 %v6287_v4, %v6467_v43  ;;  %v6588_v34 = vmax.f32 %v6288_v21, %v6469_v3  ;;  %v8565_v55 = vadd.f32 1.0, %v9123_v50  ;;  %v14958_v56 = vadd.f32 %v17499_v18, %v8434_v24  ;;  %5859 = vst [vmem:[#allocation2 + $0x14c] sm:$0xf] %v14955_v46  ;;  %v7078_v4 = vld [vmem:[#allocation2 + $0x148] sm:$0xe]  ;;  %v5708_v24 = vpop.f32.mrf.mxu2 }
 0x445   : > { %v6989_v29 = vmax.f32 %v6589_v28, %v6861_v42  ;;  %v3080_v25 = vadd.f32 %v3079_v52, %v2846_v22  ;;  %v17504_v21 = vunpack.c.l.bf16 %v14877_v37  ;;  %v3517_v20 = vrot.slane %v14932_v14, 1  ;;  %v9031_v22 = vld [vmem:[%s9454_s30 + $0x68] sm:$0xff] }
 0x446   : > { %v6987_v32 = vmax.f32 %v6587_v53, %v6857_v23  ;;  %v6988_v19 = vmax.f32 %v6588_v34, %v6859_v17  ;;  %v8597_v42 = vmul.f32 0.5, %v8565_v55  ;;  %v8502_v15 = vmul.f32 0.5, %v14958_v56  ;;  %3121 = vmatmul.bf16.gmra.mxu1 %v9031_v22 }
 0x447   : > { %v14963_v43 = vrot.slane %v17504_v21, 1  ;;  %v14966_v1 = vmax.f32 %v6989_v29, %v7261_v40  ;;  %v7158_v41 = vunpack.c.l.bf16 %v7078_v4  ;;  %v8435_v23 = vadd.f32 %v8367_v51, %v5774_v61 }
 0x448   : > { %v14970_v8 = vmax.f32 %v6987_v32, %v7257_v5  ;;  %v14972_v17 = vmax.f32 %v6988_v19, %v7259_v10  ;;  %v3519_v49 = vrot.slane %v14939_v6, 1  ;;  %v17505_v63 = vmax.f32 %v14834_v12, %v14705_v62 }
 0x449   : > { %v8629_v3 = vmul.f32 %v8597_v42, %v14921_v27  ;;  %9124 = vtanh.f32 %v8502_v15  ;;  %v14980_v52 = vadd.f32 %v5708_v24, %v3080_v25  ;;  %v17506_v5 = vmax.f32 %v14816_v30, %v14708_v33 }
 0x44a   : > { %v7989_v39 = vmax.f32 %v17505_v63, %v14966_v1  ;;  %v17507_v61 = vmax.f32 %v14819_v7, %v14710_v11  ;;  %v14990_v50 = vrot.slane %v7158_v41, 4  ;;  %v7843_v12 = vmax.f32 %v14927_v0, %v14970_v8 }
 0x44b   : > { %v7987_v28 = vmax.f32 %v17506_v5, %v14970_v8  ;;  %8661 = vst [vmem:[%s14269_s25 + $0x30] sm:$0xff] %v8629_v3  ;;  %v7844_v53 = vmax.f32 %v14917_v59, %v14972_v17  ;;  %v14998_v34 = vadd.f32 %v17499_v18, %v8435_v23  ;;  %v5591_v30 = vunpack.c.l.b16 %v14872_v54  ;;  %v5911_v55 = vld [vmem:[#allocation2 + $0x148] sm:$0xff]  }
 0x44c   : > { %v7988_v10 = vmax.f32 %v17507_v61, %v14972_v17  ;;  %v8037_v27 = vpack.c.bf16 %v7989_v39, %v7989_v39  ;;  %v5912_v7 = vld [vmem:[#allocation2 + $0x14c] sm:$0x7]  ;;  %v5592_v32 = vunpack.c.l.b16 %v14885_v35  ;;  %v5991_v4 = vunpack.c.l.bf16 %v5911_v55 }
 0x44d   : > { %v8035_v40 = vpack.c.bf16 %v7987_v28, %v7987_v28  ;;  %v5992_v21 = vunpack.c.l.bf16 %v5912_v7  ;;  %v6018_v42 = vunpack.c.h.bf16 %v5911_v55  ;;  %v8503_v24 = vmul.f32 0.5, %v14998_v34 }
 0x44e   : > { %v8036_v29 = vpack.c.bf16 %v7988_v10, %v7988_v10  ;;  %v8180_v19 = vrot.slane %v8037_v27, 7  ;;  %v5610_v51 = vpack.c.b16 %v5592_v32, %v5591_v30  ;;  %v6163_v54 = vrot.slane %v5991_v4, 1 }
 0x44f   : > { %v8975_v15 = vrot.slane %v8035_v40, 11  ;;  %v9125_v22 = vpop.eup %9124  ;;  %v6165_v23 = vrot.slane %v6018_v42, 1  ;;  %v6470_v63 = vrot.slane %v5991_v4, 2  ;;  %v6471_v39 = vrot.slane %v6018_v42, 2 }
 0x450   : > { %v8177_v41 = vrot.slane %v8036_v29, 7  ;;  %v8566_v28 = vadd.f32 1.0, %v9125_v22  ;;  %v6862_v35 = vrot.slane %v5991_v4, 3  ;;  %5750 = vmatmul.bf16.gmra.mxu2 %v5610_v51  ;;  %v6164_v10 = vsel %vm552_vm0, %v14901_v16, %v6163_v54 }
 0x451   : > { %v6166_v27 = vsel %vm552_vm0, %v6163_v54, %v6165_v23  ;;  %v6292_v40 = vmax.f32 %v5992_v21, %v6165_v23  ;;  %v17508_v55 = vunpack.c.l.bf16 %v14863_v44  ;;  %v6863_v22 = vrot.slane %v6018_v42, 3  ;;  %v3260_v21 = vld [vmem:[#allocation2 + $0x188] sm:$0x7] }
 0x452   : > { %v8178_v3 = vsel %vm11740_vm6, %v8975_v15, %v8177_v41  ;;  %v8179_v5 = vrot.slane %v8177_v41, 4  ;;  %v8598_v29 = vmul.f32 0.5, %v8566_v28  ;;  %v6291_v32 = vmax.f32 %v5991_v4, %v6166_v27 }
 0x453   : > { %v8248_v61 = vunpack.c.l.b16 %v8178_v3  ;;  %v6290_v7 = vmax.f32 %v17508_v55, %v6164_v10  ;;  %v6472_v41 = vsel %vm893_vm1, %v6470_v63, %v6471_v39  ;;  %v6592_v51 = vmax.f32 %v6292_v40, %v6471_v39 }
 0x454   : > { %v8181_v30 = vsel %vm11740_vm6, %v8179_v5, %v8180_v19  ;;  %v8630_v3 = vmul.f32 %v8598_v29, %v14958_v56  ;;  %v6591_v25 = vmax.f32 %v6291_v32, %v6472_v41  ;;  %v7263_v54 = vrot.slane %v6018_v42, 4  ;;  %v8369_v5 = vpop.f32.mrf.mxu3  ;;  %v17509_v42 = vld [vmem:[#allocation118_spill] sm:$0xff] }
 0x455   : > { %v8249_v15 = vunpack.c.l.b16 %v8181_v30  ;;  %v6590_v16 = vmax.f32 %v6290_v7, %v6470_v63  ;;  %v6864_v19 = vsel %vm1254_vm2, %v6862_v35, %v6863_v22  ;;  %v6866_v44 = vsel %vm1254_vm2, %v6863_v22, %v14903_v9  ;;  %v3082_v30 = vpop.f32.mrf.mxu1 }
 0x456   : > { %9126 = vtanh.f32 %v8503_v24  ;;  %8662 = vst [vmem:[%s14269_s25 + $0x38] sm:$0xff] %v8630_v3  ;;  %v6991_v28 = vmax.f32 %v6591_v25, %v6864_v19  ;;  %v6992_v10 = vmax.f32 %v6592_v51, %v6866_v44  ;;  %v7264_v39 = vsel %vm1655_vm3, %v14990_v50, %v7263_v54  ;;  %v2849_v25 = vpop.f32.mrf.mxu0  ;;  %v4020_v51 = vld [vmem:[#allocation2 + $0x18c] sm:$0x1] }
 0x457   : > { %v8269_v23 = vpack.c.b16 %v8249_v15, %v8248_v61  ;;  %v6990_v4 = vmax.f32 %v6590_v16, %v6862_v35  ;;  %v7266_v56 = vsel %vm1655_vm3, %v7263_v54, %v14923_v58  ;;  %v2729_v63 = vunpack.c.l.b16 %v17509_v42  ;;  %v17510_v61 = vld [vmem:[#allocation67_spill] sm:$0xff] }
 0x458   : > { %v2730_v27 = vunpack.c.l.b16 %v17510_v61  ;;  %v3340_v40 = vunpack.c.l.bf16 %v3260_v21  ;;  %v15029_v24 = vmax.f32 %v6991_v28, %v7264_v39  ;;  %v15031_v35 = vmax.f32 %v6992_v10, %v7266_v56  ;;  %v4420_v39 = vld [vmem:[#allocation2 + $0x184] sm:$0xe] }
 0x459   : > { %8401 = vmatmul.bf16.gmra.mxu3 %v8269_v23  ;;  %v15027_v9 = vmax.f32 %v6990_v4, %v14990_v50  ;;  %v8436_v29 = vadd.f32 %v8369_v5, %v14980_v52  ;;  %v15034_v55 = vadd.f32 %v3082_v30, %v2849_v25  ;;  %v3518_v58 = vsel %vm552_vm0, %v14963_v43, %v3517_v20 }
 0x45a   : > { %v2748_v7 = vpack.c.b16 %v2730_v27, %v2729_v63  ;;  %v3520_v50 = vsel %vm552_vm0, %v3517_v20, %v3519_v49  ;;  %v7991_v52 = vmax.f32 %v7844_v53, %v15029_v24  ;;  %v17511_v43 = vmax.f32 %v14930_v47, %v14966_v1 }
 0x45b   : > { %v7990_v32 = vmax.f32 %v7843_v12, %v15027_v9  ;;  %v15058_v41 = vadd.f32 %v17499_v18, %v8436_v29  ;;  %v17512_v22 = vunpack.c.l.bf16 %v14877_v37  ;;  %v3639_v12 = vmax.f32 %v14932_v14, %v3520_v50 }
 0x45c   : > { %v7992_v15 = vmax.f32 %v17511_v43, %v15031_v35  ;;  %v9127_v20 = vpop.eup %9126  ;;  %2888 = vmatmul.bf16.gmra.mxu0 %v2748_v7  ;;  %v3640_v59 = vmax.f32 %v3340_v40, %v3519_v49  ;;  %v3818_v53 = vrot.slane %v14932_v14, 2  ;;  %v8039_v16 = vpack.c.bf16 %v7991_v52, %v7991_v52 }
 0x45d   : > { %v3638_v0 = vmax.f32 %v17512_v22, %v3518_v58  ;;  %v8038_v3 = vpack.c.bf16 %v7990_v32, %v7990_v32  ;;  %v8567_v54 = vadd.f32 1.0, %v9127_v20  ;;  %v8504_v18 = vmul.f32 0.5, %v15058_v41 }
 0x45e   : > { %v8040_v47 = vpack.c.bf16 %v7992_v15, %v7992_v15  ;;  %v3819_v21 = vrot.slane %v14939_v6, 2  ;;  %v4100_v19 = vunpack.c.l.bf16 %v4020_v51  ;;  %v8184_v37 = vrot.slane %v8039_v16, 7 }
 0x45f   : > { %v3938_v23 = vmax.f32 %v3638_v0, %v3818_v53  ;;  %v8976_v44 = vrot.slane %v8038_v3, 11  ;;  %v8599_v4 = vmul.f32 0.5, %v8567_v54  ;;  %9128 = vtanh.f32 %v8504_v18  ;;  %v6679_v3 = vld [vmem:[#allocation2 + $0x164] sm:$0x1]  ;;  %v2851_v54 = vpop.f32.mrf.mxu0  ;;  %v3084_v18 = vpop.f32.mrf.mxu1 }
 0x460   : > { %v8187_v5 = vrot.slane %v8040_v47, 7  ;;  %v3820_v49 = vsel %vm893_vm1, %v3818_v53, %v3819_v21  ;;  %v3940_v28 = vmax.f32 %v3640_v59, %v3819_v21  ;;  %v4216_v10 = vrot.slane %v14932_v14, 3  ;;  %v15088_v53 = vld [vmem:[#allocation2 + $0x158] sm:$0x8] }
 0x461   : > { %v8185_v56 = vsel %vm11740_vm6, %v8976_v44, %v8184_v37  ;;  %v8186_v42 = vrot.slane %v8184_v37, 4  ;;  %v8631_v63 = vmul.f32 %v8599_v4, %v14998_v34  ;;  %v3939_v61 = vmax.f32 %v3639_v12, %v3820_v49  ;;  %v17514_v44 = vld [vmem:[#allocation58_spill] sm:$0xff] }
 0x462   : > { %v8250_v27 = vunpack.c.l.b16 %v8185_v56  ;;  %v4217_v40 = vrot.slane %v14939_v6, 3  ;;  %v4219_v25 = vrot.slane %v4100_v19, 3  ;;  %v4338_v30 = vmax.f32 %v3938_v23, %v4216_v10  ;;  %v17515_v4 = vld [vmem:[#allocation54_spill] sm:$0xff] }
 0x463   : > { %v8188_v29 = vsel %vm11740_vm6, %v8186_v42, %v8187_v5  ;;  %8663 = vst [vmem:[%s14269_s25 + $0x40] sm:$0xff] %v8631_v63  ;;  %v4500_v7 = vunpack.c.l.bf16 %v4420_v39  ;;  %v4617_v14 = vrot.slane %v14939_v6, 4  ;;  %v4619_v58 = vrot.slane %v4100_v19, 4  ;;  %v5711_v5 = vpop.f32.mrf.mxu2 }
 0x464   : > { %v8251_v50 = vunpack.c.l.b16 %v8188_v29  ;;  %v4218_v32 = vsel %vm1254_vm2, %v4216_v10, %v4217_v40  ;;  %v4220_v52 = vsel %vm1254_vm2, %v4217_v40, %v4219_v25  ;;  %v4897_v34 = vmax.f32 %v14368_v31, %v14562_v45 }
 0x465   : > { %v4339_v43 = vmax.f32 %v3939_v61, %v4218_v32  ;;  %v4340_v15 = vmax.f32 %v3940_v28, %v4220_v52  ;;  %v4616_v51 = vrot.slane %v4500_v7, 4  ;;  %v4620_v20 = vsel %vm1655_vm3, %v4617_v14, %v4619_v58  ;;  %v9129_v22 = vpop.eup %9128  ;;  %v17516_v28 = vld [vmem:[#allocation93_spill] sm:$0xff]  ;;  %v5917_v7 = vld [vmem:[#allocation2 + $0x170] sm:$0xff]  }
 0x466   : > { %v8270_v0 = vpack.c.b16 %v8251_v50, %v8250_v27  ;;  %v4898_v12 = vmax.f32 %v14370_v26, %v14564_v2  ;;  %v4899_v6 = vmax.f32 %v14358_v38, %v14566_v57  ;;  %v5044_v59 = vmax.f32 %v4897_v34, %v14827_v48  ;;  %v17513_v2 = vld [vmem:[#allocation15_spill] sm:$0xff] }
 0x467   : > { %v8568_v16 = vadd.f32 1.0, %v9129_v22  ;;  %v4618_v31 = vsel %vm1655_vm3, %v4616_v51, %v4617_v14  ;;  %v4738_v45 = vmax.f32 %v4338_v30, %v4616_v51  ;;  %v4740_v47 = vmax.f32 %v4340_v15, %v4620_v20  ;;  %v17518_v30 = vld [vmem:[#allocation17_spill] sm:$0xff] }
 0x468   : > { %v4739_v21 = vmax.f32 %v4339_v43, %v4618_v31  ;;  %v5045_v23 = vmax.f32 %v4898_v12, %v14829_v36  ;;  %v5046_v26 = vmax.f32 %v4899_v6, %v14821_v60  ;;  %v5191_v38 = vmax.f32 %v5044_v59, %v17513_v2  ;;  %v17517_v36 = vld [vmem:[#allocation71_spill] sm:$0xff]  ;;  %v5916_v43 = vld [vmem:[#allocation2 + $0x16c] sm:$0x8] }
 0x469   : > { %8406 = vmatmul.bf16.gmra.mxu3 %v8270_v0  ;;  %v8600_v57 = vmul.f32 0.5, %v8568_v16  ;;  %v5993_v48 = vunpack.c.l.bf16 %v15088_v53  ;;  %v6759_v19 = vunpack.c.l.bf16 %v6679_v3  ;;  %v7552_v37 = vmax.f32 %v17514_v44, %v14708_v33  ;;  %v5918_v16 = vld [vmem:[#allocation2 + $0x174] sm:$0x7]  ;;  %v7080_v44 = vld [vmem:[#allocation2 + $0x170] sm:$0xe] }
 0x46a   : > { %v5192_v49 = vmax.f32 %v5045_v23, %v17515_v4  ;;  %v5193_v10 = vmax.f32 %v5046_v26, %v17516_v28  ;;  %v5338_v39 = vmax.f32 %v5191_v38, %v4738_v45  ;;  %v7553_v56 = vmax.f32 %v17517_v36, %v14710_v11  ;;  %v6680_v26 = vld [vmem:[#allocation2 + $0x178] sm:$0x1] }
 0x46b   : > { %v15102_v60 = vadd.f32 %v5711_v5, %v15034_v55  ;;  %v8632_v42 = vmul.f32 %v8600_v57, %v15058_v41  ;;  %v15105_v63 = vadd.f32 %v3084_v18, %v2851_v54  ;;  %v15109_v61 = vrot.slane %v5993_v48, 1 }
 0x46c   : > { %v5339_v27 = vmax.f32 %v5192_v49, %v4739_v21  ;;  %v5340_v40 = vmax.f32 %v5193_v10, %v4740_v47  ;;  %v5386_v25 = vpack.c.bf16 %v5338_v39, %v5338_v39  ;;  %v7554_v29 = vmax.f32 %v17518_v30, %v14705_v62  ;;  %v8372_v30 = vpop.f32.mrf.mxu3 }
 0x46d   : > { %8664 = vst [vmem:[%s14269_s25 + $0x48] sm:$0xff] %v8632_v42  ;;  %v15115_v14 = vmax.f32 %v7552_v37, %v14970_v8  ;;  %v15118_v55 = vmax.f32 %v7553_v56, %v14972_v17  ;;  %v5997_v41 = vunpack.c.l.bf16 %v5917_v7  ;;  %v15120_v58 = vunpack.c.h.bf16 %v5917_v7 }
 0x46e   : > { %v5387_v50 = vpack.c.bf16 %v5339_v27, %v5339_v27  ;;  %v5388_v32 = vpack.c.bf16 %v5340_v40, %v5340_v40  ;;  %v8931_v52 = vrot.slane %v5386_v25, 11  ;;  %v15122_v34 = vrot.slane %v6759_v19, 3  ;;  %v5713_v25 = vpop.f32.mrf.mxu2 }
 0x46f   : > { %v15124_v15 = vrot.slane %v6759_v19, 4  ;;  %v15127_v51 = vmax.f32 %v7554_v29, %v14966_v1  ;;  %v5996_v20 = vunpack.c.l.bf16 %v5916_v43  ;;  %v6173_v22 = vrot.slane %v5997_v41, 1  ;;  %v17519_v29 = vld [vmem:[#allocation94_spill] sm:$0xff] }
 0x470   : > { %v5544_v0 = vrot.slane %v5387_v50, 7  ;;  %v5547_v12 = vrot.slane %v5388_v32, 7  ;;  %v7846_v6 = vmax.f32 %v15115_v14, %v15027_v9  ;;  %v6175_v59 = vrot.slane %v15120_v58, 1  ;;  %v17520_v50 = vld [vmem:[#allocation83_spill] sm:$0xff] }
 0x471   : > { %v7847_v3 = vmax.f32 %v15118_v55, %v15029_v24  ;;  %v6172_v31 = vrot.slane %v5996_v20, 1  ;;  %v6476_v45 = vrot.slane %v5997_v41, 2  ;;  %v6477_v47 = vrot.slane %v15120_v58, 2 }
 0x472   : > { %v15137_v54 = vsel %vm11740_vm6, %v8931_v52, %v5544_v0  ;;  %v5546_v18 = vrot.slane %v5544_v0, 4  ;;  %v5998_v21 = vunpack.c.l.bf16 %v5918_v16  ;;  %v6176_v23 = vsel %vm552_vm0, %v6173_v22, %v6175_v59  ;;  %v17521_v52 = vld [vmem:[#allocation55_spill] sm:$0xff]  ;;  %v2854_v0 = vpop.f32.mrf.mxu0 }
 0x473   : > { %5860 = vst [vmem:[#allocation2 + $0x15c] sm:$0xf] %v15137_v54  ;;  %v6174_v2 = vsel %vm552_vm0, %v6172_v31, %v6173_v22  ;;  %v6297_v38 = vmax.f32 %v5997_v41, %v6176_v23  ;;  %v6478_v57 = vsel %vm893_vm1, %v6476_v45, %v6477_v47  ;;  %v6760_v19 = vunpack.c.l.bf16 %v6680_v26 }
 0x474   : > { %v15145_v37 = vsel %vm11740_vm6, %v5546_v18, %v5547_v12  ;;  %v6296_v5 = vmax.f32 %v5996_v20, %v6174_v2  ;;  %v6298_v4 = vmax.f32 %v5998_v21, %v6175_v59  ;;  %v6872_v49 = vrot.slane %v5997_v41, 3  ;;  %v9032_v20 = vld [vmem:[%s9454_s30 + $0x70] sm:$0xff]  ;;  %v3087_v12 = vpop.f32.mrf.mxu1 }
 0x475   : > { %5861 = vst [vmem:[#allocation2 + $0x160] sm:$0xf] %v15145_v37  ;;  %v7848_v28 = vmax.f32 %v15127_v51, %v15031_v35  ;;  %v6597_v10 = vmax.f32 %v6297_v38, %v6478_v57  ;;  %v6873_v39 = vrot.slane %v15120_v58, 3  ;;  %v6875_v36 = vrot.slane %v6760_v19, 3  ;;  %3126 = vmatmul.bf16.gmra.mxu1 %v9032_v20 }
 0x476   : > { %v6596_v56 = vmax.f32 %v6296_v5, %v6476_v45  ;;  %v15151_v42 = vmax.f32 %v6298_v4, %v6477_v47  ;;  %v7160_v27 = vunpack.c.l.bf16 %v7080_v44  ;;  %v7273_v40 = vrot.slane %v15120_v58, 4 }
 0x477   : > { %v5593_v7 = vunpack.c.l.b16 %v17519_v29  ;;  %v5594_v41 = vunpack.c.l.b16 %v14955_v46  ;;  %v2731_v32 = vunpack.c.l.b16 %v17520_v50  ;;  %v2732_v43 = vunpack.c.l.b16 %v17521_v52  ;;  %v5716_v50 = vpop.f32.mrf.mxu2 }
 0x478   : > { %v8437_v22 = vadd.f32 %v8372_v30, %v15102_v60  ;;  %v6874_v59 = vsel %vm1254_vm2, %v6872_v49, %v6873_v39  ;;  %v15162_v16 = vsel %vm1254_vm2, %v6873_v39, %v6875_v36  ;;  %v7555_v58 = vmax.f32 %v14708_v33, %v14970_v8  ;;  %v15170_v60 = vld [vmem:[%s15386_s2] ss:$0 sm:$0xff] }
 0x479   : > { %v5777_v31 = vadd.f32 %v5713_v25, %v15105_v63  ;;  %v5611_v46 = vpack.c.b16 %v5594_v41, %v5593_v7  ;;  %v2749_v45 = vpack.c.b16 %v2732_v43, %v2731_v32  ;;  %v6996_v47 = vmax.f32 %v6596_v56, %v6872_v49  ;;  %v8374_v32 = vpop.f32.mrf.mxu3 }
 0x47a   : > { %v7079_v18 = vld [vmem:[#allocation2 + $0x15c] sm:$0xe]  ;;  %v15173_v21 = vadd.f32 %v15170_v60, %v8437_v22  ;;  %v3088_v23 = vadd.f32 %v3087_v12, %v2854_v0  ;;  %v6997_v26 = vmax.f32 %v6597_v10, %v6874_v59  ;;  %v7272_v2 = vrot.slane %v7160_v27, 4  ;;  %v2856_v20 = vpop.f32.mrf.mxu0 }
 0x47b   : > { %v7159_v38 = vunpack.c.l.bf16 %v7079_v18  ;;  %5755 = vmatmul.bf16.gmra.mxu2 %v5611_v46  ;;  %2893 = vmatmul.bf16.gmra.mxu0 %v2749_v45  ;;  %v6998_v33 = vmax.f32 %v15151_v42, %v15162_v16  ;;  %v7275_v63 = vrot.slane %v6760_v19, 4  ;;  %v7556_v57 = vmax.f32 %v14710_v11, %v14972_v17 }
 0x47c   : > { %v5914_v44 = vld [vmem:[#allocation2 + $0x15c] sm:$0xff]   ;;  %v8505_v4 = vmul.f32 0.5, %v15173_v21  ;;  %v7274_v49 = vsel %vm1655_vm3, %v7272_v2, %v7273_v40  ;;  %v15181_v39 = vmax.f32 %v6996_v47, %v7272_v2  ;;  %v7557_v10 = vmax.f32 %v14705_v62, %v14966_v1  ;;  %v3089_v22 = vpop.f32.mrf.mxu1 }
 0x47d   : > { %v5915_v5 = vld [vmem:[#allocation2 + $0x160] sm:$0x7]  ;;  %v5994_v36 = vunpack.c.l.bf16 %v5914_v44  ;;  %v6019_v27 = vunpack.c.h.bf16 %v5914_v44  ;;  %v15186_v42 = vmax.f32 %v7555_v58, %v15027_v9  ;;  %v7267_v19 = vrot.slane %v7159_v38, 4 }
 0x47e   : > { %v5995_v56 = vunpack.c.l.bf16 %v5915_v5  ;;  %9130 = vtanh.f32 %v8505_v4  ;;  %v7276_v11 = vsel %vm1655_vm3, %v7273_v40, %v7275_v63  ;;  %v15189_v25 = vmax.f32 %v6997_v26, %v7274_v49  ;;  %v15206_v5 = vld [vmem:[#allocation2 + $0x184] sm:$0xff]  }
 0x47f   : > { %v6168_v30 = vrot.slane %v5994_v36, 1  ;;  %v6170_v29 = vrot.slane %v6019_v27, 1  ;;  %v6473_v7 = vrot.slane %v5994_v36, 2  ;;  %v6474_v41 = vrot.slane %v6019_v27, 2 }
 0x480   : > { %v6867_v52 = vrot.slane %v5994_v36, 3  ;;  %v6868_v62 = vrot.slane %v6019_v27, 3  ;;  %v7268_v43 = vrot.slane %v6019_v27, 4  ;;  %v7703_v0 = vmax.f32 %v7556_v57, %v15029_v24 }
 0x481   : > { %v6169_v12 = vsel %vm552_vm0, %v15109_v61, %v6168_v30  ;;  %v6171_v40 = vsel %vm552_vm0, %v6168_v30, %v6170_v29  ;;  %v6295_v59 = vmax.f32 %v5995_v56, %v6170_v29  ;;  %v6475_v16 = vsel %vm893_vm1, %v6473_v7, %v6474_v41  ;;  %v15202_v61 = vld [vmem:[#allocation2 + $0x180] sm:$0x8] }
 0x482   : > { %v6293_v58 = vmax.f32 %v5993_v48, %v6169_v12  ;;  %v6294_v46 = vmax.f32 %v5994_v36, %v6171_v40  ;;  %v6871_v45 = vsel %vm1254_vm2, %v6868_v62, %v15122_v34  ;;  %v5778_v47 = vadd.f32 %v5716_v50, %v3088_v23  ;;  %v9033_v50 = vld [vmem:[%s9454_s30 + $0x78] sm:$0xff]  ;;  %s9066_s30 = sshll.u32 %s9284_s16, 8 }
 0x483   : > { %v6595_v18 = vmax.f32 %v6295_v59, %v6474_v41  ;;  %v6869_v26 = vsel %vm1254_vm2, %v6867_v52, %v6868_v62  ;;  %v7269_v2 = vsel %vm1655_vm3, %v7267_v19, %v7268_v43  ;;  %v8438_v38 = vadd.f32 %v8374_v32, %v5777_v31  ;;  %v8377_v41 = vpop.f32.mrf.mxu3  ;;  %s8699_s6 = scalar_lea.hbm %s15387_s3, %s9066_s30 }
 0x484   : > { %v9131_v63 = vpop.eup %9130  ;;  %v6593_v57 = vmax.f32 %v6293_v58, %v6473_v7  ;;  %v6594_v44 = vmax.f32 %v6294_v46, %v6475_v16  ;;  %v7271_v53 = vsel %vm1655_vm3, %v7268_v43, %v15124_v15  ;;  %v3090_v48 = vadd.f32 %v3089_v22, %v2856_v20  ;;  %v5718_v7 = vpop.f32.mrf.mxu2  ;;  %s8702_s8 = sshll.u32 %s8699_s6, 4  ;;  %s8703_s8 = int_to_ptr.hbm [resolvable:$true] %s8702_s8 }
 0x485   : > { %v6995_v34 = vmax.f32 %v6595_v18, %v6871_v45  ;;  %v8569_v23 = vadd.f32 1.0, %v9131_v63  ;;  %v15209_v4 = vadd.f32 %v15170_v60, %v8438_v38  ;;  %v7704_v49 = vmax.f32 %v7557_v10, %v15031_v35  ;;  %v3092_v43 = vpop.f32.mrf.mxu1  ;;  %3131 = vmatmul.bf16.gmra.mxu1 %v9033_v50  ;;  %s9190_s10 = sshra.s32 %s8703_s8, 4  ;;  %s9191_s10 = int_to_ptr.hbm [resolvable:$true] %s9190_s10 }
 0x486   : > { %v6993_v31 = vmax.f32 %v6593_v57, %v6867_v52  ;;  %v6994_v36 = vmax.f32 %v6594_v44, %v6869_v26  ;;  %v15212_v56 = vmax.f32 %v6998_v33, %v7276_v11  ;;  %v5999_v27 = vunpack.c.l.bf16 %v15202_v61  ;;  %v2859_v52 = vpop.f32.mrf.mxu0  ;;  %v17522_v57 = vld [vmem:[#allocation91_spill] sm:$0xff]  ;;  %s9192_s16 = scalar_lea.hbm %s9191_s10, 256  ;;  %p9197_p0 = scmp.lt.s32.totalorder %s9191_s10, %s15387_s3 }
 0x487   : > { %v15215_v30 = vmax.f32 %v6995_v34, %v7271_v53  ;;  %v8601_v15 = vmul.f32 0.5, %v8569_v23  ;;  %v8506_v29 = vmul.f32 0.5, %v15209_v4  ;;  %v15220_v32 = vunpack.c.l.bf16 %v15206_v5  ;;  %p9193_p11 = scmp.ne.s32.totalorder %s9191_s10, %s9192_s16  ;;  %p9198_p1 = scmp.lt.s32.totalorder %s9196_s19, %s9192_s16 }
 0x488   : > { %v15222_v62 = vmax.f32 %v6993_v31, %v7267_v19  ;;  %v15224_v10 = vmax.f32 %v6994_v36, %v7269_v2  ;;  %v8439_v33 = vadd.f32 %v8377_v41, %v5778_v47  ;;  %v5595_v11 = vunpack.c.l.b16 %v15137_v54 }
 0x489   : > { %v7995_v20 = vmax.f32 %v7848_v28, %v15215_v30  ;;  %v8633_v22 = vmul.f32 %v8601_v15, %v15173_v21  ;;  %9132 = vtanh.f32 %v8506_v29  ;;  %v7851_v12 = vmax.f32 %v7704_v49, %v15215_v30  ;;  %p9194_p12 = pnand %p9193_p11, %p9301_p5  ;;  %p9199_p2 = por %p9198_p1, %p9197_p0 }
 0x48a   : > { %v7993_v19 = vmax.f32 %v7846_v6, %v15222_v62  ;;  %v7994_v54 = vmax.f32 %v7847_v3, %v15224_v10  ;;  %v7849_v51 = vmax.f32 %v15186_v42, %v15222_v62  ;;  %v7850_v28 = vmax.f32 %v7703_v0, %v15224_v10 }
 0x48b   : > { %v8043_v21 = vpack.c.bf16 %v7995_v20, %v7995_v20  ;;  %8665 = vst [vmem:[%s14269_s25 + $0x50] sm:$0xff] %v8633_v22  ;;  %v7998_v40 = vmax.f32 %v7851_v12, %v15212_v56  ;;  %v15247_v59 = vadd.f32 %v15170_v60, %v8439_v33  ;;  %v5596_v14 = vunpack.c.l.b16 %v15145_v37  ;;  %v8379_v53 = vpop.f32.mrf.mxu3  ;;  %v17523_v33 = vld [vmem:[#allocation64_spill] sm:$0xff]  ;;  %p9195_p13 = pneg %p9194_p12 }
 0x48c   : > { %v8041_v6 = vpack.c.bf16 %v7993_v19, %v7993_v19  ;;  %v8042_v16 = vpack.c.bf16 %v7994_v54, %v7994_v54  ;;  %v7996_v58 = vmax.f32 %v7849_v51, %v15181_v39  ;;  %v7997_v55 = vmax.f32 %v7850_v28, %v15189_v25  ;;  %v5721_v63 = vpop.f32.mrf.mxu2 }
 0x48d   : > { %v8194_v3 = vrot.slane %v8043_v21, 7  ;;  %v8046_v46 = vpack.c.bf16 %v7998_v40, %v7998_v40  ;;  %v8507_v42 = vmul.f32 0.5, %v15247_v59  ;;  %v5612_v0 = vpack.c.b16 %v5596_v14, %v5595_v11  ;;  %v3094_v15 = vpop.f32.mrf.mxu1  ;;  %v6681_v14 = vld [vmem:[#allocation2 + $0x18c] sm:$0x1]  ;;  %p9200_p3 = pnand %p9199_p2, %p9195_p13 }
 0x48e   : > { %v8977_v45 = vrot.slane %v8041_v6, 11  ;;  %v8191_v47 = vrot.slane %v8042_v16, 7  ;;  %v8044_v18 = vpack.c.bf16 %v7996_v58, %v7996_v58  ;;  %v8045_v26 = vpack.c.bf16 %v7997_v55, %v7997_v55  ;;  %v2861_v36 = vpop.f32.mrf.mxu0 }
 0x48f   : > { %v9133_v2 = vpop.eup %9132  ;;  %v5779_v38 = vadd.f32 %v5718_v7, %v3090_v48  ;;  %9134 = vtanh.f32 %v8507_v42  ;;  %5760 = vmatmul.bf16.gmra.mxu2 %v5612_v0  ;;  %v3093_v37 = vadd.f32 %v3092_v43, %v2859_v52  ;;  %v2733_v44 = vunpack.c.l.b16 %v17522_v57  ;;  %v5921_v7 = vld [vmem:[#allocation2 + $0x188] sm:$0x7]  ;;  %v7081_v57 = vld [vmem:[#allocation2 + $0x184] sm:$0xe] }
 0x490   : > { %v8192_v34 = vsel %vm11740_vm6, %v8977_v45, %v8191_v47  ;;  %v8193_v23 = vrot.slane %v8191_v47, 4  ;;  %v8570_v49 = vadd.f32 1.0, %v9133_v2  ;;  %v8978_v31 = vrot.slane %v8044_v18, 11 }
 0x491   : > { %v8252_v29 = vunpack.c.l.b16 %v8192_v34  ;;  %v8198_v41 = vrot.slane %v8045_v26, 7  ;;  %v8201_v50 = vrot.slane %v8046_v46, 7  ;;  %v2734_v48 = vunpack.c.l.b16 %v17523_v33 }
 0x492   : > { %v8195_v11 = vsel %vm11740_vm6, %v8193_v23, %v8194_v3  ;;  %v8602_v52 = vmul.f32 0.5, %v8570_v49  ;;  %v15259_v43 = vadd.f32 %v5721_v63, %v3093_v37  ;;  %v8440_v20 = vadd.f32 %v8379_v53, %v5779_v38 }
 0x493   : > { %v8253_v22 = vunpack.c.l.b16 %v8195_v11  ;;  %v8199_v12 = vsel %vm11740_vm6, %v8978_v31, %v8198_v41  ;;  %v8200_v19 = vrot.slane %v8198_v41, 4  ;;  %v2750_v54 = vpack.c.b16 %v2734_v48, %v2733_v44  ;;  %v8382_v38 = vpop.f32.mrf.mxu3 }
 0x494   : > { %v8634_v51 = vmul.f32 %v8602_v52, %v15209_v4  ;;  %v15265_v28 = vadd.f32 %v15170_v60, %v8440_v20  ;;  %v15267_v21 = vadd.f32 %v3094_v15, %v2861_v36  ;;  %v6001_v40 = vunpack.c.l.bf16 %v5921_v7  ;;  %v5723_v2 = vpop.f32.mrf.mxu2 }
 0x495   : > { %v9135_v6 = vpop.eup %9134  ;;  %v8271_v16 = vpack.c.b16 %v8253_v22, %v8252_v29  ;;  %v15271_v58 = vsel %vm11740_vm6, %v8200_v19, %v8201_v50  ;;  %2898 = vmatmul.bf16.gmra.mxu0 %v2750_v54  ;;  %v6021_v55 = vunpack.c.h.bf16 %v15206_v5  ;;  %v6177_v3 = vrot.slane %v5999_v27, 1  ;;  %v3097_v53 = vpop.f32.mrf.mxu1 }
 0x496   : > { %8666 = vst [vmem:[%s14269_s25 + $0x58] sm:$0xff] %v8634_v51  ;;  %v8254_v4 = vunpack.c.l.b16 %v8199_v12  ;;  %v8571_v46 = vadd.f32 1.0, %v9135_v6  ;;  %v8508_v42 = vmul.f32 0.5, %v15265_v28  ;;  %v6178_v0 = vrot.slane %v15220_v32, 1  ;;  %v2864_v44 = vpop.f32.mrf.mxu0 }
 0x497   : > { %8411 = vmatmul.bf16.gmra.mxu3 %v8271_v16  ;;  %v6180_v45 = vrot.slane %v6021_v55, 1  ;;  %v6479_v47 = vrot.slane %v15220_v32, 2  ;;  %v6480_v18 = vrot.slane %v6021_v55, 2  ;;  %v6761_v26 = vunpack.c.l.bf16 %v6681_v14 }
 0x498   : > { %v8255_v5 = vunpack.c.l.b16 %v15271_v58  ;;  %v8603_v37 = vmul.f32 0.5, %v8571_v46  ;;  %9136 = vtanh.f32 %v8508_v42  ;;  %v6179_v63 = vsel %vm552_vm0, %v6177_v3, %v6178_v0 }
 0x499   : > { %v6181_v34 = vsel %vm552_vm0, %v6178_v0, %v6180_v45  ;;  %v6299_v23 = vmax.f32 %v5999_v27, %v6179_v63  ;;  %v6301_v49 = vmax.f32 %v6001_v40, %v6180_v45  ;;  %v6481_v31 = vsel %vm893_vm1, %v6479_v47, %v6480_v18 }
 0x49a   : > { %v8635_v36 = vmul.f32 %v8603_v37, %v15247_v59  ;;  %v6300_v15 = vmax.f32 %v15220_v32, %v6181_v34  ;;  %v6877_v29 = vrot.slane %v15220_v32, 3  ;;  %v6878_v41 = vrot.slane %v6021_v55, 3 }
 0x49b   : > { %v6599_v50 = vmax.f32 %v6299_v23, %v6479_v47  ;;  %v6601_v33 = vmax.f32 %v6301_v49, %v6480_v18  ;;  %v6880_v48 = vrot.slane %v6761_v26, 3  ;;  %v7161_v7 = vunpack.c.l.bf16 %v7081_v57  ;;  %v8384_v3 = vpop.f32.mrf.mxu3 }
 0x49c   : > { %8667 = vst [vmem:[%s14269_s25 + $0x60] sm:$0xff] %v8635_v36  ;;  %v6600_v11 = vmax.f32 %v6300_v15, %v6481_v31  ;;  %v6879_v52 = vsel %vm1254_vm2, %v6877_v29, %v6878_v41  ;;  %v7278_v61 = vrot.slane %v6021_v55, 4  ;;  %v7280_v27 = vrot.slane %v6761_v26, 4  ;;  %v5726_v55 = vpop.f32.mrf.mxu2 }
 0x49d   : > { %v6881_v20 = vsel %vm1254_vm2, %v6878_v41, %v6880_v48  ;;  %v6999_v22 = vmax.f32 %v6599_v50, %v6877_v29  ;;  %v7277_v12 = vrot.slane %v7161_v7, 4  ;;  %v7558_v59 = vmax.f32 %v14970_v8, %v15027_v9  ;;  %v3099_v45 = vpop.f32.mrf.mxu1 }
 0x49e   : > { %v9137_v19 = vpop.eup %9136  ;;  %v7000_v32 = vmax.f32 %v6600_v11, %v6879_v52  ;;  %v7001_v54 = vmax.f32 %v6601_v33, %v6881_v20  ;;  %v7281_v51 = vsel %vm1655_vm3, %v7278_v61, %v7280_v27  ;;  %v7559_v40 = vmax.f32 %v14972_v17, %v15029_v24  ;;  %v2866_v0 = vpop.f32.mrf.mxu0 }
 0x49f   : > { %v8572_v14 = vadd.f32 1.0, %v9137_v19  ;;  %v7279_v6 = vsel %vm1655_vm3, %v7277_v12, %v7278_v61  ;;  %v7399_v16 = vmax.f32 %v6999_v22, %v7277_v12  ;;  %v7560_v58 = vmax.f32 %v14966_v1, %v15031_v35 }
 0x4a0   : > { %v7400_v46 = vmax.f32 %v7000_v32, %v7279_v6  ;;  %v7401_v42 = vmax.f32 %v7001_v54, %v7281_v51  ;;  %v7705_v8 = vmax.f32 %v7558_v59, %v15222_v62  ;;  %v7706_v9 = vmax.f32 %v7559_v40, %v15224_v10 }
 0x4a1   : > { %v8604_v47 = vmul.f32 0.5, %v8572_v14  ;;  %v7707_v17 = vmax.f32 %v7560_v58, %v15215_v30  ;;  %v5781_v24 = vadd.f32 %v5723_v2, %v15267_v21  ;;  %v8441_v18 = vadd.f32 %v8382_v38, %v15259_v43 }
 0x4a2   : > { %v8272_v26 = vpack.c.b16 %v8255_v5, %v8254_v4  ;;  %v7852_v1 = vmax.f32 %v7705_v8, %v15181_v39  ;;  %v7853_v35 = vmax.f32 %v7706_v9, %v15189_v25  ;;  %v3098_v37 = vadd.f32 %v3097_v53, %v2864_v44 }
 0x4a3   : > { %v8636_v62 = vmul.f32 %v8604_v47, %v15265_v28  ;;  %v7854_v10 = vmax.f32 %v7707_v17, %v15212_v56  ;;  %v8477_v63 = vadd.f32 %v15170_v60, %v8441_v18  ;;  %v8442_v57 = vadd.f32 %v8384_v3, %v5781_v24  ;;  %v8387_v5 = vpop.f32.mrf.mxu3 }
 0x4a4   : > { %v7999_v34 = vmax.f32 %v7852_v1, %v7399_v16  ;;  %v8000_v23 = vmax.f32 %v7853_v35, %v7400_v46  ;;  %v5782_v30 = vadd.f32 %v5726_v55, %v3098_v37  ;;  %v5728_v28 = vpop.f32.mrf.mxu2  ;;  %v3100_v29 = vadd.f32 %v3099_v45, %v2866_v0 }
 0x4a5   : > { %8668 = vst [vmem:[%s14269_s25 + $0x68] sm:$0xff] %v8636_v62  ;;  %v8001_v21 = vmax.f32 %v7854_v10, %v7401_v42  ;;  %v8509_v2 = vmul.f32 0.5, %v8477_v63  ;;  %v8478_v43 = vadd.f32 %v15170_v60, %v8442_v57  ;;  %v3102_v31 = vpop.f32.mrf.mxu1 }
 0x4a6   : > { %v8047_v4 = vpack.c.bf16 %v7999_v34, %v7999_v34  ;;  %v8048_v39 = vpack.c.bf16 %v8000_v23, %v8000_v23  ;;  %v8443_v53 = vadd.f32 %v8387_v5, %v5782_v30  ;;  %v2869_v49 = vpop.f32.mrf.mxu0  ;;  %v5783_v52 = vadd.f32 %v5728_v28, %v3100_v29 }
 0x4a7   : > { %8416 = vmatmul.bf16.gmra.mxu3 %v8272_v26  ;;  %v8049_v25 = vpack.c.bf16 %v8001_v21, %v8001_v21  ;;  %9138 = vtanh.f32 %v8509_v2  ;;  %v8510_v38 = vmul.f32 0.5, %v8478_v43  ;;  %v3103_v32 = vadd.f32 %v3102_v31, %v2869_v49 }
 0x4a8   : > { %v8979_v56 = vrot.slane %v8047_v4, 11  ;;  %v8205_v44 = vrot.slane %v8048_v39, 7  ;;  %v8479_v41 = vadd.f32 %v15170_v60, %v8443_v53 }
 0x4a9   : > { %v8208_v36 = vrot.slane %v8049_v25, 7  ;;  %9140 = vtanh.f32 %v8510_v38 }
 0x4aa   : > { %v8207_v15 = vrot.slane %v8205_v44, 4  ;;  %v8206_v50 = vsel %vm11740_vm6, %v8979_v56, %v8205_v44  ;;  %v8511_v48 = vmul.f32 0.5, %v8479_v41 }
 0x4ab   : > { %v8256_v27 = vunpack.c.l.b16 %v8206_v50  ;;  %v8389_v12 = vpop.f32.mrf.mxu3 }
 0x4ac   : > { %v8209_v33 = vsel %vm11740_vm6, %v8207_v15, %v8208_v36  ;;  %9142 = vtanh.f32 %v8511_v48  ;;  %v5731_v22 = vpop.f32.mrf.mxu2  ;;  %v8444_v54 = vadd.f32 %v8389_v12, %v5783_v52 }
 0x4ad   : > { %v9139_v7 = vpop.eup %9138  ;;  %v8257_v20 = vunpack.c.l.b16 %v8209_v33  ;;  %v3104_v40 = vpop.f32.mrf.mxu1  ;;  %v5784_v3 = vadd.f32 %v5731_v22, %v3103_v32 }
 0x4ae   : > { %v8573_v11 = vadd.f32 1.0, %v9139_v7  ;;  %v2871_v51 = vpop.f32.mrf.mxu0  ;;  %v8480_v6 = vadd.f32 %v15170_v60, %v8444_v54 }
 0x4af   : > { %v9141_v61 = vpop.eup %9140  ;;  %v8273_v16 = vpack.c.b16 %v8257_v20, %v8256_v27  ;;  %v3105_v18 = vadd.f32 %v3104_v40, %v2871_v51 }
 0x4b0   : > { %v8605_v59 = vmul.f32 0.5, %v8573_v11  ;;  %v8574_v19 = vadd.f32 1.0, %v9141_v61  ;;  %v8512_v46 = vmul.f32 0.5, %v8480_v6 }
 0x4b2   : > { %v8637_v13 = vmul.f32 %v8605_v59, %v8477_v63  ;;  %v8606_v14 = vmul.f32 0.5, %v8574_v19  ;;  %v9143_v58 = vpop.eup %9142  ;;  %9144 = vtanh.f32 %v8512_v46 }
 0x4b3   : > { %v8575_v42 = vadd.f32 1.0, %v9143_v58  ;;  %v8392_v0 = vpop.f32.mrf.mxu3 }
 0x4b4   : > { %8669 = vst [vmem:[%s14269_s25 + $0x70] sm:$0xff] %v8637_v13  ;;  %v8638_v55 = vmul.f32 %v8606_v14, %v8478_v43  ;;  %v5733_v9 = vpop.f32.mrf.mxu2  ;;  %v8445_v45 = vadd.f32 %v8392_v0, %v5784_v3 }
 0x4b5   : > { %v8607_v8 = vmul.f32 0.5, %v8575_v42  ;;  %v3107_v24 = vpop.f32.mrf.mxu1  ;;  %v5785_v62 = vadd.f32 %v5733_v9, %v3105_v18 }
 0x4b6   : > { %8670 = vst [vmem:[%s14269_s25 + $0x78] sm:$0xff] %v8638_v55  ;;  %v2874_v47 = vpop.f32.mrf.mxu0  ;;  %v8481_v26 = vadd.f32 %v15170_v60, %v8445_v45 }
 0x4b7   : > { %8421 = vmatmul.bf16.gmra.mxu3 %v8273_v16  ;;  %v8639_v17 = vmul.f32 %v8607_v8, %v8479_v41  ;;  %v3108_v34 = vadd.f32 %v3107_v24, %v2874_v47 }
 0x4b8   : > { %v9145_v1 = vpop.eup %9144  ;;  %v8513_v35 = vmul.f32 0.5, %v8481_v26 }
 0x4b9   : > { %8671 = vst [vmem:[%s14269_s25 + $0x80] sm:$0xff] %v8639_v17  ;;  %v8576_v37 = vadd.f32 1.0, %v9145_v1 }
 0x4ba   : > { %9146 = vtanh.f32 %v8513_v35 }
 0x4bb   : > { %v8608_v10 = vmul.f32 0.5, %v8576_v37  ;;  %v8394_v57 = vpop.f32.mrf.mxu3 }
 0x4bc   : > { %v5736_v63 = vpop.f32.mrf.mxu2  ;;  %v8446_v23 = vadd.f32 %v8394_v57, %v5785_v62 }
 0x4bd   : > { %v8640_v30 = vmul.f32 %v8608_v10, %v8480_v6  ;;  %v3109_v43 = vpop.f32.mrf.mxu1  ;;  %v5786_v39 = vadd.f32 %v5736_v63, %v3108_v34 }
 0x4be   : > { %v8482_v21 = vadd.f32 %v15170_v60, %v8446_v23  ;;  %v2876_v2 = vpop.f32.mrf.mxu0 }
 0x4bf   : > { %8672 = vst [vmem:[%s14269_s25 + $0x88] sm:$0xff] %v8640_v30  ;;  %v3110_v49 = vadd.f32 %v3109_v43, %v2876_v2 }
 0x4c0   : > { %v9147_v4 = vpop.eup %9146  ;;  %v8514_v25 = vmul.f32 0.5, %v8482_v21 }
 0x4c1   : > { %v8577_v38 = vadd.f32 1.0, %v9147_v4 }
 0x4c2   : > { %9148 = vtanh.f32 %v8514_v25 }
 0x4c3   : > { %v8609_v28 = vmul.f32 0.5, %v8577_v38  ;;  %v8397_v56 = vpop.f32.mrf.mxu3 }
 0x4c4   : > { %v5738_v5 = vpop.f32.mrf.mxu2  ;;  %v8447_v44 = vadd.f32 %v8397_v56, %v5786_v39 }
 0x4c5   : > { %v8641_v53 = vmul.f32 %v8609_v28, %v8481_v26  ;;  %v3112_v50 = vpop.f32.mrf.mxu1  ;;  %v5787_v33 = vadd.f32 %v5738_v5, %v3110_v49 }
 0x4c6   : > { %v8483_v31 = vadd.f32 %v15170_v60, %v8447_v44  ;;  %v2879_v29 = vpop.f32.mrf.mxu0 }
 0x4c7   : > { %8673 = vst [vmem:[%s14269_s25 + $0x90] sm:$0xff] %v8641_v53  ;;  %v3113_v22 = vadd.f32 %v3112_v50, %v2879_v29 }
 0x4c8   : > { %v9149_v36 = vpop.eup %9148  ;;  %v8515_v15 = vmul.f32 0.5, %v8483_v31 }
 0x4c9   : > { %v8578_v41 = vadd.f32 1.0, %v9149_v36 }
 0x4ca   : > { %9150 = vtanh.f32 %v8515_v15 }
 0x4cb   : > { %v8610_v48 = vmul.f32 0.5, %v8578_v41  ;;  %v8399_v7 = vpop.f32.mrf.mxu3 }
 0x4cc   : > { %v8448_v11 = vadd.f32 %v8399_v7, %v5787_v33  ;;  %v5741_v61 = vpop.f32.mrf.mxu2 }
 0x4cd   : > { %v8642_v52 = vmul.f32 %v8610_v48, %v8482_v21  ;;  %v3114_v54 = vpop.f32.mrf.mxu1  ;;  %v5788_v51 = vadd.f32 %v5741_v61, %v3113_v22 }
 0x4ce   : > { %v8484_v27 = vadd.f32 %v15170_v60, %v8448_v11  ;;  %v2881_v19 = vpop.f32.mrf.mxu0 }
 0x4cf   : > { %8674 = vst [vmem:[%s14269_s25 + $0x98] sm:$0xff] %v8642_v52  ;;  %v3115_v55 = vadd.f32 %v3114_v54, %v2881_v19 }
 0x4d0   : > { %v9151_v20 = vpop.eup %9150  ;;  %v8516_v12 = vmul.f32 0.5, %v8484_v27 }
 0x4d1   : > { %v8579_v59 = vadd.f32 1.0, %v9151_v20 }
 0x4d2   : > { %9152 = vtanh.f32 %v8516_v12 }
 0x4d3   : > { %v8611_v32 = vmul.f32 0.5, %v8579_v59 }
 0x4d4   : > { %v5743_v13 = vpop.f32.mrf.mxu2 }
 0x4d5   : > { %v8643_v40 = vmul.f32 %v8611_v32, %v8483_v31  ;;  %v3117_v0 = vpop.f32.mrf.mxu1  ;;  %v5789_v45 = vadd.f32 %v5743_v13, %v3115_v55 }
 0x4d6   : > { %v2884_v8 = vpop.f32.mrf.mxu0 }
 0x4d7   : > { %8675 = vst [vmem:[%s14269_s25 + $0xa0] sm:$0xff] %v8643_v40  ;;  %v3118_v17 = vadd.f32 %v3117_v0, %v2884_v8 }
 0x4d8   : > { %v9153_v6 = vpop.eup %9152 }
 0x4d9   : > { %v8580_v58 = vadd.f32 1.0, %v9153_v6 }
 0x4db   : > { %v8612_v46 = vmul.f32 0.5, %v8580_v58 }
 0x4dc   : > { %v8402_v14 = vpop.f32.mrf.mxu3  ;;  %v5746_v18 = vpop.f32.mrf.mxu2 }
 0x4dd   : > { %v8449_v16 = vadd.f32 %v8402_v14, %v5788_v51  ;;  %v8644_v9 = vmul.f32 %v8612_v46, %v8484_v27  ;;  %v5790_v35 = vadd.f32 %v5746_v18, %v3118_v17  ;;  %v3119_v57 = vpop.f32.mrf.mxu1 }
 0x4de   : > { %v2886_v10 = vpop.f32.mrf.mxu0 }
 0x4df   : > { %v8485_v3 = vadd.f32 %v15170_v60, %v8449_v16  ;;  %8676 = vst [vmem:[%s14269_s25 + $0xa8] sm:$0xff] %v8644_v9  ;;  %v3120_v21 = vadd.f32 %v3119_v57, %v2886_v10 }
 0x4e1   : > { %v8517_v42 = vmul.f32 0.5, %v8485_v3 }
 0x4e3   : > { %9154 = vtanh.f32 %v8517_v42 }
 0x4e4   : > { %v8404_v47 = vpop.f32.mrf.mxu3  ;;  %v5748_v43 = vpop.f32.mrf.mxu2 }
 0x4e5   : > { %v8450_v24 = vadd.f32 %v8404_v47, %v5789_v45  ;;  %v5791_v38 = vadd.f32 %v5748_v43, %v3120_v21  ;;  %v3122_v7 = vpop.f32.mrf.mxu1 }
 0x4e6   : > { %v2889_v11 = vpop.f32.mrf.mxu0 }
 0x4e7   : > { %v8486_v26 = vadd.f32 %v15170_v60, %v8450_v24  ;;  %v3123_v20 = vadd.f32 %v3122_v7, %v2889_v11 }
 0x4e9   : > { %v9155_v1 = vpop.eup %9154  ;;  %v8518_v37 = vmul.f32 0.5, %v8486_v26 }
 0x4ea   : > { %v8581_v62 = vadd.f32 1.0, %v9155_v1 }
 0x4eb   : > { %9156 = vtanh.f32 %v8518_v37 }
 0x4ec   : > { %v8613_v63 = vmul.f32 0.5, %v8581_v62  ;;  %v8407_v34 = vpop.f32.mrf.mxu3  ;;  %v5751_v52 = vpop.f32.mrf.mxu2 }
 0x4ed   : > { %v8451_v23 = vadd.f32 %v8407_v34, %v5790_v35  ;;  %v3124_v61 = vpop.f32.mrf.mxu1  ;;  %v5792_v12 = vadd.f32 %v5751_v52, %v3123_v20 }
 0x4ee   : > { %v8645_v30 = vmul.f32 %v8613_v63, %v8485_v3  ;;  %v2891_v27 = vpop.f32.mrf.mxu0 }
 0x4ef   : > { %v8487_v2 = vadd.f32 %v15170_v60, %v8451_v23  ;;  %v3125_v51 = vadd.f32 %v3124_v61, %v2891_v27 }
 0x4f0   : > { %8677 = vst [vmem:[%s14269_s25 + $0xb0] sm:$0xff] %v8645_v30 }
 0x4f1   : > { %v9157_v4 = vpop.eup %9156  ;;  %v8519_v39 = vmul.f32 0.5, %v8487_v2 }
 0x4f2   : > { %v8582_v25 = vadd.f32 1.0, %v9157_v4 }
 0x4f3   : > { %9158 = vtanh.f32 %v8519_v39 }
 0x4f4   : > { %v8614_v28 = vmul.f32 0.5, %v8582_v25  ;;  %v8409_v5 = vpop.f32.mrf.mxu3  ;;  %v5753_v22 = vpop.f32.mrf.mxu2 }
 0x4f5   : > { %v8452_v56 = vadd.f32 %v8409_v5, %v5791_v38  ;;  %v3127_v32 = vpop.f32.mrf.mxu1  ;;  %v5793_v6 = vadd.f32 %v5753_v22, %v3125_v51 }
 0x4f6   : > { %v8646_v44 = vmul.f32 %v8614_v28, %v8486_v26 }
 0x4f7   : > { %v8488_v53 = vadd.f32 %v15170_v60, %v8452_v56 }
 0x4f8   : > { %8678 = vst [vmem:[%s14269_s25 + $0xb8] sm:$0xff] %v8646_v44  ;;  %v2894_v54 = vpop.f32.mrf.mxu0 }
 0x4f9   : > { %v9159_v49 = vpop.eup %9158  ;;  %v8520_v31 = vmul.f32 0.5, %v8488_v53  ;;  %v3128_v58 = vadd.f32 %v3127_v32, %v2894_v54 }
 0x4fa   : > { %v8583_v36 = vadd.f32 1.0, %v9159_v49 }
 0x4fb   : > { %9160 = vtanh.f32 %v8520_v31 }
 0x4fc   : > { %v8615_v15 = vmul.f32 0.5, %v8583_v36 }
 0x4fd   : > { %v3129_v46 = vpop.f32.mrf.mxu1 }
 0x4fe   : > { %v8647_v29 = vmul.f32 %v8615_v15, %v8487_v2  ;;  %v5756_v14 = vpop.f32.mrf.mxu2 }
 0x4ff   : > { %v5794_v9 = vadd.f32 %v5756_v14, %v3128_v58 }
 0x500   : > { %8679 = vst [vmem:[%s14269_s25 + $0xc0] sm:$0xff] %v8647_v29  ;;  %v2896_v42 = vpop.f32.mrf.mxu0 }
 0x501   : > { %v9161_v41 = vpop.eup %9160  ;;  %v3130_v1 = vadd.f32 %v3129_v46, %v2896_v42 }
 0x502   : > { %v8584_v50 = vadd.f32 1.0, %v9161_v41 }
 0x504   : > { %v8616_v33 = vmul.f32 0.5, %v8584_v50 }
 0x505   : > { %v3132_v10 = vpop.f32.mrf.mxu1 }
 0x506   : > { %v8648_v48 = vmul.f32 %v8616_v33, %v8488_v53  ;;  %v5758_v17 = vpop.f32.mrf.mxu2 }
 0x507   : > { %v5795_v34 = vadd.f32 %v5758_v17, %v3130_v1 }
 0x508   : > { %8680 = vst [vmem:[%s14269_s25 + $0xc8] sm:$0xff] %v8648_v48 }
 0x50d   : > { %v3134_v56 = vpop.f32.mrf.mxu1 }
 0x512   : > { %v2899_v57 = vpop.f32.mrf.mxu0  ;;  %v5761_v4 = vpop.f32.mrf.mxu2 }
 0x513   : > { %v3133_v21 = vadd.f32 %v3132_v10, %v2899_v57 }
 0x515   : > { %v5796_v38 = vadd.f32 %v5761_v4, %v3133_v21 }
 0x51a   : > { %v8412_v59 = vpop.f32.mrf.mxu3  ;;  %v2901_v53 = vpop.f32.mrf.mxu0 }
 0x51b   : > { %v8453_v19 = vadd.f32 %v8412_v59, %v5792_v12  ;;  %v3135_v15 = vadd.f32 %v3134_v56, %v2901_v53  ;;  %v5763_v41 = vpop.f32.mrf.mxu2 }
 0x51d   : > { %v8489_v40 = vadd.f32 %v15170_v60, %v8453_v19  ;;  %v5797_v7 = vadd.f32 %v5763_v41, %v3135_v15 }
 0x51f   : > { %v8521_v13 = vmul.f32 0.5, %v8489_v40 }
 0x521   : > { %9162 = vtanh.f32 %v8521_v13 }
 0x522   : > { %v8414_v16 = vpop.f32.mrf.mxu3 }
 0x523   : > { %v8454_v55 = vadd.f32 %v8414_v16, %v5793_v6 }
 0x525   : > { %v8490_v3 = vadd.f32 %v15170_v60, %v8454_v55 }
 0x527   : > { %v9163_v8 = vpop.eup %9162  ;;  %v8522_v0 = vmul.f32 0.5, %v8490_v3 }
 0x528   : > { %v8585_v45 = vadd.f32 1.0, %v9163_v8 }
 0x529   : > { %9164 = vtanh.f32 %v8522_v0 }
 0x52a   : > { %v8617_v47 = vmul.f32 0.5, %v8585_v45  ;;  %v8417_v24 = vpop.f32.mrf.mxu3 }
 0x52b   : > { %v8455_v18 = vadd.f32 %v8417_v24, %v5794_v9 }
 0x52c   : > { %v8649_v26 = vmul.f32 %v8617_v47, %v8489_v40 }
 0x52d   : > { %v8491_v35 = vadd.f32 %v15170_v60, %v8455_v18 }
 0x52e   : > { %8681 = vst [vmem:[%s14269_s25 + $0xd0] sm:$0xff] %v8649_v26 }
 0x52f   : > { %v9165_v37 = vpop.eup %9164  ;;  %v8523_v62 = vmul.f32 0.5, %v8491_v35 }
 0x530   : > { %v8586_v63 = vadd.f32 1.0, %v9165_v37 }
 0x531   : > { %9166 = vtanh.f32 %v8523_v62 }
 0x532   : > { %v8618_v23 = vmul.f32 0.5, %v8586_v63  ;;  %v8419_v30 = vpop.f32.mrf.mxu3 }
 0x533   : > { %v8456_v2 = vadd.f32 %v8419_v30, %v5795_v34 }
 0x534   : > { %v8650_v43 = vmul.f32 %v8618_v23, %v8490_v3 }
 0x535   : > { %v8492_v39 = vadd.f32 %v15170_v60, %v8456_v2 }
 0x536   : > { %8682 = vst [vmem:[%s14269_s25 + $0xd8] sm:$0xff] %v8650_v43 }
 0x537   : > { %v9167_v25 = vpop.eup %9166  ;;  %v8524_v28 = vmul.f32 0.5, %v8492_v39 }
 0x538   : > { %v8587_v5 = vadd.f32 1.0, %v9167_v25 }
 0x539   : > { %9168 = vtanh.f32 %v8524_v28 }
 0x53a   : > { %v8619_v44 = vmul.f32 0.5, %v8587_v5  ;;  %v8422_v49 = vpop.f32.mrf.mxu3 }
 0x53b   : > { %v8457_v31 = vadd.f32 %v8422_v49, %v5796_v38 }
 0x53c   : > { %v8651_v36 = vmul.f32 %v8619_v44, %v8491_v35 }
 0x53d   : > { %v8493_v29 = vadd.f32 %v15170_v60, %v8457_v31 }
 0x53e   : > { %8683 = vst [vmem:[%s14269_s25 + $0xe0] sm:$0xff] %v8651_v36 }
 0x53f   : > { %v9169_v50 = vpop.eup %9168  ;;  %v8525_v33 = vmul.f32 0.5, %v8493_v29 }
 0x540   : > { %v8588_v48 = vadd.f32 1.0, %v9169_v50 }
 0x541   : > { %9170 = vtanh.f32 %v8525_v33 }
 0x542   : > { %v8620_v11 = vmul.f32 0.5, %v8588_v48  ;;  %v8424_v52 = vpop.f32.mrf.mxu3 }
 0x543   : > { %v8458_v61 = vadd.f32 %v8424_v52, %v5797_v7 }
 0x544   : > { %v8652_v27 = vmul.f32 %v8620_v11, %v8492_v39 }
 0x545   : > { %v8494_v20 = vadd.f32 %v15170_v60, %v8458_v61 }
 0x546   : > { %8684 = vst [vmem:[%s14269_s25 + $0xe8] sm:$0xff] %v8652_v27 }
 0x547   : > { %v9171_v22 = vpop.eup %9170  ;;  %v8526_v12 = vmul.f32 0.5, %v8494_v20 }
 0x548   : > { %v8589_v59 = vadd.f32 1.0, %v9171_v22 }
 0x549   : > { %9172 = vtanh.f32 %v8526_v12 }
 0x54a   : > { %v8621_v19 = vmul.f32 0.5, %v8589_v59 }
 0x54c   : > { %v8653_v32 = vmul.f32 %v8621_v19, %v8493_v29 }
 0x54e   : > { %8685 = vst [vmem:[%s14269_s25 + $0xf0] sm:$0xff] %v8653_v32 }
 0x54f   : > { %v9173_v54 = vpop.eup %9172 }
 0x550   : > { %v8590_v51 = vadd.f32 1.0, %v9173_v54 }
 0x552   : > { %v8622_v60 = vmul.f32 0.5, %v8590_v51 }
 0x554   : > { %v8654_v40 = vmul.f32 %v8622_v60, %v8494_v20 }
 0x556   : > { %8686 = vst [vmem:[%s14269_s25 + $0xf8] sm:$0xff] %v8654_v40 }
 0x557   : > { %9203 = shalt.err (!%p9200_p3)
}
 0x558   : > { %s9241_s20 = smov 128   ;;  %s9242_s25 = smov 8  }
 0x559   : > { %9067 = dma.vmem_to_hbm [thread:$0]  (%p9301_p5), %s8701_s7, 4096, %s8703_s8, %s8688_s9, %s9241_s20, %s9241_s20, %s9242_s25  }
 0x55a PF: > { %p9073_p4 = scmp.ge.s32.totalorder %s9238_s15, 2  ;;  %s8717_s27 = sand.u32 1, %s9226_s12  }
 0x55b   : > { %s8718_s28 = scalar_lea.sflag [#allocation4], %s8717_s27 }
 0x55c   : > { %p9070_p7 = pnand %p9073_p4, %p9305_p6 }
 0x55e   : > { %p9071_p8 = pneg %p9070_p7 }
 0x560   : > { %9221 = dma.done.wait (%p9071_p8), %s8718_s28, 4096  }
 0x561   : > { %9223 = vsyncadd (%p9071_p8), %s8718_s28, 4294963200  ;;  %p13_p9 = scmp.ge.s32.totalorder %s9288_s18, 4   ;;  %s17524_s12 = smov %s9230_s13 }
 0x562   : > { %s17525_s13 = smov %s9234_s14  ;;  %s17526_s14 = smov %s9299_s21 }
 0x563   : > { %s17527_s15 = smov %s9288_s18  ;;  %15 = sbr.rel (!%p13_p9) target bundleno = 3 (0x3), region = 69 }
 0x568   :  { %8724 = vsyncpa [#allocation4], 1 }
 0x569   :  { %8726 = vsyncpa [#allocation4 + $0x1], 1 }

</bundles_post_ra>
